<compile_context>
chip_gen: v7x
topology: tpu7x:2x2x1
jax: 0.10.0
libtpu: 0.0.40
codegen_flags: <defaults>
</compile_context>

<pallas_src>
import jax
import jax.numpy as jnp
from jax.experimental import pallas as pl
from jax.experimental.pallas import tpu as pltpu

NUM_CLASSES = 5
HIDDEN = 4096
CONV_OUT = 64
CONV_OUT_PAD = 128              # lane-dense store width for the conv output
FC_TN = 1024                    # fc N-tile: 4 steps/layer; safe on v5e/v6e/v7x VMEM
VMEM_LIMIT = 48 * 1024 * 1024   # explicit override (v5e scoped default is only 16 MiB)


# ---------------- Kernel 1: conv-as-matmul (im2col patches) + bias + ReLU ----------------
def conv_mm_relu_kernel(p_ref, w_ref, b_ref, o_ref):
    y = jnp.dot(p_ref[...], w_ref[...], preferred_element_type=jnp.float32)
    o_ref[...] = jnp.maximum(y + b_ref[...], 0.0)


def conv3x3_relu_nhwc(x_nchw, w_mat_pad, b_pad, tr=256):
    """x_nchw: (B,Cin,H,W).  w_mat_pad: (9*Cin, 128) in (ky,kx,cin) row order, columns
    64..127 zero.  b_pad: (1, 128).  Returns NHWC-flattened features (B, H*W*64)."""
    B, C, H, W = x_nchw.shape
    x_nhwc = jnp.transpose(x_nchw, (0, 2, 3, 1))
    xp = jnp.pad(x_nhwc, ((0, 0), (1, 1), (1, 1), (0, 0)))                 # padding=1
    cols = [xp[:, ky:ky + H, kx:kx + W, :] for ky in range(3) for kx in range(3)]
    patches = jnp.concatenate(cols, axis=-1).reshape(B * H * W, 9 * C)

    rows = B * H * W
    tr = min(tr, ((rows + 7) // 8) * 8)            # clamp tile: no wasted padded rows
    rows_p = ((rows + tr - 1) // tr) * tr
    if rows_p != rows:
        patches = jnp.pad(patches, ((0, rows_p - rows), (0, 0)))

    out = pl.pallas_call(
        conv_mm_relu_kernel,
        out_shape=jax.ShapeDtypeStruct((rows_p, CONV_OUT_PAD), jnp.float32),
        grid=(rows_p // tr,),
        in_specs=[
            pl.BlockSpec((tr, 9 * C), lambda i: (i, 0)),                   # patch rows (streamed)
            pl.BlockSpec((9 * C, CONV_OUT_PAD), lambda i: (0, 0)),         # conv weights (resident)
            pl.BlockSpec((1, CONV_OUT_PAD), lambda i: (0, 0)),             # bias (resident)
        ],
        out_specs=pl.BlockSpec((tr, CONV_OUT_PAD), lambda i: (i, 0)),
        compiler_params=pltpu.CompilerParams(
            dimension_semantics=("parallel",),
            vmem_limit_bytes=VMEM_LIMIT),
    )(patches, w_mat_pad, b_pad)

    out = out[:rows, :CONV_OUT]                        # drop row + channel padding
    return out.reshape(B, H * W * CONV_OUT)            # NHWC flatten (w1 rows permuted to match)


# ---------------- Kernel 2: sum(W ** 2) reduction (run once at init, not per call) ----------------
def sumsq_kernel(w_ref, o_ref):
    @pl.when(pl.program_id(0) == 0)
    def _():
        o_ref[...] = jnp.zeros_like(o_ref)

    o_ref[...] += jnp.sum(w_ref[...] ** 2, keepdims=True)


def sum_of_squares(w, tk=512):
    K, N = w.shape
    assert K % tk == 0
    return pl.pallas_call(
        sumsq_kernel,
        out_shape=jax.ShapeDtypeStruct((1, 1), jnp.float32),
        grid=(K // tk,),
        in_specs=[pl.BlockSpec((tk, N), lambda i: (i, 0))],
        out_specs=pl.BlockSpec((1, 1), lambda i: (0, 0)),
        compiler_params=pltpu.CompilerParams(
            dimension_semantics=("arbitrary",),
            vmem_limit_bytes=VMEM_LIMIT),
    )(w)


# ---------------- Kernel 3: fc1 = relu(x @ W1 + b1) + reg1 (bf16 weight stream) ----------------
def fc1_kernel(reg_ref, x_ref, w_ref, b_ref, o_ref):
    xb = x_ref[...].astype(jnp.bfloat16)                                   # tiny resident x
    y = jnp.dot(xb, w_ref[...], preferred_element_type=jnp.float32)        # bf16 MXU, f32 acc
    o_ref[...] = jnp.maximum(y + b_ref[...], 0.0) + reg_ref[0, 0]


def linear_relu_reg(x, w_blocks, b, reg, tn=FC_TN):
    """x: (B,K) f32.  w_blocks: (N//tn, K, tn) bf16 (column-blocked, contiguous tiles)."""
    B, K = x.shape
    nb, K2, tn2 = w_blocks.shape
    assert K == K2 and tn == tn2
    N = nb * tn
    return pl.pallas_call(
        fc1_kernel,
        out_shape=jax.ShapeDtypeStruct((B, N), jnp.float32),
        grid=(nb,),
        in_specs=[
            pl.BlockSpec(memory_space=pltpu.MemorySpace.SMEM),   # reg scalar (1,1)
            pl.BlockSpec((B, K), lambda i: (0, 0)),              # x: full K, stays resident
            pl.BlockSpec((None, K, tn), lambda i: (i, 0, 0)),    # W tile: one contiguous 8 MiB DMA
            pl.BlockSpec((1, tn), lambda i: (0, i)),             # bias tile
        ],
        out_specs=pl.BlockSpec((B, tn), lambda i: (0, i)),
        compiler_params=pltpu.CompilerParams(
            dimension_semantics=("parallel",),
            vmem_limit_bytes=VMEM_LIMIT),
    )(reg, x, w_blocks, b)


# ---------------- Kernel 4: fused fc2 + output linear + softmax ----------------
# Per N step: h_tile = relu(x @ W2[:,tile] + b2[tile]) + reg2, then accumulate the
# matching (tn, 5) slice of W3 into a tiny VMEM logits accumulator.  Softmax on the
# last step.  Removes one pallas_call and the h2 (B,4096) HBM round trip.
def fc2_out_softmax_kernel(reg_ref, x_ref, w2_ref, b2_ref, w3_ref, b3_ref,
                           o_ref, logits_acc):
    i = pl.program_id(0)

    @pl.when(i == 0)
    def _():
        logits_acc[...] = jnp.zeros_like(logits_acc)

    xb = x_ref[...].astype(jnp.bfloat16)
    h = jnp.dot(xb, w2_ref[...], preferred_element_type=jnp.float32)
    h = jnp.maximum(h + b2_ref[...], 0.0) + reg_ref[0, 0]
    logits_acc[...] += jnp.dot(h, w3_ref[...], preferred_element_type=jnp.float32)

    @pl.when(i == pl.num_programs(0) - 1)
    def _():
        logits = logits_acc[...] + b3_ref[...]
        m = jnp.max(logits, axis=1, keepdims=True)
        e = jnp.exp(logits - m)
        o_ref[...] = e / jnp.sum(e, axis=1, keepdims=True)


def fc2_output_softmax(x, w2_blocks, b2, w3, b3, reg, tn=FC_TN):
    B, K = x.shape
    nb, K2, tn2 = w2_blocks.shape
    assert K == K2 and tn == tn2
    return pl.pallas_call(
        fc2_out_softmax_kernel,
        out_shape=jax.ShapeDtypeStruct((B, NUM_CLASSES), jnp.float32),
        grid=(nb,),
        in_specs=[
            pl.BlockSpec(memory_space=pltpu.MemorySpace.SMEM),   # reg2 scalar (1,1)
            pl.BlockSpec((B, K), lambda i: (0, 0)),              # h1 resident
            pl.BlockSpec((None, K, tn), lambda i: (i, 0, 0)),    # W2 tile (bf16, contiguous)
            pl.BlockSpec((1, tn), lambda i: (0, i)),             # b2 tile
            pl.BlockSpec((tn, NUM_CLASSES), lambda i: (i, 0)),   # W3 row tile (contiguous)
            pl.BlockSpec((1, NUM_CLASSES), lambda i: (0, 0)),    # b3 (resident)
        ],
        out_specs=pl.BlockSpec((B, NUM_CLASSES), lambda i: (0, 0)),   # written at last step
        scratch_shapes=[pltpu.VMEM((B, NUM_CLASSES), jnp.float32)],
        compiler_params=pltpu.CompilerParams(
            dimension_semantics=("arbitrary",),                  # accumulator across steps
            vmem_limit_bytes=VMEM_LIMIT),
    )(reg, x, w2_blocks, b2, w3, b3)


# ---------------- Parameter init (deterministic, synthetic) ----------------
def _nchw_to_nhwc_row_perm(cout, h, w):
    """perm[p] = NCHW-flatten row index feeding NHWC-flatten feature position p."""
    idx = jnp.arange(cout * h * w)
    c = idx % cout
    x = (idx // cout) % w
    y = idx // (cout * w)
    return c * (h * w) + y * w + x


def _block_columns(w, tn):
    """(K, N) -> (N//tn, K, tn) so each streamed (K, tn) tile is one contiguous DMA."""
    K, N = w.shape
    assert N % tn == 0
    nb = N // tn
    return w.reshape(K, nb, tn).transpose(1, 0, 2)


def init_params(key, in_ch, h, w, hidden=HIDDEN, num_classes=NUM_CLASSES,
                conv_out=CONV_OUT, reg_strength=0.01, tn=FC_TN):
    feat = conv_out * h * w
    ks = jax.random.split(key, 8)
    s = 0.02

    conv_w = s * jax.random.normal(ks[0], (9 * in_ch, conv_out), jnp.float32)
    conv_b = s * jax.random.normal(ks[1], (1, conv_out), jnp.float32)
    # Pad output channels 64 -> 128 so the conv kernel's stores are lane-dense.
    conv_w_pad = jnp.pad(conv_w, ((0, 0), (0, CONV_OUT_PAD - conv_out)))
    conv_b_pad = jnp.pad(conv_b, ((0, 0), (0, CONV_OUT_PAD - conv_out)))

    # fc1 weights as PyTorch would see them (rows in NCHW-flatten order), then permute
    # rows once so they consume the NHWC-flattened conv features directly.
    w1_nchw = s * jax.random.normal(ks[2], (feat, hidden), jnp.float32)
    w1 = w1_nchw[_nchw_to_nhwc_row_perm(conv_out, h, w), :]
    b1 = s * jax.random.normal(ks[3], (1, hidden), jnp.float32)
    w2 = s * jax.random.normal(ks[4], (hidden, hidden), jnp.float32)
    b2 = s * jax.random.normal(ks[5], (1, hidden), jnp.float32)
    w3 = s * jax.random.normal(ks[6], (hidden, num_classes), jnp.float32)
    b3 = s * jax.random.normal(ks[7], (1, num_classes), jnp.float32)

    # Regularizer scalars depend only on the (fixed) weights -> compute once here on the
    # f32 weights (Pallas reduction), before the bf16 streaming cast.
    reg = jnp.float32(reg_strength)
    reg1 = reg * sum_of_squares(w1)          # (1,1)
    reg2 = reg * sum_of_squares(w2)          # (1,1)

    # bf16, column-blocked weight layout for the fc streaming kernels.
    w1_blk = _block_columns(w1, tn).astype(jnp.bfloat16)
    w2_blk = _block_columns(w2, tn).astype(jnp.bfloat16)

    return dict(
        conv_w=conv_w_pad, conv_b=conv_b_pad,
        w1=w1_blk, b1=b1, w2=w2_blk, b2=b2, w3=w3, b3=b3,
        reg1=reg1, reg2=reg2,
    )


# ---------------- Forward pass ----------------
@jax.jit
def ser_conv_forward(x_nchw, params):
    # Reduced backbone: the replaced first conv + ReLU, NHWC-flattened features.
    feat = conv3x3_relu_nhwc(x_nchw, params["conv_w"], params["conv_b"])   # (B, H*W*64)

    # fc1: relu(x @ W1 + b1) + reg * sum(W1**2)   (reg precomputed at init)
    h1 = linear_relu_reg(feat, params["w1"], params["b1"], params["reg1"])
    # dropout -> identity (eval mode)

    # fc2 + dropout(identity) + output linear + softmax, fused into one kernel.
    return fc2_output_softmax(h1, params["w2"], params["b2"],
                              params["w3"], params["b3"], params["reg2"])


if __name__ == "__main__":
    B, C, H, W = 2, 4, 8, 8                       # small shapes; 64*H*W = 4096 features
    key = jax.random.PRNGKey(0)
    kx, kp = jax.random.split(key)
    x = jax.random.normal(kx, (B, C, H, W), jnp.float32)   # NCHW like PyTorch
    params = init_params(kp, in_ch=C, h=H, w=W)

    probs = ser_conv_forward(x, params)
    jax.block_until_ready(probs)

    assert probs.shape == (B, NUM_CLASSES)
    row_sums = jnp.sum(probs, axis=1)
    assert bool(jnp.all(jnp.abs(row_sums - 1.0) < 1e-4))
    print("KERNEL_OK")
</pallas_src>

<mosaic_0001>
module attributes {stable_mosaic.version = 11 : i64} {
  func.func @sumsq_kernel(%arg0: i32, %arg1: memref<512x4096xf32, #tpu.memory_space<vmem>>, %arg2: memref<1x1xf32, #tpu.memory_space<vmem>>) attributes {dimension_semantics = [#tpu.dimension_semantics<arbitrary>], iteration_bounds = array<i64: 8>, scalar_prefetch = 0 : i64, scratch_operands = 0 : i64, tpu.core_type = #tpu.core_type<tc>, window_params = [{transform_indices = @transform_0, window_bounds = array<i64: 512, 4096>}, {pipeline_mode = #tpu.pipeline_mode<synchronous>, transform_indices = @transform_1, window_bounds = array<i64: 1, 1>}]} {
    %c0_i32 = arith.constant 0 : i32
    %0 = arith.cmpi eq, %arg0, %c0_i32 : i32
    %1 = arith.extui %0 : i1 to i32
    %c0_i32_0 = arith.constant 0 : i32
    %2 = arith.cmpi ne, %1, %c0_i32_0 : i32
    scf.if %2 {
      %cst_6 = arith.constant 0.000000e+00 : f32
      %13 = vector.broadcast %cst_6 : f32 to vector<1x1xf32>
      %c0_7 = arith.constant 0 : index
      %c0_8 = arith.constant 0 : index
      %14 = vector.load %arg2[%c0_7, %c0_8] : memref<1x1xf32, #tpu.memory_space<vmem>>, vector<1x1xf32>
      tpu.vector_store %arg2[%c0_7, %c0_8], %13 {strides = array<i32>} : memref<1x1xf32, #tpu.memory_space<vmem>>, vector<1x1xf32>,
    } else {
    }
    %c0 = arith.constant 0 : index
    %c0_1 = arith.constant 0 : index
    %3 = vector.load %arg2[%c0, %c0_1] : memref<1x1xf32, #tpu.memory_space<vmem>>, vector<1x1xf32>
    %c0_2 = arith.constant 0 : index
    %c0_3 = arith.constant 0 : index
    %4 = vector.load %arg1[%c0_2, %c0_3] : memref<512x4096xf32, #tpu.memory_space<vmem>>, vector<512x4096xf32>
    %5 = arith.mulf %4, %4 : vector<512x4096xf32>
    %6 = vector.shape_cast %5 : vector<512x4096xf32> to vector<1x512x4096xf32>
    %cst = arith.constant dense<0.000000e+00> : vector<1xf32>
    %7 = vector.multi_reduction <add>, %6, %cst [1, 2] : vector<1x512x4096xf32> to vector<1xf32>
    %8 = vector.shape_cast %7 : vector<1xf32> to vector<1x1x1xf32>
    %9 = vector.extract %8[0, 0, 0] : f32 from vector<1x1x1xf32>
    %10 = vector.broadcast %9 : f32 to vector<1x1xf32>
    %11 = arith.addf %3, %10 : vector<1x1xf32>
    %c0_4 = arith.constant 0 : index
    %c0_5 = arith.constant 0 : index
    %12 = vector.load %arg2[%c0_4, %c0_5] : memref<1x1xf32, #tpu.memory_space<vmem>>, vector<1x1xf32>
    tpu.vector_store %arg2[%c0_4, %c0_5], %11 {strides = array<i32>} : memref<1x1xf32, #tpu.memory_space<vmem>>, vector<1x1xf32>,
    return
  }
  func.func @transform_0(%arg0: i32) -> (i32, i32) {
    %c0_i32 = arith.constant 0 : i32
    %c0_i32_0 = arith.constant 0 : i32
    return %arg0, %c0_i32 : i32, i32
  }
  func.func @transform_1(%arg0: i32) -> (i32, i32) {
    %c0_i32 = arith.constant 0 : i32
    %c0_i32_0 = arith.constant 0 : i32
    %c0_i32_1 = arith.constant 0 : i32
    return %c0_i32, %c0_i32_0 : i32, i32
  }
}

</mosaic_0001>

<bundles_post_ra>
// kernel: tpu_custom_call.1
= control target key start
LH: loop header
LB: loop body
LE: loop exit
PB: predicated region body
PF: predicated region fallthrough
CT: control target
= control target key end

     0   :  { %6 = vsyncpa [#allocation3], 0  ;;  %s8700_s0 = inlined_call_operand.hbm [shape: f32[4096,4096], index: 0, kind: input, shape index: {}]   ;;  %s8701_s1 = inlined_call_operand.hbm [shape: f32[1,1], index: 1, kind: output, shape index: {}]  }
   0x1   :  { %8 = vsyncpa [#allocation3 + $0x1], 0 }
   0x2   :  { %9 = vsyncpa [#allocation4], 0  ;;  %s6523_s6 = smov 0   ;;  %s6525_s7 = smov 0  }
   0x3   :  { %s6527_s8 = smov 0   ;;  %s6529_s9 = smov 0  }
   0x4 LB: > { %s6542_s10 = sadd.s32 4294967295, %s6506_s9   ;;  %s6545_s11 = sadd.s32 1, %s6506_s9   ;;  %s6506_s9 = sphi %s6529_s9, %s8708_s9   ;;  %s6502_s8 = sphi %s6527_s8, %s8707_s8   ;;  %s6498_s7 = sphi %s6525_s7, %s8706_s7   ;;  %s6494_s6 = sphi %s6523_s6, %s8705_s6  }
   0x5   : > { %s19_s12 = ssub.s32 %s6506_s9, %s6545_s11  ;;  %s22_s13 = sadd.s32 1, %s6502_s8 }
   0x6   : > { %p20_p0 = scmp.eq.s32.totalorder %s19_s12, 0  ;;  %p29_p1 = scmp.ne.s32.totalorder %s6502_s8, %s6498_s7 }
   0x7   : > { %p30_p2 = scmp.eq.s32.totalorder %s6506_s9, 0  ;;  %p35_p3 = scmp.ne.s32.totalorder %s6498_s7, %s6494_s6 }
   0x8   : > { %s6555_s14 = scalar_select %p20_p0, %s6502_s8, %s22_s13  }
   0x9   : > { %p31_p4 = por %p30_p2, %p29_p1  ;;  %p36_p5 = scmp.eq.s32.totalorder %s6542_s10, 0 }
   0xa   : > { %p6373_p6 = scmp.lt.s32.totalorder %s6506_s9, 8  ;;  %s80_s16 = sand.u32 1, %s6502_s8  }
   0xb   : > { %p6559_p7 = por %p36_p5, %p35_p3  ;;  %s6348_s17 = sshll.u32 %s80_s16, 14 }
   0xc   : > { %s6360_s18 = sshll.u32 %s6506_s9, 18  ;;  %s84_s22 = scalar_lea.vmem [#allocation2], %s6348_s17 }
   0xd   : > { %s6568_s21 = scalar_lea.hbm %s8700_s0, %s6360_s18  ;;  %s92_s23 = sshll.u32 %s84_s22, 4  ;;  %s6570_s23 = int_to_ptr.vmem [resolvable:$true] %s92_s23 }
   0xe   : > { %p6572_p8 = pnand %p6373_p6, %p31_p4  ;;  %s6577_s25 = scalar_lea.sflag [#allocation3], %s80_s16 }
   0xf   : > { %s6412_s26 = scalar_lea.hbm %s6568_s21, 262144  ;;  %s6417_s29 = scalar_lea.hbm %s8700_s0, 2097152 }
  0x10   : > { %p6413_p10 = scmp.ne.s32.totalorder %s6568_s21, %s6412_s26  ;;  %p6414_p11 = pneg %p6572_p8 }
  0x11   : > { %p6418_p0 = scmp.lt.u32.totalorder %s6568_s21, %s8700_s0  ;;  %p6419_p1 = scmp.lt.u32.totalorder %s6417_s29, %s6412_s26 }
  0x12   : > { %p6415_p12 = pnand %p6414_p11, %p6413_p10  ;;  %p6421_p3 = scmp.lt.u32.totalorder %s6412_s26, %s6568_s21 }
  0x13   : > { %p6420_p2 = por %p6419_p1, %p6418_p0 }
  0x14   : > { %p6416_p13 = pneg %p6415_p12 }
  0x15   : > { %p6422_p4 = por %p6421_p3, %p6420_p2 }
  0x17   : > { %p6423_p5 = pnand %p6422_p4, %p6416_p13 }
  0x19   : > { %6426 = shalt.err (!%p6423_p5)
}
  0x1a   : > { %s6427_s3 = scalar_lea.vmem %s6570_s23, 262144  ;;  %s6508_s4 = smov [#allocation2]  }
  0x1b   : > { %p6428_p6 = scmp.ne.s32.totalorder %s6570_s23, %s6427_s3  ;;  %s6432_s5 = sshll.u32 %s6508_s4, 4  ;;  %s6433_s5 = int_to_ptr.vmem [resolvable:$false] %s6432_s5 }
  0x1c   : > { %s6434_s6 = scalar_lea.vmem %s6433_s5, 524288  ;;  %p6435_p9 = scmp.lt.s32.totalorder %s6570_s23, %s6433_s5 }
  0x1d   : > { %p6430_p10 = pnand %p6428_p6, %p6414_p11  ;;  %p6436_p0 = scmp.lt.s32.totalorder %s6434_s6, %s6427_s3 }
  0x1f   : > { %p6431_p12 = pneg %p6430_p10  ;;  %p6437_p1 = por %p6436_p0, %p6435_p9 }
  0x21   : > { %p6438_p2 = pnand %p6437_p1, %p6431_p12 }
  0x23   : > { %6441 = shalt.err (!%p6438_p2)
}
  0x24   : > { %s6509_s12 = smov 4096   ;;  %s6510_s13 = smov 256  }
  0x25   : > { %6372 = dma.hbm_to_vmem [thread:$0]  (!%p6572_p8), %s6568_s21, 262144, %s6570_s23, %s6577_s25, %s6509_s12, %s6509_s12, %s6510_s13  }
  0x26   : > { %p100_p11 = scmp.lt.s32.totalorder %s6506_s9, 9  ;;  %p8704_p13 = scmp.ge.s32.totalorder %s6506_s9, 1 }
  0x28   : > { %p101_p3 = pnand %p8704_p13, %p100_p11 }
  0x29   : > { %s106_s16 = sand.u32 (!%p101_p3), 1, %s6498_s7  }
  0x2a   : > { %104 = sbr.rel (%p101_p3) target bundleno = 4378 (0x111a), region = 24  ;;  %s6353_s17 = sshll.u32 (!%p101_p3), %s106_s16, 14 }
  0x2b   : > { %s107_s18 = scalar_lea.sflag (!%p101_p3), [#allocation3], %s106_s16  ;;  %s6609_s19 = scalar_lea.vmem (!%p101_p3), [#allocation2], %s6353_s17 }
  0x31   : > { %6485 = dma.done.wait (%p6559_p7), %s107_s18, 262144  }
  0x32   : > { %6487 = vsyncadd (%p6559_p7), %s107_s18, 4294705152  ;;  %p6354_p9 = scmp.ne.s32.totalorder %s6542_s10, 0 }
  0x33   : > { %vm129_vm0 = vcmask (!%p6354_p9), 0   ;;  %v6511_v0 = vmov (!%p6354_p9), 0.0  }
  0x34   : > { %128 = sbr.rel (%p6354_p9) target bundleno = 59 (0x3b), region = 32  ;;  %130 = vst.msk [vmem:[#allocation5] sm:$0x1] (!%p6354_p9), %vm129_vm0, %v6511_v0 }
  0x3b PF: > { %v132_v1 = vld [vmem:[%s6609_s19] sm:$0xff]  ;;  %v133_v2 = vld [vmem:[%s6609_s19 + $0x8] sm:$0xff]  ;;  %v134_v3 = vld [vmem:[%s6609_s19 + $0x10] sm:$0xff]  ;;  %s6512_s9 = smov [#allocation5]   ;;  %vm6286_vm1 = vcmask 0   ;;  %p6374_p7 = scmp.eq.s32.totalorder %s6542_s10, 7 }
  0x3c   : > { %v135_v4 = vld [vmem:[%s6609_s19 + $0x18] sm:$0xff]  ;;  %v2180_v5 = vmul.f32 %v132_v1, %v132_v1  ;;  %v2181_v6 = vmul.f32 %v133_v2, %v133_v2  ;;  %v136_v7 = vld [vmem:[%s6609_s19 + $0x20] sm:$0xff]  ;;  %v2182_v8 = vmul.f32 %v134_v3, %v134_v3  ;;  %v137_v11 = vld [vmem:[%s6609_s19 + $0x28] sm:$0xff]  ;;  %s6295_s15 = sshll.u32 %s6512_s9, 4  ;;  %s6296_s15 = int_to_ptr.vmem [resolvable:$true] %s6295_s15 }
  0x3d   : > { %v2183_v9 = vmul.f32 %v135_v4, %v135_v4  ;;  %v2184_v12 = vmul.f32 %v136_v7, %v136_v7  ;;  %v138_v14 = vld [vmem:[%s6609_s19 + $0x30] sm:$0xff]  ;;  %v2185_v15 = vmul.f32 %v137_v11, %v137_v11  ;;  %v139_v17 = vld [vmem:[%s6609_s19 + $0x38] sm:$0xff]  ;;  %v140_v20 = vld [vmem:[%s6609_s19 + $0x40] sm:$0xff]  ;;  %s6442_s21 = scalar_lea.vmem %s6296_s15, 16  ;;  %s6448_s22 = scalar_lea.vmem %s6296_s15, 32 }
  0x3e   : > { %v4228_v10 = vadd.f32 %v2181_v6, %v2180_v5  ;;  %v2186_v18 = vmul.f32 %v138_v14, %v138_v14  ;;  %v2187_v21 = vmul.f32 %v139_v17, %v139_v17  ;;  %v141_v23 = vld [vmem:[%s6609_s19 + $0x48] sm:$0xff]  ;;  %v2188_v24 = vmul.f32 %v140_v20, %v140_v20  ;;  %v142_v26 = vld [vmem:[%s6609_s19 + $0x50] sm:$0xff]  ;;  %v143_v29 = vld [vmem:[%s6609_s19 + $0x58] sm:$0xff]  ;;  %p6443_p8 = scmp.ne.s32.totalorder %s6296_s15, %s6442_s21  ;;  %p6449_p6 = scmp.lt.s32.totalorder %s6296_s15, %s6296_s15 }
  0x3f   : > { %v2189_v27 = vmul.f32 %v141_v23, %v141_v23  ;;  %v2190_v30 = vmul.f32 %v142_v26, %v142_v26  ;;  %v144_v32 = vld [vmem:[%s6609_s19 + $0x60] sm:$0xff]  ;;  %v2191_v33 = vmul.f32 %v143_v29, %v143_v29  ;;  %v145_v35 = vld [vmem:[%s6609_s19 + $0x68] sm:$0xff]  ;;  %v146_v38 = vld [vmem:[%s6609_s19 + $0x70] sm:$0xff]  ;;  %p6450_p10 = scmp.lt.s32.totalorder %s6448_s22, %s6442_s21 }
  0x40   : > { %v4229_v13 = vadd.f32 %v4228_v10, %v2182_v8  ;;  %v2192_v36 = vmul.f32 %v144_v32, %v144_v32  ;;  %v2193_v39 = vmul.f32 %v145_v35, %v145_v35  ;;  %v147_v41 = vld [vmem:[%s6609_s19 + $0x78] sm:$0xff]  ;;  %v2194_v42 = vmul.f32 %v146_v38, %v146_v38  ;;  %v148_v44 = vld [vmem:[%s6609_s19 + $0x80] sm:$0xff]  ;;  %v149_v47 = vld [vmem:[%s6609_s19 + $0x88] sm:$0xff]  ;;  %p6444_p4 = pnand %p6443_p8, %p6374_p7 }
  0x41   : > { %v2195_v45 = vmul.f32 %v147_v41, %v147_v41  ;;  %v2196_v48 = vmul.f32 %v148_v44, %v148_v44  ;;  %v150_v50 = vld [vmem:[%s6609_s19 + $0x90] sm:$0xff]  ;;  %v2197_v51 = vmul.f32 %v149_v47, %v149_v47  ;;  %v151_v53 = vld [vmem:[%s6609_s19 + $0x98] sm:$0xff]  ;;  %v152_v56 = vld [vmem:[%s6609_s19 + $0xa0] sm:$0xff]  ;;  %p6451_p12 = por %p6450_p10, %p6449_p6 }
  0x42   : > { %v4230_v16 = vadd.f32 %v4229_v13, %v2183_v9  ;;  %v2198_v54 = vmul.f32 %v150_v50, %v150_v50  ;;  %v2199_v57 = vmul.f32 %v151_v53, %v151_v53  ;;  %v153_v59 = vld [vmem:[%s6609_s19 + $0xa8] sm:$0xff]  ;;  %v2200_v60 = vmul.f32 %v152_v56, %v152_v56  ;;  %v154_v62 = vld [vmem:[%s6609_s19 + $0xb0] sm:$0xff]  ;;  %v155_v1 = vld [vmem:[%s6609_s19 + $0xb8] sm:$0xff]  ;;  %p6445_p5 = pneg %p6444_p4 }
  0x43   : > { %v2201_v63 = vmul.f32 %v153_v59, %v153_v59  ;;  %v2202_v2 = vmul.f32 %v154_v62, %v154_v62  ;;  %v156_v4 = vld [vmem:[%s6609_s19 + $0xc0] sm:$0xff]  ;;  %v2203_v5 = vmul.f32 %v155_v1, %v155_v1  ;;  %v157_v7 = vld [vmem:[%s6609_s19 + $0xc8] sm:$0xff]  ;;  %v158_v10 = vld [vmem:[%s6609_s19 + $0xd0] sm:$0xff] }
  0x44   : > { %v4231_v19 = vadd.f32 %v4230_v16, %v2184_v12  ;;  %v2204_v8 = vmul.f32 %v156_v4, %v156_v4  ;;  %v2205_v11 = vmul.f32 %v157_v7, %v157_v7  ;;  %v159_v13 = vld [vmem:[%s6609_s19 + $0xd8] sm:$0xff]  ;;  %v2206_v14 = vmul.f32 %v158_v10, %v158_v10  ;;  %v160_v16 = vld [vmem:[%s6609_s19 + $0xe0] sm:$0xff]  ;;  %p6452_p0 = pnand %p6451_p12, %p6445_p5 }
  0x45   : > { %v2207_v17 = vmul.f32 %v159_v13, %v159_v13  ;;  %v2208_v20 = vmul.f32 %v160_v16, %v160_v16 }
  0x46   : > { %v4232_v22 = vadd.f32 %v4231_v19, %v2185_v15  ;;  %v161_v19 = vld [vmem:[%s6609_s19 + $0xe8] sm:$0xff] }
  0x47   : > { %v2209_v23 = vmul.f32 %v161_v19, %v161_v19 }
  0x48   : > { %v4233_v25 = vadd.f32 %v4232_v22, %v2186_v18  ;;  %v162_v22 = vld [vmem:[%s6609_s19 + $0xf0] sm:$0xff] }
  0x49   : > { %v2210_v26 = vmul.f32 %v162_v22, %v162_v22 }
  0x4a   : > { %v4234_v28 = vadd.f32 %v4233_v25, %v2187_v21  ;;  %v163_v25 = vld [vmem:[%s6609_s19 + $0xf8] sm:$0xff] }
  0x4b   : > { %v2211_v29 = vmul.f32 %v163_v25, %v163_v25 }
  0x4c   : > { %v4235_v31 = vadd.f32 %v4234_v28, %v2188_v24  ;;  %v164_v28 = vld [vmem:[%s6609_s19 + $0x100] sm:$0xff] }
  0x4d   : > { %v2212_v32 = vmul.f32 %v164_v28, %v164_v28 }
  0x4e   : > { %v4236_v34 = vadd.f32 %v4235_v31, %v2189_v27  ;;  %v165_v31 = vld [vmem:[%s6609_s19 + $0x108] sm:$0xff] }
  0x4f   : > { %v2213_v35 = vmul.f32 %v165_v31, %v165_v31 }
  0x50   : > { %v4237_v37 = vadd.f32 %v4236_v34, %v2190_v30  ;;  %v166_v34 = vld [vmem:[%s6609_s19 + $0x110] sm:$0xff] }
  0x51   : > { %v2214_v38 = vmul.f32 %v166_v34, %v166_v34 }
  0x52   : > { %v4238_v40 = vadd.f32 %v4237_v37, %v2191_v33  ;;  %v167_v37 = vld [vmem:[%s6609_s19 + $0x118] sm:$0xff] }
  0x53   : > { %v2215_v41 = vmul.f32 %v167_v37, %v167_v37 }
  0x54   : > { %v4239_v43 = vadd.f32 %v4238_v40, %v2192_v36  ;;  %v168_v40 = vld [vmem:[%s6609_s19 + $0x120] sm:$0xff] }
  0x55   : > { %v2216_v44 = vmul.f32 %v168_v40, %v168_v40 }
  0x56   : > { %v4240_v46 = vadd.f32 %v4239_v43, %v2193_v39  ;;  %v169_v43 = vld [vmem:[%s6609_s19 + $0x128] sm:$0xff] }
  0x57   : > { %v2217_v47 = vmul.f32 %v169_v43, %v169_v43 }
  0x58   : > { %v4241_v49 = vadd.f32 %v4240_v46, %v2194_v42  ;;  %v170_v46 = vld [vmem:[%s6609_s19 + $0x130] sm:$0xff] }
  0x59   : > { %v2218_v50 = vmul.f32 %v170_v46, %v170_v46 }
  0x5a   : > { %v4242_v52 = vadd.f32 %v4241_v49, %v2195_v45  ;;  %v171_v49 = vld [vmem:[%s6609_s19 + $0x138] sm:$0xff] }
  0x5b   : > { %v2219_v53 = vmul.f32 %v171_v49, %v171_v49 }
  0x5c   : > { %v4243_v55 = vadd.f32 %v4242_v52, %v2196_v48  ;;  %v172_v52 = vld [vmem:[%s6609_s19 + $0x140] sm:$0xff] }
  0x5d   : > { %v2220_v56 = vmul.f32 %v172_v52, %v172_v52 }
  0x5e   : > { %v4244_v58 = vadd.f32 %v4243_v55, %v2197_v51  ;;  %v173_v55 = vld [vmem:[%s6609_s19 + $0x148] sm:$0xff] }
  0x5f   : > { %v2221_v59 = vmul.f32 %v173_v55, %v173_v55 }
  0x60   : > { %v4245_v61 = vadd.f32 %v4244_v58, %v2198_v54  ;;  %v174_v58 = vld [vmem:[%s6609_s19 + $0x150] sm:$0xff] }
  0x61   : > { %v2222_v62 = vmul.f32 %v174_v58, %v174_v58 }
  0x62   : > { %v4246_v0 = vadd.f32 %v4245_v61, %v2199_v57  ;;  %v175_v61 = vld [vmem:[%s6609_s19 + $0x158] sm:$0xff] }
  0x63   : > { %v2223_v1 = vmul.f32 %v175_v61, %v175_v61 }
  0x64   : > { %v4247_v3 = vadd.f32 %v4246_v0, %v2200_v60  ;;  %v176_v0 = vld [vmem:[%s6609_s19 + $0x160] sm:$0xff] }
  0x65   : > { %v2224_v4 = vmul.f32 %v176_v0, %v176_v0 }
  0x66   : > { %v4248_v6 = vadd.f32 %v4247_v3, %v2201_v63  ;;  %v177_v3 = vld [vmem:[%s6609_s19 + $0x168] sm:$0xff] }
  0x67   : > { %v2225_v7 = vmul.f32 %v177_v3, %v177_v3 }
  0x68   : > { %v4249_v9 = vadd.f32 %v4248_v6, %v2202_v2  ;;  %v178_v6 = vld [vmem:[%s6609_s19 + $0x170] sm:$0xff] }
  0x69   : > { %v2226_v10 = vmul.f32 %v178_v6, %v178_v6 }
  0x6a   : > { %v4250_v12 = vadd.f32 %v4249_v9, %v2203_v5  ;;  %v179_v9 = vld [vmem:[%s6609_s19 + $0x178] sm:$0xff] }
  0x6b   : > { %v2227_v13 = vmul.f32 %v179_v9, %v179_v9 }
  0x6c   : > { %v4251_v15 = vadd.f32 %v4250_v12, %v2204_v8  ;;  %v180_v12 = vld [vmem:[%s6609_s19 + $0x180] sm:$0xff] }
  0x6d   : > { %v2228_v16 = vmul.f32 %v180_v12, %v180_v12 }
  0x6e   : > { %v4252_v18 = vadd.f32 %v4251_v15, %v2205_v11  ;;  %v181_v15 = vld [vmem:[%s6609_s19 + $0x188] sm:$0xff] }
  0x6f   : > { %v2229_v19 = vmul.f32 %v181_v15, %v181_v15 }
  0x70   : > { %v4253_v21 = vadd.f32 %v4252_v18, %v2206_v14  ;;  %v182_v18 = vld [vmem:[%s6609_s19 + $0x190] sm:$0xff] }
  0x71   : > { %v2230_v22 = vmul.f32 %v182_v18, %v182_v18 }
  0x72   : > { %v4254_v24 = vadd.f32 %v4253_v21, %v2207_v17  ;;  %v183_v21 = vld [vmem:[%s6609_s19 + $0x198] sm:$0xff] }
  0x73   : > { %v2231_v25 = vmul.f32 %v183_v21, %v183_v21 }
  0x74   : > { %v4255_v27 = vadd.f32 %v4254_v24, %v2208_v20  ;;  %v184_v24 = vld [vmem:[%s6609_s19 + $0x1a0] sm:$0xff] }
  0x75   : > { %v2232_v28 = vmul.f32 %v184_v24, %v184_v24 }
  0x76   : > { %v4256_v30 = vadd.f32 %v4255_v27, %v2209_v23  ;;  %v185_v27 = vld [vmem:[%s6609_s19 + $0x1a8] sm:$0xff] }
  0x77   : > { %v2233_v31 = vmul.f32 %v185_v27, %v185_v27 }
  0x78   : > { %v4257_v33 = vadd.f32 %v4256_v30, %v2210_v26  ;;  %v186_v30 = vld [vmem:[%s6609_s19 + $0x1b0] sm:$0xff] }
  0x79   : > { %v2234_v34 = vmul.f32 %v186_v30, %v186_v30 }
  0x7a   : > { %v4258_v36 = vadd.f32 %v4257_v33, %v2211_v29  ;;  %v187_v33 = vld [vmem:[%s6609_s19 + $0x1b8] sm:$0xff] }
  0x7b   : > { %v2235_v37 = vmul.f32 %v187_v33, %v187_v33 }
  0x7c   : > { %v4259_v39 = vadd.f32 %v4258_v36, %v2212_v32  ;;  %v188_v36 = vld [vmem:[%s6609_s19 + $0x1c0] sm:$0xff] }
  0x7d   : > { %v2236_v40 = vmul.f32 %v188_v36, %v188_v36 }
  0x7e   : > { %v4260_v42 = vadd.f32 %v4259_v39, %v2213_v35  ;;  %v189_v39 = vld [vmem:[%s6609_s19 + $0x1c8] sm:$0xff] }
  0x7f   : > { %v2237_v43 = vmul.f32 %v189_v39, %v189_v39 }
  0x80   : > { %v4261_v45 = vadd.f32 %v4260_v42, %v2214_v38  ;;  %v190_v42 = vld [vmem:[%s6609_s19 + $0x1d0] sm:$0xff] }
  0x81   : > { %v2238_v46 = vmul.f32 %v190_v42, %v190_v42 }
  0x82   : > { %v4262_v48 = vadd.f32 %v4261_v45, %v2215_v41  ;;  %v191_v45 = vld [vmem:[%s6609_s19 + $0x1d8] sm:$0xff] }
  0x83   : > { %v2239_v49 = vmul.f32 %v191_v45, %v191_v45 }
  0x84   : > { %v4263_v51 = vadd.f32 %v4262_v48, %v2216_v44  ;;  %v192_v48 = vld [vmem:[%s6609_s19 + $0x1e0] sm:$0xff] }
  0x85   : > { %v2240_v52 = vmul.f32 %v192_v48, %v192_v48 }
  0x86   : > { %v4264_v54 = vadd.f32 %v4263_v51, %v2217_v47  ;;  %v193_v51 = vld [vmem:[%s6609_s19 + $0x1e8] sm:$0xff] }
  0x87   : > { %v2241_v55 = vmul.f32 %v193_v51, %v193_v51 }
  0x88   : > { %v4265_v57 = vadd.f32 %v4264_v54, %v2218_v50  ;;  %v194_v54 = vld [vmem:[%s6609_s19 + $0x1f0] sm:$0xff] }
  0x89   : > { %v2242_v58 = vmul.f32 %v194_v54, %v194_v54 }
  0x8a   : > { %v4266_v60 = vadd.f32 %v4265_v57, %v2219_v53  ;;  %v195_v57 = vld [vmem:[%s6609_s19 + $0x1f8] sm:$0xff] }
  0x8b   : > { %v2243_v61 = vmul.f32 %v195_v57, %v195_v57 }
  0x8c   : > { %v4267_v63 = vadd.f32 %v4266_v60, %v2220_v56  ;;  %v196_v60 = vld [vmem:[%s6609_s19 + $0x200] sm:$0xff] }
  0x8d   : > { %v2244_v0 = vmul.f32 %v196_v60, %v196_v60 }
  0x8e   : > { %v4268_v2 = vadd.f32 %v4267_v63, %v2221_v59  ;;  %v197_v63 = vld [vmem:[%s6609_s19 + $0x208] sm:$0xff] }
  0x8f   : > { %v2245_v3 = vmul.f32 %v197_v63, %v197_v63 }
  0x90   : > { %v4269_v5 = vadd.f32 %v4268_v2, %v2222_v62 }
  0x92   : > { %v4270_v8 = vadd.f32 %v4269_v5, %v2223_v1 }
  0x94   : > { %v4271_v11 = vadd.f32 %v4270_v8, %v2224_v4  ;;  %v198_v4 = vld [vmem:[%s6609_s19 + $0x210] sm:$0xff]  ;;  %v199_v8 = vld [vmem:[%s6609_s19 + $0x218] sm:$0xff] }
  0x95   : > { %v2246_v6 = vmul.f32 %v198_v4, %v198_v4  ;;  %v2247_v9 = vmul.f32 %v199_v8, %v199_v8  ;;  %v219_v4 = vld [vmem:[%s6609_s19 + $0x2b8] sm:$0xff] }
  0x96   : > { %v4272_v14 = vadd.f32 %v4271_v11, %v2225_v7  ;;  %v200_v11 = vld [vmem:[%s6609_s19 + $0x220] sm:$0xff] }
  0x97   : > { %v2248_v12 = vmul.f32 %v200_v11, %v200_v11 }
  0x98   : > { %v4273_v17 = vadd.f32 %v4272_v14, %v2226_v10  ;;  %v201_v14 = vld [vmem:[%s6609_s19 + $0x228] sm:$0xff] }
  0x99   : > { %v2249_v15 = vmul.f32 %v201_v14, %v201_v14 }
  0x9a   : > { %v4274_v20 = vadd.f32 %v4273_v17, %v2227_v13  ;;  %v202_v17 = vld [vmem:[%s6609_s19 + $0x230] sm:$0xff] }
  0x9b   : > { %v2250_v18 = vmul.f32 %v202_v17, %v202_v17 }
  0x9c   : > { %v4275_v23 = vadd.f32 %v4274_v20, %v2228_v16  ;;  %v203_v20 = vld [vmem:[%s6609_s19 + $0x238] sm:$0xff] }
  0x9d   : > { %v2251_v21 = vmul.f32 %v203_v20, %v203_v20 }
  0x9e   : > { %v4276_v26 = vadd.f32 %v4275_v23, %v2229_v19  ;;  %v204_v23 = vld [vmem:[%s6609_s19 + $0x240] sm:$0xff] }
  0x9f   : > { %v2252_v24 = vmul.f32 %v204_v23, %v204_v23 }
  0xa0   : > { %v4277_v29 = vadd.f32 %v4276_v26, %v2230_v22  ;;  %v205_v26 = vld [vmem:[%s6609_s19 + $0x248] sm:$0xff] }
  0xa1   : > { %v2253_v27 = vmul.f32 %v205_v26, %v205_v26 }
  0xa2   : > { %v4278_v32 = vadd.f32 %v4277_v29, %v2231_v25  ;;  %v206_v29 = vld [vmem:[%s6609_s19 + $0x250] sm:$0xff] }
  0xa3   : > { %v2254_v30 = vmul.f32 %v206_v29, %v206_v29 }
  0xa4   : > { %v4279_v35 = vadd.f32 %v4278_v32, %v2232_v28  ;;  %v207_v32 = vld [vmem:[%s6609_s19 + $0x258] sm:$0xff] }
  0xa5   : > { %v2255_v33 = vmul.f32 %v207_v32, %v207_v32 }
  0xa6   : > { %v4280_v38 = vadd.f32 %v4279_v35, %v2233_v31  ;;  %v208_v35 = vld [vmem:[%s6609_s19 + $0x260] sm:$0xff] }
  0xa7   : > { %v2256_v36 = vmul.f32 %v208_v35, %v208_v35 }
  0xa8   : > { %v4281_v41 = vadd.f32 %v4280_v38, %v2234_v34  ;;  %v209_v38 = vld [vmem:[%s6609_s19 + $0x268] sm:$0xff] }
  0xa9   : > { %v2257_v39 = vmul.f32 %v209_v38, %v209_v38 }
  0xaa   : > { %v4282_v44 = vadd.f32 %v4281_v41, %v2235_v37  ;;  %v210_v41 = vld [vmem:[%s6609_s19 + $0x270] sm:$0xff] }
  0xab   : > { %v2258_v42 = vmul.f32 %v210_v41, %v210_v41 }
  0xac   : > { %v4283_v47 = vadd.f32 %v4282_v44, %v2236_v40  ;;  %v211_v44 = vld [vmem:[%s6609_s19 + $0x278] sm:$0xff] }
  0xad   : > { %v2259_v45 = vmul.f32 %v211_v44, %v211_v44 }
  0xae   : > { %v4284_v50 = vadd.f32 %v4283_v47, %v2237_v43  ;;  %v212_v47 = vld [vmem:[%s6609_s19 + $0x280] sm:$0xff] }
  0xaf   : > { %v2260_v48 = vmul.f32 %v212_v47, %v212_v47 }
  0xb0   : > { %v4285_v53 = vadd.f32 %v4284_v50, %v2238_v46  ;;  %v213_v50 = vld [vmem:[%s6609_s19 + $0x288] sm:$0xff] }
  0xb1   : > { %v2261_v51 = vmul.f32 %v213_v50, %v213_v50 }
  0xb2   : > { %v4286_v56 = vadd.f32 %v4285_v53, %v2239_v49  ;;  %v214_v53 = vld [vmem:[%s6609_s19 + $0x290] sm:$0xff] }
  0xb3   : > { %v2262_v54 = vmul.f32 %v214_v53, %v214_v53 }
  0xb4   : > { %v4287_v59 = vadd.f32 %v4286_v56, %v2240_v52  ;;  %v215_v56 = vld [vmem:[%s6609_s19 + $0x298] sm:$0xff] }
  0xb5   : > { %v2263_v57 = vmul.f32 %v215_v56, %v215_v56 }
  0xb6   : > { %v4288_v62 = vadd.f32 %v4287_v59, %v2241_v55  ;;  %v216_v59 = vld [vmem:[%s6609_s19 + $0x2a0] sm:$0xff] }
  0xb7   : > { %v2264_v60 = vmul.f32 %v216_v59, %v216_v59 }
  0xb8   : > { %v4289_v1 = vadd.f32 %v4288_v62, %v2242_v58  ;;  %v217_v62 = vld [vmem:[%s6609_s19 + $0x2a8] sm:$0xff] }
  0xb9   : > { %v2265_v63 = vmul.f32 %v217_v62, %v217_v62 }
  0xba   : > { %v4290_v2 = vadd.f32 %v4289_v1, %v2243_v61  ;;  %v218_v1 = vld [vmem:[%s6609_s19 + $0x2b0] sm:$0xff] }
  0xbc   : > { %v4291_v5 = vadd.f32 %v4290_v2, %v2244_v0  ;;  %v2266_v2 = vmul.f32 %v218_v1, %v218_v1 }
  0xbe   : > { %v4292_v7 = vadd.f32 %v4291_v5, %v2245_v3  ;;  %v2267_v5 = vmul.f32 %v219_v4, %v219_v4 }
  0xc0   : > { %v4293_v10 = vadd.f32 %v4292_v7, %v2246_v6  ;;  %v220_v7 = vld [vmem:[%s6609_s19 + $0x2c0] sm:$0xff] }
  0xc1   : > { %v2268_v8 = vmul.f32 %v220_v7, %v220_v7 }
  0xc2   : > { %v4294_v13 = vadd.f32 %v4293_v10, %v2247_v9  ;;  %v221_v10 = vld [vmem:[%s6609_s19 + $0x2c8] sm:$0xff] }
  0xc3   : > { %v2269_v11 = vmul.f32 %v221_v10, %v221_v10 }
  0xc4   : > { %v4295_v16 = vadd.f32 %v4294_v13, %v2248_v12  ;;  %v222_v13 = vld [vmem:[%s6609_s19 + $0x2d0] sm:$0xff] }
  0xc5   : > { %v2270_v14 = vmul.f32 %v222_v13, %v222_v13 }
  0xc6   : > { %v4296_v19 = vadd.f32 %v4295_v16, %v2249_v15  ;;  %v223_v16 = vld [vmem:[%s6609_s19 + $0x2d8] sm:$0xff] }
  0xc7   : > { %v2271_v17 = vmul.f32 %v223_v16, %v223_v16 }
  0xc8   : > { %v4297_v22 = vadd.f32 %v4296_v19, %v2250_v18  ;;  %v224_v19 = vld [vmem:[%s6609_s19 + $0x2e0] sm:$0xff] }
  0xc9   : > { %v2272_v20 = vmul.f32 %v224_v19, %v224_v19 }
  0xca   : > { %v4298_v25 = vadd.f32 %v4297_v22, %v2251_v21  ;;  %v225_v22 = vld [vmem:[%s6609_s19 + $0x2e8] sm:$0xff] }
  0xcb   : > { %v2273_v23 = vmul.f32 %v225_v22, %v225_v22 }
  0xcc   : > { %v4299_v28 = vadd.f32 %v4298_v25, %v2252_v24  ;;  %v226_v25 = vld [vmem:[%s6609_s19 + $0x2f0] sm:$0xff] }
  0xcd   : > { %v2274_v26 = vmul.f32 %v226_v25, %v226_v25 }
  0xce   : > { %v4300_v31 = vadd.f32 %v4299_v28, %v2253_v27  ;;  %v227_v28 = vld [vmem:[%s6609_s19 + $0x2f8] sm:$0xff] }
  0xcf   : > { %v2275_v29 = vmul.f32 %v227_v28, %v227_v28 }
  0xd0   : > { %v4301_v34 = vadd.f32 %v4300_v31, %v2254_v30  ;;  %v228_v31 = vld [vmem:[%s6609_s19 + $0x300] sm:$0xff] }
  0xd1   : > { %v2276_v32 = vmul.f32 %v228_v31, %v228_v31 }
  0xd2   : > { %v4302_v37 = vadd.f32 %v4301_v34, %v2255_v33  ;;  %v229_v34 = vld [vmem:[%s6609_s19 + $0x308] sm:$0xff] }
  0xd3   : > { %v2277_v35 = vmul.f32 %v229_v34, %v229_v34 }
  0xd4   : > { %v4303_v40 = vadd.f32 %v4302_v37, %v2256_v36  ;;  %v230_v37 = vld [vmem:[%s6609_s19 + $0x310] sm:$0xff] }
  0xd5   : > { %v2278_v38 = vmul.f32 %v230_v37, %v230_v37 }
  0xd6   : > { %v4304_v43 = vadd.f32 %v4303_v40, %v2257_v39  ;;  %v231_v40 = vld [vmem:[%s6609_s19 + $0x318] sm:$0xff] }
  0xd7   : > { %v2279_v41 = vmul.f32 %v231_v40, %v231_v40 }
  0xd8   : > { %v4305_v46 = vadd.f32 %v4304_v43, %v2258_v42  ;;  %v232_v43 = vld [vmem:[%s6609_s19 + $0x320] sm:$0xff] }
  0xd9   : > { %v2280_v44 = vmul.f32 %v232_v43, %v232_v43 }
  0xda   : > { %v4306_v49 = vadd.f32 %v4305_v46, %v2259_v45  ;;  %v233_v46 = vld [vmem:[%s6609_s19 + $0x328] sm:$0xff] }
  0xdb   : > { %v2281_v47 = vmul.f32 %v233_v46, %v233_v46 }
  0xdc   : > { %v4307_v52 = vadd.f32 %v4306_v49, %v2260_v48  ;;  %v234_v49 = vld [vmem:[%s6609_s19 + $0x330] sm:$0xff] }
  0xdd   : > { %v2282_v50 = vmul.f32 %v234_v49, %v234_v49 }
  0xde   : > { %v4308_v55 = vadd.f32 %v4307_v52, %v2261_v51  ;;  %v235_v52 = vld [vmem:[%s6609_s19 + $0x338] sm:$0xff] }
  0xdf   : > { %v2283_v53 = vmul.f32 %v235_v52, %v235_v52 }
  0xe0   : > { %v4309_v58 = vadd.f32 %v4308_v55, %v2262_v54  ;;  %v236_v55 = vld [vmem:[%s6609_s19 + $0x340] sm:$0xff] }
  0xe1   : > { %v2284_v56 = vmul.f32 %v236_v55, %v236_v55 }
  0xe2   : > { %v4310_v61 = vadd.f32 %v4309_v58, %v2263_v57  ;;  %v237_v58 = vld [vmem:[%s6609_s19 + $0x348] sm:$0xff] }
  0xe3   : > { %v2285_v59 = vmul.f32 %v237_v58, %v237_v58 }
  0xe4   : > { %v4311_v0 = vadd.f32 %v4310_v61, %v2264_v60  ;;  %v238_v61 = vld [vmem:[%s6609_s19 + $0x350] sm:$0xff] }
  0xe5   : > { %v2286_v62 = vmul.f32 %v238_v61, %v238_v61 }
  0xe6   : > { %v4312_v3 = vadd.f32 %v4311_v0, %v2265_v63  ;;  %v239_v0 = vld [vmem:[%s6609_s19 + $0x358] sm:$0xff] }
  0xe7   : > { %v2287_v1 = vmul.f32 %v239_v0, %v239_v0 }
  0xe8   : > { %v4313_v6 = vadd.f32 %v4312_v3, %v2266_v2  ;;  %v240_v3 = vld [vmem:[%s6609_s19 + $0x360] sm:$0xff] }
  0xe9   : > { %v2288_v4 = vmul.f32 %v240_v3, %v240_v3 }
  0xea   : > { %v4314_v9 = vadd.f32 %v4313_v6, %v2267_v5  ;;  %v241_v6 = vld [vmem:[%s6609_s19 + $0x368] sm:$0xff] }
  0xeb   : > { %v2289_v7 = vmul.f32 %v241_v6, %v241_v6 }
  0xec   : > { %v4315_v12 = vadd.f32 %v4314_v9, %v2268_v8  ;;  %v242_v9 = vld [vmem:[%s6609_s19 + $0x370] sm:$0xff] }
  0xed   : > { %v2290_v10 = vmul.f32 %v242_v9, %v242_v9 }
  0xee   : > { %v4316_v15 = vadd.f32 %v4315_v12, %v2269_v11  ;;  %v243_v12 = vld [vmem:[%s6609_s19 + $0x378] sm:$0xff] }
  0xef   : > { %v2291_v13 = vmul.f32 %v243_v12, %v243_v12 }
  0xf0   : > { %v4317_v18 = vadd.f32 %v4316_v15, %v2270_v14  ;;  %v244_v15 = vld [vmem:[%s6609_s19 + $0x380] sm:$0xff] }
  0xf1   : > { %v2292_v16 = vmul.f32 %v244_v15, %v244_v15 }
  0xf2   : > { %v4318_v21 = vadd.f32 %v4317_v18, %v2271_v17  ;;  %v245_v18 = vld [vmem:[%s6609_s19 + $0x388] sm:$0xff] }
  0xf3   : > { %v2293_v19 = vmul.f32 %v245_v18, %v245_v18 }
  0xf4   : > { %v4319_v24 = vadd.f32 %v4318_v21, %v2272_v20  ;;  %v246_v21 = vld [vmem:[%s6609_s19 + $0x390] sm:$0xff] }
  0xf5   : > { %v2294_v22 = vmul.f32 %v246_v21, %v246_v21 }
  0xf6   : > { %v4320_v27 = vadd.f32 %v4319_v24, %v2273_v23  ;;  %v247_v24 = vld [vmem:[%s6609_s19 + $0x398] sm:$0xff] }
  0xf7   : > { %v2295_v25 = vmul.f32 %v247_v24, %v247_v24 }
  0xf8   : > { %v4321_v30 = vadd.f32 %v4320_v27, %v2274_v26  ;;  %v248_v27 = vld [vmem:[%s6609_s19 + $0x3a0] sm:$0xff] }
  0xf9   : > { %v2296_v28 = vmul.f32 %v248_v27, %v248_v27 }
  0xfa   : > { %v4322_v33 = vadd.f32 %v4321_v30, %v2275_v29  ;;  %v249_v30 = vld [vmem:[%s6609_s19 + $0x3a8] sm:$0xff] }
  0xfb   : > { %v2297_v31 = vmul.f32 %v249_v30, %v249_v30 }
  0xfc   : > { %v4323_v36 = vadd.f32 %v4322_v33, %v2276_v32  ;;  %v250_v33 = vld [vmem:[%s6609_s19 + $0x3b0] sm:$0xff] }
  0xfd   : > { %v2298_v34 = vmul.f32 %v250_v33, %v250_v33 }
  0xfe   : > { %v4324_v39 = vadd.f32 %v4323_v36, %v2277_v35  ;;  %v251_v36 = vld [vmem:[%s6609_s19 + $0x3b8] sm:$0xff] }
  0xff   : > { %v2299_v37 = vmul.f32 %v251_v36, %v251_v36 }
 0x100   : > { %v4325_v42 = vadd.f32 %v4324_v39, %v2278_v38  ;;  %v252_v39 = vld [vmem:[%s6609_s19 + $0x3c0] sm:$0xff] }
 0x101   : > { %v2300_v40 = vmul.f32 %v252_v39, %v252_v39 }
 0x102   : > { %v4326_v45 = vadd.f32 %v4325_v42, %v2279_v41  ;;  %v253_v42 = vld [vmem:[%s6609_s19 + $0x3c8] sm:$0xff] }
 0x103   : > { %v2301_v43 = vmul.f32 %v253_v42, %v253_v42 }
 0x104   : > { %v4327_v48 = vadd.f32 %v4326_v45, %v2280_v44  ;;  %v254_v45 = vld [vmem:[%s6609_s19 + $0x3d0] sm:$0xff] }
 0x105   : > { %v2302_v46 = vmul.f32 %v254_v45, %v254_v45 }
 0x106   : > { %v4328_v51 = vadd.f32 %v4327_v48, %v2281_v47  ;;  %v255_v48 = vld [vmem:[%s6609_s19 + $0x3d8] sm:$0xff] }
 0x107   : > { %v2303_v49 = vmul.f32 %v255_v48, %v255_v48 }
 0x108   : > { %v4329_v54 = vadd.f32 %v4328_v51, %v2282_v50  ;;  %v256_v51 = vld [vmem:[%s6609_s19 + $0x3e0] sm:$0xff] }
 0x109   : > { %v2304_v52 = vmul.f32 %v256_v51, %v256_v51 }
 0x10a   : > { %v4330_v57 = vadd.f32 %v4329_v54, %v2283_v53  ;;  %v257_v54 = vld [vmem:[%s6609_s19 + $0x3e8] sm:$0xff] }
 0x10b   : > { %v2305_v55 = vmul.f32 %v257_v54, %v257_v54 }
 0x10c   : > { %v4331_v60 = vadd.f32 %v4330_v57, %v2284_v56  ;;  %v258_v57 = vld [vmem:[%s6609_s19 + $0x3f0] sm:$0xff] }
 0x10d   : > { %v2306_v58 = vmul.f32 %v258_v57, %v258_v57 }
 0x10e   : > { %v4332_v63 = vadd.f32 %v4331_v60, %v2285_v59  ;;  %v259_v60 = vld [vmem:[%s6609_s19 + $0x3f8] sm:$0xff] }
 0x10f   : > { %v2307_v61 = vmul.f32 %v259_v60, %v259_v60 }
 0x110   : > { %v4333_v2 = vadd.f32 %v4332_v63, %v2286_v62  ;;  %v260_v63 = vld [vmem:[%s6609_s19 + $0x400] sm:$0xff] }
 0x111   : > { %v2308_v0 = vmul.f32 %v260_v63, %v260_v63 }
 0x112   : > { %v4334_v5 = vadd.f32 %v4333_v2, %v2287_v1  ;;  %v261_v2 = vld [vmem:[%s6609_s19 + $0x408] sm:$0xff] }
 0x113   : > { %v2309_v3 = vmul.f32 %v261_v2, %v261_v2 }
 0x114   : > { %v4335_v8 = vadd.f32 %v4334_v5, %v2288_v4  ;;  %v262_v5 = vld [vmem:[%s6609_s19 + $0x410] sm:$0xff] }
 0x115   : > { %v2310_v6 = vmul.f32 %v262_v5, %v262_v5 }
 0x116   : > { %v4336_v11 = vadd.f32 %v4335_v8, %v2289_v7  ;;  %v263_v8 = vld [vmem:[%s6609_s19 + $0x418] sm:$0xff] }
 0x117   : > { %v2311_v9 = vmul.f32 %v263_v8, %v263_v8 }
 0x118   : > { %v4337_v14 = vadd.f32 %v4336_v11, %v2290_v10  ;;  %v264_v11 = vld [vmem:[%s6609_s19 + $0x420] sm:$0xff] }
 0x119   : > { %v2312_v12 = vmul.f32 %v264_v11, %v264_v11 }
 0x11a   : > { %v4338_v17 = vadd.f32 %v4337_v14, %v2291_v13  ;;  %v265_v14 = vld [vmem:[%s6609_s19 + $0x428] sm:$0xff] }
 0x11b   : > { %v2313_v15 = vmul.f32 %v265_v14, %v265_v14 }
 0x11c   : > { %v4339_v20 = vadd.f32 %v4338_v17, %v2292_v16  ;;  %v266_v17 = vld [vmem:[%s6609_s19 + $0x430] sm:$0xff] }
 0x11d   : > { %v2314_v18 = vmul.f32 %v266_v17, %v266_v17 }
 0x11e   : > { %v4340_v23 = vadd.f32 %v4339_v20, %v2293_v19  ;;  %v267_v20 = vld [vmem:[%s6609_s19 + $0x438] sm:$0xff] }
 0x11f   : > { %v2315_v21 = vmul.f32 %v267_v20, %v267_v20 }
 0x120   : > { %v4341_v26 = vadd.f32 %v4340_v23, %v2294_v22  ;;  %v268_v23 = vld [vmem:[%s6609_s19 + $0x440] sm:$0xff] }
 0x121   : > { %v2316_v24 = vmul.f32 %v268_v23, %v268_v23 }
 0x122   : > { %v4342_v29 = vadd.f32 %v4341_v26, %v2295_v25  ;;  %v269_v26 = vld [vmem:[%s6609_s19 + $0x448] sm:$0xff] }
 0x123   : > { %v2317_v27 = vmul.f32 %v269_v26, %v269_v26 }
 0x124   : > { %v4343_v32 = vadd.f32 %v4342_v29, %v2296_v28  ;;  %v270_v29 = vld [vmem:[%s6609_s19 + $0x450] sm:$0xff] }
 0x125   : > { %v2318_v30 = vmul.f32 %v270_v29, %v270_v29 }
 0x126   : > { %v4344_v35 = vadd.f32 %v4343_v32, %v2297_v31  ;;  %v271_v32 = vld [vmem:[%s6609_s19 + $0x458] sm:$0xff] }
 0x127   : > { %v2319_v33 = vmul.f32 %v271_v32, %v271_v32 }
 0x128   : > { %v4345_v38 = vadd.f32 %v4344_v35, %v2298_v34  ;;  %v272_v35 = vld [vmem:[%s6609_s19 + $0x460] sm:$0xff] }
 0x129   : > { %v2320_v36 = vmul.f32 %v272_v35, %v272_v35 }
 0x12a   : > { %v4346_v41 = vadd.f32 %v4345_v38, %v2299_v37  ;;  %v273_v38 = vld [vmem:[%s6609_s19 + $0x468] sm:$0xff] }
 0x12b   : > { %v2321_v39 = vmul.f32 %v273_v38, %v273_v38 }
 0x12c   : > { %v4347_v44 = vadd.f32 %v4346_v41, %v2300_v40  ;;  %v274_v41 = vld [vmem:[%s6609_s19 + $0x470] sm:$0xff] }
 0x12d   : > { %v2322_v42 = vmul.f32 %v274_v41, %v274_v41 }
 0x12e   : > { %v4348_v47 = vadd.f32 %v4347_v44, %v2301_v43  ;;  %v275_v44 = vld [vmem:[%s6609_s19 + $0x478] sm:$0xff] }
 0x12f   : > { %v2323_v45 = vmul.f32 %v275_v44, %v275_v44 }
 0x130   : > { %v4349_v50 = vadd.f32 %v4348_v47, %v2302_v46  ;;  %v276_v47 = vld [vmem:[%s6609_s19 + $0x480] sm:$0xff] }
 0x131   : > { %v2324_v48 = vmul.f32 %v276_v47, %v276_v47 }
 0x132   : > { %v4350_v53 = vadd.f32 %v4349_v50, %v2303_v49  ;;  %v277_v50 = vld [vmem:[%s6609_s19 + $0x488] sm:$0xff] }
 0x133   : > { %v2325_v51 = vmul.f32 %v277_v50, %v277_v50 }
 0x134   : > { %v4351_v56 = vadd.f32 %v4350_v53, %v2304_v52  ;;  %v278_v53 = vld [vmem:[%s6609_s19 + $0x490] sm:$0xff] }
 0x135   : > { %v2326_v54 = vmul.f32 %v278_v53, %v278_v53 }
 0x136   : > { %v4352_v59 = vadd.f32 %v4351_v56, %v2305_v55  ;;  %v279_v56 = vld [vmem:[%s6609_s19 + $0x498] sm:$0xff] }
 0x137   : > { %v2327_v57 = vmul.f32 %v279_v56, %v279_v56 }
 0x138   : > { %v4353_v62 = vadd.f32 %v4352_v59, %v2306_v58  ;;  %v280_v59 = vld [vmem:[%s6609_s19 + $0x4a0] sm:$0xff] }
 0x139   : > { %v2328_v60 = vmul.f32 %v280_v59, %v280_v59 }
 0x13a   : > { %v4354_v1 = vadd.f32 %v4353_v62, %v2307_v61  ;;  %v281_v62 = vld [vmem:[%s6609_s19 + $0x4a8] sm:$0xff] }
 0x13b   : > { %v2329_v63 = vmul.f32 %v281_v62, %v281_v62 }
 0x13c   : > { %v4355_v4 = vadd.f32 %v4354_v1, %v2308_v0  ;;  %v282_v1 = vld [vmem:[%s6609_s19 + $0x4b0] sm:$0xff] }
 0x13d   : > { %v2330_v2 = vmul.f32 %v282_v1, %v282_v1 }
 0x13e   : > { %v4356_v7 = vadd.f32 %v4355_v4, %v2309_v3  ;;  %v283_v4 = vld [vmem:[%s6609_s19 + $0x4b8] sm:$0xff] }
 0x13f   : > { %v2331_v5 = vmul.f32 %v283_v4, %v283_v4 }
 0x140   : > { %v4357_v10 = vadd.f32 %v4356_v7, %v2310_v6  ;;  %v284_v7 = vld [vmem:[%s6609_s19 + $0x4c0] sm:$0xff] }
 0x141   : > { %v2332_v8 = vmul.f32 %v284_v7, %v284_v7 }
 0x142   : > { %v4358_v13 = vadd.f32 %v4357_v10, %v2311_v9  ;;  %v285_v10 = vld [vmem:[%s6609_s19 + $0x4c8] sm:$0xff] }
 0x143   : > { %v2333_v11 = vmul.f32 %v285_v10, %v285_v10 }
 0x144   : > { %v4359_v16 = vadd.f32 %v4358_v13, %v2312_v12  ;;  %v286_v13 = vld [vmem:[%s6609_s19 + $0x4d0] sm:$0xff] }
 0x145   : > { %v2334_v14 = vmul.f32 %v286_v13, %v286_v13 }
 0x146   : > { %v4360_v19 = vadd.f32 %v4359_v16, %v2313_v15  ;;  %v287_v16 = vld [vmem:[%s6609_s19 + $0x4d8] sm:$0xff] }
 0x147   : > { %v2335_v17 = vmul.f32 %v287_v16, %v287_v16 }
 0x148   : > { %v4361_v22 = vadd.f32 %v4360_v19, %v2314_v18  ;;  %v288_v19 = vld [vmem:[%s6609_s19 + $0x4e0] sm:$0xff] }
 0x149   : > { %v2336_v20 = vmul.f32 %v288_v19, %v288_v19 }
 0x14a   : > { %v4362_v25 = vadd.f32 %v4361_v22, %v2315_v21  ;;  %v289_v22 = vld [vmem:[%s6609_s19 + $0x4e8] sm:$0xff] }
 0x14b   : > { %v2337_v23 = vmul.f32 %v289_v22, %v289_v22 }
 0x14c   : > { %v4363_v28 = vadd.f32 %v4362_v25, %v2316_v24  ;;  %v290_v25 = vld [vmem:[%s6609_s19 + $0x4f0] sm:$0xff] }
 0x14d   : > { %v2338_v26 = vmul.f32 %v290_v25, %v290_v25 }
 0x14e   : > { %v4364_v31 = vadd.f32 %v4363_v28, %v2317_v27  ;;  %v291_v28 = vld [vmem:[%s6609_s19 + $0x4f8] sm:$0xff] }
 0x14f   : > { %v2339_v29 = vmul.f32 %v291_v28, %v291_v28 }
 0x150   : > { %v4365_v34 = vadd.f32 %v4364_v31, %v2318_v30  ;;  %v292_v31 = vld [vmem:[%s6609_s19 + $0x500] sm:$0xff] }
 0x151   : > { %v2340_v32 = vmul.f32 %v292_v31, %v292_v31 }
 0x152   : > { %v4366_v37 = vadd.f32 %v4365_v34, %v2319_v33  ;;  %v293_v34 = vld [vmem:[%s6609_s19 + $0x508] sm:$0xff] }
 0x153   : > { %v2341_v35 = vmul.f32 %v293_v34, %v293_v34 }
 0x154   : > { %v4367_v40 = vadd.f32 %v4366_v37, %v2320_v36  ;;  %v294_v37 = vld [vmem:[%s6609_s19 + $0x510] sm:$0xff] }
 0x155   : > { %v2342_v38 = vmul.f32 %v294_v37, %v294_v37 }
 0x156   : > { %v4368_v43 = vadd.f32 %v4367_v40, %v2321_v39  ;;  %v295_v40 = vld [vmem:[%s6609_s19 + $0x518] sm:$0xff] }
 0x157   : > { %v2343_v41 = vmul.f32 %v295_v40, %v295_v40 }
 0x158   : > { %v4369_v46 = vadd.f32 %v4368_v43, %v2322_v42  ;;  %v296_v43 = vld [vmem:[%s6609_s19 + $0x520] sm:$0xff] }
 0x159   : > { %v2344_v44 = vmul.f32 %v296_v43, %v296_v43 }
 0x15a   : > { %v4370_v49 = vadd.f32 %v4369_v46, %v2323_v45  ;;  %v297_v46 = vld [vmem:[%s6609_s19 + $0x528] sm:$0xff] }
 0x15b   : > { %v2345_v47 = vmul.f32 %v297_v46, %v297_v46 }
 0x15c   : > { %v4371_v52 = vadd.f32 %v4370_v49, %v2324_v48  ;;  %v298_v49 = vld [vmem:[%s6609_s19 + $0x530] sm:$0xff] }
 0x15d   : > { %v2346_v50 = vmul.f32 %v298_v49, %v298_v49 }
 0x15e   : > { %v4372_v55 = vadd.f32 %v4371_v52, %v2325_v51  ;;  %v299_v52 = vld [vmem:[%s6609_s19 + $0x538] sm:$0xff] }
 0x15f   : > { %v2347_v53 = vmul.f32 %v299_v52, %v299_v52 }
 0x160   : > { %v4373_v58 = vadd.f32 %v4372_v55, %v2326_v54  ;;  %v300_v55 = vld [vmem:[%s6609_s19 + $0x540] sm:$0xff] }
 0x161   : > { %v2348_v56 = vmul.f32 %v300_v55, %v300_v55 }
 0x162   : > { %v4374_v61 = vadd.f32 %v4373_v58, %v2327_v57  ;;  %v301_v58 = vld [vmem:[%s6609_s19 + $0x548] sm:$0xff] }
 0x163   : > { %v2349_v59 = vmul.f32 %v301_v58, %v301_v58 }
 0x164   : > { %v4375_v0 = vadd.f32 %v4374_v61, %v2328_v60  ;;  %v302_v61 = vld [vmem:[%s6609_s19 + $0x550] sm:$0xff] }
 0x165   : > { %v2350_v62 = vmul.f32 %v302_v61, %v302_v61 }
 0x166   : > { %v4376_v3 = vadd.f32 %v4375_v0, %v2329_v63  ;;  %v303_v0 = vld [vmem:[%s6609_s19 + $0x558] sm:$0xff] }
 0x167   : > { %v2351_v1 = vmul.f32 %v303_v0, %v303_v0 }
 0x168   : > { %v4377_v6 = vadd.f32 %v4376_v3, %v2330_v2  ;;  %v304_v3 = vld [vmem:[%s6609_s19 + $0x560] sm:$0xff] }
 0x169   : > { %v2352_v4 = vmul.f32 %v304_v3, %v304_v3 }
 0x16a   : > { %v4378_v9 = vadd.f32 %v4377_v6, %v2331_v5  ;;  %v305_v6 = vld [vmem:[%s6609_s19 + $0x568] sm:$0xff] }
 0x16b   : > { %v2353_v7 = vmul.f32 %v305_v6, %v305_v6 }
 0x16c   : > { %v4379_v12 = vadd.f32 %v4378_v9, %v2332_v8  ;;  %v306_v9 = vld [vmem:[%s6609_s19 + $0x570] sm:$0xff] }
 0x16d   : > { %v2354_v10 = vmul.f32 %v306_v9, %v306_v9 }
 0x16e   : > { %v4380_v15 = vadd.f32 %v4379_v12, %v2333_v11  ;;  %v307_v12 = vld [vmem:[%s6609_s19 + $0x578] sm:$0xff] }
 0x16f   : > { %v2355_v13 = vmul.f32 %v307_v12, %v307_v12 }
 0x170   : > { %v4381_v18 = vadd.f32 %v4380_v15, %v2334_v14  ;;  %v308_v15 = vld [vmem:[%s6609_s19 + $0x580] sm:$0xff] }
 0x171   : > { %v2356_v16 = vmul.f32 %v308_v15, %v308_v15 }
 0x172   : > { %v4382_v21 = vadd.f32 %v4381_v18, %v2335_v17  ;;  %v309_v18 = vld [vmem:[%s6609_s19 + $0x588] sm:$0xff] }
 0x173   : > { %v2357_v19 = vmul.f32 %v309_v18, %v309_v18 }
 0x174   : > { %v4383_v24 = vadd.f32 %v4382_v21, %v2336_v20  ;;  %v310_v21 = vld [vmem:[%s6609_s19 + $0x590] sm:$0xff] }
 0x175   : > { %v2358_v22 = vmul.f32 %v310_v21, %v310_v21 }
 0x176   : > { %v4384_v27 = vadd.f32 %v4383_v24, %v2337_v23  ;;  %v311_v24 = vld [vmem:[%s6609_s19 + $0x598] sm:$0xff] }
 0x177   : > { %v2359_v25 = vmul.f32 %v311_v24, %v311_v24 }
 0x178   : > { %v4385_v30 = vadd.f32 %v4384_v27, %v2338_v26  ;;  %v312_v27 = vld [vmem:[%s6609_s19 + $0x5a0] sm:$0xff] }
 0x179   : > { %v2360_v28 = vmul.f32 %v312_v27, %v312_v27 }
 0x17a   : > { %v4386_v33 = vadd.f32 %v4385_v30, %v2339_v29  ;;  %v313_v30 = vld [vmem:[%s6609_s19 + $0x5a8] sm:$0xff] }
 0x17b   : > { %v2361_v31 = vmul.f32 %v313_v30, %v313_v30 }
 0x17c   : > { %v4387_v36 = vadd.f32 %v4386_v33, %v2340_v32  ;;  %v314_v33 = vld [vmem:[%s6609_s19 + $0x5b0] sm:$0xff] }
 0x17d   : > { %v2362_v34 = vmul.f32 %v314_v33, %v314_v33 }
 0x17e   : > { %v4388_v39 = vadd.f32 %v4387_v36, %v2341_v35  ;;  %v315_v36 = vld [vmem:[%s6609_s19 + $0x5b8] sm:$0xff] }
 0x17f   : > { %v2363_v37 = vmul.f32 %v315_v36, %v315_v36 }
 0x180   : > { %v4389_v42 = vadd.f32 %v4388_v39, %v2342_v38  ;;  %v316_v39 = vld [vmem:[%s6609_s19 + $0x5c0] sm:$0xff] }
 0x181   : > { %v2364_v40 = vmul.f32 %v316_v39, %v316_v39 }
 0x182   : > { %v4390_v45 = vadd.f32 %v4389_v42, %v2343_v41  ;;  %v317_v42 = vld [vmem:[%s6609_s19 + $0x5c8] sm:$0xff] }
 0x183   : > { %v2365_v43 = vmul.f32 %v317_v42, %v317_v42 }
 0x184   : > { %v4391_v48 = vadd.f32 %v4390_v45, %v2344_v44  ;;  %v318_v45 = vld [vmem:[%s6609_s19 + $0x5d0] sm:$0xff] }
 0x185   : > { %v2366_v46 = vmul.f32 %v318_v45, %v318_v45 }
 0x186   : > { %v4392_v51 = vadd.f32 %v4391_v48, %v2345_v47  ;;  %v319_v48 = vld [vmem:[%s6609_s19 + $0x5d8] sm:$0xff] }
 0x187   : > { %v2367_v49 = vmul.f32 %v319_v48, %v319_v48 }
 0x188   : > { %v4393_v54 = vadd.f32 %v4392_v51, %v2346_v50  ;;  %v320_v51 = vld [vmem:[%s6609_s19 + $0x5e0] sm:$0xff] }
 0x189   : > { %v2368_v52 = vmul.f32 %v320_v51, %v320_v51 }
 0x18a   : > { %v4394_v57 = vadd.f32 %v4393_v54, %v2347_v53  ;;  %v321_v54 = vld [vmem:[%s6609_s19 + $0x5e8] sm:$0xff] }
 0x18b   : > { %v2369_v55 = vmul.f32 %v321_v54, %v321_v54 }
 0x18c   : > { %v4395_v60 = vadd.f32 %v4394_v57, %v2348_v56  ;;  %v322_v57 = vld [vmem:[%s6609_s19 + $0x5f0] sm:$0xff] }
 0x18d   : > { %v2370_v58 = vmul.f32 %v322_v57, %v322_v57 }
 0x18e   : > { %v4396_v63 = vadd.f32 %v4395_v60, %v2349_v59  ;;  %v323_v60 = vld [vmem:[%s6609_s19 + $0x5f8] sm:$0xff] }
 0x18f   : > { %v2371_v61 = vmul.f32 %v323_v60, %v323_v60 }
 0x190   : > { %v4397_v2 = vadd.f32 %v4396_v63, %v2350_v62  ;;  %v324_v63 = vld [vmem:[%s6609_s19 + $0x600] sm:$0xff] }
 0x191   : > { %v2372_v0 = vmul.f32 %v324_v63, %v324_v63 }
 0x192   : > { %v4398_v5 = vadd.f32 %v4397_v2, %v2351_v1  ;;  %v325_v2 = vld [vmem:[%s6609_s19 + $0x608] sm:$0xff] }
 0x193   : > { %v2373_v3 = vmul.f32 %v325_v2, %v325_v2 }
 0x194   : > { %v4399_v8 = vadd.f32 %v4398_v5, %v2352_v4  ;;  %v326_v5 = vld [vmem:[%s6609_s19 + $0x610] sm:$0xff] }
 0x195   : > { %v2374_v6 = vmul.f32 %v326_v5, %v326_v5 }
 0x196   : > { %v4400_v11 = vadd.f32 %v4399_v8, %v2353_v7  ;;  %v327_v8 = vld [vmem:[%s6609_s19 + $0x618] sm:$0xff] }
 0x197   : > { %v2375_v9 = vmul.f32 %v327_v8, %v327_v8 }
 0x198   : > { %v4401_v14 = vadd.f32 %v4400_v11, %v2354_v10  ;;  %v328_v11 = vld [vmem:[%s6609_s19 + $0x620] sm:$0xff] }
 0x199   : > { %v2376_v12 = vmul.f32 %v328_v11, %v328_v11 }
 0x19a   : > { %v4402_v17 = vadd.f32 %v4401_v14, %v2355_v13  ;;  %v329_v14 = vld [vmem:[%s6609_s19 + $0x628] sm:$0xff] }
 0x19b   : > { %v2377_v15 = vmul.f32 %v329_v14, %v329_v14 }
 0x19c   : > { %v4403_v20 = vadd.f32 %v4402_v17, %v2356_v16  ;;  %v330_v17 = vld [vmem:[%s6609_s19 + $0x630] sm:$0xff] }
 0x19d   : > { %v2378_v18 = vmul.f32 %v330_v17, %v330_v17 }
 0x19e   : > { %v4404_v23 = vadd.f32 %v4403_v20, %v2357_v19  ;;  %v331_v20 = vld [vmem:[%s6609_s19 + $0x638] sm:$0xff] }
 0x19f   : > { %v2379_v21 = vmul.f32 %v331_v20, %v331_v20 }
 0x1a0   : > { %v4405_v26 = vadd.f32 %v4404_v23, %v2358_v22  ;;  %v332_v23 = vld [vmem:[%s6609_s19 + $0x640] sm:$0xff] }
 0x1a1   : > { %v2380_v24 = vmul.f32 %v332_v23, %v332_v23 }
 0x1a2   : > { %v4406_v29 = vadd.f32 %v4405_v26, %v2359_v25  ;;  %v333_v26 = vld [vmem:[%s6609_s19 + $0x648] sm:$0xff] }
 0x1a3   : > { %v2381_v27 = vmul.f32 %v333_v26, %v333_v26 }
 0x1a4   : > { %v4407_v32 = vadd.f32 %v4406_v29, %v2360_v28  ;;  %v334_v29 = vld [vmem:[%s6609_s19 + $0x650] sm:$0xff] }
 0x1a5   : > { %v2382_v30 = vmul.f32 %v334_v29, %v334_v29 }
 0x1a6   : > { %v4408_v35 = vadd.f32 %v4407_v32, %v2361_v31  ;;  %v335_v32 = vld [vmem:[%s6609_s19 + $0x658] sm:$0xff] }
 0x1a7   : > { %v2383_v33 = vmul.f32 %v335_v32, %v335_v32 }
 0x1a8   : > { %v4409_v38 = vadd.f32 %v4408_v35, %v2362_v34  ;;  %v336_v35 = vld [vmem:[%s6609_s19 + $0x660] sm:$0xff] }
 0x1a9   : > { %v2384_v36 = vmul.f32 %v336_v35, %v336_v35 }
 0x1aa   : > { %v4410_v41 = vadd.f32 %v4409_v38, %v2363_v37  ;;  %v337_v38 = vld [vmem:[%s6609_s19 + $0x668] sm:$0xff] }
 0x1ab   : > { %v2385_v39 = vmul.f32 %v337_v38, %v337_v38 }
 0x1ac   : > { %v4411_v44 = vadd.f32 %v4410_v41, %v2364_v40  ;;  %v338_v41 = vld [vmem:[%s6609_s19 + $0x670] sm:$0xff] }
 0x1ad   : > { %v2386_v42 = vmul.f32 %v338_v41, %v338_v41 }
 0x1ae   : > { %v4412_v47 = vadd.f32 %v4411_v44, %v2365_v43  ;;  %v339_v44 = vld [vmem:[%s6609_s19 + $0x678] sm:$0xff] }
 0x1af   : > { %v2387_v45 = vmul.f32 %v339_v44, %v339_v44 }
 0x1b0   : > { %v4413_v50 = vadd.f32 %v4412_v47, %v2366_v46  ;;  %v340_v47 = vld [vmem:[%s6609_s19 + $0x680] sm:$0xff] }
 0x1b1   : > { %v2388_v48 = vmul.f32 %v340_v47, %v340_v47 }
 0x1b2   : > { %v4414_v53 = vadd.f32 %v4413_v50, %v2367_v49  ;;  %v341_v50 = vld [vmem:[%s6609_s19 + $0x688] sm:$0xff] }
 0x1b3   : > { %v2389_v51 = vmul.f32 %v341_v50, %v341_v50 }
 0x1b4   : > { %v4415_v56 = vadd.f32 %v4414_v53, %v2368_v52  ;;  %v342_v53 = vld [vmem:[%s6609_s19 + $0x690] sm:$0xff] }
 0x1b5   : > { %v2390_v54 = vmul.f32 %v342_v53, %v342_v53 }
 0x1b6   : > { %v4416_v59 = vadd.f32 %v4415_v56, %v2369_v55  ;;  %v343_v56 = vld [vmem:[%s6609_s19 + $0x698] sm:$0xff] }
 0x1b7   : > { %v2391_v57 = vmul.f32 %v343_v56, %v343_v56 }
 0x1b8   : > { %v4417_v62 = vadd.f32 %v4416_v59, %v2370_v58  ;;  %v344_v59 = vld [vmem:[%s6609_s19 + $0x6a0] sm:$0xff] }
 0x1b9   : > { %v2392_v60 = vmul.f32 %v344_v59, %v344_v59 }
 0x1ba   : > { %v4418_v1 = vadd.f32 %v4417_v62, %v2371_v61  ;;  %v345_v62 = vld [vmem:[%s6609_s19 + $0x6a8] sm:$0xff] }
 0x1bb   : > { %v2393_v63 = vmul.f32 %v345_v62, %v345_v62 }
 0x1bc   : > { %v4419_v4 = vadd.f32 %v4418_v1, %v2372_v0  ;;  %v346_v1 = vld [vmem:[%s6609_s19 + $0x6b0] sm:$0xff] }
 0x1bd   : > { %v2394_v2 = vmul.f32 %v346_v1, %v346_v1 }
 0x1be   : > { %v4420_v7 = vadd.f32 %v4419_v4, %v2373_v3  ;;  %v347_v4 = vld [vmem:[%s6609_s19 + $0x6b8] sm:$0xff] }
 0x1bf   : > { %v2395_v5 = vmul.f32 %v347_v4, %v347_v4 }
 0x1c0   : > { %v4421_v10 = vadd.f32 %v4420_v7, %v2374_v6  ;;  %v348_v7 = vld [vmem:[%s6609_s19 + $0x6c0] sm:$0xff] }
 0x1c1   : > { %v2396_v8 = vmul.f32 %v348_v7, %v348_v7 }
 0x1c2   : > { %v4422_v13 = vadd.f32 %v4421_v10, %v2375_v9  ;;  %v349_v10 = vld [vmem:[%s6609_s19 + $0x6c8] sm:$0xff] }
 0x1c3   : > { %v2397_v11 = vmul.f32 %v349_v10, %v349_v10 }
 0x1c4   : > { %v4423_v16 = vadd.f32 %v4422_v13, %v2376_v12  ;;  %v350_v13 = vld [vmem:[%s6609_s19 + $0x6d0] sm:$0xff] }
 0x1c5   : > { %v2398_v14 = vmul.f32 %v350_v13, %v350_v13 }
 0x1c6   : > { %v4424_v19 = vadd.f32 %v4423_v16, %v2377_v15  ;;  %v351_v16 = vld [vmem:[%s6609_s19 + $0x6d8] sm:$0xff] }
 0x1c7   : > { %v2399_v17 = vmul.f32 %v351_v16, %v351_v16 }
 0x1c8   : > { %v4425_v22 = vadd.f32 %v4424_v19, %v2378_v18  ;;  %v352_v19 = vld [vmem:[%s6609_s19 + $0x6e0] sm:$0xff] }
 0x1c9   : > { %v2400_v20 = vmul.f32 %v352_v19, %v352_v19 }
 0x1ca   : > { %v4426_v25 = vadd.f32 %v4425_v22, %v2379_v21  ;;  %v353_v22 = vld [vmem:[%s6609_s19 + $0x6e8] sm:$0xff] }
 0x1cb   : > { %v2401_v23 = vmul.f32 %v353_v22, %v353_v22 }
 0x1cc   : > { %v4427_v28 = vadd.f32 %v4426_v25, %v2380_v24  ;;  %v354_v25 = vld [vmem:[%s6609_s19 + $0x6f0] sm:$0xff] }
 0x1cd   : > { %v2402_v26 = vmul.f32 %v354_v25, %v354_v25 }
 0x1ce   : > { %v4428_v31 = vadd.f32 %v4427_v28, %v2381_v27  ;;  %v355_v28 = vld [vmem:[%s6609_s19 + $0x6f8] sm:$0xff] }
 0x1cf   : > { %v2403_v29 = vmul.f32 %v355_v28, %v355_v28 }
 0x1d0   : > { %v4429_v34 = vadd.f32 %v4428_v31, %v2382_v30  ;;  %v356_v31 = vld [vmem:[%s6609_s19 + $0x700] sm:$0xff] }
 0x1d1   : > { %v2404_v32 = vmul.f32 %v356_v31, %v356_v31 }
 0x1d2   : > { %v4430_v37 = vadd.f32 %v4429_v34, %v2383_v33  ;;  %v357_v34 = vld [vmem:[%s6609_s19 + $0x708] sm:$0xff] }
 0x1d3   : > { %v2405_v35 = vmul.f32 %v357_v34, %v357_v34 }
 0x1d4   : > { %v4431_v40 = vadd.f32 %v4430_v37, %v2384_v36  ;;  %v358_v37 = vld [vmem:[%s6609_s19 + $0x710] sm:$0xff] }
 0x1d5   : > { %v2406_v38 = vmul.f32 %v358_v37, %v358_v37 }
 0x1d6   : > { %v4432_v43 = vadd.f32 %v4431_v40, %v2385_v39  ;;  %v359_v40 = vld [vmem:[%s6609_s19 + $0x718] sm:$0xff] }
 0x1d7   : > { %v2407_v41 = vmul.f32 %v359_v40, %v359_v40 }
 0x1d8   : > { %v4433_v46 = vadd.f32 %v4432_v43, %v2386_v42  ;;  %v360_v43 = vld [vmem:[%s6609_s19 + $0x720] sm:$0xff] }
 0x1d9   : > { %v2408_v44 = vmul.f32 %v360_v43, %v360_v43 }
 0x1da   : > { %v4434_v49 = vadd.f32 %v4433_v46, %v2387_v45  ;;  %v361_v46 = vld [vmem:[%s6609_s19 + $0x728] sm:$0xff] }
 0x1db   : > { %v2409_v47 = vmul.f32 %v361_v46, %v361_v46 }
 0x1dc   : > { %v4435_v52 = vadd.f32 %v4434_v49, %v2388_v48  ;;  %v362_v49 = vld [vmem:[%s6609_s19 + $0x730] sm:$0xff] }
 0x1dd   : > { %v2410_v50 = vmul.f32 %v362_v49, %v362_v49 }
 0x1de   : > { %v4436_v55 = vadd.f32 %v4435_v52, %v2389_v51  ;;  %v363_v52 = vld [vmem:[%s6609_s19 + $0x738] sm:$0xff] }
 0x1df   : > { %v2411_v53 = vmul.f32 %v363_v52, %v363_v52 }
 0x1e0   : > { %v4437_v58 = vadd.f32 %v4436_v55, %v2390_v54  ;;  %v364_v55 = vld [vmem:[%s6609_s19 + $0x740] sm:$0xff] }
 0x1e1   : > { %v2412_v56 = vmul.f32 %v364_v55, %v364_v55 }
 0x1e2   : > { %v4438_v61 = vadd.f32 %v4437_v58, %v2391_v57  ;;  %v365_v58 = vld [vmem:[%s6609_s19 + $0x748] sm:$0xff] }
 0x1e3   : > { %v2413_v59 = vmul.f32 %v365_v58, %v365_v58 }
 0x1e4   : > { %v4439_v0 = vadd.f32 %v4438_v61, %v2392_v60  ;;  %v366_v61 = vld [vmem:[%s6609_s19 + $0x750] sm:$0xff] }
 0x1e5   : > { %v2414_v62 = vmul.f32 %v366_v61, %v366_v61 }
 0x1e6   : > { %v4440_v3 = vadd.f32 %v4439_v0, %v2393_v63  ;;  %v367_v0 = vld [vmem:[%s6609_s19 + $0x758] sm:$0xff] }
 0x1e7   : > { %v2415_v1 = vmul.f32 %v367_v0, %v367_v0 }
 0x1e8   : > { %v4441_v6 = vadd.f32 %v4440_v3, %v2394_v2  ;;  %v368_v3 = vld [vmem:[%s6609_s19 + $0x760] sm:$0xff] }
 0x1e9   : > { %v2416_v4 = vmul.f32 %v368_v3, %v368_v3 }
 0x1ea   : > { %v4442_v9 = vadd.f32 %v4441_v6, %v2395_v5  ;;  %v369_v6 = vld [vmem:[%s6609_s19 + $0x768] sm:$0xff] }
 0x1eb   : > { %v2417_v7 = vmul.f32 %v369_v6, %v369_v6 }
 0x1ec   : > { %v4443_v12 = vadd.f32 %v4442_v9, %v2396_v8  ;;  %v370_v9 = vld [vmem:[%s6609_s19 + $0x770] sm:$0xff] }
 0x1ed   : > { %v2418_v10 = vmul.f32 %v370_v9, %v370_v9 }
 0x1ee   : > { %v4444_v15 = vadd.f32 %v4443_v12, %v2397_v11  ;;  %v371_v12 = vld [vmem:[%s6609_s19 + $0x778] sm:$0xff] }
 0x1ef   : > { %v2419_v13 = vmul.f32 %v371_v12, %v371_v12 }
 0x1f0   : > { %v4445_v18 = vadd.f32 %v4444_v15, %v2398_v14  ;;  %v372_v15 = vld [vmem:[%s6609_s19 + $0x780] sm:$0xff] }
 0x1f1   : > { %v2420_v16 = vmul.f32 %v372_v15, %v372_v15 }
 0x1f2   : > { %v4446_v21 = vadd.f32 %v4445_v18, %v2399_v17  ;;  %v373_v18 = vld [vmem:[%s6609_s19 + $0x788] sm:$0xff] }
 0x1f3   : > { %v2421_v19 = vmul.f32 %v373_v18, %v373_v18 }
 0x1f4   : > { %v4447_v24 = vadd.f32 %v4446_v21, %v2400_v20  ;;  %v374_v21 = vld [vmem:[%s6609_s19 + $0x790] sm:$0xff] }
 0x1f5   : > { %v2422_v22 = vmul.f32 %v374_v21, %v374_v21 }
 0x1f6   : > { %v4448_v27 = vadd.f32 %v4447_v24, %v2401_v23  ;;  %v375_v24 = vld [vmem:[%s6609_s19 + $0x798] sm:$0xff] }
 0x1f7   : > { %v2423_v25 = vmul.f32 %v375_v24, %v375_v24 }
 0x1f8   : > { %v4449_v30 = vadd.f32 %v4448_v27, %v2402_v26  ;;  %v376_v27 = vld [vmem:[%s6609_s19 + $0x7a0] sm:$0xff] }
 0x1f9   : > { %v2424_v28 = vmul.f32 %v376_v27, %v376_v27 }
 0x1fa   : > { %v4450_v33 = vadd.f32 %v4449_v30, %v2403_v29  ;;  %v377_v30 = vld [vmem:[%s6609_s19 + $0x7a8] sm:$0xff] }
 0x1fb   : > { %v2425_v31 = vmul.f32 %v377_v30, %v377_v30 }
 0x1fc   : > { %v4451_v36 = vadd.f32 %v4450_v33, %v2404_v32  ;;  %v378_v33 = vld [vmem:[%s6609_s19 + $0x7b0] sm:$0xff] }
 0x1fd   : > { %v2426_v34 = vmul.f32 %v378_v33, %v378_v33 }
 0x1fe   : > { %v4452_v39 = vadd.f32 %v4451_v36, %v2405_v35  ;;  %v379_v36 = vld [vmem:[%s6609_s19 + $0x7b8] sm:$0xff] }
 0x1ff   : > { %v2427_v37 = vmul.f32 %v379_v36, %v379_v36 }
 0x200   : > { %v4453_v42 = vadd.f32 %v4452_v39, %v2406_v38  ;;  %v380_v39 = vld [vmem:[%s6609_s19 + $0x7c0] sm:$0xff] }
 0x201   : > { %v2428_v40 = vmul.f32 %v380_v39, %v380_v39 }
 0x202   : > { %v4454_v45 = vadd.f32 %v4453_v42, %v2407_v41  ;;  %v381_v42 = vld [vmem:[%s6609_s19 + $0x7c8] sm:$0xff] }
 0x203   : > { %v2429_v43 = vmul.f32 %v381_v42, %v381_v42 }
 0x204   : > { %v4455_v48 = vadd.f32 %v4454_v45, %v2408_v44  ;;  %v382_v45 = vld [vmem:[%s6609_s19 + $0x7d0] sm:$0xff] }
 0x205   : > { %v2430_v46 = vmul.f32 %v382_v45, %v382_v45 }
 0x206   : > { %v4456_v51 = vadd.f32 %v4455_v48, %v2409_v47  ;;  %v383_v48 = vld [vmem:[%s6609_s19 + $0x7d8] sm:$0xff] }
 0x207   : > { %v2431_v49 = vmul.f32 %v383_v48, %v383_v48 }
 0x208   : > { %v4457_v54 = vadd.f32 %v4456_v51, %v2410_v50  ;;  %v384_v51 = vld [vmem:[%s6609_s19 + $0x7e0] sm:$0xff] }
 0x209   : > { %v2432_v52 = vmul.f32 %v384_v51, %v384_v51 }
 0x20a   : > { %v4458_v57 = vadd.f32 %v4457_v54, %v2411_v53  ;;  %v385_v54 = vld [vmem:[%s6609_s19 + $0x7e8] sm:$0xff] }
 0x20b   : > { %v2433_v55 = vmul.f32 %v385_v54, %v385_v54 }
 0x20c   : > { %v4459_v60 = vadd.f32 %v4458_v57, %v2412_v56  ;;  %v386_v57 = vld [vmem:[%s6609_s19 + $0x7f0] sm:$0xff] }
 0x20d   : > { %v2434_v58 = vmul.f32 %v386_v57, %v386_v57 }
 0x20e   : > { %v4460_v63 = vadd.f32 %v4459_v60, %v2413_v59  ;;  %v387_v60 = vld [vmem:[%s6609_s19 + $0x7f8] sm:$0xff] }
 0x20f   : > { %v2435_v61 = vmul.f32 %v387_v60, %v387_v60 }
 0x210   : > { %v4461_v2 = vadd.f32 %v4460_v63, %v2414_v62  ;;  %v388_v63 = vld [vmem:[%s6609_s19 + $0x800] sm:$0xff] }
 0x211   : > { %v2436_v0 = vmul.f32 %v388_v63, %v388_v63  ;;  %v410_v63 = vld [vmem:[%s6609_s19 + $0x8b0] sm:$0xff] }
 0x212   : > { %v4462_v5 = vadd.f32 %v4461_v2, %v2415_v1  ;;  %v389_v2 = vld [vmem:[%s6609_s19 + $0x808] sm:$0xff] }
 0x213   : > { %v2437_v3 = vmul.f32 %v389_v2, %v389_v2  ;;  %v411_v2 = vld [vmem:[%s6609_s19 + $0x8b8] sm:$0xff] }
 0x214   : > { %v4463_v8 = vadd.f32 %v4462_v5, %v2416_v4  ;;  %v390_v5 = vld [vmem:[%s6609_s19 + $0x810] sm:$0xff] }
 0x215   : > { %v2438_v6 = vmul.f32 %v390_v5, %v390_v5  ;;  %v2459_v5 = vmul.f32 %v411_v2, %v411_v2 }
 0x216   : > { %v4464_v11 = vadd.f32 %v4463_v8, %v2417_v7  ;;  %v391_v8 = vld [vmem:[%s6609_s19 + $0x818] sm:$0xff] }
 0x217   : > { %v2439_v9 = vmul.f32 %v391_v8, %v391_v8 }
 0x218   : > { %v4465_v14 = vadd.f32 %v4464_v11, %v2418_v10  ;;  %v392_v11 = vld [vmem:[%s6609_s19 + $0x820] sm:$0xff] }
 0x219   : > { %v2440_v12 = vmul.f32 %v392_v11, %v392_v11 }
 0x21a   : > { %v4466_v17 = vadd.f32 %v4465_v14, %v2419_v13  ;;  %v393_v14 = vld [vmem:[%s6609_s19 + $0x828] sm:$0xff] }
 0x21b   : > { %v2441_v15 = vmul.f32 %v393_v14, %v393_v14 }
 0x21c   : > { %v4467_v20 = vadd.f32 %v4466_v17, %v2420_v16  ;;  %v394_v17 = vld [vmem:[%s6609_s19 + $0x830] sm:$0xff] }
 0x21d   : > { %v2442_v18 = vmul.f32 %v394_v17, %v394_v17 }
 0x21e   : > { %v4468_v23 = vadd.f32 %v4467_v20, %v2421_v19  ;;  %v395_v20 = vld [vmem:[%s6609_s19 + $0x838] sm:$0xff] }
 0x21f   : > { %v2443_v21 = vmul.f32 %v395_v20, %v395_v20 }
 0x220   : > { %v4469_v26 = vadd.f32 %v4468_v23, %v2422_v22  ;;  %v396_v23 = vld [vmem:[%s6609_s19 + $0x840] sm:$0xff] }
 0x221   : > { %v2444_v24 = vmul.f32 %v396_v23, %v396_v23 }
 0x222   : > { %v4470_v29 = vadd.f32 %v4469_v26, %v2423_v25  ;;  %v397_v26 = vld [vmem:[%s6609_s19 + $0x848] sm:$0xff] }
 0x223   : > { %v2445_v27 = vmul.f32 %v397_v26, %v397_v26 }
 0x224   : > { %v4471_v32 = vadd.f32 %v4470_v29, %v2424_v28  ;;  %v398_v29 = vld [vmem:[%s6609_s19 + $0x850] sm:$0xff] }
 0x225   : > { %v2446_v30 = vmul.f32 %v398_v29, %v398_v29 }
 0x226   : > { %v4472_v35 = vadd.f32 %v4471_v32, %v2425_v31  ;;  %v399_v32 = vld [vmem:[%s6609_s19 + $0x858] sm:$0xff] }
 0x227   : > { %v2447_v33 = vmul.f32 %v399_v32, %v399_v32 }
 0x228   : > { %v4473_v38 = vadd.f32 %v4472_v35, %v2426_v34  ;;  %v400_v35 = vld [vmem:[%s6609_s19 + $0x860] sm:$0xff] }
 0x229   : > { %v2448_v36 = vmul.f32 %v400_v35, %v400_v35 }
 0x22a   : > { %v4474_v41 = vadd.f32 %v4473_v38, %v2427_v37  ;;  %v401_v38 = vld [vmem:[%s6609_s19 + $0x868] sm:$0xff] }
 0x22b   : > { %v2449_v39 = vmul.f32 %v401_v38, %v401_v38 }
 0x22c   : > { %v4475_v44 = vadd.f32 %v4474_v41, %v2428_v40  ;;  %v402_v41 = vld [vmem:[%s6609_s19 + $0x870] sm:$0xff] }
 0x22d   : > { %v2450_v42 = vmul.f32 %v402_v41, %v402_v41 }
 0x22e   : > { %v4476_v47 = vadd.f32 %v4475_v44, %v2429_v43  ;;  %v403_v44 = vld [vmem:[%s6609_s19 + $0x878] sm:$0xff] }
 0x22f   : > { %v2451_v45 = vmul.f32 %v403_v44, %v403_v44 }
 0x230   : > { %v4477_v50 = vadd.f32 %v4476_v47, %v2430_v46  ;;  %v404_v47 = vld [vmem:[%s6609_s19 + $0x880] sm:$0xff] }
 0x231   : > { %v2452_v48 = vmul.f32 %v404_v47, %v404_v47 }
 0x232   : > { %v4478_v53 = vadd.f32 %v4477_v50, %v2431_v49  ;;  %v405_v50 = vld [vmem:[%s6609_s19 + $0x888] sm:$0xff] }
 0x233   : > { %v2453_v51 = vmul.f32 %v405_v50, %v405_v50 }
 0x234   : > { %v4479_v56 = vadd.f32 %v4478_v53, %v2432_v52  ;;  %v406_v53 = vld [vmem:[%s6609_s19 + $0x890] sm:$0xff] }
 0x235   : > { %v2454_v54 = vmul.f32 %v406_v53, %v406_v53 }
 0x236   : > { %v4480_v59 = vadd.f32 %v4479_v56, %v2433_v55  ;;  %v407_v56 = vld [vmem:[%s6609_s19 + $0x898] sm:$0xff] }
 0x237   : > { %v2455_v57 = vmul.f32 %v407_v56, %v407_v56 }
 0x238   : > { %v4481_v62 = vadd.f32 %v4480_v59, %v2434_v58  ;;  %v408_v59 = vld [vmem:[%s6609_s19 + $0x8a0] sm:$0xff] }
 0x239   : > { %v2456_v60 = vmul.f32 %v408_v59, %v408_v59 }
 0x23a   : > { %v4482_v1 = vadd.f32 %v4481_v62, %v2435_v61  ;;  %v409_v62 = vld [vmem:[%s6609_s19 + $0x8a8] sm:$0xff] }
 0x23c   : > { %v4483_v4 = vadd.f32 %v4482_v1, %v2436_v0  ;;  %v2457_v0 = vmul.f32 %v409_v62, %v409_v62 }
 0x23e   : > { %v4484_v7 = vadd.f32 %v4483_v4, %v2437_v3  ;;  %v2458_v3 = vmul.f32 %v410_v63, %v410_v63  ;;  %v412_v4 = vld [vmem:[%s6609_s19 + $0x8c0] sm:$0xff] }
 0x23f   : > { %v2460_v8 = vmul.f32 %v412_v4, %v412_v4 }
 0x240   : > { %v4485_v10 = vadd.f32 %v4484_v7, %v2438_v6  ;;  %v413_v7 = vld [vmem:[%s6609_s19 + $0x8c8] sm:$0xff] }
 0x241   : > { %v2461_v11 = vmul.f32 %v413_v7, %v413_v7 }
 0x242   : > { %v4486_v13 = vadd.f32 %v4485_v10, %v2439_v9  ;;  %v414_v10 = vld [vmem:[%s6609_s19 + $0x8d0] sm:$0xff] }
 0x243   : > { %v2462_v14 = vmul.f32 %v414_v10, %v414_v10 }
 0x244   : > { %v4487_v16 = vadd.f32 %v4486_v13, %v2440_v12  ;;  %v415_v13 = vld [vmem:[%s6609_s19 + $0x8d8] sm:$0xff] }
 0x245   : > { %v2463_v17 = vmul.f32 %v415_v13, %v415_v13 }
 0x246   : > { %v4488_v19 = vadd.f32 %v4487_v16, %v2441_v15  ;;  %v416_v16 = vld [vmem:[%s6609_s19 + $0x8e0] sm:$0xff] }
 0x247   : > { %v2464_v20 = vmul.f32 %v416_v16, %v416_v16 }
 0x248   : > { %v4489_v22 = vadd.f32 %v4488_v19, %v2442_v18  ;;  %v417_v19 = vld [vmem:[%s6609_s19 + $0x8e8] sm:$0xff] }
 0x249   : > { %v2465_v23 = vmul.f32 %v417_v19, %v417_v19 }
 0x24a   : > { %v4490_v25 = vadd.f32 %v4489_v22, %v2443_v21  ;;  %v418_v22 = vld [vmem:[%s6609_s19 + $0x8f0] sm:$0xff] }
 0x24b   : > { %v2466_v26 = vmul.f32 %v418_v22, %v418_v22 }
 0x24c   : > { %v4491_v28 = vadd.f32 %v4490_v25, %v2444_v24  ;;  %v419_v25 = vld [vmem:[%s6609_s19 + $0x8f8] sm:$0xff] }
 0x24d   : > { %v2467_v29 = vmul.f32 %v419_v25, %v419_v25 }
 0x24e   : > { %v4492_v31 = vadd.f32 %v4491_v28, %v2445_v27  ;;  %v420_v28 = vld [vmem:[%s6609_s19 + $0x900] sm:$0xff] }
 0x24f   : > { %v2468_v32 = vmul.f32 %v420_v28, %v420_v28 }
 0x250   : > { %v4493_v34 = vadd.f32 %v4492_v31, %v2446_v30  ;;  %v421_v31 = vld [vmem:[%s6609_s19 + $0x908] sm:$0xff] }
 0x251   : > { %v2469_v35 = vmul.f32 %v421_v31, %v421_v31 }
 0x252   : > { %v4494_v37 = vadd.f32 %v4493_v34, %v2447_v33  ;;  %v422_v34 = vld [vmem:[%s6609_s19 + $0x910] sm:$0xff] }
 0x253   : > { %v2470_v38 = vmul.f32 %v422_v34, %v422_v34 }
 0x254   : > { %v4495_v40 = vadd.f32 %v4494_v37, %v2448_v36  ;;  %v423_v37 = vld [vmem:[%s6609_s19 + $0x918] sm:$0xff] }
 0x255   : > { %v2471_v41 = vmul.f32 %v423_v37, %v423_v37 }
 0x256   : > { %v4496_v43 = vadd.f32 %v4495_v40, %v2449_v39  ;;  %v424_v40 = vld [vmem:[%s6609_s19 + $0x920] sm:$0xff] }
 0x257   : > { %v2472_v44 = vmul.f32 %v424_v40, %v424_v40 }
 0x258   : > { %v4497_v46 = vadd.f32 %v4496_v43, %v2450_v42  ;;  %v425_v43 = vld [vmem:[%s6609_s19 + $0x928] sm:$0xff] }
 0x259   : > { %v2473_v47 = vmul.f32 %v425_v43, %v425_v43 }
 0x25a   : > { %v4498_v49 = vadd.f32 %v4497_v46, %v2451_v45  ;;  %v426_v46 = vld [vmem:[%s6609_s19 + $0x930] sm:$0xff] }
 0x25b   : > { %v2474_v50 = vmul.f32 %v426_v46, %v426_v46 }
 0x25c   : > { %v4499_v52 = vadd.f32 %v4498_v49, %v2452_v48  ;;  %v427_v49 = vld [vmem:[%s6609_s19 + $0x938] sm:$0xff] }
 0x25d   : > { %v2475_v53 = vmul.f32 %v427_v49, %v427_v49 }
 0x25e   : > { %v4500_v55 = vadd.f32 %v4499_v52, %v2453_v51  ;;  %v428_v52 = vld [vmem:[%s6609_s19 + $0x940] sm:$0xff] }
 0x25f   : > { %v2476_v56 = vmul.f32 %v428_v52, %v428_v52 }
 0x260   : > { %v4501_v58 = vadd.f32 %v4500_v55, %v2454_v54  ;;  %v429_v55 = vld [vmem:[%s6609_s19 + $0x948] sm:$0xff] }
 0x261   : > { %v2477_v59 = vmul.f32 %v429_v55, %v429_v55 }
 0x262   : > { %v4502_v61 = vadd.f32 %v4501_v58, %v2455_v57  ;;  %v430_v58 = vld [vmem:[%s6609_s19 + $0x950] sm:$0xff] }
 0x263   : > { %v2478_v62 = vmul.f32 %v430_v58, %v430_v58 }
 0x264   : > { %v4503_v1 = vadd.f32 %v4502_v61, %v2456_v60  ;;  %v431_v61 = vld [vmem:[%s6609_s19 + $0x958] sm:$0xff] }
 0x266   : > { %v4504_v6 = vadd.f32 %v4503_v1, %v2457_v0  ;;  %v432_v0 = vld [vmem:[%s6609_s19 + $0x960] sm:$0xff]  ;;  %v2479_v1 = vmul.f32 %v431_v61, %v431_v61 }
 0x267   : > { %v2480_v4 = vmul.f32 %v432_v0, %v432_v0 }
 0x268   : > { %v4505_v9 = vadd.f32 %v4504_v6, %v2458_v3  ;;  %v433_v3 = vld [vmem:[%s6609_s19 + $0x968] sm:$0xff]  ;;  %v434_v6 = vld [vmem:[%s6609_s19 + $0x970] sm:$0xff] }
 0x269   : > { %v2481_v7 = vmul.f32 %v433_v3, %v433_v3  ;;  %v2482_v10 = vmul.f32 %v434_v6, %v434_v6 }
 0x26a   : > { %v4506_v12 = vadd.f32 %v4505_v9, %v2459_v5  ;;  %v435_v9 = vld [vmem:[%s6609_s19 + $0x978] sm:$0xff] }
 0x26b   : > { %v2483_v13 = vmul.f32 %v435_v9, %v435_v9 }
 0x26c   : > { %v4507_v15 = vadd.f32 %v4506_v12, %v2460_v8  ;;  %v436_v12 = vld [vmem:[%s6609_s19 + $0x980] sm:$0xff] }
 0x26d   : > { %v2484_v16 = vmul.f32 %v436_v12, %v436_v12 }
 0x26e   : > { %v4508_v18 = vadd.f32 %v4507_v15, %v2461_v11  ;;  %v437_v15 = vld [vmem:[%s6609_s19 + $0x988] sm:$0xff] }
 0x26f   : > { %v2485_v19 = vmul.f32 %v437_v15, %v437_v15 }
 0x270   : > { %v4509_v21 = vadd.f32 %v4508_v18, %v2462_v14  ;;  %v438_v18 = vld [vmem:[%s6609_s19 + $0x990] sm:$0xff] }
 0x271   : > { %v2486_v22 = vmul.f32 %v438_v18, %v438_v18 }
 0x272   : > { %v4510_v24 = vadd.f32 %v4509_v21, %v2463_v17  ;;  %v439_v21 = vld [vmem:[%s6609_s19 + $0x998] sm:$0xff] }
 0x273   : > { %v2487_v25 = vmul.f32 %v439_v21, %v439_v21 }
 0x274   : > { %v4511_v27 = vadd.f32 %v4510_v24, %v2464_v20  ;;  %v440_v24 = vld [vmem:[%s6609_s19 + $0x9a0] sm:$0xff] }
 0x275   : > { %v2488_v28 = vmul.f32 %v440_v24, %v440_v24 }
 0x276   : > { %v4512_v30 = vadd.f32 %v4511_v27, %v2465_v23  ;;  %v441_v27 = vld [vmem:[%s6609_s19 + $0x9a8] sm:$0xff] }
 0x277   : > { %v2489_v31 = vmul.f32 %v441_v27, %v441_v27 }
 0x278   : > { %v4513_v33 = vadd.f32 %v4512_v30, %v2466_v26  ;;  %v442_v30 = vld [vmem:[%s6609_s19 + $0x9b0] sm:$0xff] }
 0x279   : > { %v2490_v34 = vmul.f32 %v442_v30, %v442_v30 }
 0x27a   : > { %v4514_v36 = vadd.f32 %v4513_v33, %v2467_v29  ;;  %v443_v33 = vld [vmem:[%s6609_s19 + $0x9b8] sm:$0xff] }
 0x27b   : > { %v2491_v37 = vmul.f32 %v443_v33, %v443_v33 }
 0x27c   : > { %v4515_v39 = vadd.f32 %v4514_v36, %v2468_v32  ;;  %v444_v36 = vld [vmem:[%s6609_s19 + $0x9c0] sm:$0xff] }
 0x27d   : > { %v2492_v40 = vmul.f32 %v444_v36, %v444_v36 }
 0x27e   : > { %v4516_v42 = vadd.f32 %v4515_v39, %v2469_v35  ;;  %v445_v39 = vld [vmem:[%s6609_s19 + $0x9c8] sm:$0xff] }
 0x27f   : > { %v2493_v43 = vmul.f32 %v445_v39, %v445_v39 }
 0x280   : > { %v4517_v45 = vadd.f32 %v4516_v42, %v2470_v38  ;;  %v446_v42 = vld [vmem:[%s6609_s19 + $0x9d0] sm:$0xff] }
 0x281   : > { %v2494_v46 = vmul.f32 %v446_v42, %v446_v42 }
 0x282   : > { %v4518_v48 = vadd.f32 %v4517_v45, %v2471_v41  ;;  %v447_v45 = vld [vmem:[%s6609_s19 + $0x9d8] sm:$0xff] }
 0x283   : > { %v2495_v49 = vmul.f32 %v447_v45, %v447_v45 }
 0x284   : > { %v4519_v51 = vadd.f32 %v4518_v48, %v2472_v44  ;;  %v448_v48 = vld [vmem:[%s6609_s19 + $0x9e0] sm:$0xff] }
 0x285   : > { %v2496_v52 = vmul.f32 %v448_v48, %v448_v48 }
 0x286   : > { %v4520_v54 = vadd.f32 %v4519_v51, %v2473_v47  ;;  %v449_v51 = vld [vmem:[%s6609_s19 + $0x9e8] sm:$0xff] }
 0x287   : > { %v2497_v55 = vmul.f32 %v449_v51, %v449_v51 }
 0x288   : > { %v4521_v57 = vadd.f32 %v4520_v54, %v2474_v50  ;;  %v450_v54 = vld [vmem:[%s6609_s19 + $0x9f0] sm:$0xff] }
 0x289   : > { %v2498_v58 = vmul.f32 %v450_v54, %v450_v54 }
 0x28a   : > { %v4522_v60 = vadd.f32 %v4521_v57, %v2475_v53  ;;  %v451_v57 = vld [vmem:[%s6609_s19 + $0x9f8] sm:$0xff] }
 0x28b   : > { %v2499_v61 = vmul.f32 %v451_v57, %v451_v57 }
 0x28c   : > { %v4523_v63 = vadd.f32 %v4522_v60, %v2476_v56  ;;  %v452_v60 = vld [vmem:[%s6609_s19 + $0xa00] sm:$0xff] }
 0x28d   : > { %v2500_v0 = vmul.f32 %v452_v60, %v452_v60 }
 0x28e   : > { %v4524_v2 = vadd.f32 %v4523_v63, %v2477_v59  ;;  %v453_v63 = vld [vmem:[%s6609_s19 + $0xa08] sm:$0xff] }
 0x28f   : > { %v2501_v3 = vmul.f32 %v453_v63, %v453_v63 }
 0x290   : > { %v4525_v5 = vadd.f32 %v4524_v2, %v2478_v62  ;;  %v454_v2 = vld [vmem:[%s6609_s19 + $0xa10] sm:$0xff] }
 0x291   : > { %v2502_v6 = vmul.f32 %v454_v2, %v454_v2 }
 0x292   : > { %v4526_v8 = vadd.f32 %v4525_v5, %v2479_v1  ;;  %v455_v5 = vld [vmem:[%s6609_s19 + $0xa18] sm:$0xff] }
 0x293   : > { %v2503_v9 = vmul.f32 %v455_v5, %v455_v5 }
 0x294   : > { %v4527_v11 = vadd.f32 %v4526_v8, %v2480_v4  ;;  %v456_v8 = vld [vmem:[%s6609_s19 + $0xa20] sm:$0xff] }
 0x295   : > { %v2504_v12 = vmul.f32 %v456_v8, %v456_v8 }
 0x296   : > { %v4528_v14 = vadd.f32 %v4527_v11, %v2481_v7  ;;  %v457_v11 = vld [vmem:[%s6609_s19 + $0xa28] sm:$0xff] }
 0x297   : > { %v2505_v15 = vmul.f32 %v457_v11, %v457_v11 }
 0x298   : > { %v4529_v17 = vadd.f32 %v4528_v14, %v2482_v10  ;;  %v458_v14 = vld [vmem:[%s6609_s19 + $0xa30] sm:$0xff] }
 0x299   : > { %v2506_v18 = vmul.f32 %v458_v14, %v458_v14 }
 0x29a   : > { %v4530_v20 = vadd.f32 %v4529_v17, %v2483_v13  ;;  %v459_v17 = vld [vmem:[%s6609_s19 + $0xa38] sm:$0xff] }
 0x29b   : > { %v2507_v21 = vmul.f32 %v459_v17, %v459_v17 }
 0x29c   : > { %v4531_v23 = vadd.f32 %v4530_v20, %v2484_v16  ;;  %v460_v20 = vld [vmem:[%s6609_s19 + $0xa40] sm:$0xff] }
 0x29d   : > { %v2508_v24 = vmul.f32 %v460_v20, %v460_v20 }
 0x29e   : > { %v4532_v26 = vadd.f32 %v4531_v23, %v2485_v19  ;;  %v461_v23 = vld [vmem:[%s6609_s19 + $0xa48] sm:$0xff] }
 0x29f   : > { %v2509_v27 = vmul.f32 %v461_v23, %v461_v23 }
 0x2a0   : > { %v4533_v29 = vadd.f32 %v4532_v26, %v2486_v22  ;;  %v462_v26 = vld [vmem:[%s6609_s19 + $0xa50] sm:$0xff] }
 0x2a1   : > { %v2510_v30 = vmul.f32 %v462_v26, %v462_v26 }
 0x2a2   : > { %v4534_v32 = vadd.f32 %v4533_v29, %v2487_v25  ;;  %v463_v29 = vld [vmem:[%s6609_s19 + $0xa58] sm:$0xff] }
 0x2a3   : > { %v2511_v33 = vmul.f32 %v463_v29, %v463_v29 }
 0x2a4   : > { %v4535_v35 = vadd.f32 %v4534_v32, %v2488_v28  ;;  %v464_v32 = vld [vmem:[%s6609_s19 + $0xa60] sm:$0xff] }
 0x2a5   : > { %v2512_v36 = vmul.f32 %v464_v32, %v464_v32 }
 0x2a6   : > { %v4536_v38 = vadd.f32 %v4535_v35, %v2489_v31  ;;  %v465_v35 = vld [vmem:[%s6609_s19 + $0xa68] sm:$0xff] }
 0x2a7   : > { %v2513_v39 = vmul.f32 %v465_v35, %v465_v35 }
 0x2a8   : > { %v4537_v41 = vadd.f32 %v4536_v38, %v2490_v34  ;;  %v466_v38 = vld [vmem:[%s6609_s19 + $0xa70] sm:$0xff] }
 0x2a9   : > { %v2514_v42 = vmul.f32 %v466_v38, %v466_v38 }
 0x2aa   : > { %v4538_v44 = vadd.f32 %v4537_v41, %v2491_v37  ;;  %v467_v41 = vld [vmem:[%s6609_s19 + $0xa78] sm:$0xff] }
 0x2ab   : > { %v2515_v45 = vmul.f32 %v467_v41, %v467_v41 }
 0x2ac   : > { %v4539_v47 = vadd.f32 %v4538_v44, %v2492_v40  ;;  %v468_v44 = vld [vmem:[%s6609_s19 + $0xa80] sm:$0xff] }
 0x2ad   : > { %v2516_v48 = vmul.f32 %v468_v44, %v468_v44 }
 0x2ae   : > { %v4540_v50 = vadd.f32 %v4539_v47, %v2493_v43  ;;  %v469_v47 = vld [vmem:[%s6609_s19 + $0xa88] sm:$0xff] }
 0x2af   : > { %v2517_v51 = vmul.f32 %v469_v47, %v469_v47 }
 0x2b0   : > { %v4541_v53 = vadd.f32 %v4540_v50, %v2494_v46  ;;  %v470_v50 = vld [vmem:[%s6609_s19 + $0xa90] sm:$0xff] }
 0x2b1   : > { %v2518_v54 = vmul.f32 %v470_v50, %v470_v50 }
 0x2b2   : > { %v4542_v56 = vadd.f32 %v4541_v53, %v2495_v49  ;;  %v471_v53 = vld [vmem:[%s6609_s19 + $0xa98] sm:$0xff] }
 0x2b3   : > { %v2519_v57 = vmul.f32 %v471_v53, %v471_v53 }
 0x2b4   : > { %v4543_v59 = vadd.f32 %v4542_v56, %v2496_v52  ;;  %v472_v56 = vld [vmem:[%s6609_s19 + $0xaa0] sm:$0xff] }
 0x2b5   : > { %v2520_v60 = vmul.f32 %v472_v56, %v472_v56 }
 0x2b6   : > { %v4544_v62 = vadd.f32 %v4543_v59, %v2497_v55  ;;  %v473_v59 = vld [vmem:[%s6609_s19 + $0xaa8] sm:$0xff] }
 0x2b7   : > { %v2521_v63 = vmul.f32 %v473_v59, %v473_v59 }
 0x2b8   : > { %v4545_v1 = vadd.f32 %v4544_v62, %v2498_v58  ;;  %v474_v62 = vld [vmem:[%s6609_s19 + $0xab0] sm:$0xff] }
 0x2b9   : > { %v2522_v2 = vmul.f32 %v474_v62, %v474_v62 }
 0x2ba   : > { %v4546_v4 = vadd.f32 %v4545_v1, %v2499_v61  ;;  %v475_v1 = vld [vmem:[%s6609_s19 + $0xab8] sm:$0xff] }
 0x2bb   : > { %v2523_v5 = vmul.f32 %v475_v1, %v475_v1 }
 0x2bc   : > { %v4547_v7 = vadd.f32 %v4546_v4, %v2500_v0  ;;  %v476_v4 = vld [vmem:[%s6609_s19 + $0xac0] sm:$0xff] }
 0x2bd   : > { %v2524_v8 = vmul.f32 %v476_v4, %v476_v4 }
 0x2be   : > { %v4548_v10 = vadd.f32 %v4547_v7, %v2501_v3  ;;  %v477_v7 = vld [vmem:[%s6609_s19 + $0xac8] sm:$0xff] }
 0x2bf   : > { %v2525_v11 = vmul.f32 %v477_v7, %v477_v7 }
 0x2c0   : > { %v4549_v13 = vadd.f32 %v4548_v10, %v2502_v6  ;;  %v478_v10 = vld [vmem:[%s6609_s19 + $0xad0] sm:$0xff] }
 0x2c1   : > { %v2526_v14 = vmul.f32 %v478_v10, %v478_v10 }
 0x2c2   : > { %v4550_v16 = vadd.f32 %v4549_v13, %v2503_v9  ;;  %v479_v13 = vld [vmem:[%s6609_s19 + $0xad8] sm:$0xff] }
 0x2c3   : > { %v2527_v17 = vmul.f32 %v479_v13, %v479_v13 }
 0x2c4   : > { %v4551_v19 = vadd.f32 %v4550_v16, %v2504_v12  ;;  %v480_v16 = vld [vmem:[%s6609_s19 + $0xae0] sm:$0xff] }
 0x2c5   : > { %v2528_v20 = vmul.f32 %v480_v16, %v480_v16 }
 0x2c6   : > { %v4552_v22 = vadd.f32 %v4551_v19, %v2505_v15  ;;  %v481_v19 = vld [vmem:[%s6609_s19 + $0xae8] sm:$0xff] }
 0x2c7   : > { %v2529_v23 = vmul.f32 %v481_v19, %v481_v19 }
 0x2c8   : > { %v4553_v25 = vadd.f32 %v4552_v22, %v2506_v18  ;;  %v482_v22 = vld [vmem:[%s6609_s19 + $0xaf0] sm:$0xff] }
 0x2c9   : > { %v2530_v26 = vmul.f32 %v482_v22, %v482_v22 }
 0x2ca   : > { %v4554_v28 = vadd.f32 %v4553_v25, %v2507_v21  ;;  %v483_v25 = vld [vmem:[%s6609_s19 + $0xaf8] sm:$0xff] }
 0x2cb   : > { %v2531_v29 = vmul.f32 %v483_v25, %v483_v25 }
 0x2cc   : > { %v4555_v31 = vadd.f32 %v4554_v28, %v2508_v24  ;;  %v484_v28 = vld [vmem:[%s6609_s19 + $0xb00] sm:$0xff] }
 0x2cd   : > { %v2532_v32 = vmul.f32 %v484_v28, %v484_v28 }
 0x2ce   : > { %v4556_v34 = vadd.f32 %v4555_v31, %v2509_v27  ;;  %v485_v31 = vld [vmem:[%s6609_s19 + $0xb08] sm:$0xff] }
 0x2cf   : > { %v2533_v35 = vmul.f32 %v485_v31, %v485_v31 }
 0x2d0   : > { %v4557_v37 = vadd.f32 %v4556_v34, %v2510_v30  ;;  %v486_v34 = vld [vmem:[%s6609_s19 + $0xb10] sm:$0xff] }
 0x2d1   : > { %v2534_v38 = vmul.f32 %v486_v34, %v486_v34 }
 0x2d2   : > { %v4558_v40 = vadd.f32 %v4557_v37, %v2511_v33  ;;  %v487_v37 = vld [vmem:[%s6609_s19 + $0xb18] sm:$0xff] }
 0x2d3   : > { %v2535_v41 = vmul.f32 %v487_v37, %v487_v37 }
 0x2d4   : > { %v4559_v43 = vadd.f32 %v4558_v40, %v2512_v36  ;;  %v488_v40 = vld [vmem:[%s6609_s19 + $0xb20] sm:$0xff] }
 0x2d5   : > { %v2536_v44 = vmul.f32 %v488_v40, %v488_v40 }
 0x2d6   : > { %v4560_v46 = vadd.f32 %v4559_v43, %v2513_v39  ;;  %v489_v43 = vld [vmem:[%s6609_s19 + $0xb28] sm:$0xff] }
 0x2d7   : > { %v2537_v47 = vmul.f32 %v489_v43, %v489_v43 }
 0x2d8   : > { %v4561_v49 = vadd.f32 %v4560_v46, %v2514_v42  ;;  %v490_v46 = vld [vmem:[%s6609_s19 + $0xb30] sm:$0xff] }
 0x2d9   : > { %v2538_v50 = vmul.f32 %v490_v46, %v490_v46 }
 0x2da   : > { %v4562_v52 = vadd.f32 %v4561_v49, %v2515_v45  ;;  %v491_v49 = vld [vmem:[%s6609_s19 + $0xb38] sm:$0xff] }
 0x2db   : > { %v2539_v53 = vmul.f32 %v491_v49, %v491_v49 }
 0x2dc   : > { %v4563_v55 = vadd.f32 %v4562_v52, %v2516_v48  ;;  %v492_v52 = vld [vmem:[%s6609_s19 + $0xb40] sm:$0xff] }
 0x2dd   : > { %v2540_v56 = vmul.f32 %v492_v52, %v492_v52 }
 0x2de   : > { %v4564_v58 = vadd.f32 %v4563_v55, %v2517_v51  ;;  %v493_v55 = vld [vmem:[%s6609_s19 + $0xb48] sm:$0xff] }
 0x2df   : > { %v2541_v59 = vmul.f32 %v493_v55, %v493_v55 }
 0x2e0   : > { %v4565_v61 = vadd.f32 %v4564_v58, %v2518_v54  ;;  %v494_v58 = vld [vmem:[%s6609_s19 + $0xb50] sm:$0xff] }
 0x2e1   : > { %v2542_v62 = vmul.f32 %v494_v58, %v494_v58 }
 0x2e2   : > { %v4566_v0 = vadd.f32 %v4565_v61, %v2519_v57  ;;  %v495_v61 = vld [vmem:[%s6609_s19 + $0xb58] sm:$0xff] }
 0x2e3   : > { %v2543_v1 = vmul.f32 %v495_v61, %v495_v61 }
 0x2e4   : > { %v4567_v3 = vadd.f32 %v4566_v0, %v2520_v60  ;;  %v496_v0 = vld [vmem:[%s6609_s19 + $0xb60] sm:$0xff] }
 0x2e5   : > { %v2544_v4 = vmul.f32 %v496_v0, %v496_v0 }
 0x2e6   : > { %v4568_v6 = vadd.f32 %v4567_v3, %v2521_v63  ;;  %v497_v3 = vld [vmem:[%s6609_s19 + $0xb68] sm:$0xff] }
 0x2e7   : > { %v2545_v7 = vmul.f32 %v497_v3, %v497_v3 }
 0x2e8   : > { %v4569_v9 = vadd.f32 %v4568_v6, %v2522_v2  ;;  %v498_v6 = vld [vmem:[%s6609_s19 + $0xb70] sm:$0xff] }
 0x2e9   : > { %v2546_v10 = vmul.f32 %v498_v6, %v498_v6 }
 0x2ea   : > { %v4570_v12 = vadd.f32 %v4569_v9, %v2523_v5  ;;  %v499_v9 = vld [vmem:[%s6609_s19 + $0xb78] sm:$0xff] }
 0x2eb   : > { %v2547_v13 = vmul.f32 %v499_v9, %v499_v9 }
 0x2ec   : > { %v4571_v15 = vadd.f32 %v4570_v12, %v2524_v8  ;;  %v500_v12 = vld [vmem:[%s6609_s19 + $0xb80] sm:$0xff] }
 0x2ed   : > { %v2548_v16 = vmul.f32 %v500_v12, %v500_v12 }
 0x2ee   : > { %v4572_v18 = vadd.f32 %v4571_v15, %v2525_v11  ;;  %v501_v15 = vld [vmem:[%s6609_s19 + $0xb88] sm:$0xff] }
 0x2ef   : > { %v2549_v19 = vmul.f32 %v501_v15, %v501_v15 }
 0x2f0   : > { %v4573_v21 = vadd.f32 %v4572_v18, %v2526_v14  ;;  %v502_v18 = vld [vmem:[%s6609_s19 + $0xb90] sm:$0xff] }
 0x2f1   : > { %v2550_v22 = vmul.f32 %v502_v18, %v502_v18 }
 0x2f2   : > { %v4574_v24 = vadd.f32 %v4573_v21, %v2527_v17  ;;  %v503_v21 = vld [vmem:[%s6609_s19 + $0xb98] sm:$0xff] }
 0x2f3   : > { %v2551_v25 = vmul.f32 %v503_v21, %v503_v21 }
 0x2f4   : > { %v4575_v27 = vadd.f32 %v4574_v24, %v2528_v20  ;;  %v504_v24 = vld [vmem:[%s6609_s19 + $0xba0] sm:$0xff] }
 0x2f5   : > { %v2552_v28 = vmul.f32 %v504_v24, %v504_v24 }
 0x2f6   : > { %v4576_v30 = vadd.f32 %v4575_v27, %v2529_v23  ;;  %v505_v27 = vld [vmem:[%s6609_s19 + $0xba8] sm:$0xff] }
 0x2f7   : > { %v2553_v31 = vmul.f32 %v505_v27, %v505_v27 }
 0x2f8   : > { %v4577_v33 = vadd.f32 %v4576_v30, %v2530_v26  ;;  %v506_v30 = vld [vmem:[%s6609_s19 + $0xbb0] sm:$0xff] }
 0x2f9   : > { %v2554_v34 = vmul.f32 %v506_v30, %v506_v30 }
 0x2fa   : > { %v4578_v36 = vadd.f32 %v4577_v33, %v2531_v29  ;;  %v507_v33 = vld [vmem:[%s6609_s19 + $0xbb8] sm:$0xff] }
 0x2fb   : > { %v2555_v37 = vmul.f32 %v507_v33, %v507_v33 }
 0x2fc   : > { %v4579_v39 = vadd.f32 %v4578_v36, %v2532_v32  ;;  %v508_v36 = vld [vmem:[%s6609_s19 + $0xbc0] sm:$0xff] }
 0x2fd   : > { %v2556_v40 = vmul.f32 %v508_v36, %v508_v36 }
 0x2fe   : > { %v4580_v42 = vadd.f32 %v4579_v39, %v2533_v35  ;;  %v509_v39 = vld [vmem:[%s6609_s19 + $0xbc8] sm:$0xff] }
 0x2ff   : > { %v2557_v43 = vmul.f32 %v509_v39, %v509_v39 }
 0x300   : > { %v4581_v45 = vadd.f32 %v4580_v42, %v2534_v38  ;;  %v510_v42 = vld [vmem:[%s6609_s19 + $0xbd0] sm:$0xff] }
 0x301   : > { %v2558_v46 = vmul.f32 %v510_v42, %v510_v42 }
 0x302   : > { %v4582_v48 = vadd.f32 %v4581_v45, %v2535_v41  ;;  %v511_v45 = vld [vmem:[%s6609_s19 + $0xbd8] sm:$0xff] }
 0x303   : > { %v2559_v49 = vmul.f32 %v511_v45, %v511_v45 }
 0x304   : > { %v4583_v51 = vadd.f32 %v4582_v48, %v2536_v44  ;;  %v512_v48 = vld [vmem:[%s6609_s19 + $0xbe0] sm:$0xff] }
 0x305   : > { %v2560_v52 = vmul.f32 %v512_v48, %v512_v48 }
 0x306   : > { %v4584_v54 = vadd.f32 %v4583_v51, %v2537_v47  ;;  %v513_v51 = vld [vmem:[%s6609_s19 + $0xbe8] sm:$0xff] }
 0x307   : > { %v2561_v55 = vmul.f32 %v513_v51, %v513_v51 }
 0x308   : > { %v4585_v57 = vadd.f32 %v4584_v54, %v2538_v50  ;;  %v514_v54 = vld [vmem:[%s6609_s19 + $0xbf0] sm:$0xff] }
 0x309   : > { %v2562_v58 = vmul.f32 %v514_v54, %v514_v54 }
 0x30a   : > { %v4586_v60 = vadd.f32 %v4585_v57, %v2539_v53  ;;  %v515_v57 = vld [vmem:[%s6609_s19 + $0xbf8] sm:$0xff] }
 0x30b   : > { %v2563_v61 = vmul.f32 %v515_v57, %v515_v57 }
 0x30c   : > { %v4587_v63 = vadd.f32 %v4586_v60, %v2540_v56  ;;  %v516_v60 = vld [vmem:[%s6609_s19 + $0xc00] sm:$0xff] }
 0x30d   : > { %v2564_v0 = vmul.f32 %v516_v60, %v516_v60 }
 0x30e   : > { %v4588_v2 = vadd.f32 %v4587_v63, %v2541_v59  ;;  %v517_v63 = vld [vmem:[%s6609_s19 + $0xc08] sm:$0xff] }
 0x30f   : > { %v2565_v3 = vmul.f32 %v517_v63, %v517_v63 }
 0x310   : > { %v4589_v5 = vadd.f32 %v4588_v2, %v2542_v62  ;;  %v518_v2 = vld [vmem:[%s6609_s19 + $0xc10] sm:$0xff] }
 0x311   : > { %v2566_v6 = vmul.f32 %v518_v2, %v518_v2 }
 0x312   : > { %v4590_v8 = vadd.f32 %v4589_v5, %v2543_v1  ;;  %v519_v5 = vld [vmem:[%s6609_s19 + $0xc18] sm:$0xff] }
 0x313   : > { %v2567_v9 = vmul.f32 %v519_v5, %v519_v5 }
 0x314   : > { %v4591_v11 = vadd.f32 %v4590_v8, %v2544_v4  ;;  %v520_v8 = vld [vmem:[%s6609_s19 + $0xc20] sm:$0xff] }
 0x315   : > { %v2568_v12 = vmul.f32 %v520_v8, %v520_v8 }
 0x316   : > { %v4592_v14 = vadd.f32 %v4591_v11, %v2545_v7  ;;  %v521_v11 = vld [vmem:[%s6609_s19 + $0xc28] sm:$0xff] }
 0x317   : > { %v2569_v15 = vmul.f32 %v521_v11, %v521_v11 }
 0x318   : > { %v4593_v17 = vadd.f32 %v4592_v14, %v2546_v10  ;;  %v522_v14 = vld [vmem:[%s6609_s19 + $0xc30] sm:$0xff] }
 0x319   : > { %v2570_v18 = vmul.f32 %v522_v14, %v522_v14 }
 0x31a   : > { %v4594_v20 = vadd.f32 %v4593_v17, %v2547_v13  ;;  %v523_v17 = vld [vmem:[%s6609_s19 + $0xc38] sm:$0xff] }
 0x31b   : > { %v2571_v21 = vmul.f32 %v523_v17, %v523_v17 }
 0x31c   : > { %v4595_v23 = vadd.f32 %v4594_v20, %v2548_v16  ;;  %v524_v20 = vld [vmem:[%s6609_s19 + $0xc40] sm:$0xff] }
 0x31d   : > { %v2572_v24 = vmul.f32 %v524_v20, %v524_v20 }
 0x31e   : > { %v4596_v26 = vadd.f32 %v4595_v23, %v2549_v19  ;;  %v525_v23 = vld [vmem:[%s6609_s19 + $0xc48] sm:$0xff] }
 0x31f   : > { %v2573_v27 = vmul.f32 %v525_v23, %v525_v23 }
 0x320   : > { %v4597_v29 = vadd.f32 %v4596_v26, %v2550_v22  ;;  %v526_v26 = vld [vmem:[%s6609_s19 + $0xc50] sm:$0xff] }
 0x321   : > { %v2574_v30 = vmul.f32 %v526_v26, %v526_v26 }
 0x322   : > { %v4598_v32 = vadd.f32 %v4597_v29, %v2551_v25  ;;  %v527_v29 = vld [vmem:[%s6609_s19 + $0xc58] sm:$0xff] }
 0x323   : > { %v2575_v33 = vmul.f32 %v527_v29, %v527_v29 }
 0x324   : > { %v4599_v35 = vadd.f32 %v4598_v32, %v2552_v28  ;;  %v528_v32 = vld [vmem:[%s6609_s19 + $0xc60] sm:$0xff] }
 0x325   : > { %v2576_v36 = vmul.f32 %v528_v32, %v528_v32 }
 0x326   : > { %v4600_v38 = vadd.f32 %v4599_v35, %v2553_v31  ;;  %v529_v35 = vld [vmem:[%s6609_s19 + $0xc68] sm:$0xff] }
 0x327   : > { %v2577_v39 = vmul.f32 %v529_v35, %v529_v35 }
 0x328   : > { %v4601_v41 = vadd.f32 %v4600_v38, %v2554_v34  ;;  %v530_v38 = vld [vmem:[%s6609_s19 + $0xc70] sm:$0xff] }
 0x329   : > { %v2578_v42 = vmul.f32 %v530_v38, %v530_v38 }
 0x32a   : > { %v4602_v44 = vadd.f32 %v4601_v41, %v2555_v37  ;;  %v531_v41 = vld [vmem:[%s6609_s19 + $0xc78] sm:$0xff] }
 0x32b   : > { %v2579_v45 = vmul.f32 %v531_v41, %v531_v41 }
 0x32c   : > { %v4603_v47 = vadd.f32 %v4602_v44, %v2556_v40  ;;  %v532_v44 = vld [vmem:[%s6609_s19 + $0xc80] sm:$0xff] }
 0x32d   : > { %v2580_v48 = vmul.f32 %v532_v44, %v532_v44 }
 0x32e   : > { %v4604_v50 = vadd.f32 %v4603_v47, %v2557_v43  ;;  %v533_v47 = vld [vmem:[%s6609_s19 + $0xc88] sm:$0xff] }
 0x32f   : > { %v2581_v51 = vmul.f32 %v533_v47, %v533_v47 }
 0x330   : > { %v4605_v53 = vadd.f32 %v4604_v50, %v2558_v46  ;;  %v534_v50 = vld [vmem:[%s6609_s19 + $0xc90] sm:$0xff] }
 0x331   : > { %v2582_v54 = vmul.f32 %v534_v50, %v534_v50 }
 0x332   : > { %v4606_v56 = vadd.f32 %v4605_v53, %v2559_v49  ;;  %v535_v53 = vld [vmem:[%s6609_s19 + $0xc98] sm:$0xff] }
 0x333   : > { %v2583_v57 = vmul.f32 %v535_v53, %v535_v53 }
 0x334   : > { %v4607_v59 = vadd.f32 %v4606_v56, %v2560_v52  ;;  %v536_v56 = vld [vmem:[%s6609_s19 + $0xca0] sm:$0xff] }
 0x335   : > { %v2584_v60 = vmul.f32 %v536_v56, %v536_v56 }
 0x336   : > { %v4608_v62 = vadd.f32 %v4607_v59, %v2561_v55  ;;  %v537_v59 = vld [vmem:[%s6609_s19 + $0xca8] sm:$0xff] }
 0x337   : > { %v2585_v63 = vmul.f32 %v537_v59, %v537_v59 }
 0x338   : > { %v4609_v1 = vadd.f32 %v4608_v62, %v2562_v58  ;;  %v538_v62 = vld [vmem:[%s6609_s19 + $0xcb0] sm:$0xff] }
 0x339   : > { %v2586_v2 = vmul.f32 %v538_v62, %v538_v62 }
 0x33a   : > { %v4610_v4 = vadd.f32 %v4609_v1, %v2563_v61  ;;  %v539_v1 = vld [vmem:[%s6609_s19 + $0xcb8] sm:$0xff] }
 0x33b   : > { %v2587_v5 = vmul.f32 %v539_v1, %v539_v1 }
 0x33c   : > { %v4611_v7 = vadd.f32 %v4610_v4, %v2564_v0  ;;  %v540_v4 = vld [vmem:[%s6609_s19 + $0xcc0] sm:$0xff] }
 0x33d   : > { %v2588_v8 = vmul.f32 %v540_v4, %v540_v4 }
 0x33e   : > { %v4612_v10 = vadd.f32 %v4611_v7, %v2565_v3  ;;  %v541_v7 = vld [vmem:[%s6609_s19 + $0xcc8] sm:$0xff] }
 0x33f   : > { %v2589_v11 = vmul.f32 %v541_v7, %v541_v7 }
 0x340   : > { %v4613_v13 = vadd.f32 %v4612_v10, %v2566_v6  ;;  %v542_v10 = vld [vmem:[%s6609_s19 + $0xcd0] sm:$0xff] }
 0x341   : > { %v2590_v14 = vmul.f32 %v542_v10, %v542_v10 }
 0x342   : > { %v4614_v16 = vadd.f32 %v4613_v13, %v2567_v9  ;;  %v543_v13 = vld [vmem:[%s6609_s19 + $0xcd8] sm:$0xff] }
 0x343   : > { %v2591_v17 = vmul.f32 %v543_v13, %v543_v13 }
 0x344   : > { %v4615_v19 = vadd.f32 %v4614_v16, %v2568_v12  ;;  %v544_v16 = vld [vmem:[%s6609_s19 + $0xce0] sm:$0xff] }
 0x345   : > { %v2592_v20 = vmul.f32 %v544_v16, %v544_v16 }
 0x346   : > { %v4616_v22 = vadd.f32 %v4615_v19, %v2569_v15  ;;  %v545_v19 = vld [vmem:[%s6609_s19 + $0xce8] sm:$0xff] }
 0x347   : > { %v2593_v23 = vmul.f32 %v545_v19, %v545_v19 }
 0x348   : > { %v4617_v25 = vadd.f32 %v4616_v22, %v2570_v18  ;;  %v546_v22 = vld [vmem:[%s6609_s19 + $0xcf0] sm:$0xff] }
 0x349   : > { %v2594_v26 = vmul.f32 %v546_v22, %v546_v22 }
 0x34a   : > { %v4618_v28 = vadd.f32 %v4617_v25, %v2571_v21  ;;  %v547_v25 = vld [vmem:[%s6609_s19 + $0xcf8] sm:$0xff] }
 0x34b   : > { %v2595_v29 = vmul.f32 %v547_v25, %v547_v25 }
 0x34c   : > { %v4619_v31 = vadd.f32 %v4618_v28, %v2572_v24  ;;  %v548_v28 = vld [vmem:[%s6609_s19 + $0xd00] sm:$0xff] }
 0x34d   : > { %v2596_v32 = vmul.f32 %v548_v28, %v548_v28 }
 0x34e   : > { %v4620_v34 = vadd.f32 %v4619_v31, %v2573_v27  ;;  %v549_v31 = vld [vmem:[%s6609_s19 + $0xd08] sm:$0xff] }
 0x34f   : > { %v2597_v35 = vmul.f32 %v549_v31, %v549_v31 }
 0x350   : > { %v4621_v37 = vadd.f32 %v4620_v34, %v2574_v30  ;;  %v550_v34 = vld [vmem:[%s6609_s19 + $0xd10] sm:$0xff] }
 0x351   : > { %v2598_v38 = vmul.f32 %v550_v34, %v550_v34 }
 0x352   : > { %v4622_v40 = vadd.f32 %v4621_v37, %v2575_v33  ;;  %v551_v37 = vld [vmem:[%s6609_s19 + $0xd18] sm:$0xff] }
 0x353   : > { %v2599_v41 = vmul.f32 %v551_v37, %v551_v37 }
 0x354   : > { %v4623_v43 = vadd.f32 %v4622_v40, %v2576_v36  ;;  %v552_v40 = vld [vmem:[%s6609_s19 + $0xd20] sm:$0xff] }
 0x355   : > { %v2600_v44 = vmul.f32 %v552_v40, %v552_v40 }
 0x356   : > { %v4624_v46 = vadd.f32 %v4623_v43, %v2577_v39  ;;  %v553_v43 = vld [vmem:[%s6609_s19 + $0xd28] sm:$0xff] }
 0x357   : > { %v2601_v47 = vmul.f32 %v553_v43, %v553_v43 }
 0x358   : > { %v4625_v49 = vadd.f32 %v4624_v46, %v2578_v42  ;;  %v554_v46 = vld [vmem:[%s6609_s19 + $0xd30] sm:$0xff] }
 0x359   : > { %v2602_v50 = vmul.f32 %v554_v46, %v554_v46 }
 0x35a   : > { %v4626_v52 = vadd.f32 %v4625_v49, %v2579_v45  ;;  %v555_v49 = vld [vmem:[%s6609_s19 + $0xd38] sm:$0xff] }
 0x35b   : > { %v2603_v53 = vmul.f32 %v555_v49, %v555_v49 }
 0x35c   : > { %v4627_v55 = vadd.f32 %v4626_v52, %v2580_v48  ;;  %v556_v52 = vld [vmem:[%s6609_s19 + $0xd40] sm:$0xff] }
 0x35d   : > { %v2604_v56 = vmul.f32 %v556_v52, %v556_v52 }
 0x35e   : > { %v4628_v58 = vadd.f32 %v4627_v55, %v2581_v51  ;;  %v557_v55 = vld [vmem:[%s6609_s19 + $0xd48] sm:$0xff] }
 0x35f   : > { %v2605_v59 = vmul.f32 %v557_v55, %v557_v55 }
 0x360   : > { %v4629_v61 = vadd.f32 %v4628_v58, %v2582_v54  ;;  %v558_v58 = vld [vmem:[%s6609_s19 + $0xd50] sm:$0xff] }
 0x361   : > { %v2606_v62 = vmul.f32 %v558_v58, %v558_v58 }
 0x362   : > { %v4630_v0 = vadd.f32 %v4629_v61, %v2583_v57  ;;  %v559_v61 = vld [vmem:[%s6609_s19 + $0xd58] sm:$0xff] }
 0x363   : > { %v2607_v1 = vmul.f32 %v559_v61, %v559_v61 }
 0x364   : > { %v4631_v3 = vadd.f32 %v4630_v0, %v2584_v60  ;;  %v560_v0 = vld [vmem:[%s6609_s19 + $0xd60] sm:$0xff] }
 0x365   : > { %v2608_v4 = vmul.f32 %v560_v0, %v560_v0 }
 0x366   : > { %v4632_v6 = vadd.f32 %v4631_v3, %v2585_v63  ;;  %v561_v3 = vld [vmem:[%s6609_s19 + $0xd68] sm:$0xff] }
 0x367   : > { %v2609_v7 = vmul.f32 %v561_v3, %v561_v3 }
 0x368   : > { %v4633_v9 = vadd.f32 %v4632_v6, %v2586_v2  ;;  %v562_v6 = vld [vmem:[%s6609_s19 + $0xd70] sm:$0xff] }
 0x369   : > { %v2610_v10 = vmul.f32 %v562_v6, %v562_v6 }
 0x36a   : > { %v4634_v12 = vadd.f32 %v4633_v9, %v2587_v5  ;;  %v563_v9 = vld [vmem:[%s6609_s19 + $0xd78] sm:$0xff] }
 0x36b   : > { %v2611_v13 = vmul.f32 %v563_v9, %v563_v9 }
 0x36c   : > { %v4635_v15 = vadd.f32 %v4634_v12, %v2588_v8  ;;  %v564_v12 = vld [vmem:[%s6609_s19 + $0xd80] sm:$0xff] }
 0x36d   : > { %v2612_v16 = vmul.f32 %v564_v12, %v564_v12 }
 0x36e   : > { %v4636_v18 = vadd.f32 %v4635_v15, %v2589_v11  ;;  %v565_v15 = vld [vmem:[%s6609_s19 + $0xd88] sm:$0xff] }
 0x36f   : > { %v2613_v19 = vmul.f32 %v565_v15, %v565_v15 }
 0x370   : > { %v4637_v21 = vadd.f32 %v4636_v18, %v2590_v14  ;;  %v566_v18 = vld [vmem:[%s6609_s19 + $0xd90] sm:$0xff] }
 0x371   : > { %v2614_v22 = vmul.f32 %v566_v18, %v566_v18 }
 0x372   : > { %v4638_v24 = vadd.f32 %v4637_v21, %v2591_v17  ;;  %v567_v21 = vld [vmem:[%s6609_s19 + $0xd98] sm:$0xff] }
 0x373   : > { %v2615_v25 = vmul.f32 %v567_v21, %v567_v21 }
 0x374   : > { %v4639_v27 = vadd.f32 %v4638_v24, %v2592_v20  ;;  %v568_v24 = vld [vmem:[%s6609_s19 + $0xda0] sm:$0xff] }
 0x375   : > { %v2616_v28 = vmul.f32 %v568_v24, %v568_v24 }
 0x376   : > { %v4640_v30 = vadd.f32 %v4639_v27, %v2593_v23  ;;  %v569_v27 = vld [vmem:[%s6609_s19 + $0xda8] sm:$0xff] }
 0x377   : > { %v2617_v31 = vmul.f32 %v569_v27, %v569_v27 }
 0x378   : > { %v4641_v33 = vadd.f32 %v4640_v30, %v2594_v26  ;;  %v570_v30 = vld [vmem:[%s6609_s19 + $0xdb0] sm:$0xff] }
 0x379   : > { %v2618_v34 = vmul.f32 %v570_v30, %v570_v30 }
 0x37a   : > { %v4642_v36 = vadd.f32 %v4641_v33, %v2595_v29  ;;  %v571_v33 = vld [vmem:[%s6609_s19 + $0xdb8] sm:$0xff] }
 0x37b   : > { %v2619_v37 = vmul.f32 %v571_v33, %v571_v33 }
 0x37c   : > { %v4643_v39 = vadd.f32 %v4642_v36, %v2596_v32  ;;  %v572_v36 = vld [vmem:[%s6609_s19 + $0xdc0] sm:$0xff] }
 0x37d   : > { %v2620_v40 = vmul.f32 %v572_v36, %v572_v36 }
 0x37e   : > { %v4644_v42 = vadd.f32 %v4643_v39, %v2597_v35  ;;  %v573_v39 = vld [vmem:[%s6609_s19 + $0xdc8] sm:$0xff] }
 0x37f   : > { %v2621_v43 = vmul.f32 %v573_v39, %v573_v39 }
 0x380   : > { %v4645_v45 = vadd.f32 %v4644_v42, %v2598_v38  ;;  %v574_v42 = vld [vmem:[%s6609_s19 + $0xdd0] sm:$0xff] }
 0x381   : > { %v2622_v46 = vmul.f32 %v574_v42, %v574_v42 }
 0x382   : > { %v4646_v48 = vadd.f32 %v4645_v45, %v2599_v41  ;;  %v575_v45 = vld [vmem:[%s6609_s19 + $0xdd8] sm:$0xff] }
 0x383   : > { %v2623_v49 = vmul.f32 %v575_v45, %v575_v45 }
 0x384   : > { %v4647_v51 = vadd.f32 %v4646_v48, %v2600_v44  ;;  %v576_v48 = vld [vmem:[%s6609_s19 + $0xde0] sm:$0xff] }
 0x385   : > { %v2624_v52 = vmul.f32 %v576_v48, %v576_v48 }
 0x386   : > { %v4648_v54 = vadd.f32 %v4647_v51, %v2601_v47  ;;  %v577_v51 = vld [vmem:[%s6609_s19 + $0xde8] sm:$0xff] }
 0x387   : > { %v2625_v55 = vmul.f32 %v577_v51, %v577_v51 }
 0x388   : > { %v4649_v57 = vadd.f32 %v4648_v54, %v2602_v50  ;;  %v578_v54 = vld [vmem:[%s6609_s19 + $0xdf0] sm:$0xff] }
 0x389   : > { %v2626_v58 = vmul.f32 %v578_v54, %v578_v54 }
 0x38a   : > { %v4650_v60 = vadd.f32 %v4649_v57, %v2603_v53  ;;  %v579_v57 = vld [vmem:[%s6609_s19 + $0xdf8] sm:$0xff] }
 0x38b   : > { %v2627_v61 = vmul.f32 %v579_v57, %v579_v57 }
 0x38c   : > { %v4651_v63 = vadd.f32 %v4650_v60, %v2604_v56  ;;  %v580_v60 = vld [vmem:[%s6609_s19 + $0xe00] sm:$0xff] }
 0x38d   : > { %v2628_v0 = vmul.f32 %v580_v60, %v580_v60 }
 0x38e   : > { %v4652_v2 = vadd.f32 %v4651_v63, %v2605_v59  ;;  %v581_v63 = vld [vmem:[%s6609_s19 + $0xe08] sm:$0xff] }
 0x38f   : > { %v2629_v3 = vmul.f32 %v581_v63, %v581_v63 }
 0x390   : > { %v4653_v5 = vadd.f32 %v4652_v2, %v2606_v62  ;;  %v582_v2 = vld [vmem:[%s6609_s19 + $0xe10] sm:$0xff] }
 0x391   : > { %v2630_v6 = vmul.f32 %v582_v2, %v582_v2 }
 0x392   : > { %v4654_v8 = vadd.f32 %v4653_v5, %v2607_v1  ;;  %v583_v5 = vld [vmem:[%s6609_s19 + $0xe18] sm:$0xff] }
 0x393   : > { %v2631_v9 = vmul.f32 %v583_v5, %v583_v5 }
 0x394   : > { %v4655_v11 = vadd.f32 %v4654_v8, %v2608_v4  ;;  %v584_v8 = vld [vmem:[%s6609_s19 + $0xe20] sm:$0xff] }
 0x395   : > { %v2632_v12 = vmul.f32 %v584_v8, %v584_v8 }
 0x396   : > { %v4656_v14 = vadd.f32 %v4655_v11, %v2609_v7  ;;  %v585_v11 = vld [vmem:[%s6609_s19 + $0xe28] sm:$0xff] }
 0x397   : > { %v2633_v15 = vmul.f32 %v585_v11, %v585_v11 }
 0x398   : > { %v4657_v17 = vadd.f32 %v4656_v14, %v2610_v10  ;;  %v586_v14 = vld [vmem:[%s6609_s19 + $0xe30] sm:$0xff] }
 0x399   : > { %v2634_v18 = vmul.f32 %v586_v14, %v586_v14 }
 0x39a   : > { %v4658_v20 = vadd.f32 %v4657_v17, %v2611_v13  ;;  %v587_v17 = vld [vmem:[%s6609_s19 + $0xe38] sm:$0xff] }
 0x39b   : > { %v2635_v21 = vmul.f32 %v587_v17, %v587_v17 }
 0x39c   : > { %v4659_v23 = vadd.f32 %v4658_v20, %v2612_v16  ;;  %v588_v20 = vld [vmem:[%s6609_s19 + $0xe40] sm:$0xff] }
 0x39d   : > { %v2636_v24 = vmul.f32 %v588_v20, %v588_v20 }
 0x39e   : > { %v4660_v26 = vadd.f32 %v4659_v23, %v2613_v19  ;;  %v589_v23 = vld [vmem:[%s6609_s19 + $0xe48] sm:$0xff] }
 0x39f   : > { %v2637_v27 = vmul.f32 %v589_v23, %v589_v23 }
 0x3a0   : > { %v4661_v29 = vadd.f32 %v4660_v26, %v2614_v22  ;;  %v590_v26 = vld [vmem:[%s6609_s19 + $0xe50] sm:$0xff] }
 0x3a1   : > { %v2638_v30 = vmul.f32 %v590_v26, %v590_v26 }
 0x3a2   : > { %v4662_v32 = vadd.f32 %v4661_v29, %v2615_v25  ;;  %v591_v29 = vld [vmem:[%s6609_s19 + $0xe58] sm:$0xff] }
 0x3a3   : > { %v2639_v33 = vmul.f32 %v591_v29, %v591_v29 }
 0x3a4   : > { %v4663_v35 = vadd.f32 %v4662_v32, %v2616_v28  ;;  %v592_v32 = vld [vmem:[%s6609_s19 + $0xe60] sm:$0xff] }
 0x3a5   : > { %v2640_v36 = vmul.f32 %v592_v32, %v592_v32 }
 0x3a6   : > { %v4664_v38 = vadd.f32 %v4663_v35, %v2617_v31  ;;  %v593_v35 = vld [vmem:[%s6609_s19 + $0xe68] sm:$0xff] }
 0x3a7   : > { %v2641_v39 = vmul.f32 %v593_v35, %v593_v35 }
 0x3a8   : > { %v4665_v41 = vadd.f32 %v4664_v38, %v2618_v34  ;;  %v594_v38 = vld [vmem:[%s6609_s19 + $0xe70] sm:$0xff] }
 0x3a9   : > { %v2642_v42 = vmul.f32 %v594_v38, %v594_v38 }
 0x3aa   : > { %v4666_v44 = vadd.f32 %v4665_v41, %v2619_v37  ;;  %v595_v41 = vld [vmem:[%s6609_s19 + $0xe78] sm:$0xff] }
 0x3ab   : > { %v2643_v45 = vmul.f32 %v595_v41, %v595_v41 }
 0x3ac   : > { %v4667_v47 = vadd.f32 %v4666_v44, %v2620_v40  ;;  %v596_v44 = vld [vmem:[%s6609_s19 + $0xe80] sm:$0xff] }
 0x3ad   : > { %v2644_v48 = vmul.f32 %v596_v44, %v596_v44 }
 0x3ae   : > { %v4668_v50 = vadd.f32 %v4667_v47, %v2621_v43  ;;  %v597_v47 = vld [vmem:[%s6609_s19 + $0xe88] sm:$0xff] }
 0x3af   : > { %v2645_v51 = vmul.f32 %v597_v47, %v597_v47 }
 0x3b0   : > { %v4669_v53 = vadd.f32 %v4668_v50, %v2622_v46  ;;  %v598_v50 = vld [vmem:[%s6609_s19 + $0xe90] sm:$0xff] }
 0x3b1   : > { %v2646_v54 = vmul.f32 %v598_v50, %v598_v50 }
 0x3b2   : > { %v4670_v56 = vadd.f32 %v4669_v53, %v2623_v49  ;;  %v599_v53 = vld [vmem:[%s6609_s19 + $0xe98] sm:$0xff] }
 0x3b3   : > { %v2647_v57 = vmul.f32 %v599_v53, %v599_v53 }
 0x3b4   : > { %v4671_v59 = vadd.f32 %v4670_v56, %v2624_v52  ;;  %v600_v56 = vld [vmem:[%s6609_s19 + $0xea0] sm:$0xff] }
 0x3b5   : > { %v2648_v60 = vmul.f32 %v600_v56, %v600_v56 }
 0x3b6   : > { %v4672_v62 = vadd.f32 %v4671_v59, %v2625_v55  ;;  %v601_v59 = vld [vmem:[%s6609_s19 + $0xea8] sm:$0xff] }
 0x3b7   : > { %v2649_v63 = vmul.f32 %v601_v59, %v601_v59 }
 0x3b8   : > { %v4673_v1 = vadd.f32 %v4672_v62, %v2626_v58  ;;  %v602_v62 = vld [vmem:[%s6609_s19 + $0xeb0] sm:$0xff] }
 0x3b9   : > { %v2650_v2 = vmul.f32 %v602_v62, %v602_v62 }
 0x3ba   : > { %v4674_v4 = vadd.f32 %v4673_v1, %v2627_v61  ;;  %v603_v1 = vld [vmem:[%s6609_s19 + $0xeb8] sm:$0xff] }
 0x3bb   : > { %v2651_v5 = vmul.f32 %v603_v1, %v603_v1 }
 0x3bc   : > { %v4675_v7 = vadd.f32 %v4674_v4, %v2628_v0  ;;  %v604_v4 = vld [vmem:[%s6609_s19 + $0xec0] sm:$0xff] }
 0x3bd   : > { %v2652_v8 = vmul.f32 %v604_v4, %v604_v4 }
 0x3be   : > { %v4676_v10 = vadd.f32 %v4675_v7, %v2629_v3  ;;  %v605_v7 = vld [vmem:[%s6609_s19 + $0xec8] sm:$0xff] }
 0x3bf   : > { %v2653_v11 = vmul.f32 %v605_v7, %v605_v7 }
 0x3c0   : > { %v4677_v13 = vadd.f32 %v4676_v10, %v2630_v6  ;;  %v606_v10 = vld [vmem:[%s6609_s19 + $0xed0] sm:$0xff] }
 0x3c1   : > { %v2654_v14 = vmul.f32 %v606_v10, %v606_v10 }
 0x3c2   : > { %v4678_v16 = vadd.f32 %v4677_v13, %v2631_v9  ;;  %v607_v13 = vld [vmem:[%s6609_s19 + $0xed8] sm:$0xff] }
 0x3c3   : > { %v2655_v17 = vmul.f32 %v607_v13, %v607_v13 }
 0x3c4   : > { %v4679_v19 = vadd.f32 %v4678_v16, %v2632_v12  ;;  %v608_v16 = vld [vmem:[%s6609_s19 + $0xee0] sm:$0xff] }
 0x3c5   : > { %v2656_v20 = vmul.f32 %v608_v16, %v608_v16 }
 0x3c6   : > { %v4680_v22 = vadd.f32 %v4679_v19, %v2633_v15  ;;  %v609_v19 = vld [vmem:[%s6609_s19 + $0xee8] sm:$0xff] }
 0x3c7   : > { %v2657_v23 = vmul.f32 %v609_v19, %v609_v19 }
 0x3c8   : > { %v4681_v25 = vadd.f32 %v4680_v22, %v2634_v18  ;;  %v610_v22 = vld [vmem:[%s6609_s19 + $0xef0] sm:$0xff] }
 0x3c9   : > { %v2658_v26 = vmul.f32 %v610_v22, %v610_v22 }
 0x3ca   : > { %v4682_v28 = vadd.f32 %v4681_v25, %v2635_v21  ;;  %v611_v25 = vld [vmem:[%s6609_s19 + $0xef8] sm:$0xff] }
 0x3cb   : > { %v2659_v29 = vmul.f32 %v611_v25, %v611_v25 }
 0x3cc   : > { %v4683_v31 = vadd.f32 %v4682_v28, %v2636_v24  ;;  %v612_v28 = vld [vmem:[%s6609_s19 + $0xf00] sm:$0xff] }
 0x3cd   : > { %v2660_v32 = vmul.f32 %v612_v28, %v612_v28 }
 0x3ce   : > { %v4684_v34 = vadd.f32 %v4683_v31, %v2637_v27  ;;  %v613_v31 = vld [vmem:[%s6609_s19 + $0xf08] sm:$0xff] }
 0x3cf   : > { %v2661_v35 = vmul.f32 %v613_v31, %v613_v31 }
 0x3d0   : > { %v4685_v37 = vadd.f32 %v4684_v34, %v2638_v30  ;;  %v614_v34 = vld [vmem:[%s6609_s19 + $0xf10] sm:$0xff] }
 0x3d1   : > { %v2662_v38 = vmul.f32 %v614_v34, %v614_v34 }
 0x3d2   : > { %v4686_v40 = vadd.f32 %v4685_v37, %v2639_v33  ;;  %v615_v37 = vld [vmem:[%s6609_s19 + $0xf18] sm:$0xff] }
 0x3d3   : > { %v2663_v41 = vmul.f32 %v615_v37, %v615_v37 }
 0x3d4   : > { %v4687_v43 = vadd.f32 %v4686_v40, %v2640_v36  ;;  %v616_v40 = vld [vmem:[%s6609_s19 + $0xf20] sm:$0xff] }
 0x3d5   : > { %v2664_v44 = vmul.f32 %v616_v40, %v616_v40 }
 0x3d6   : > { %v4688_v46 = vadd.f32 %v4687_v43, %v2641_v39  ;;  %v617_v43 = vld [vmem:[%s6609_s19 + $0xf28] sm:$0xff] }
 0x3d7   : > { %v2665_v47 = vmul.f32 %v617_v43, %v617_v43 }
 0x3d8   : > { %v4689_v49 = vadd.f32 %v4688_v46, %v2642_v42  ;;  %v618_v46 = vld [vmem:[%s6609_s19 + $0xf30] sm:$0xff] }
 0x3d9   : > { %v2666_v50 = vmul.f32 %v618_v46, %v618_v46 }
 0x3da   : > { %v4690_v52 = vadd.f32 %v4689_v49, %v2643_v45  ;;  %v619_v49 = vld [vmem:[%s6609_s19 + $0xf38] sm:$0xff] }
 0x3db   : > { %v2667_v53 = vmul.f32 %v619_v49, %v619_v49 }
 0x3dc   : > { %v4691_v55 = vadd.f32 %v4690_v52, %v2644_v48  ;;  %v620_v52 = vld [vmem:[%s6609_s19 + $0xf40] sm:$0xff] }
 0x3dd   : > { %v2668_v56 = vmul.f32 %v620_v52, %v620_v52 }
 0x3de   : > { %v4692_v58 = vadd.f32 %v4691_v55, %v2645_v51  ;;  %v621_v55 = vld [vmem:[%s6609_s19 + $0xf48] sm:$0xff] }
 0x3df   : > { %v2669_v59 = vmul.f32 %v621_v55, %v621_v55 }
 0x3e0   : > { %v4693_v61 = vadd.f32 %v4692_v58, %v2646_v54  ;;  %v622_v58 = vld [vmem:[%s6609_s19 + $0xf50] sm:$0xff] }
 0x3e1   : > { %v2670_v62 = vmul.f32 %v622_v58, %v622_v58 }
 0x3e2   : > { %v4694_v0 = vadd.f32 %v4693_v61, %v2647_v57  ;;  %v623_v61 = vld [vmem:[%s6609_s19 + $0xf58] sm:$0xff] }
 0x3e3   : > { %v2671_v1 = vmul.f32 %v623_v61, %v623_v61 }
 0x3e4   : > { %v4695_v3 = vadd.f32 %v4694_v0, %v2648_v60  ;;  %v624_v0 = vld [vmem:[%s6609_s19 + $0xf60] sm:$0xff] }
 0x3e5   : > { %v2672_v4 = vmul.f32 %v624_v0, %v624_v0 }
 0x3e6   : > { %v4696_v6 = vadd.f32 %v4695_v3, %v2649_v63  ;;  %v625_v3 = vld [vmem:[%s6609_s19 + $0xf68] sm:$0xff] }
 0x3e7   : > { %v2673_v7 = vmul.f32 %v625_v3, %v625_v3 }
 0x3e8   : > { %v4697_v9 = vadd.f32 %v4696_v6, %v2650_v2  ;;  %v626_v6 = vld [vmem:[%s6609_s19 + $0xf70] sm:$0xff] }
 0x3e9   : > { %v2674_v10 = vmul.f32 %v626_v6, %v626_v6 }
 0x3ea   : > { %v4698_v12 = vadd.f32 %v4697_v9, %v2651_v5  ;;  %v627_v9 = vld [vmem:[%s6609_s19 + $0xf78] sm:$0xff] }
 0x3eb   : > { %v2675_v13 = vmul.f32 %v627_v9, %v627_v9 }
 0x3ec   : > { %v4699_v15 = vadd.f32 %v4698_v12, %v2652_v8  ;;  %v628_v12 = vld [vmem:[%s6609_s19 + $0xf80] sm:$0xff] }
 0x3ed   : > { %v2676_v16 = vmul.f32 %v628_v12, %v628_v12 }
 0x3ee   : > { %v4700_v18 = vadd.f32 %v4699_v15, %v2653_v11  ;;  %v629_v15 = vld [vmem:[%s6609_s19 + $0xf88] sm:$0xff] }
 0x3ef   : > { %v2677_v19 = vmul.f32 %v629_v15, %v629_v15 }
 0x3f0   : > { %v4701_v21 = vadd.f32 %v4700_v18, %v2654_v14  ;;  %v630_v18 = vld [vmem:[%s6609_s19 + $0xf90] sm:$0xff] }
 0x3f1   : > { %v2678_v22 = vmul.f32 %v630_v18, %v630_v18 }
 0x3f2   : > { %v4702_v24 = vadd.f32 %v4701_v21, %v2655_v17  ;;  %v631_v21 = vld [vmem:[%s6609_s19 + $0xf98] sm:$0xff] }
 0x3f3   : > { %v2679_v25 = vmul.f32 %v631_v21, %v631_v21 }
 0x3f4   : > { %v4703_v27 = vadd.f32 %v4702_v24, %v2656_v20  ;;  %v632_v24 = vld [vmem:[%s6609_s19 + $0xfa0] sm:$0xff] }
 0x3f5   : > { %v2680_v28 = vmul.f32 %v632_v24, %v632_v24 }
 0x3f6   : > { %v4704_v30 = vadd.f32 %v4703_v27, %v2657_v23  ;;  %v633_v27 = vld [vmem:[%s6609_s19 + $0xfa8] sm:$0xff] }
 0x3f7   : > { %v2681_v31 = vmul.f32 %v633_v27, %v633_v27 }
 0x3f8   : > { %v4705_v33 = vadd.f32 %v4704_v30, %v2658_v26  ;;  %v634_v30 = vld [vmem:[%s6609_s19 + $0xfb0] sm:$0xff] }
 0x3f9   : > { %v2682_v34 = vmul.f32 %v634_v30, %v634_v30 }
 0x3fa   : > { %v4706_v36 = vadd.f32 %v4705_v33, %v2659_v29  ;;  %v635_v33 = vld [vmem:[%s6609_s19 + $0xfb8] sm:$0xff] }
 0x3fb   : > { %v2683_v37 = vmul.f32 %v635_v33, %v635_v33 }
 0x3fc   : > { %v4707_v39 = vadd.f32 %v4706_v36, %v2660_v32  ;;  %v636_v36 = vld [vmem:[%s6609_s19 + $0xfc0] sm:$0xff] }
 0x3fd   : > { %v2684_v40 = vmul.f32 %v636_v36, %v636_v36 }
 0x3fe   : > { %v4708_v42 = vadd.f32 %v4707_v39, %v2661_v35  ;;  %v637_v39 = vld [vmem:[%s6609_s19 + $0xfc8] sm:$0xff] }
 0x3ff   : > { %v2685_v43 = vmul.f32 %v637_v39, %v637_v39 }
 0x400   : > { %v4709_v45 = vadd.f32 %v4708_v42, %v2662_v38  ;;  %v638_v42 = vld [vmem:[%s6609_s19 + $0xfd0] sm:$0xff] }
 0x401   : > { %v2686_v46 = vmul.f32 %v638_v42, %v638_v42 }
 0x402   : > { %v4710_v48 = vadd.f32 %v4709_v45, %v2663_v41  ;;  %v639_v45 = vld [vmem:[%s6609_s19 + $0xfd8] sm:$0xff] }
 0x403   : > { %v2687_v49 = vmul.f32 %v639_v45, %v639_v45 }
 0x404   : > { %v4711_v51 = vadd.f32 %v4710_v48, %v2664_v44  ;;  %v640_v48 = vld [vmem:[%s6609_s19 + $0xfe0] sm:$0xff] }
 0x405   : > { %v2688_v52 = vmul.f32 %v640_v48, %v640_v48 }
 0x406   : > { %v4712_v54 = vadd.f32 %v4711_v51, %v2665_v47  ;;  %v641_v51 = vld [vmem:[%s6609_s19 + $0xfe8] sm:$0xff] }
 0x407   : > { %v2689_v55 = vmul.f32 %v641_v51, %v641_v51 }
 0x408   : > { %v4713_v57 = vadd.f32 %v4712_v54, %v2666_v50  ;;  %v642_v54 = vld [vmem:[%s6609_s19 + $0xff0] sm:$0xff] }
 0x409   : > { %v2690_v58 = vmul.f32 %v642_v54, %v642_v54 }
 0x40a   : > { %v4714_v60 = vadd.f32 %v4713_v57, %v2667_v53  ;;  %v643_v57 = vld [vmem:[%s6609_s19 + $0xff8] sm:$0xff] }
 0x40b   : > { %v2691_v61 = vmul.f32 %v643_v57, %v643_v57 }
 0x40c   : > { %v4715_v63 = vadd.f32 %v4714_v60, %v2668_v56  ;;  %v644_v60 = vld [vmem:[%s6609_s19 + $0x1000] sm:$0xff] }
 0x40d   : > { %v2692_v0 = vmul.f32 %v644_v60, %v644_v60 }
 0x40e   : > { %v4716_v2 = vadd.f32 %v4715_v63, %v2669_v59  ;;  %v645_v63 = vld [vmem:[%s6609_s19 + $0x1008] sm:$0xff] }
 0x40f   : > { %v2693_v3 = vmul.f32 %v645_v63, %v645_v63 }
 0x410   : > { %v4717_v5 = vadd.f32 %v4716_v2, %v2670_v62  ;;  %v646_v2 = vld [vmem:[%s6609_s19 + $0x1010] sm:$0xff] }
 0x411   : > { %v2694_v6 = vmul.f32 %v646_v2, %v646_v2 }
 0x412   : > { %v4718_v8 = vadd.f32 %v4717_v5, %v2671_v1  ;;  %v647_v5 = vld [vmem:[%s6609_s19 + $0x1018] sm:$0xff] }
 0x413   : > { %v2695_v9 = vmul.f32 %v647_v5, %v647_v5 }
 0x414   : > { %v4719_v11 = vadd.f32 %v4718_v8, %v2672_v4  ;;  %v648_v8 = vld [vmem:[%s6609_s19 + $0x1020] sm:$0xff] }
 0x415   : > { %v2696_v12 = vmul.f32 %v648_v8, %v648_v8 }
 0x416   : > { %v4720_v14 = vadd.f32 %v4719_v11, %v2673_v7  ;;  %v649_v11 = vld [vmem:[%s6609_s19 + $0x1028] sm:$0xff] }
 0x417   : > { %v2697_v15 = vmul.f32 %v649_v11, %v649_v11 }
 0x418   : > { %v4721_v17 = vadd.f32 %v4720_v14, %v2674_v10  ;;  %v650_v14 = vld [vmem:[%s6609_s19 + $0x1030] sm:$0xff] }
 0x419   : > { %v2698_v18 = vmul.f32 %v650_v14, %v650_v14 }
 0x41a   : > { %v4722_v20 = vadd.f32 %v4721_v17, %v2675_v13  ;;  %v651_v17 = vld [vmem:[%s6609_s19 + $0x1038] sm:$0xff] }
 0x41b   : > { %v2699_v21 = vmul.f32 %v651_v17, %v651_v17 }
 0x41c   : > { %v4723_v23 = vadd.f32 %v4722_v20, %v2676_v16  ;;  %v652_v20 = vld [vmem:[%s6609_s19 + $0x1040] sm:$0xff] }
 0x41d   : > { %v2700_v24 = vmul.f32 %v652_v20, %v652_v20 }
 0x41e   : > { %v4724_v26 = vadd.f32 %v4723_v23, %v2677_v19  ;;  %v653_v23 = vld [vmem:[%s6609_s19 + $0x1048] sm:$0xff] }
 0x41f   : > { %v2701_v27 = vmul.f32 %v653_v23, %v653_v23 }
 0x420   : > { %v4725_v29 = vadd.f32 %v4724_v26, %v2678_v22  ;;  %v654_v26 = vld [vmem:[%s6609_s19 + $0x1050] sm:$0xff] }
 0x421   : > { %v2702_v30 = vmul.f32 %v654_v26, %v654_v26 }
 0x422   : > { %v4726_v32 = vadd.f32 %v4725_v29, %v2679_v25  ;;  %v655_v29 = vld [vmem:[%s6609_s19 + $0x1058] sm:$0xff] }
 0x423   : > { %v2703_v33 = vmul.f32 %v655_v29, %v655_v29 }
 0x424   : > { %v4727_v35 = vadd.f32 %v4726_v32, %v2680_v28  ;;  %v656_v32 = vld [vmem:[%s6609_s19 + $0x1060] sm:$0xff] }
 0x425   : > { %v2704_v36 = vmul.f32 %v656_v32, %v656_v32 }
 0x426   : > { %v4728_v38 = vadd.f32 %v4727_v35, %v2681_v31  ;;  %v657_v35 = vld [vmem:[%s6609_s19 + $0x1068] sm:$0xff] }
 0x427   : > { %v2705_v39 = vmul.f32 %v657_v35, %v657_v35 }
 0x428   : > { %v4729_v41 = vadd.f32 %v4728_v38, %v2682_v34  ;;  %v658_v38 = vld [vmem:[%s6609_s19 + $0x1070] sm:$0xff] }
 0x429   : > { %v2706_v42 = vmul.f32 %v658_v38, %v658_v38 }
 0x42a   : > { %v4730_v44 = vadd.f32 %v4729_v41, %v2683_v37  ;;  %v659_v41 = vld [vmem:[%s6609_s19 + $0x1078] sm:$0xff] }
 0x42b   : > { %v2707_v45 = vmul.f32 %v659_v41, %v659_v41 }
 0x42c   : > { %v4731_v47 = vadd.f32 %v4730_v44, %v2684_v40  ;;  %v660_v44 = vld [vmem:[%s6609_s19 + $0x1080] sm:$0xff] }
 0x42d   : > { %v2708_v48 = vmul.f32 %v660_v44, %v660_v44 }
 0x42e   : > { %v4732_v50 = vadd.f32 %v4731_v47, %v2685_v43  ;;  %v661_v47 = vld [vmem:[%s6609_s19 + $0x1088] sm:$0xff] }
 0x42f   : > { %v2709_v51 = vmul.f32 %v661_v47, %v661_v47 }
 0x430   : > { %v4733_v53 = vadd.f32 %v4732_v50, %v2686_v46  ;;  %v662_v50 = vld [vmem:[%s6609_s19 + $0x1090] sm:$0xff] }
 0x431   : > { %v2710_v54 = vmul.f32 %v662_v50, %v662_v50 }
 0x432   : > { %v4734_v56 = vadd.f32 %v4733_v53, %v2687_v49  ;;  %v663_v53 = vld [vmem:[%s6609_s19 + $0x1098] sm:$0xff] }
 0x433   : > { %v2711_v57 = vmul.f32 %v663_v53, %v663_v53 }
 0x434   : > { %v4735_v59 = vadd.f32 %v4734_v56, %v2688_v52  ;;  %v664_v56 = vld [vmem:[%s6609_s19 + $0x10a0] sm:$0xff] }
 0x435   : > { %v2712_v60 = vmul.f32 %v664_v56, %v664_v56 }
 0x436   : > { %v4736_v62 = vadd.f32 %v4735_v59, %v2689_v55  ;;  %v665_v59 = vld [vmem:[%s6609_s19 + $0x10a8] sm:$0xff] }
 0x437   : > { %v2713_v63 = vmul.f32 %v665_v59, %v665_v59 }
 0x438   : > { %v4737_v1 = vadd.f32 %v4736_v62, %v2690_v58  ;;  %v666_v62 = vld [vmem:[%s6609_s19 + $0x10b0] sm:$0xff] }
 0x439   : > { %v2714_v2 = vmul.f32 %v666_v62, %v666_v62 }
 0x43a   : > { %v4738_v4 = vadd.f32 %v4737_v1, %v2691_v61  ;;  %v667_v1 = vld [vmem:[%s6609_s19 + $0x10b8] sm:$0xff] }
 0x43b   : > { %v2715_v5 = vmul.f32 %v667_v1, %v667_v1 }
 0x43c   : > { %v4739_v7 = vadd.f32 %v4738_v4, %v2692_v0  ;;  %v668_v4 = vld [vmem:[%s6609_s19 + $0x10c0] sm:$0xff] }
 0x43d   : > { %v2716_v8 = vmul.f32 %v668_v4, %v668_v4 }
 0x43e   : > { %v4740_v10 = vadd.f32 %v4739_v7, %v2693_v3  ;;  %v669_v7 = vld [vmem:[%s6609_s19 + $0x10c8] sm:$0xff] }
 0x43f   : > { %v2717_v11 = vmul.f32 %v669_v7, %v669_v7 }
 0x440   : > { %v4741_v13 = vadd.f32 %v4740_v10, %v2694_v6  ;;  %v670_v10 = vld [vmem:[%s6609_s19 + $0x10d0] sm:$0xff] }
 0x441   : > { %v2718_v14 = vmul.f32 %v670_v10, %v670_v10 }
 0x442   : > { %v4742_v16 = vadd.f32 %v4741_v13, %v2695_v9  ;;  %v671_v13 = vld [vmem:[%s6609_s19 + $0x10d8] sm:$0xff] }
 0x443   : > { %v2719_v17 = vmul.f32 %v671_v13, %v671_v13 }
 0x444   : > { %v4743_v19 = vadd.f32 %v4742_v16, %v2696_v12  ;;  %v672_v16 = vld [vmem:[%s6609_s19 + $0x10e0] sm:$0xff] }
 0x445   : > { %v2720_v20 = vmul.f32 %v672_v16, %v672_v16 }
 0x446   : > { %v4744_v22 = vadd.f32 %v4743_v19, %v2697_v15  ;;  %v673_v19 = vld [vmem:[%s6609_s19 + $0x10e8] sm:$0xff] }
 0x447   : > { %v2721_v23 = vmul.f32 %v673_v19, %v673_v19 }
 0x448   : > { %v4745_v25 = vadd.f32 %v4744_v22, %v2698_v18  ;;  %v674_v22 = vld [vmem:[%s6609_s19 + $0x10f0] sm:$0xff] }
 0x449   : > { %v2722_v26 = vmul.f32 %v674_v22, %v674_v22 }
 0x44a   : > { %v4746_v28 = vadd.f32 %v4745_v25, %v2699_v21  ;;  %v675_v25 = vld [vmem:[%s6609_s19 + $0x10f8] sm:$0xff] }
 0x44b   : > { %v2723_v29 = vmul.f32 %v675_v25, %v675_v25 }
 0x44c   : > { %v4747_v31 = vadd.f32 %v4746_v28, %v2700_v24  ;;  %v676_v28 = vld [vmem:[%s6609_s19 + $0x1100] sm:$0xff] }
 0x44d   : > { %v2724_v32 = vmul.f32 %v676_v28, %v676_v28 }
 0x44e   : > { %v4748_v34 = vadd.f32 %v4747_v31, %v2701_v27  ;;  %v677_v31 = vld [vmem:[%s6609_s19 + $0x1108] sm:$0xff] }
 0x44f   : > { %v2725_v35 = vmul.f32 %v677_v31, %v677_v31 }
 0x450   : > { %v4749_v37 = vadd.f32 %v4748_v34, %v2702_v30  ;;  %v678_v34 = vld [vmem:[%s6609_s19 + $0x1110] sm:$0xff] }
 0x451   : > { %v2726_v38 = vmul.f32 %v678_v34, %v678_v34 }
 0x452   : > { %v4750_v40 = vadd.f32 %v4749_v37, %v2703_v33  ;;  %v679_v37 = vld [vmem:[%s6609_s19 + $0x1118] sm:$0xff] }
 0x453   : > { %v2727_v41 = vmul.f32 %v679_v37, %v679_v37 }
 0x454   : > { %v4751_v43 = vadd.f32 %v4750_v40, %v2704_v36  ;;  %v680_v40 = vld [vmem:[%s6609_s19 + $0x1120] sm:$0xff] }
 0x455   : > { %v2728_v44 = vmul.f32 %v680_v40, %v680_v40 }
 0x456   : > { %v4752_v46 = vadd.f32 %v4751_v43, %v2705_v39  ;;  %v681_v43 = vld [vmem:[%s6609_s19 + $0x1128] sm:$0xff] }
 0x457   : > { %v2729_v47 = vmul.f32 %v681_v43, %v681_v43 }
 0x458   : > { %v4753_v49 = vadd.f32 %v4752_v46, %v2706_v42  ;;  %v682_v46 = vld [vmem:[%s6609_s19 + $0x1130] sm:$0xff] }
 0x459   : > { %v2730_v50 = vmul.f32 %v682_v46, %v682_v46 }
 0x45a   : > { %v4754_v52 = vadd.f32 %v4753_v49, %v2707_v45  ;;  %v683_v49 = vld [vmem:[%s6609_s19 + $0x1138] sm:$0xff] }
 0x45b   : > { %v2731_v53 = vmul.f32 %v683_v49, %v683_v49 }
 0x45c   : > { %v4755_v55 = vadd.f32 %v4754_v52, %v2708_v48  ;;  %v684_v52 = vld [vmem:[%s6609_s19 + $0x1140] sm:$0xff] }
 0x45d   : > { %v2732_v56 = vmul.f32 %v684_v52, %v684_v52 }
 0x45e   : > { %v4756_v58 = vadd.f32 %v4755_v55, %v2709_v51  ;;  %v685_v55 = vld [vmem:[%s6609_s19 + $0x1148] sm:$0xff] }
 0x45f   : > { %v2733_v59 = vmul.f32 %v685_v55, %v685_v55 }
 0x460   : > { %v4757_v61 = vadd.f32 %v4756_v58, %v2710_v54  ;;  %v686_v58 = vld [vmem:[%s6609_s19 + $0x1150] sm:$0xff] }
 0x461   : > { %v2734_v62 = vmul.f32 %v686_v58, %v686_v58 }
 0x462   : > { %v4758_v0 = vadd.f32 %v4757_v61, %v2711_v57  ;;  %v687_v61 = vld [vmem:[%s6609_s19 + $0x1158] sm:$0xff] }
 0x463   : > { %v2735_v1 = vmul.f32 %v687_v61, %v687_v61 }
 0x464   : > { %v4759_v3 = vadd.f32 %v4758_v0, %v2712_v60  ;;  %v688_v0 = vld [vmem:[%s6609_s19 + $0x1160] sm:$0xff] }
 0x465   : > { %v2736_v4 = vmul.f32 %v688_v0, %v688_v0 }
 0x466   : > { %v4760_v6 = vadd.f32 %v4759_v3, %v2713_v63  ;;  %v689_v3 = vld [vmem:[%s6609_s19 + $0x1168] sm:$0xff] }
 0x467   : > { %v2737_v7 = vmul.f32 %v689_v3, %v689_v3 }
 0x468   : > { %v4761_v9 = vadd.f32 %v4760_v6, %v2714_v2  ;;  %v690_v6 = vld [vmem:[%s6609_s19 + $0x1170] sm:$0xff] }
 0x469   : > { %v2738_v10 = vmul.f32 %v690_v6, %v690_v6 }
 0x46a   : > { %v4762_v12 = vadd.f32 %v4761_v9, %v2715_v5  ;;  %v691_v9 = vld [vmem:[%s6609_s19 + $0x1178] sm:$0xff] }
 0x46b   : > { %v2739_v13 = vmul.f32 %v691_v9, %v691_v9 }
 0x46c   : > { %v4763_v15 = vadd.f32 %v4762_v12, %v2716_v8  ;;  %v692_v12 = vld [vmem:[%s6609_s19 + $0x1180] sm:$0xff] }
 0x46d   : > { %v2740_v16 = vmul.f32 %v692_v12, %v692_v12 }
 0x46e   : > { %v4764_v18 = vadd.f32 %v4763_v15, %v2717_v11  ;;  %v693_v15 = vld [vmem:[%s6609_s19 + $0x1188] sm:$0xff] }
 0x46f   : > { %v2741_v19 = vmul.f32 %v693_v15, %v693_v15 }
 0x470   : > { %v4765_v21 = vadd.f32 %v4764_v18, %v2718_v14  ;;  %v694_v18 = vld [vmem:[%s6609_s19 + $0x1190] sm:$0xff] }
 0x471   : > { %v2742_v22 = vmul.f32 %v694_v18, %v694_v18 }
 0x472   : > { %v4766_v24 = vadd.f32 %v4765_v21, %v2719_v17  ;;  %v695_v21 = vld [vmem:[%s6609_s19 + $0x1198] sm:$0xff] }
 0x473   : > { %v2743_v25 = vmul.f32 %v695_v21, %v695_v21 }
 0x474   : > { %v4767_v27 = vadd.f32 %v4766_v24, %v2720_v20  ;;  %v696_v24 = vld [vmem:[%s6609_s19 + $0x11a0] sm:$0xff] }
 0x475   : > { %v2744_v28 = vmul.f32 %v696_v24, %v696_v24 }
 0x476   : > { %v4768_v30 = vadd.f32 %v4767_v27, %v2721_v23  ;;  %v697_v27 = vld [vmem:[%s6609_s19 + $0x11a8] sm:$0xff] }
 0x477   : > { %v2745_v31 = vmul.f32 %v697_v27, %v697_v27 }
 0x478   : > { %v4769_v33 = vadd.f32 %v4768_v30, %v2722_v26  ;;  %v698_v30 = vld [vmem:[%s6609_s19 + $0x11b0] sm:$0xff] }
 0x479   : > { %v2746_v34 = vmul.f32 %v698_v30, %v698_v30 }
 0x47a   : > { %v4770_v36 = vadd.f32 %v4769_v33, %v2723_v29  ;;  %v699_v33 = vld [vmem:[%s6609_s19 + $0x11b8] sm:$0xff] }
 0x47b   : > { %v2747_v37 = vmul.f32 %v699_v33, %v699_v33 }
 0x47c   : > { %v4771_v39 = vadd.f32 %v4770_v36, %v2724_v32  ;;  %v700_v36 = vld [vmem:[%s6609_s19 + $0x11c0] sm:$0xff] }
 0x47d   : > { %v2748_v40 = vmul.f32 %v700_v36, %v700_v36 }
 0x47e   : > { %v4772_v42 = vadd.f32 %v4771_v39, %v2725_v35  ;;  %v701_v39 = vld [vmem:[%s6609_s19 + $0x11c8] sm:$0xff] }
 0x47f   : > { %v2749_v43 = vmul.f32 %v701_v39, %v701_v39 }
 0x480   : > { %v4773_v45 = vadd.f32 %v4772_v42, %v2726_v38  ;;  %v702_v42 = vld [vmem:[%s6609_s19 + $0x11d0] sm:$0xff] }
 0x481   : > { %v2750_v46 = vmul.f32 %v702_v42, %v702_v42 }
 0x482   : > { %v4774_v48 = vadd.f32 %v4773_v45, %v2727_v41  ;;  %v703_v45 = vld [vmem:[%s6609_s19 + $0x11d8] sm:$0xff] }
 0x483   : > { %v2751_v49 = vmul.f32 %v703_v45, %v703_v45 }
 0x484   : > { %v4775_v51 = vadd.f32 %v4774_v48, %v2728_v44  ;;  %v704_v48 = vld [vmem:[%s6609_s19 + $0x11e0] sm:$0xff] }
 0x485   : > { %v2752_v52 = vmul.f32 %v704_v48, %v704_v48 }
 0x486   : > { %v4776_v54 = vadd.f32 %v4775_v51, %v2729_v47  ;;  %v705_v51 = vld [vmem:[%s6609_s19 + $0x11e8] sm:$0xff] }
 0x487   : > { %v2753_v55 = vmul.f32 %v705_v51, %v705_v51 }
 0x488   : > { %v4777_v57 = vadd.f32 %v4776_v54, %v2730_v50  ;;  %v706_v54 = vld [vmem:[%s6609_s19 + $0x11f0] sm:$0xff] }
 0x489   : > { %v2754_v58 = vmul.f32 %v706_v54, %v706_v54 }
 0x48a   : > { %v4778_v60 = vadd.f32 %v4777_v57, %v2731_v53  ;;  %v707_v57 = vld [vmem:[%s6609_s19 + $0x11f8] sm:$0xff] }
 0x48b   : > { %v2755_v61 = vmul.f32 %v707_v57, %v707_v57 }
 0x48c   : > { %v4779_v63 = vadd.f32 %v4778_v60, %v2732_v56  ;;  %v708_v60 = vld [vmem:[%s6609_s19 + $0x1200] sm:$0xff] }
 0x48d   : > { %v2756_v0 = vmul.f32 %v708_v60, %v708_v60 }
 0x48e   : > { %v4780_v2 = vadd.f32 %v4779_v63, %v2733_v59  ;;  %v709_v63 = vld [vmem:[%s6609_s19 + $0x1208] sm:$0xff] }
 0x48f   : > { %v2757_v3 = vmul.f32 %v709_v63, %v709_v63 }
 0x490   : > { %v4781_v5 = vadd.f32 %v4780_v2, %v2734_v62  ;;  %v710_v2 = vld [vmem:[%s6609_s19 + $0x1210] sm:$0xff] }
 0x491   : > { %v2758_v6 = vmul.f32 %v710_v2, %v710_v2 }
 0x492   : > { %v4782_v8 = vadd.f32 %v4781_v5, %v2735_v1  ;;  %v711_v5 = vld [vmem:[%s6609_s19 + $0x1218] sm:$0xff] }
 0x493   : > { %v2759_v9 = vmul.f32 %v711_v5, %v711_v5 }
 0x494   : > { %v4783_v11 = vadd.f32 %v4782_v8, %v2736_v4  ;;  %v712_v8 = vld [vmem:[%s6609_s19 + $0x1220] sm:$0xff] }
 0x495   : > { %v2760_v12 = vmul.f32 %v712_v8, %v712_v8 }
 0x496   : > { %v4784_v14 = vadd.f32 %v4783_v11, %v2737_v7  ;;  %v713_v11 = vld [vmem:[%s6609_s19 + $0x1228] sm:$0xff] }
 0x497   : > { %v2761_v15 = vmul.f32 %v713_v11, %v713_v11 }
 0x498   : > { %v4785_v17 = vadd.f32 %v4784_v14, %v2738_v10  ;;  %v714_v14 = vld [vmem:[%s6609_s19 + $0x1230] sm:$0xff] }
 0x499   : > { %v2762_v18 = vmul.f32 %v714_v14, %v714_v14 }
 0x49a   : > { %v4786_v20 = vadd.f32 %v4785_v17, %v2739_v13  ;;  %v715_v17 = vld [vmem:[%s6609_s19 + $0x1238] sm:$0xff] }
 0x49b   : > { %v2763_v21 = vmul.f32 %v715_v17, %v715_v17 }
 0x49c   : > { %v4787_v23 = vadd.f32 %v4786_v20, %v2740_v16  ;;  %v716_v20 = vld [vmem:[%s6609_s19 + $0x1240] sm:$0xff] }
 0x49d   : > { %v2764_v24 = vmul.f32 %v716_v20, %v716_v20 }
 0x49e   : > { %v4788_v26 = vadd.f32 %v4787_v23, %v2741_v19  ;;  %v717_v23 = vld [vmem:[%s6609_s19 + $0x1248] sm:$0xff] }
 0x49f   : > { %v2765_v27 = vmul.f32 %v717_v23, %v717_v23 }
 0x4a0   : > { %v4789_v29 = vadd.f32 %v4788_v26, %v2742_v22  ;;  %v718_v26 = vld [vmem:[%s6609_s19 + $0x1250] sm:$0xff] }
 0x4a1   : > { %v2766_v30 = vmul.f32 %v718_v26, %v718_v26 }
 0x4a2   : > { %v4790_v32 = vadd.f32 %v4789_v29, %v2743_v25  ;;  %v719_v29 = vld [vmem:[%s6609_s19 + $0x1258] sm:$0xff] }
 0x4a3   : > { %v2767_v33 = vmul.f32 %v719_v29, %v719_v29 }
 0x4a4   : > { %v4791_v35 = vadd.f32 %v4790_v32, %v2744_v28  ;;  %v720_v32 = vld [vmem:[%s6609_s19 + $0x1260] sm:$0xff] }
 0x4a5   : > { %v2768_v36 = vmul.f32 %v720_v32, %v720_v32 }
 0x4a6   : > { %v4792_v38 = vadd.f32 %v4791_v35, %v2745_v31  ;;  %v721_v35 = vld [vmem:[%s6609_s19 + $0x1268] sm:$0xff] }
 0x4a7   : > { %v2769_v39 = vmul.f32 %v721_v35, %v721_v35 }
 0x4a8   : > { %v4793_v41 = vadd.f32 %v4792_v38, %v2746_v34  ;;  %v722_v38 = vld [vmem:[%s6609_s19 + $0x1270] sm:$0xff] }
 0x4a9   : > { %v2770_v42 = vmul.f32 %v722_v38, %v722_v38 }
 0x4aa   : > { %v4794_v44 = vadd.f32 %v4793_v41, %v2747_v37  ;;  %v723_v41 = vld [vmem:[%s6609_s19 + $0x1278] sm:$0xff] }
 0x4ab   : > { %v2771_v45 = vmul.f32 %v723_v41, %v723_v41 }
 0x4ac   : > { %v4795_v47 = vadd.f32 %v4794_v44, %v2748_v40  ;;  %v724_v44 = vld [vmem:[%s6609_s19 + $0x1280] sm:$0xff] }
 0x4ad   : > { %v2772_v48 = vmul.f32 %v724_v44, %v724_v44 }
 0x4ae   : > { %v4796_v50 = vadd.f32 %v4795_v47, %v2749_v43  ;;  %v725_v47 = vld [vmem:[%s6609_s19 + $0x1288] sm:$0xff] }
 0x4af   : > { %v2773_v51 = vmul.f32 %v725_v47, %v725_v47 }
 0x4b0   : > { %v4797_v53 = vadd.f32 %v4796_v50, %v2750_v46  ;;  %v726_v50 = vld [vmem:[%s6609_s19 + $0x1290] sm:$0xff] }
 0x4b1   : > { %v2774_v54 = vmul.f32 %v726_v50, %v726_v50 }
 0x4b2   : > { %v4798_v56 = vadd.f32 %v4797_v53, %v2751_v49  ;;  %v727_v53 = vld [vmem:[%s6609_s19 + $0x1298] sm:$0xff] }
 0x4b3   : > { %v2775_v57 = vmul.f32 %v727_v53, %v727_v53 }
 0x4b4   : > { %v4799_v59 = vadd.f32 %v4798_v56, %v2752_v52  ;;  %v728_v56 = vld [vmem:[%s6609_s19 + $0x12a0] sm:$0xff] }
 0x4b5   : > { %v2776_v60 = vmul.f32 %v728_v56, %v728_v56 }
 0x4b6   : > { %v4800_v62 = vadd.f32 %v4799_v59, %v2753_v55  ;;  %v729_v59 = vld [vmem:[%s6609_s19 + $0x12a8] sm:$0xff] }
 0x4b7   : > { %v2777_v63 = vmul.f32 %v729_v59, %v729_v59 }
 0x4b8   : > { %v4801_v1 = vadd.f32 %v4800_v62, %v2754_v58  ;;  %v730_v62 = vld [vmem:[%s6609_s19 + $0x12b0] sm:$0xff] }
 0x4b9   : > { %v2778_v2 = vmul.f32 %v730_v62, %v730_v62 }
 0x4ba   : > { %v4802_v4 = vadd.f32 %v4801_v1, %v2755_v61  ;;  %v731_v1 = vld [vmem:[%s6609_s19 + $0x12b8] sm:$0xff] }
 0x4bb   : > { %v2779_v5 = vmul.f32 %v731_v1, %v731_v1 }
 0x4bc   : > { %v4803_v7 = vadd.f32 %v4802_v4, %v2756_v0  ;;  %v732_v4 = vld [vmem:[%s6609_s19 + $0x12c0] sm:$0xff] }
 0x4bd   : > { %v2780_v8 = vmul.f32 %v732_v4, %v732_v4 }
 0x4be   : > { %v4804_v10 = vadd.f32 %v4803_v7, %v2757_v3  ;;  %v733_v7 = vld [vmem:[%s6609_s19 + $0x12c8] sm:$0xff] }
 0x4bf   : > { %v2781_v11 = vmul.f32 %v733_v7, %v733_v7 }
 0x4c0   : > { %v4805_v13 = vadd.f32 %v4804_v10, %v2758_v6  ;;  %v734_v10 = vld [vmem:[%s6609_s19 + $0x12d0] sm:$0xff] }
 0x4c1   : > { %v2782_v14 = vmul.f32 %v734_v10, %v734_v10 }
 0x4c2   : > { %v4806_v16 = vadd.f32 %v4805_v13, %v2759_v9  ;;  %v735_v13 = vld [vmem:[%s6609_s19 + $0x12d8] sm:$0xff] }
 0x4c3   : > { %v2783_v17 = vmul.f32 %v735_v13, %v735_v13 }
 0x4c4   : > { %v4807_v19 = vadd.f32 %v4806_v16, %v2760_v12  ;;  %v736_v16 = vld [vmem:[%s6609_s19 + $0x12e0] sm:$0xff] }
 0x4c5   : > { %v2784_v20 = vmul.f32 %v736_v16, %v736_v16 }
 0x4c6   : > { %v4808_v22 = vadd.f32 %v4807_v19, %v2761_v15  ;;  %v737_v19 = vld [vmem:[%s6609_s19 + $0x12e8] sm:$0xff] }
 0x4c7   : > { %v2785_v23 = vmul.f32 %v737_v19, %v737_v19 }
 0x4c8   : > { %v4809_v25 = vadd.f32 %v4808_v22, %v2762_v18  ;;  %v738_v22 = vld [vmem:[%s6609_s19 + $0x12f0] sm:$0xff] }
 0x4c9   : > { %v2786_v26 = vmul.f32 %v738_v22, %v738_v22 }
 0x4ca   : > { %v4810_v28 = vadd.f32 %v4809_v25, %v2763_v21  ;;  %v739_v25 = vld [vmem:[%s6609_s19 + $0x12f8] sm:$0xff] }
 0x4cb   : > { %v2787_v29 = vmul.f32 %v739_v25, %v739_v25 }
 0x4cc   : > { %v4811_v31 = vadd.f32 %v4810_v28, %v2764_v24  ;;  %v740_v28 = vld [vmem:[%s6609_s19 + $0x1300] sm:$0xff] }
 0x4cd   : > { %v2788_v32 = vmul.f32 %v740_v28, %v740_v28 }
 0x4ce   : > { %v4812_v34 = vadd.f32 %v4811_v31, %v2765_v27  ;;  %v741_v31 = vld [vmem:[%s6609_s19 + $0x1308] sm:$0xff] }
 0x4cf   : > { %v2789_v35 = vmul.f32 %v741_v31, %v741_v31 }
 0x4d0   : > { %v4813_v37 = vadd.f32 %v4812_v34, %v2766_v30  ;;  %v742_v34 = vld [vmem:[%s6609_s19 + $0x1310] sm:$0xff] }
 0x4d1   : > { %v2790_v38 = vmul.f32 %v742_v34, %v742_v34 }
 0x4d2   : > { %v4814_v40 = vadd.f32 %v4813_v37, %v2767_v33  ;;  %v743_v37 = vld [vmem:[%s6609_s19 + $0x1318] sm:$0xff] }
 0x4d3   : > { %v2791_v41 = vmul.f32 %v743_v37, %v743_v37 }
 0x4d4   : > { %v4815_v43 = vadd.f32 %v4814_v40, %v2768_v36  ;;  %v744_v40 = vld [vmem:[%s6609_s19 + $0x1320] sm:$0xff] }
 0x4d5   : > { %v2792_v44 = vmul.f32 %v744_v40, %v744_v40 }
 0x4d6   : > { %v4816_v46 = vadd.f32 %v4815_v43, %v2769_v39  ;;  %v745_v43 = vld [vmem:[%s6609_s19 + $0x1328] sm:$0xff] }
 0x4d7   : > { %v2793_v47 = vmul.f32 %v745_v43, %v745_v43 }
 0x4d8   : > { %v4817_v49 = vadd.f32 %v4816_v46, %v2770_v42  ;;  %v746_v46 = vld [vmem:[%s6609_s19 + $0x1330] sm:$0xff] }
 0x4d9   : > { %v2794_v50 = vmul.f32 %v746_v46, %v746_v46 }
 0x4da   : > { %v4818_v52 = vadd.f32 %v4817_v49, %v2771_v45  ;;  %v747_v49 = vld [vmem:[%s6609_s19 + $0x1338] sm:$0xff] }
 0x4db   : > { %v2795_v53 = vmul.f32 %v747_v49, %v747_v49 }
 0x4dc   : > { %v4819_v55 = vadd.f32 %v4818_v52, %v2772_v48  ;;  %v748_v52 = vld [vmem:[%s6609_s19 + $0x1340] sm:$0xff] }
 0x4dd   : > { %v2796_v56 = vmul.f32 %v748_v52, %v748_v52 }
 0x4de   : > { %v4820_v58 = vadd.f32 %v4819_v55, %v2773_v51  ;;  %v749_v55 = vld [vmem:[%s6609_s19 + $0x1348] sm:$0xff] }
 0x4df   : > { %v2797_v59 = vmul.f32 %v749_v55, %v749_v55 }
 0x4e0   : > { %v4821_v61 = vadd.f32 %v4820_v58, %v2774_v54  ;;  %v750_v58 = vld [vmem:[%s6609_s19 + $0x1350] sm:$0xff] }
 0x4e1   : > { %v2798_v62 = vmul.f32 %v750_v58, %v750_v58 }
 0x4e2   : > { %v4822_v0 = vadd.f32 %v4821_v61, %v2775_v57  ;;  %v751_v61 = vld [vmem:[%s6609_s19 + $0x1358] sm:$0xff] }
 0x4e3   : > { %v2799_v1 = vmul.f32 %v751_v61, %v751_v61 }
 0x4e4   : > { %v4823_v3 = vadd.f32 %v4822_v0, %v2776_v60  ;;  %v752_v0 = vld [vmem:[%s6609_s19 + $0x1360] sm:$0xff] }
 0x4e5   : > { %v2800_v4 = vmul.f32 %v752_v0, %v752_v0 }
 0x4e6   : > { %v4824_v6 = vadd.f32 %v4823_v3, %v2777_v63  ;;  %v753_v3 = vld [vmem:[%s6609_s19 + $0x1368] sm:$0xff] }
 0x4e7   : > { %v2801_v7 = vmul.f32 %v753_v3, %v753_v3 }
 0x4e8   : > { %v4825_v9 = vadd.f32 %v4824_v6, %v2778_v2  ;;  %v754_v6 = vld [vmem:[%s6609_s19 + $0x1370] sm:$0xff] }
 0x4e9   : > { %v2802_v10 = vmul.f32 %v754_v6, %v754_v6 }
 0x4ea   : > { %v4826_v12 = vadd.f32 %v4825_v9, %v2779_v5  ;;  %v755_v9 = vld [vmem:[%s6609_s19 + $0x1378] sm:$0xff] }
 0x4eb   : > { %v2803_v13 = vmul.f32 %v755_v9, %v755_v9 }
 0x4ec   : > { %v4827_v15 = vadd.f32 %v4826_v12, %v2780_v8  ;;  %v756_v12 = vld [vmem:[%s6609_s19 + $0x1380] sm:$0xff] }
 0x4ed   : > { %v2804_v16 = vmul.f32 %v756_v12, %v756_v12 }
 0x4ee   : > { %v4828_v18 = vadd.f32 %v4827_v15, %v2781_v11  ;;  %v757_v15 = vld [vmem:[%s6609_s19 + $0x1388] sm:$0xff] }
 0x4ef   : > { %v2805_v19 = vmul.f32 %v757_v15, %v757_v15 }
 0x4f0   : > { %v4829_v21 = vadd.f32 %v4828_v18, %v2782_v14  ;;  %v758_v18 = vld [vmem:[%s6609_s19 + $0x1390] sm:$0xff] }
 0x4f1   : > { %v2806_v22 = vmul.f32 %v758_v18, %v758_v18 }
 0x4f2   : > { %v4830_v24 = vadd.f32 %v4829_v21, %v2783_v17  ;;  %v759_v21 = vld [vmem:[%s6609_s19 + $0x1398] sm:$0xff] }
 0x4f3   : > { %v2807_v25 = vmul.f32 %v759_v21, %v759_v21 }
 0x4f4   : > { %v4831_v27 = vadd.f32 %v4830_v24, %v2784_v20  ;;  %v760_v24 = vld [vmem:[%s6609_s19 + $0x13a0] sm:$0xff] }
 0x4f5   : > { %v2808_v28 = vmul.f32 %v760_v24, %v760_v24 }
 0x4f6   : > { %v4832_v30 = vadd.f32 %v4831_v27, %v2785_v23  ;;  %v761_v27 = vld [vmem:[%s6609_s19 + $0x13a8] sm:$0xff] }
 0x4f7   : > { %v2809_v31 = vmul.f32 %v761_v27, %v761_v27 }
 0x4f8   : > { %v4833_v33 = vadd.f32 %v4832_v30, %v2786_v26  ;;  %v762_v30 = vld [vmem:[%s6609_s19 + $0x13b0] sm:$0xff] }
 0x4f9   : > { %v2810_v34 = vmul.f32 %v762_v30, %v762_v30 }
 0x4fa   : > { %v4834_v36 = vadd.f32 %v4833_v33, %v2787_v29  ;;  %v763_v33 = vld [vmem:[%s6609_s19 + $0x13b8] sm:$0xff] }
 0x4fb   : > { %v2811_v37 = vmul.f32 %v763_v33, %v763_v33 }
 0x4fc   : > { %v4835_v39 = vadd.f32 %v4834_v36, %v2788_v32  ;;  %v764_v36 = vld [vmem:[%s6609_s19 + $0x13c0] sm:$0xff] }
 0x4fd   : > { %v2812_v40 = vmul.f32 %v764_v36, %v764_v36 }
 0x4fe   : > { %v4836_v42 = vadd.f32 %v4835_v39, %v2789_v35  ;;  %v765_v39 = vld [vmem:[%s6609_s19 + $0x13c8] sm:$0xff] }
 0x4ff   : > { %v2813_v43 = vmul.f32 %v765_v39, %v765_v39 }
 0x500   : > { %v4837_v45 = vadd.f32 %v4836_v42, %v2790_v38  ;;  %v766_v42 = vld [vmem:[%s6609_s19 + $0x13d0] sm:$0xff] }
 0x501   : > { %v2814_v46 = vmul.f32 %v766_v42, %v766_v42 }
 0x502   : > { %v4838_v48 = vadd.f32 %v4837_v45, %v2791_v41  ;;  %v767_v45 = vld [vmem:[%s6609_s19 + $0x13d8] sm:$0xff] }
 0x503   : > { %v2815_v49 = vmul.f32 %v767_v45, %v767_v45 }
 0x504   : > { %v4839_v51 = vadd.f32 %v4838_v48, %v2792_v44  ;;  %v768_v48 = vld [vmem:[%s6609_s19 + $0x13e0] sm:$0xff] }
 0x505   : > { %v2816_v52 = vmul.f32 %v768_v48, %v768_v48 }
 0x506   : > { %v4840_v54 = vadd.f32 %v4839_v51, %v2793_v47  ;;  %v769_v51 = vld [vmem:[%s6609_s19 + $0x13e8] sm:$0xff] }
 0x507   : > { %v2817_v55 = vmul.f32 %v769_v51, %v769_v51 }
 0x508   : > { %v4841_v57 = vadd.f32 %v4840_v54, %v2794_v50  ;;  %v770_v54 = vld [vmem:[%s6609_s19 + $0x13f0] sm:$0xff] }
 0x509   : > { %v2818_v58 = vmul.f32 %v770_v54, %v770_v54 }
 0x50a   : > { %v4842_v60 = vadd.f32 %v4841_v57, %v2795_v53  ;;  %v771_v57 = vld [vmem:[%s6609_s19 + $0x13f8] sm:$0xff] }
 0x50b   : > { %v2819_v61 = vmul.f32 %v771_v57, %v771_v57 }
 0x50c   : > { %v4843_v63 = vadd.f32 %v4842_v60, %v2796_v56  ;;  %v772_v60 = vld [vmem:[%s6609_s19 + $0x1400] sm:$0xff] }
 0x50d   : > { %v2820_v0 = vmul.f32 %v772_v60, %v772_v60 }
 0x50e   : > { %v4844_v2 = vadd.f32 %v4843_v63, %v2797_v59  ;;  %v773_v63 = vld [vmem:[%s6609_s19 + $0x1408] sm:$0xff] }
 0x50f   : > { %v2821_v3 = vmul.f32 %v773_v63, %v773_v63 }
 0x510   : > { %v4845_v5 = vadd.f32 %v4844_v2, %v2798_v62  ;;  %v774_v2 = vld [vmem:[%s6609_s19 + $0x1410] sm:$0xff] }
 0x511   : > { %v2822_v6 = vmul.f32 %v774_v2, %v774_v2 }
 0x512   : > { %v4846_v8 = vadd.f32 %v4845_v5, %v2799_v1  ;;  %v775_v5 = vld [vmem:[%s6609_s19 + $0x1418] sm:$0xff] }
 0x513   : > { %v2823_v9 = vmul.f32 %v775_v5, %v775_v5 }
 0x514   : > { %v4847_v11 = vadd.f32 %v4846_v8, %v2800_v4  ;;  %v776_v8 = vld [vmem:[%s6609_s19 + $0x1420] sm:$0xff] }
 0x515   : > { %v2824_v12 = vmul.f32 %v776_v8, %v776_v8 }
 0x516   : > { %v4848_v14 = vadd.f32 %v4847_v11, %v2801_v7  ;;  %v777_v11 = vld [vmem:[%s6609_s19 + $0x1428] sm:$0xff] }
 0x517   : > { %v2825_v15 = vmul.f32 %v777_v11, %v777_v11 }
 0x518   : > { %v4849_v17 = vadd.f32 %v4848_v14, %v2802_v10  ;;  %v778_v14 = vld [vmem:[%s6609_s19 + $0x1430] sm:$0xff] }
 0x519   : > { %v2826_v18 = vmul.f32 %v778_v14, %v778_v14 }
 0x51a   : > { %v4850_v20 = vadd.f32 %v4849_v17, %v2803_v13  ;;  %v779_v17 = vld [vmem:[%s6609_s19 + $0x1438] sm:$0xff] }
 0x51b   : > { %v2827_v21 = vmul.f32 %v779_v17, %v779_v17 }
 0x51c   : > { %v4851_v23 = vadd.f32 %v4850_v20, %v2804_v16  ;;  %v780_v20 = vld [vmem:[%s6609_s19 + $0x1440] sm:$0xff] }
 0x51d   : > { %v2828_v24 = vmul.f32 %v780_v20, %v780_v20 }
 0x51e   : > { %v4852_v26 = vadd.f32 %v4851_v23, %v2805_v19  ;;  %v781_v23 = vld [vmem:[%s6609_s19 + $0x1448] sm:$0xff] }
 0x51f   : > { %v2829_v27 = vmul.f32 %v781_v23, %v781_v23 }
 0x520   : > { %v4853_v29 = vadd.f32 %v4852_v26, %v2806_v22  ;;  %v782_v26 = vld [vmem:[%s6609_s19 + $0x1450] sm:$0xff] }
 0x521   : > { %v2830_v30 = vmul.f32 %v782_v26, %v782_v26 }
 0x522   : > { %v4854_v32 = vadd.f32 %v4853_v29, %v2807_v25  ;;  %v783_v29 = vld [vmem:[%s6609_s19 + $0x1458] sm:$0xff] }
 0x523   : > { %v2831_v33 = vmul.f32 %v783_v29, %v783_v29 }
 0x524   : > { %v4855_v35 = vadd.f32 %v4854_v32, %v2808_v28  ;;  %v784_v32 = vld [vmem:[%s6609_s19 + $0x1460] sm:$0xff] }
 0x525   : > { %v2832_v36 = vmul.f32 %v784_v32, %v784_v32 }
 0x526   : > { %v4856_v38 = vadd.f32 %v4855_v35, %v2809_v31  ;;  %v785_v35 = vld [vmem:[%s6609_s19 + $0x1468] sm:$0xff] }
 0x527   : > { %v2833_v39 = vmul.f32 %v785_v35, %v785_v35 }
 0x528   : > { %v4857_v41 = vadd.f32 %v4856_v38, %v2810_v34  ;;  %v786_v38 = vld [vmem:[%s6609_s19 + $0x1470] sm:$0xff] }
 0x529   : > { %v2834_v42 = vmul.f32 %v786_v38, %v786_v38 }
 0x52a   : > { %v4858_v44 = vadd.f32 %v4857_v41, %v2811_v37  ;;  %v787_v41 = vld [vmem:[%s6609_s19 + $0x1478] sm:$0xff] }
 0x52b   : > { %v2835_v45 = vmul.f32 %v787_v41, %v787_v41 }
 0x52c   : > { %v4859_v47 = vadd.f32 %v4858_v44, %v2812_v40  ;;  %v788_v44 = vld [vmem:[%s6609_s19 + $0x1480] sm:$0xff] }
 0x52d   : > { %v2836_v48 = vmul.f32 %v788_v44, %v788_v44 }
 0x52e   : > { %v4860_v50 = vadd.f32 %v4859_v47, %v2813_v43  ;;  %v789_v47 = vld [vmem:[%s6609_s19 + $0x1488] sm:$0xff] }
 0x52f   : > { %v2837_v51 = vmul.f32 %v789_v47, %v789_v47 }
 0x530   : > { %v4861_v53 = vadd.f32 %v4860_v50, %v2814_v46  ;;  %v790_v50 = vld [vmem:[%s6609_s19 + $0x1490] sm:$0xff] }
 0x531   : > { %v2838_v54 = vmul.f32 %v790_v50, %v790_v50 }
 0x532   : > { %v4862_v56 = vadd.f32 %v4861_v53, %v2815_v49  ;;  %v791_v53 = vld [vmem:[%s6609_s19 + $0x1498] sm:$0xff] }
 0x533   : > { %v2839_v57 = vmul.f32 %v791_v53, %v791_v53 }
 0x534   : > { %v4863_v59 = vadd.f32 %v4862_v56, %v2816_v52  ;;  %v792_v56 = vld [vmem:[%s6609_s19 + $0x14a0] sm:$0xff] }
 0x535   : > { %v2840_v60 = vmul.f32 %v792_v56, %v792_v56 }
 0x536   : > { %v4864_v62 = vadd.f32 %v4863_v59, %v2817_v55  ;;  %v793_v59 = vld [vmem:[%s6609_s19 + $0x14a8] sm:$0xff] }
 0x537   : > { %v2841_v63 = vmul.f32 %v793_v59, %v793_v59 }
 0x538   : > { %v4865_v1 = vadd.f32 %v4864_v62, %v2818_v58  ;;  %v794_v62 = vld [vmem:[%s6609_s19 + $0x14b0] sm:$0xff] }
 0x539   : > { %v2842_v2 = vmul.f32 %v794_v62, %v794_v62 }
 0x53a   : > { %v4866_v4 = vadd.f32 %v4865_v1, %v2819_v61  ;;  %v795_v1 = vld [vmem:[%s6609_s19 + $0x14b8] sm:$0xff] }
 0x53b   : > { %v2843_v5 = vmul.f32 %v795_v1, %v795_v1 }
 0x53c   : > { %v4867_v7 = vadd.f32 %v4866_v4, %v2820_v0  ;;  %v796_v4 = vld [vmem:[%s6609_s19 + $0x14c0] sm:$0xff] }
 0x53d   : > { %v2844_v8 = vmul.f32 %v796_v4, %v796_v4 }
 0x53e   : > { %v4868_v10 = vadd.f32 %v4867_v7, %v2821_v3  ;;  %v797_v7 = vld [vmem:[%s6609_s19 + $0x14c8] sm:$0xff] }
 0x53f   : > { %v2845_v11 = vmul.f32 %v797_v7, %v797_v7 }
 0x540   : > { %v4869_v13 = vadd.f32 %v4868_v10, %v2822_v6  ;;  %v798_v10 = vld [vmem:[%s6609_s19 + $0x14d0] sm:$0xff] }
 0x541   : > { %v2846_v14 = vmul.f32 %v798_v10, %v798_v10 }
 0x542   : > { %v4870_v16 = vadd.f32 %v4869_v13, %v2823_v9  ;;  %v799_v13 = vld [vmem:[%s6609_s19 + $0x14d8] sm:$0xff] }
 0x543   : > { %v2847_v17 = vmul.f32 %v799_v13, %v799_v13 }
 0x544   : > { %v4871_v19 = vadd.f32 %v4870_v16, %v2824_v12  ;;  %v800_v16 = vld [vmem:[%s6609_s19 + $0x14e0] sm:$0xff] }
 0x545   : > { %v2848_v20 = vmul.f32 %v800_v16, %v800_v16 }
 0x546   : > { %v4872_v22 = vadd.f32 %v4871_v19, %v2825_v15  ;;  %v801_v19 = vld [vmem:[%s6609_s19 + $0x14e8] sm:$0xff] }
 0x547   : > { %v2849_v23 = vmul.f32 %v801_v19, %v801_v19 }
 0x548   : > { %v4873_v25 = vadd.f32 %v4872_v22, %v2826_v18  ;;  %v802_v22 = vld [vmem:[%s6609_s19 + $0x14f0] sm:$0xff] }
 0x549   : > { %v2850_v26 = vmul.f32 %v802_v22, %v802_v22 }
 0x54a   : > { %v4874_v28 = vadd.f32 %v4873_v25, %v2827_v21  ;;  %v803_v25 = vld [vmem:[%s6609_s19 + $0x14f8] sm:$0xff] }
 0x54b   : > { %v2851_v29 = vmul.f32 %v803_v25, %v803_v25 }
 0x54c   : > { %v4875_v31 = vadd.f32 %v4874_v28, %v2828_v24  ;;  %v804_v28 = vld [vmem:[%s6609_s19 + $0x1500] sm:$0xff] }
 0x54d   : > { %v2852_v32 = vmul.f32 %v804_v28, %v804_v28 }
 0x54e   : > { %v4876_v34 = vadd.f32 %v4875_v31, %v2829_v27  ;;  %v805_v31 = vld [vmem:[%s6609_s19 + $0x1508] sm:$0xff] }
 0x54f   : > { %v2853_v35 = vmul.f32 %v805_v31, %v805_v31 }
 0x550   : > { %v4877_v37 = vadd.f32 %v4876_v34, %v2830_v30  ;;  %v806_v34 = vld [vmem:[%s6609_s19 + $0x1510] sm:$0xff] }
 0x551   : > { %v2854_v38 = vmul.f32 %v806_v34, %v806_v34 }
 0x552   : > { %v4878_v40 = vadd.f32 %v4877_v37, %v2831_v33  ;;  %v807_v37 = vld [vmem:[%s6609_s19 + $0x1518] sm:$0xff] }
 0x553   : > { %v2855_v41 = vmul.f32 %v807_v37, %v807_v37 }
 0x554   : > { %v4879_v43 = vadd.f32 %v4878_v40, %v2832_v36  ;;  %v808_v40 = vld [vmem:[%s6609_s19 + $0x1520] sm:$0xff] }
 0x555   : > { %v2856_v44 = vmul.f32 %v808_v40, %v808_v40 }
 0x556   : > { %v4880_v46 = vadd.f32 %v4879_v43, %v2833_v39  ;;  %v809_v43 = vld [vmem:[%s6609_s19 + $0x1528] sm:$0xff] }
 0x557   : > { %v2857_v47 = vmul.f32 %v809_v43, %v809_v43 }
 0x558   : > { %v4881_v49 = vadd.f32 %v4880_v46, %v2834_v42  ;;  %v810_v46 = vld [vmem:[%s6609_s19 + $0x1530] sm:$0xff] }
 0x559   : > { %v2858_v50 = vmul.f32 %v810_v46, %v810_v46 }
 0x55a   : > { %v4882_v52 = vadd.f32 %v4881_v49, %v2835_v45  ;;  %v811_v49 = vld [vmem:[%s6609_s19 + $0x1538] sm:$0xff] }
 0x55b   : > { %v2859_v53 = vmul.f32 %v811_v49, %v811_v49 }
 0x55c   : > { %v4883_v55 = vadd.f32 %v4882_v52, %v2836_v48  ;;  %v812_v52 = vld [vmem:[%s6609_s19 + $0x1540] sm:$0xff] }
 0x55d   : > { %v2860_v56 = vmul.f32 %v812_v52, %v812_v52 }
 0x55e   : > { %v4884_v58 = vadd.f32 %v4883_v55, %v2837_v51  ;;  %v813_v55 = vld [vmem:[%s6609_s19 + $0x1548] sm:$0xff] }
 0x55f   : > { %v2861_v59 = vmul.f32 %v813_v55, %v813_v55 }
 0x560   : > { %v4885_v61 = vadd.f32 %v4884_v58, %v2838_v54  ;;  %v814_v58 = vld [vmem:[%s6609_s19 + $0x1550] sm:$0xff] }
 0x561   : > { %v2862_v62 = vmul.f32 %v814_v58, %v814_v58 }
 0x562   : > { %v4886_v0 = vadd.f32 %v4885_v61, %v2839_v57  ;;  %v815_v61 = vld [vmem:[%s6609_s19 + $0x1558] sm:$0xff] }
 0x563   : > { %v2863_v1 = vmul.f32 %v815_v61, %v815_v61 }
 0x564   : > { %v4887_v3 = vadd.f32 %v4886_v0, %v2840_v60  ;;  %v816_v0 = vld [vmem:[%s6609_s19 + $0x1560] sm:$0xff] }
 0x565   : > { %v2864_v4 = vmul.f32 %v816_v0, %v816_v0 }
 0x566   : > { %v4888_v6 = vadd.f32 %v4887_v3, %v2841_v63  ;;  %v817_v3 = vld [vmem:[%s6609_s19 + $0x1568] sm:$0xff] }
 0x567   : > { %v2865_v7 = vmul.f32 %v817_v3, %v817_v3 }
 0x568   : > { %v4889_v9 = vadd.f32 %v4888_v6, %v2842_v2  ;;  %v818_v6 = vld [vmem:[%s6609_s19 + $0x1570] sm:$0xff] }
 0x569   : > { %v2866_v10 = vmul.f32 %v818_v6, %v818_v6 }
 0x56a   : > { %v4890_v12 = vadd.f32 %v4889_v9, %v2843_v5  ;;  %v819_v9 = vld [vmem:[%s6609_s19 + $0x1578] sm:$0xff] }
 0x56b   : > { %v2867_v13 = vmul.f32 %v819_v9, %v819_v9 }
 0x56c   : > { %v4891_v15 = vadd.f32 %v4890_v12, %v2844_v8  ;;  %v820_v12 = vld [vmem:[%s6609_s19 + $0x1580] sm:$0xff] }
 0x56d   : > { %v2868_v16 = vmul.f32 %v820_v12, %v820_v12 }
 0x56e   : > { %v4892_v18 = vadd.f32 %v4891_v15, %v2845_v11  ;;  %v821_v15 = vld [vmem:[%s6609_s19 + $0x1588] sm:$0xff] }
 0x56f   : > { %v2869_v19 = vmul.f32 %v821_v15, %v821_v15 }
 0x570   : > { %v4893_v21 = vadd.f32 %v4892_v18, %v2846_v14  ;;  %v822_v18 = vld [vmem:[%s6609_s19 + $0x1590] sm:$0xff] }
 0x571   : > { %v2870_v22 = vmul.f32 %v822_v18, %v822_v18 }
 0x572   : > { %v4894_v24 = vadd.f32 %v4893_v21, %v2847_v17  ;;  %v823_v21 = vld [vmem:[%s6609_s19 + $0x1598] sm:$0xff] }
 0x573   : > { %v2871_v25 = vmul.f32 %v823_v21, %v823_v21 }
 0x574   : > { %v4895_v27 = vadd.f32 %v4894_v24, %v2848_v20  ;;  %v824_v24 = vld [vmem:[%s6609_s19 + $0x15a0] sm:$0xff] }
 0x575   : > { %v2872_v28 = vmul.f32 %v824_v24, %v824_v24 }
 0x576   : > { %v4896_v30 = vadd.f32 %v4895_v27, %v2849_v23  ;;  %v825_v27 = vld [vmem:[%s6609_s19 + $0x15a8] sm:$0xff] }
 0x577   : > { %v2873_v31 = vmul.f32 %v825_v27, %v825_v27 }
 0x578   : > { %v4897_v33 = vadd.f32 %v4896_v30, %v2850_v26  ;;  %v826_v30 = vld [vmem:[%s6609_s19 + $0x15b0] sm:$0xff] }
 0x579   : > { %v2874_v34 = vmul.f32 %v826_v30, %v826_v30 }
 0x57a   : > { %v4898_v36 = vadd.f32 %v4897_v33, %v2851_v29  ;;  %v827_v33 = vld [vmem:[%s6609_s19 + $0x15b8] sm:$0xff] }
 0x57b   : > { %v2875_v37 = vmul.f32 %v827_v33, %v827_v33 }
 0x57c   : > { %v4899_v39 = vadd.f32 %v4898_v36, %v2852_v32  ;;  %v828_v36 = vld [vmem:[%s6609_s19 + $0x15c0] sm:$0xff] }
 0x57d   : > { %v2876_v40 = vmul.f32 %v828_v36, %v828_v36 }
 0x57e   : > { %v4900_v42 = vadd.f32 %v4899_v39, %v2853_v35  ;;  %v829_v39 = vld [vmem:[%s6609_s19 + $0x15c8] sm:$0xff] }
 0x57f   : > { %v2877_v43 = vmul.f32 %v829_v39, %v829_v39 }
 0x580   : > { %v4901_v45 = vadd.f32 %v4900_v42, %v2854_v38  ;;  %v830_v42 = vld [vmem:[%s6609_s19 + $0x15d0] sm:$0xff] }
 0x581   : > { %v2878_v46 = vmul.f32 %v830_v42, %v830_v42 }
 0x582   : > { %v4902_v48 = vadd.f32 %v4901_v45, %v2855_v41  ;;  %v831_v45 = vld [vmem:[%s6609_s19 + $0x15d8] sm:$0xff] }
 0x583   : > { %v2879_v49 = vmul.f32 %v831_v45, %v831_v45 }
 0x584   : > { %v4903_v51 = vadd.f32 %v4902_v48, %v2856_v44  ;;  %v832_v48 = vld [vmem:[%s6609_s19 + $0x15e0] sm:$0xff] }
 0x585   : > { %v2880_v52 = vmul.f32 %v832_v48, %v832_v48 }
 0x586   : > { %v4904_v54 = vadd.f32 %v4903_v51, %v2857_v47  ;;  %v833_v51 = vld [vmem:[%s6609_s19 + $0x15e8] sm:$0xff] }
 0x587   : > { %v2881_v55 = vmul.f32 %v833_v51, %v833_v51 }
 0x588   : > { %v4905_v57 = vadd.f32 %v4904_v54, %v2858_v50  ;;  %v834_v54 = vld [vmem:[%s6609_s19 + $0x15f0] sm:$0xff] }
 0x589   : > { %v2882_v58 = vmul.f32 %v834_v54, %v834_v54 }
 0x58a   : > { %v4906_v60 = vadd.f32 %v4905_v57, %v2859_v53  ;;  %v835_v57 = vld [vmem:[%s6609_s19 + $0x15f8] sm:$0xff] }
 0x58b   : > { %v2883_v61 = vmul.f32 %v835_v57, %v835_v57 }
 0x58c   : > { %v4907_v63 = vadd.f32 %v4906_v60, %v2860_v56  ;;  %v836_v60 = vld [vmem:[%s6609_s19 + $0x1600] sm:$0xff] }
 0x58d   : > { %v2884_v0 = vmul.f32 %v836_v60, %v836_v60 }
 0x58e   : > { %v4908_v2 = vadd.f32 %v4907_v63, %v2861_v59  ;;  %v837_v63 = vld [vmem:[%s6609_s19 + $0x1608] sm:$0xff] }
 0x58f   : > { %v2885_v3 = vmul.f32 %v837_v63, %v837_v63 }
 0x590   : > { %v4909_v5 = vadd.f32 %v4908_v2, %v2862_v62  ;;  %v838_v2 = vld [vmem:[%s6609_s19 + $0x1610] sm:$0xff] }
 0x591   : > { %v2886_v6 = vmul.f32 %v838_v2, %v838_v2 }
 0x592   : > { %v4910_v8 = vadd.f32 %v4909_v5, %v2863_v1  ;;  %v839_v5 = vld [vmem:[%s6609_s19 + $0x1618] sm:$0xff] }
 0x593   : > { %v2887_v9 = vmul.f32 %v839_v5, %v839_v5 }
 0x594   : > { %v4911_v11 = vadd.f32 %v4910_v8, %v2864_v4  ;;  %v840_v8 = vld [vmem:[%s6609_s19 + $0x1620] sm:$0xff] }
 0x595   : > { %v2888_v12 = vmul.f32 %v840_v8, %v840_v8 }
 0x596   : > { %v4912_v14 = vadd.f32 %v4911_v11, %v2865_v7  ;;  %v841_v11 = vld [vmem:[%s6609_s19 + $0x1628] sm:$0xff] }
 0x597   : > { %v2889_v15 = vmul.f32 %v841_v11, %v841_v11 }
 0x598   : > { %v4913_v17 = vadd.f32 %v4912_v14, %v2866_v10  ;;  %v842_v14 = vld [vmem:[%s6609_s19 + $0x1630] sm:$0xff] }
 0x599   : > { %v2890_v18 = vmul.f32 %v842_v14, %v842_v14 }
 0x59a   : > { %v4914_v20 = vadd.f32 %v4913_v17, %v2867_v13  ;;  %v843_v17 = vld [vmem:[%s6609_s19 + $0x1638] sm:$0xff] }
 0x59b   : > { %v2891_v21 = vmul.f32 %v843_v17, %v843_v17 }
 0x59c   : > { %v4915_v23 = vadd.f32 %v4914_v20, %v2868_v16  ;;  %v844_v20 = vld [vmem:[%s6609_s19 + $0x1640] sm:$0xff] }
 0x59d   : > { %v2892_v24 = vmul.f32 %v844_v20, %v844_v20 }
 0x59e   : > { %v4916_v26 = vadd.f32 %v4915_v23, %v2869_v19  ;;  %v845_v23 = vld [vmem:[%s6609_s19 + $0x1648] sm:$0xff] }
 0x59f   : > { %v2893_v27 = vmul.f32 %v845_v23, %v845_v23 }
 0x5a0   : > { %v4917_v29 = vadd.f32 %v4916_v26, %v2870_v22  ;;  %v846_v26 = vld [vmem:[%s6609_s19 + $0x1650] sm:$0xff] }
 0x5a1   : > { %v2894_v30 = vmul.f32 %v846_v26, %v846_v26 }
 0x5a2   : > { %v4918_v32 = vadd.f32 %v4917_v29, %v2871_v25  ;;  %v847_v29 = vld [vmem:[%s6609_s19 + $0x1658] sm:$0xff] }
 0x5a3   : > { %v2895_v33 = vmul.f32 %v847_v29, %v847_v29 }
 0x5a4   : > { %v4919_v35 = vadd.f32 %v4918_v32, %v2872_v28  ;;  %v848_v32 = vld [vmem:[%s6609_s19 + $0x1660] sm:$0xff] }
 0x5a5   : > { %v2896_v36 = vmul.f32 %v848_v32, %v848_v32 }
 0x5a6   : > { %v4920_v38 = vadd.f32 %v4919_v35, %v2873_v31  ;;  %v849_v35 = vld [vmem:[%s6609_s19 + $0x1668] sm:$0xff] }
 0x5a7   : > { %v2897_v39 = vmul.f32 %v849_v35, %v849_v35 }
 0x5a8   : > { %v4921_v41 = vadd.f32 %v4920_v38, %v2874_v34  ;;  %v850_v38 = vld [vmem:[%s6609_s19 + $0x1670] sm:$0xff] }
 0x5a9   : > { %v2898_v42 = vmul.f32 %v850_v38, %v850_v38 }
 0x5aa   : > { %v4922_v44 = vadd.f32 %v4921_v41, %v2875_v37  ;;  %v851_v41 = vld [vmem:[%s6609_s19 + $0x1678] sm:$0xff] }
 0x5ab   : > { %v2899_v45 = vmul.f32 %v851_v41, %v851_v41 }
 0x5ac   : > { %v4923_v47 = vadd.f32 %v4922_v44, %v2876_v40  ;;  %v852_v44 = vld [vmem:[%s6609_s19 + $0x1680] sm:$0xff] }
 0x5ad   : > { %v2900_v48 = vmul.f32 %v852_v44, %v852_v44 }
 0x5ae   : > { %v4924_v50 = vadd.f32 %v4923_v47, %v2877_v43  ;;  %v853_v47 = vld [vmem:[%s6609_s19 + $0x1688] sm:$0xff] }
 0x5af   : > { %v2901_v51 = vmul.f32 %v853_v47, %v853_v47 }
 0x5b0   : > { %v4925_v53 = vadd.f32 %v4924_v50, %v2878_v46  ;;  %v854_v50 = vld [vmem:[%s6609_s19 + $0x1690] sm:$0xff] }
 0x5b1   : > { %v2902_v54 = vmul.f32 %v854_v50, %v854_v50 }
 0x5b2   : > { %v4926_v56 = vadd.f32 %v4925_v53, %v2879_v49  ;;  %v855_v53 = vld [vmem:[%s6609_s19 + $0x1698] sm:$0xff] }
 0x5b3   : > { %v2903_v57 = vmul.f32 %v855_v53, %v855_v53 }
 0x5b4   : > { %v4927_v59 = vadd.f32 %v4926_v56, %v2880_v52  ;;  %v856_v56 = vld [vmem:[%s6609_s19 + $0x16a0] sm:$0xff] }
 0x5b5   : > { %v2904_v60 = vmul.f32 %v856_v56, %v856_v56 }
 0x5b6   : > { %v4928_v62 = vadd.f32 %v4927_v59, %v2881_v55  ;;  %v857_v59 = vld [vmem:[%s6609_s19 + $0x16a8] sm:$0xff] }
 0x5b7   : > { %v2905_v63 = vmul.f32 %v857_v59, %v857_v59 }
 0x5b8   : > { %v4929_v1 = vadd.f32 %v4928_v62, %v2882_v58  ;;  %v858_v62 = vld [vmem:[%s6609_s19 + $0x16b0] sm:$0xff] }
 0x5b9   : > { %v2906_v2 = vmul.f32 %v858_v62, %v858_v62 }
 0x5ba   : > { %v4930_v4 = vadd.f32 %v4929_v1, %v2883_v61  ;;  %v859_v1 = vld [vmem:[%s6609_s19 + $0x16b8] sm:$0xff] }
 0x5bb   : > { %v2907_v5 = vmul.f32 %v859_v1, %v859_v1 }
 0x5bc   : > { %v4931_v7 = vadd.f32 %v4930_v4, %v2884_v0  ;;  %v860_v4 = vld [vmem:[%s6609_s19 + $0x16c0] sm:$0xff] }
 0x5bd   : > { %v2908_v8 = vmul.f32 %v860_v4, %v860_v4 }
 0x5be   : > { %v4932_v10 = vadd.f32 %v4931_v7, %v2885_v3  ;;  %v861_v7 = vld [vmem:[%s6609_s19 + $0x16c8] sm:$0xff] }
 0x5bf   : > { %v2909_v11 = vmul.f32 %v861_v7, %v861_v7 }
 0x5c0   : > { %v4933_v13 = vadd.f32 %v4932_v10, %v2886_v6  ;;  %v862_v10 = vld [vmem:[%s6609_s19 + $0x16d0] sm:$0xff] }
 0x5c1   : > { %v2910_v14 = vmul.f32 %v862_v10, %v862_v10 }
 0x5c2   : > { %v4934_v16 = vadd.f32 %v4933_v13, %v2887_v9  ;;  %v863_v13 = vld [vmem:[%s6609_s19 + $0x16d8] sm:$0xff] }
 0x5c3   : > { %v2911_v17 = vmul.f32 %v863_v13, %v863_v13 }
 0x5c4   : > { %v4935_v19 = vadd.f32 %v4934_v16, %v2888_v12  ;;  %v864_v16 = vld [vmem:[%s6609_s19 + $0x16e0] sm:$0xff] }
 0x5c5   : > { %v2912_v20 = vmul.f32 %v864_v16, %v864_v16 }
 0x5c6   : > { %v4936_v22 = vadd.f32 %v4935_v19, %v2889_v15  ;;  %v865_v19 = vld [vmem:[%s6609_s19 + $0x16e8] sm:$0xff] }
 0x5c7   : > { %v2913_v23 = vmul.f32 %v865_v19, %v865_v19 }
 0x5c8   : > { %v4937_v25 = vadd.f32 %v4936_v22, %v2890_v18  ;;  %v866_v22 = vld [vmem:[%s6609_s19 + $0x16f0] sm:$0xff] }
 0x5c9   : > { %v2914_v26 = vmul.f32 %v866_v22, %v866_v22 }
 0x5ca   : > { %v4938_v28 = vadd.f32 %v4937_v25, %v2891_v21  ;;  %v867_v25 = vld [vmem:[%s6609_s19 + $0x16f8] sm:$0xff] }
 0x5cb   : > { %v2915_v29 = vmul.f32 %v867_v25, %v867_v25 }
 0x5cc   : > { %v4939_v31 = vadd.f32 %v4938_v28, %v2892_v24  ;;  %v868_v28 = vld [vmem:[%s6609_s19 + $0x1700] sm:$0xff] }
 0x5cd   : > { %v2916_v32 = vmul.f32 %v868_v28, %v868_v28 }
 0x5ce   : > { %v4940_v34 = vadd.f32 %v4939_v31, %v2893_v27  ;;  %v869_v31 = vld [vmem:[%s6609_s19 + $0x1708] sm:$0xff] }
 0x5cf   : > { %v2917_v35 = vmul.f32 %v869_v31, %v869_v31 }
 0x5d0   : > { %v4941_v37 = vadd.f32 %v4940_v34, %v2894_v30  ;;  %v870_v34 = vld [vmem:[%s6609_s19 + $0x1710] sm:$0xff] }
 0x5d1   : > { %v2918_v38 = vmul.f32 %v870_v34, %v870_v34 }
 0x5d2   : > { %v4942_v40 = vadd.f32 %v4941_v37, %v2895_v33  ;;  %v871_v37 = vld [vmem:[%s6609_s19 + $0x1718] sm:$0xff] }
 0x5d3   : > { %v2919_v41 = vmul.f32 %v871_v37, %v871_v37 }
 0x5d4   : > { %v4943_v43 = vadd.f32 %v4942_v40, %v2896_v36  ;;  %v872_v40 = vld [vmem:[%s6609_s19 + $0x1720] sm:$0xff] }
 0x5d5   : > { %v2920_v44 = vmul.f32 %v872_v40, %v872_v40 }
 0x5d6   : > { %v4944_v46 = vadd.f32 %v4943_v43, %v2897_v39  ;;  %v873_v43 = vld [vmem:[%s6609_s19 + $0x1728] sm:$0xff] }
 0x5d7   : > { %v2921_v47 = vmul.f32 %v873_v43, %v873_v43 }
 0x5d8   : > { %v4945_v49 = vadd.f32 %v4944_v46, %v2898_v42  ;;  %v874_v46 = vld [vmem:[%s6609_s19 + $0x1730] sm:$0xff] }
 0x5d9   : > { %v2922_v50 = vmul.f32 %v874_v46, %v874_v46 }
 0x5da   : > { %v4946_v52 = vadd.f32 %v4945_v49, %v2899_v45  ;;  %v875_v49 = vld [vmem:[%s6609_s19 + $0x1738] sm:$0xff] }
 0x5db   : > { %v2923_v53 = vmul.f32 %v875_v49, %v875_v49 }
 0x5dc   : > { %v4947_v55 = vadd.f32 %v4946_v52, %v2900_v48  ;;  %v876_v52 = vld [vmem:[%s6609_s19 + $0x1740] sm:$0xff] }
 0x5dd   : > { %v2924_v56 = vmul.f32 %v876_v52, %v876_v52 }
 0x5de   : > { %v4948_v58 = vadd.f32 %v4947_v55, %v2901_v51  ;;  %v877_v55 = vld [vmem:[%s6609_s19 + $0x1748] sm:$0xff] }
 0x5df   : > { %v2925_v59 = vmul.f32 %v877_v55, %v877_v55 }
 0x5e0   : > { %v4949_v61 = vadd.f32 %v4948_v58, %v2902_v54  ;;  %v878_v58 = vld [vmem:[%s6609_s19 + $0x1750] sm:$0xff] }
 0x5e1   : > { %v2926_v62 = vmul.f32 %v878_v58, %v878_v58 }
 0x5e2   : > { %v4950_v0 = vadd.f32 %v4949_v61, %v2903_v57  ;;  %v879_v61 = vld [vmem:[%s6609_s19 + $0x1758] sm:$0xff] }
 0x5e3   : > { %v2927_v1 = vmul.f32 %v879_v61, %v879_v61 }
 0x5e4   : > { %v4951_v3 = vadd.f32 %v4950_v0, %v2904_v60  ;;  %v880_v0 = vld [vmem:[%s6609_s19 + $0x1760] sm:$0xff] }
 0x5e5   : > { %v2928_v4 = vmul.f32 %v880_v0, %v880_v0 }
 0x5e6   : > { %v4952_v6 = vadd.f32 %v4951_v3, %v2905_v63  ;;  %v881_v3 = vld [vmem:[%s6609_s19 + $0x1768] sm:$0xff] }
 0x5e7   : > { %v2929_v7 = vmul.f32 %v881_v3, %v881_v3 }
 0x5e8   : > { %v4953_v9 = vadd.f32 %v4952_v6, %v2906_v2  ;;  %v882_v6 = vld [vmem:[%s6609_s19 + $0x1770] sm:$0xff] }
 0x5e9   : > { %v2930_v10 = vmul.f32 %v882_v6, %v882_v6 }
 0x5ea   : > { %v4954_v12 = vadd.f32 %v4953_v9, %v2907_v5  ;;  %v883_v9 = vld [vmem:[%s6609_s19 + $0x1778] sm:$0xff] }
 0x5eb   : > { %v2931_v13 = vmul.f32 %v883_v9, %v883_v9 }
 0x5ec   : > { %v4955_v15 = vadd.f32 %v4954_v12, %v2908_v8  ;;  %v884_v12 = vld [vmem:[%s6609_s19 + $0x1780] sm:$0xff] }
 0x5ed   : > { %v2932_v16 = vmul.f32 %v884_v12, %v884_v12 }
 0x5ee   : > { %v4956_v18 = vadd.f32 %v4955_v15, %v2909_v11  ;;  %v885_v15 = vld [vmem:[%s6609_s19 + $0x1788] sm:$0xff] }
 0x5ef   : > { %v2933_v19 = vmul.f32 %v885_v15, %v885_v15 }
 0x5f0   : > { %v4957_v21 = vadd.f32 %v4956_v18, %v2910_v14  ;;  %v886_v18 = vld [vmem:[%s6609_s19 + $0x1790] sm:$0xff] }
 0x5f1   : > { %v2934_v22 = vmul.f32 %v886_v18, %v886_v18 }
 0x5f2   : > { %v4958_v24 = vadd.f32 %v4957_v21, %v2911_v17  ;;  %v887_v21 = vld [vmem:[%s6609_s19 + $0x1798] sm:$0xff] }
 0x5f3   : > { %v2935_v25 = vmul.f32 %v887_v21, %v887_v21 }
 0x5f4   : > { %v4959_v27 = vadd.f32 %v4958_v24, %v2912_v20  ;;  %v888_v24 = vld [vmem:[%s6609_s19 + $0x17a0] sm:$0xff] }
 0x5f5   : > { %v2936_v28 = vmul.f32 %v888_v24, %v888_v24 }
 0x5f6   : > { %v4960_v30 = vadd.f32 %v4959_v27, %v2913_v23  ;;  %v889_v27 = vld [vmem:[%s6609_s19 + $0x17a8] sm:$0xff] }
 0x5f7   : > { %v2937_v31 = vmul.f32 %v889_v27, %v889_v27 }
 0x5f8   : > { %v4961_v33 = vadd.f32 %v4960_v30, %v2914_v26  ;;  %v890_v30 = vld [vmem:[%s6609_s19 + $0x17b0] sm:$0xff] }
 0x5f9   : > { %v2938_v34 = vmul.f32 %v890_v30, %v890_v30 }
 0x5fa   : > { %v4962_v36 = vadd.f32 %v4961_v33, %v2915_v29  ;;  %v891_v33 = vld [vmem:[%s6609_s19 + $0x17b8] sm:$0xff] }
 0x5fb   : > { %v2939_v37 = vmul.f32 %v891_v33, %v891_v33 }
 0x5fc   : > { %v4963_v39 = vadd.f32 %v4962_v36, %v2916_v32  ;;  %v892_v36 = vld [vmem:[%s6609_s19 + $0x17c0] sm:$0xff] }
 0x5fd   : > { %v2940_v40 = vmul.f32 %v892_v36, %v892_v36 }
 0x5fe   : > { %v4964_v42 = vadd.f32 %v4963_v39, %v2917_v35  ;;  %v893_v39 = vld [vmem:[%s6609_s19 + $0x17c8] sm:$0xff] }
 0x5ff   : > { %v2941_v43 = vmul.f32 %v893_v39, %v893_v39 }
 0x600   : > { %v4965_v45 = vadd.f32 %v4964_v42, %v2918_v38  ;;  %v894_v42 = vld [vmem:[%s6609_s19 + $0x17d0] sm:$0xff] }
 0x601   : > { %v2942_v46 = vmul.f32 %v894_v42, %v894_v42 }
 0x602   : > { %v4966_v48 = vadd.f32 %v4965_v45, %v2919_v41  ;;  %v895_v45 = vld [vmem:[%s6609_s19 + $0x17d8] sm:$0xff] }
 0x603   : > { %v2943_v49 = vmul.f32 %v895_v45, %v895_v45 }
 0x604   : > { %v4967_v51 = vadd.f32 %v4966_v48, %v2920_v44  ;;  %v896_v48 = vld [vmem:[%s6609_s19 + $0x17e0] sm:$0xff] }
 0x605   : > { %v2944_v52 = vmul.f32 %v896_v48, %v896_v48 }
 0x606   : > { %v4968_v54 = vadd.f32 %v4967_v51, %v2921_v47  ;;  %v897_v51 = vld [vmem:[%s6609_s19 + $0x17e8] sm:$0xff] }
 0x607   : > { %v2945_v55 = vmul.f32 %v897_v51, %v897_v51 }
 0x608   : > { %v4969_v57 = vadd.f32 %v4968_v54, %v2922_v50  ;;  %v898_v54 = vld [vmem:[%s6609_s19 + $0x17f0] sm:$0xff] }
 0x609   : > { %v2946_v58 = vmul.f32 %v898_v54, %v898_v54 }
 0x60a   : > { %v4970_v60 = vadd.f32 %v4969_v57, %v2923_v53  ;;  %v899_v57 = vld [vmem:[%s6609_s19 + $0x17f8] sm:$0xff] }
 0x60b   : > { %v2947_v61 = vmul.f32 %v899_v57, %v899_v57 }
 0x60c   : > { %v4971_v63 = vadd.f32 %v4970_v60, %v2924_v56  ;;  %v900_v60 = vld [vmem:[%s6609_s19 + $0x1800] sm:$0xff] }
 0x60d   : > { %v2948_v0 = vmul.f32 %v900_v60, %v900_v60 }
 0x60e   : > { %v4972_v2 = vadd.f32 %v4971_v63, %v2925_v59  ;;  %v901_v63 = vld [vmem:[%s6609_s19 + $0x1808] sm:$0xff] }
 0x60f   : > { %v2949_v3 = vmul.f32 %v901_v63, %v901_v63 }
 0x610   : > { %v4973_v5 = vadd.f32 %v4972_v2, %v2926_v62  ;;  %v902_v2 = vld [vmem:[%s6609_s19 + $0x1810] sm:$0xff] }
 0x611   : > { %v2950_v6 = vmul.f32 %v902_v2, %v902_v2 }
 0x612   : > { %v4974_v8 = vadd.f32 %v4973_v5, %v2927_v1  ;;  %v903_v5 = vld [vmem:[%s6609_s19 + $0x1818] sm:$0xff] }
 0x613   : > { %v2951_v9 = vmul.f32 %v903_v5, %v903_v5 }
 0x614   : > { %v4975_v11 = vadd.f32 %v4974_v8, %v2928_v4  ;;  %v904_v8 = vld [vmem:[%s6609_s19 + $0x1820] sm:$0xff] }
 0x615   : > { %v2952_v12 = vmul.f32 %v904_v8, %v904_v8 }
 0x616   : > { %v4976_v14 = vadd.f32 %v4975_v11, %v2929_v7  ;;  %v905_v11 = vld [vmem:[%s6609_s19 + $0x1828] sm:$0xff] }
 0x617   : > { %v2953_v15 = vmul.f32 %v905_v11, %v905_v11 }
 0x618   : > { %v4977_v17 = vadd.f32 %v4976_v14, %v2930_v10  ;;  %v906_v14 = vld [vmem:[%s6609_s19 + $0x1830] sm:$0xff] }
 0x619   : > { %v2954_v18 = vmul.f32 %v906_v14, %v906_v14 }
 0x61a   : > { %v4978_v20 = vadd.f32 %v4977_v17, %v2931_v13  ;;  %v907_v17 = vld [vmem:[%s6609_s19 + $0x1838] sm:$0xff] }
 0x61b   : > { %v2955_v21 = vmul.f32 %v907_v17, %v907_v17 }
 0x61c   : > { %v4979_v23 = vadd.f32 %v4978_v20, %v2932_v16  ;;  %v908_v20 = vld [vmem:[%s6609_s19 + $0x1840] sm:$0xff] }
 0x61d   : > { %v2956_v24 = vmul.f32 %v908_v20, %v908_v20 }
 0x61e   : > { %v4980_v26 = vadd.f32 %v4979_v23, %v2933_v19  ;;  %v909_v23 = vld [vmem:[%s6609_s19 + $0x1848] sm:$0xff] }
 0x61f   : > { %v2957_v27 = vmul.f32 %v909_v23, %v909_v23 }
 0x620   : > { %v4981_v29 = vadd.f32 %v4980_v26, %v2934_v22  ;;  %v910_v26 = vld [vmem:[%s6609_s19 + $0x1850] sm:$0xff] }
 0x621   : > { %v2958_v30 = vmul.f32 %v910_v26, %v910_v26 }
 0x622   : > { %v4982_v32 = vadd.f32 %v4981_v29, %v2935_v25  ;;  %v911_v29 = vld [vmem:[%s6609_s19 + $0x1858] sm:$0xff] }
 0x623   : > { %v2959_v33 = vmul.f32 %v911_v29, %v911_v29 }
 0x624   : > { %v4983_v35 = vadd.f32 %v4982_v32, %v2936_v28  ;;  %v912_v32 = vld [vmem:[%s6609_s19 + $0x1860] sm:$0xff] }
 0x625   : > { %v2960_v36 = vmul.f32 %v912_v32, %v912_v32 }
 0x626   : > { %v4984_v38 = vadd.f32 %v4983_v35, %v2937_v31  ;;  %v913_v35 = vld [vmem:[%s6609_s19 + $0x1868] sm:$0xff] }
 0x627   : > { %v2961_v39 = vmul.f32 %v913_v35, %v913_v35 }
 0x628   : > { %v4985_v41 = vadd.f32 %v4984_v38, %v2938_v34  ;;  %v914_v38 = vld [vmem:[%s6609_s19 + $0x1870] sm:$0xff] }
 0x629   : > { %v2962_v42 = vmul.f32 %v914_v38, %v914_v38 }
 0x62a   : > { %v4986_v44 = vadd.f32 %v4985_v41, %v2939_v37  ;;  %v915_v41 = vld [vmem:[%s6609_s19 + $0x1878] sm:$0xff] }
 0x62b   : > { %v2963_v45 = vmul.f32 %v915_v41, %v915_v41 }
 0x62c   : > { %v4987_v47 = vadd.f32 %v4986_v44, %v2940_v40  ;;  %v916_v44 = vld [vmem:[%s6609_s19 + $0x1880] sm:$0xff] }
 0x62d   : > { %v2964_v48 = vmul.f32 %v916_v44, %v916_v44 }
 0x62e   : > { %v4988_v50 = vadd.f32 %v4987_v47, %v2941_v43  ;;  %v917_v47 = vld [vmem:[%s6609_s19 + $0x1888] sm:$0xff] }
 0x62f   : > { %v2965_v51 = vmul.f32 %v917_v47, %v917_v47 }
 0x630   : > { %v4989_v53 = vadd.f32 %v4988_v50, %v2942_v46  ;;  %v918_v50 = vld [vmem:[%s6609_s19 + $0x1890] sm:$0xff] }
 0x631   : > { %v2966_v54 = vmul.f32 %v918_v50, %v918_v50 }
 0x632   : > { %v4990_v56 = vadd.f32 %v4989_v53, %v2943_v49  ;;  %v919_v53 = vld [vmem:[%s6609_s19 + $0x1898] sm:$0xff] }
 0x633   : > { %v2967_v57 = vmul.f32 %v919_v53, %v919_v53 }
 0x634   : > { %v4991_v59 = vadd.f32 %v4990_v56, %v2944_v52  ;;  %v920_v56 = vld [vmem:[%s6609_s19 + $0x18a0] sm:$0xff] }
 0x635   : > { %v2968_v60 = vmul.f32 %v920_v56, %v920_v56 }
 0x636   : > { %v4992_v62 = vadd.f32 %v4991_v59, %v2945_v55  ;;  %v921_v59 = vld [vmem:[%s6609_s19 + $0x18a8] sm:$0xff] }
 0x637   : > { %v2969_v63 = vmul.f32 %v921_v59, %v921_v59 }
 0x638   : > { %v4993_v1 = vadd.f32 %v4992_v62, %v2946_v58  ;;  %v922_v62 = vld [vmem:[%s6609_s19 + $0x18b0] sm:$0xff] }
 0x639   : > { %v2970_v2 = vmul.f32 %v922_v62, %v922_v62 }
 0x63a   : > { %v4994_v4 = vadd.f32 %v4993_v1, %v2947_v61  ;;  %v923_v1 = vld [vmem:[%s6609_s19 + $0x18b8] sm:$0xff] }
 0x63b   : > { %v2971_v5 = vmul.f32 %v923_v1, %v923_v1 }
 0x63c   : > { %v4995_v7 = vadd.f32 %v4994_v4, %v2948_v0  ;;  %v924_v4 = vld [vmem:[%s6609_s19 + $0x18c0] sm:$0xff] }
 0x63d   : > { %v2972_v8 = vmul.f32 %v924_v4, %v924_v4 }
 0x63e   : > { %v4996_v10 = vadd.f32 %v4995_v7, %v2949_v3  ;;  %v925_v7 = vld [vmem:[%s6609_s19 + $0x18c8] sm:$0xff] }
 0x63f   : > { %v2973_v11 = vmul.f32 %v925_v7, %v925_v7 }
 0x640   : > { %v4997_v13 = vadd.f32 %v4996_v10, %v2950_v6  ;;  %v926_v10 = vld [vmem:[%s6609_s19 + $0x18d0] sm:$0xff] }
 0x641   : > { %v2974_v14 = vmul.f32 %v926_v10, %v926_v10 }
 0x642   : > { %v4998_v16 = vadd.f32 %v4997_v13, %v2951_v9  ;;  %v927_v13 = vld [vmem:[%s6609_s19 + $0x18d8] sm:$0xff] }
 0x643   : > { %v2975_v17 = vmul.f32 %v927_v13, %v927_v13 }
 0x644   : > { %v4999_v19 = vadd.f32 %v4998_v16, %v2952_v12  ;;  %v928_v16 = vld [vmem:[%s6609_s19 + $0x18e0] sm:$0xff] }
 0x645   : > { %v2976_v20 = vmul.f32 %v928_v16, %v928_v16 }
 0x646   : > { %v5000_v22 = vadd.f32 %v4999_v19, %v2953_v15  ;;  %v929_v19 = vld [vmem:[%s6609_s19 + $0x18e8] sm:$0xff] }
 0x647   : > { %v2977_v23 = vmul.f32 %v929_v19, %v929_v19 }
 0x648   : > { %v5001_v25 = vadd.f32 %v5000_v22, %v2954_v18  ;;  %v930_v22 = vld [vmem:[%s6609_s19 + $0x18f0] sm:$0xff] }
 0x649   : > { %v2978_v26 = vmul.f32 %v930_v22, %v930_v22 }
 0x64a   : > { %v5002_v28 = vadd.f32 %v5001_v25, %v2955_v21  ;;  %v931_v25 = vld [vmem:[%s6609_s19 + $0x18f8] sm:$0xff] }
 0x64b   : > { %v2979_v29 = vmul.f32 %v931_v25, %v931_v25 }
 0x64c   : > { %v5003_v31 = vadd.f32 %v5002_v28, %v2956_v24  ;;  %v932_v28 = vld [vmem:[%s6609_s19 + $0x1900] sm:$0xff] }
 0x64d   : > { %v2980_v32 = vmul.f32 %v932_v28, %v932_v28 }
 0x64e   : > { %v5004_v34 = vadd.f32 %v5003_v31, %v2957_v27  ;;  %v933_v31 = vld [vmem:[%s6609_s19 + $0x1908] sm:$0xff] }
 0x64f   : > { %v2981_v35 = vmul.f32 %v933_v31, %v933_v31 }
 0x650   : > { %v5005_v37 = vadd.f32 %v5004_v34, %v2958_v30  ;;  %v934_v34 = vld [vmem:[%s6609_s19 + $0x1910] sm:$0xff] }
 0x651   : > { %v2982_v38 = vmul.f32 %v934_v34, %v934_v34 }
 0x652   : > { %v5006_v40 = vadd.f32 %v5005_v37, %v2959_v33  ;;  %v935_v37 = vld [vmem:[%s6609_s19 + $0x1918] sm:$0xff] }
 0x653   : > { %v2983_v41 = vmul.f32 %v935_v37, %v935_v37 }
 0x654   : > { %v5007_v43 = vadd.f32 %v5006_v40, %v2960_v36  ;;  %v936_v40 = vld [vmem:[%s6609_s19 + $0x1920] sm:$0xff] }
 0x655   : > { %v2984_v44 = vmul.f32 %v936_v40, %v936_v40 }
 0x656   : > { %v5008_v46 = vadd.f32 %v5007_v43, %v2961_v39  ;;  %v937_v43 = vld [vmem:[%s6609_s19 + $0x1928] sm:$0xff] }
 0x657   : > { %v2985_v47 = vmul.f32 %v937_v43, %v937_v43 }
 0x658   : > { %v5009_v49 = vadd.f32 %v5008_v46, %v2962_v42  ;;  %v938_v46 = vld [vmem:[%s6609_s19 + $0x1930] sm:$0xff] }
 0x659   : > { %v2986_v50 = vmul.f32 %v938_v46, %v938_v46 }
 0x65a   : > { %v5010_v52 = vadd.f32 %v5009_v49, %v2963_v45  ;;  %v939_v49 = vld [vmem:[%s6609_s19 + $0x1938] sm:$0xff] }
 0x65b   : > { %v2987_v53 = vmul.f32 %v939_v49, %v939_v49 }
 0x65c   : > { %v5011_v55 = vadd.f32 %v5010_v52, %v2964_v48  ;;  %v940_v52 = vld [vmem:[%s6609_s19 + $0x1940] sm:$0xff] }
 0x65d   : > { %v2988_v56 = vmul.f32 %v940_v52, %v940_v52 }
 0x65e   : > { %v5012_v58 = vadd.f32 %v5011_v55, %v2965_v51  ;;  %v941_v55 = vld [vmem:[%s6609_s19 + $0x1948] sm:$0xff] }
 0x65f   : > { %v2989_v59 = vmul.f32 %v941_v55, %v941_v55 }
 0x660   : > { %v5013_v61 = vadd.f32 %v5012_v58, %v2966_v54  ;;  %v942_v58 = vld [vmem:[%s6609_s19 + $0x1950] sm:$0xff] }
 0x661   : > { %v2990_v62 = vmul.f32 %v942_v58, %v942_v58 }
 0x662   : > { %v5014_v0 = vadd.f32 %v5013_v61, %v2967_v57  ;;  %v943_v61 = vld [vmem:[%s6609_s19 + $0x1958] sm:$0xff] }
 0x663   : > { %v2991_v1 = vmul.f32 %v943_v61, %v943_v61 }
 0x664   : > { %v5015_v3 = vadd.f32 %v5014_v0, %v2968_v60  ;;  %v944_v0 = vld [vmem:[%s6609_s19 + $0x1960] sm:$0xff] }
 0x665   : > { %v2992_v4 = vmul.f32 %v944_v0, %v944_v0 }
 0x666   : > { %v5016_v6 = vadd.f32 %v5015_v3, %v2969_v63  ;;  %v945_v3 = vld [vmem:[%s6609_s19 + $0x1968] sm:$0xff] }
 0x667   : > { %v2993_v7 = vmul.f32 %v945_v3, %v945_v3 }
 0x668   : > { %v5017_v9 = vadd.f32 %v5016_v6, %v2970_v2  ;;  %v946_v6 = vld [vmem:[%s6609_s19 + $0x1970] sm:$0xff] }
 0x669   : > { %v2994_v10 = vmul.f32 %v946_v6, %v946_v6 }
 0x66a   : > { %v5018_v12 = vadd.f32 %v5017_v9, %v2971_v5  ;;  %v947_v9 = vld [vmem:[%s6609_s19 + $0x1978] sm:$0xff] }
 0x66b   : > { %v2995_v13 = vmul.f32 %v947_v9, %v947_v9 }
 0x66c   : > { %v5019_v15 = vadd.f32 %v5018_v12, %v2972_v8  ;;  %v948_v12 = vld [vmem:[%s6609_s19 + $0x1980] sm:$0xff] }
 0x66d   : > { %v2996_v16 = vmul.f32 %v948_v12, %v948_v12 }
 0x66e   : > { %v5020_v18 = vadd.f32 %v5019_v15, %v2973_v11  ;;  %v949_v15 = vld [vmem:[%s6609_s19 + $0x1988] sm:$0xff] }
 0x66f   : > { %v2997_v19 = vmul.f32 %v949_v15, %v949_v15 }
 0x670   : > { %v5021_v21 = vadd.f32 %v5020_v18, %v2974_v14  ;;  %v950_v18 = vld [vmem:[%s6609_s19 + $0x1990] sm:$0xff] }
 0x671   : > { %v2998_v22 = vmul.f32 %v950_v18, %v950_v18 }
 0x672   : > { %v5022_v24 = vadd.f32 %v5021_v21, %v2975_v17  ;;  %v951_v21 = vld [vmem:[%s6609_s19 + $0x1998] sm:$0xff] }
 0x673   : > { %v2999_v25 = vmul.f32 %v951_v21, %v951_v21 }
 0x674   : > { %v5023_v27 = vadd.f32 %v5022_v24, %v2976_v20  ;;  %v952_v24 = vld [vmem:[%s6609_s19 + $0x19a0] sm:$0xff] }
 0x675   : > { %v3000_v28 = vmul.f32 %v952_v24, %v952_v24 }
 0x676   : > { %v5024_v30 = vadd.f32 %v5023_v27, %v2977_v23  ;;  %v953_v27 = vld [vmem:[%s6609_s19 + $0x19a8] sm:$0xff] }
 0x677   : > { %v3001_v31 = vmul.f32 %v953_v27, %v953_v27 }
 0x678   : > { %v5025_v33 = vadd.f32 %v5024_v30, %v2978_v26  ;;  %v954_v30 = vld [vmem:[%s6609_s19 + $0x19b0] sm:$0xff] }
 0x679   : > { %v3002_v34 = vmul.f32 %v954_v30, %v954_v30 }
 0x67a   : > { %v5026_v36 = vadd.f32 %v5025_v33, %v2979_v29  ;;  %v955_v33 = vld [vmem:[%s6609_s19 + $0x19b8] sm:$0xff] }
 0x67b   : > { %v3003_v37 = vmul.f32 %v955_v33, %v955_v33 }
 0x67c   : > { %v5027_v39 = vadd.f32 %v5026_v36, %v2980_v32  ;;  %v956_v36 = vld [vmem:[%s6609_s19 + $0x19c0] sm:$0xff] }
 0x67d   : > { %v3004_v40 = vmul.f32 %v956_v36, %v956_v36 }
 0x67e   : > { %v5028_v42 = vadd.f32 %v5027_v39, %v2981_v35  ;;  %v957_v39 = vld [vmem:[%s6609_s19 + $0x19c8] sm:$0xff] }
 0x67f   : > { %v3005_v43 = vmul.f32 %v957_v39, %v957_v39 }
 0x680   : > { %v5029_v45 = vadd.f32 %v5028_v42, %v2982_v38  ;;  %v958_v42 = vld [vmem:[%s6609_s19 + $0x19d0] sm:$0xff] }
 0x681   : > { %v3006_v46 = vmul.f32 %v958_v42, %v958_v42 }
 0x682   : > { %v5030_v48 = vadd.f32 %v5029_v45, %v2983_v41  ;;  %v959_v45 = vld [vmem:[%s6609_s19 + $0x19d8] sm:$0xff] }
 0x683   : > { %v3007_v49 = vmul.f32 %v959_v45, %v959_v45 }
 0x684   : > { %v5031_v51 = vadd.f32 %v5030_v48, %v2984_v44  ;;  %v960_v48 = vld [vmem:[%s6609_s19 + $0x19e0] sm:$0xff] }
 0x685   : > { %v3008_v52 = vmul.f32 %v960_v48, %v960_v48 }
 0x686   : > { %v5032_v54 = vadd.f32 %v5031_v51, %v2985_v47  ;;  %v961_v51 = vld [vmem:[%s6609_s19 + $0x19e8] sm:$0xff] }
 0x687   : > { %v3009_v55 = vmul.f32 %v961_v51, %v961_v51 }
 0x688   : > { %v5033_v57 = vadd.f32 %v5032_v54, %v2986_v50  ;;  %v962_v54 = vld [vmem:[%s6609_s19 + $0x19f0] sm:$0xff] }
 0x689   : > { %v3010_v58 = vmul.f32 %v962_v54, %v962_v54 }
 0x68a   : > { %v5034_v60 = vadd.f32 %v5033_v57, %v2987_v53  ;;  %v963_v57 = vld [vmem:[%s6609_s19 + $0x19f8] sm:$0xff] }
 0x68b   : > { %v3011_v61 = vmul.f32 %v963_v57, %v963_v57 }
 0x68c   : > { %v5035_v63 = vadd.f32 %v5034_v60, %v2988_v56  ;;  %v964_v60 = vld [vmem:[%s6609_s19 + $0x1a00] sm:$0xff] }
 0x68d   : > { %v3012_v0 = vmul.f32 %v964_v60, %v964_v60 }
 0x68e   : > { %v5036_v2 = vadd.f32 %v5035_v63, %v2989_v59  ;;  %v965_v63 = vld [vmem:[%s6609_s19 + $0x1a08] sm:$0xff] }
 0x68f   : > { %v3013_v3 = vmul.f32 %v965_v63, %v965_v63 }
 0x690   : > { %v5037_v5 = vadd.f32 %v5036_v2, %v2990_v62  ;;  %v966_v2 = vld [vmem:[%s6609_s19 + $0x1a10] sm:$0xff] }
 0x691   : > { %v3014_v6 = vmul.f32 %v966_v2, %v966_v2 }
 0x692   : > { %v5038_v8 = vadd.f32 %v5037_v5, %v2991_v1  ;;  %v967_v5 = vld [vmem:[%s6609_s19 + $0x1a18] sm:$0xff] }
 0x693   : > { %v3015_v9 = vmul.f32 %v967_v5, %v967_v5 }
 0x694   : > { %v5039_v11 = vadd.f32 %v5038_v8, %v2992_v4  ;;  %v968_v8 = vld [vmem:[%s6609_s19 + $0x1a20] sm:$0xff] }
 0x695   : > { %v3016_v12 = vmul.f32 %v968_v8, %v968_v8 }
 0x696   : > { %v5040_v14 = vadd.f32 %v5039_v11, %v2993_v7  ;;  %v969_v11 = vld [vmem:[%s6609_s19 + $0x1a28] sm:$0xff] }
 0x697   : > { %v3017_v15 = vmul.f32 %v969_v11, %v969_v11 }
 0x698   : > { %v5041_v17 = vadd.f32 %v5040_v14, %v2994_v10  ;;  %v970_v14 = vld [vmem:[%s6609_s19 + $0x1a30] sm:$0xff] }
 0x699   : > { %v3018_v18 = vmul.f32 %v970_v14, %v970_v14 }
 0x69a   : > { %v5042_v20 = vadd.f32 %v5041_v17, %v2995_v13  ;;  %v971_v17 = vld [vmem:[%s6609_s19 + $0x1a38] sm:$0xff] }
 0x69b   : > { %v3019_v21 = vmul.f32 %v971_v17, %v971_v17 }
 0x69c   : > { %v5043_v23 = vadd.f32 %v5042_v20, %v2996_v16  ;;  %v972_v20 = vld [vmem:[%s6609_s19 + $0x1a40] sm:$0xff] }
 0x69d   : > { %v3020_v24 = vmul.f32 %v972_v20, %v972_v20 }
 0x69e   : > { %v5044_v26 = vadd.f32 %v5043_v23, %v2997_v19  ;;  %v973_v23 = vld [vmem:[%s6609_s19 + $0x1a48] sm:$0xff] }
 0x69f   : > { %v3021_v27 = vmul.f32 %v973_v23, %v973_v23 }
 0x6a0   : > { %v5045_v29 = vadd.f32 %v5044_v26, %v2998_v22  ;;  %v974_v26 = vld [vmem:[%s6609_s19 + $0x1a50] sm:$0xff] }
 0x6a1   : > { %v3022_v30 = vmul.f32 %v974_v26, %v974_v26 }
 0x6a2   : > { %v5046_v32 = vadd.f32 %v5045_v29, %v2999_v25  ;;  %v975_v29 = vld [vmem:[%s6609_s19 + $0x1a58] sm:$0xff] }
 0x6a3   : > { %v3023_v33 = vmul.f32 %v975_v29, %v975_v29 }
 0x6a4   : > { %v5047_v35 = vadd.f32 %v5046_v32, %v3000_v28  ;;  %v976_v32 = vld [vmem:[%s6609_s19 + $0x1a60] sm:$0xff] }
 0x6a5   : > { %v3024_v36 = vmul.f32 %v976_v32, %v976_v32 }
 0x6a6   : > { %v5048_v38 = vadd.f32 %v5047_v35, %v3001_v31  ;;  %v977_v35 = vld [vmem:[%s6609_s19 + $0x1a68] sm:$0xff] }
 0x6a7   : > { %v3025_v39 = vmul.f32 %v977_v35, %v977_v35 }
 0x6a8   : > { %v5049_v41 = vadd.f32 %v5048_v38, %v3002_v34  ;;  %v978_v38 = vld [vmem:[%s6609_s19 + $0x1a70] sm:$0xff] }
 0x6a9   : > { %v3026_v42 = vmul.f32 %v978_v38, %v978_v38 }
 0x6aa   : > { %v5050_v44 = vadd.f32 %v5049_v41, %v3003_v37  ;;  %v979_v41 = vld [vmem:[%s6609_s19 + $0x1a78] sm:$0xff] }
 0x6ab   : > { %v3027_v45 = vmul.f32 %v979_v41, %v979_v41 }
 0x6ac   : > { %v5051_v47 = vadd.f32 %v5050_v44, %v3004_v40  ;;  %v980_v44 = vld [vmem:[%s6609_s19 + $0x1a80] sm:$0xff] }
 0x6ad   : > { %v3028_v48 = vmul.f32 %v980_v44, %v980_v44 }
 0x6ae   : > { %v5052_v50 = vadd.f32 %v5051_v47, %v3005_v43  ;;  %v981_v47 = vld [vmem:[%s6609_s19 + $0x1a88] sm:$0xff] }
 0x6af   : > { %v3029_v51 = vmul.f32 %v981_v47, %v981_v47 }
 0x6b0   : > { %v5053_v53 = vadd.f32 %v5052_v50, %v3006_v46  ;;  %v982_v50 = vld [vmem:[%s6609_s19 + $0x1a90] sm:$0xff] }
 0x6b1   : > { %v3030_v54 = vmul.f32 %v982_v50, %v982_v50 }
 0x6b2   : > { %v5054_v56 = vadd.f32 %v5053_v53, %v3007_v49  ;;  %v983_v53 = vld [vmem:[%s6609_s19 + $0x1a98] sm:$0xff] }
 0x6b3   : > { %v3031_v57 = vmul.f32 %v983_v53, %v983_v53 }
 0x6b4   : > { %v5055_v59 = vadd.f32 %v5054_v56, %v3008_v52  ;;  %v984_v56 = vld [vmem:[%s6609_s19 + $0x1aa0] sm:$0xff] }
 0x6b5   : > { %v3032_v60 = vmul.f32 %v984_v56, %v984_v56 }
 0x6b6   : > { %v5056_v62 = vadd.f32 %v5055_v59, %v3009_v55  ;;  %v985_v59 = vld [vmem:[%s6609_s19 + $0x1aa8] sm:$0xff] }
 0x6b7   : > { %v3033_v63 = vmul.f32 %v985_v59, %v985_v59 }
 0x6b8   : > { %v5057_v1 = vadd.f32 %v5056_v62, %v3010_v58  ;;  %v986_v62 = vld [vmem:[%s6609_s19 + $0x1ab0] sm:$0xff] }
 0x6b9   : > { %v3034_v2 = vmul.f32 %v986_v62, %v986_v62 }
 0x6ba   : > { %v5058_v4 = vadd.f32 %v5057_v1, %v3011_v61  ;;  %v987_v1 = vld [vmem:[%s6609_s19 + $0x1ab8] sm:$0xff] }
 0x6bb   : > { %v3035_v5 = vmul.f32 %v987_v1, %v987_v1 }
 0x6bc   : > { %v5059_v7 = vadd.f32 %v5058_v4, %v3012_v0  ;;  %v988_v4 = vld [vmem:[%s6609_s19 + $0x1ac0] sm:$0xff] }
 0x6bd   : > { %v3036_v8 = vmul.f32 %v988_v4, %v988_v4 }
 0x6be   : > { %v5060_v10 = vadd.f32 %v5059_v7, %v3013_v3  ;;  %v989_v7 = vld [vmem:[%s6609_s19 + $0x1ac8] sm:$0xff] }
 0x6bf   : > { %v3037_v11 = vmul.f32 %v989_v7, %v989_v7 }
 0x6c0   : > { %v5061_v13 = vadd.f32 %v5060_v10, %v3014_v6  ;;  %v990_v10 = vld [vmem:[%s6609_s19 + $0x1ad0] sm:$0xff] }
 0x6c1   : > { %v3038_v14 = vmul.f32 %v990_v10, %v990_v10 }
 0x6c2   : > { %v5062_v16 = vadd.f32 %v5061_v13, %v3015_v9  ;;  %v991_v13 = vld [vmem:[%s6609_s19 + $0x1ad8] sm:$0xff] }
 0x6c3   : > { %v3039_v17 = vmul.f32 %v991_v13, %v991_v13 }
 0x6c4   : > { %v5063_v19 = vadd.f32 %v5062_v16, %v3016_v12  ;;  %v992_v16 = vld [vmem:[%s6609_s19 + $0x1ae0] sm:$0xff] }
 0x6c5   : > { %v3040_v20 = vmul.f32 %v992_v16, %v992_v16 }
 0x6c6   : > { %v5064_v22 = vadd.f32 %v5063_v19, %v3017_v15  ;;  %v993_v19 = vld [vmem:[%s6609_s19 + $0x1ae8] sm:$0xff] }
 0x6c7   : > { %v3041_v23 = vmul.f32 %v993_v19, %v993_v19 }
 0x6c8   : > { %v5065_v25 = vadd.f32 %v5064_v22, %v3018_v18  ;;  %v994_v22 = vld [vmem:[%s6609_s19 + $0x1af0] sm:$0xff] }
 0x6c9   : > { %v3042_v26 = vmul.f32 %v994_v22, %v994_v22 }
 0x6ca   : > { %v5066_v28 = vadd.f32 %v5065_v25, %v3019_v21  ;;  %v995_v25 = vld [vmem:[%s6609_s19 + $0x1af8] sm:$0xff] }
 0x6cb   : > { %v3043_v29 = vmul.f32 %v995_v25, %v995_v25 }
 0x6cc   : > { %v5067_v31 = vadd.f32 %v5066_v28, %v3020_v24  ;;  %v996_v28 = vld [vmem:[%s6609_s19 + $0x1b00] sm:$0xff] }
 0x6cd   : > { %v3044_v32 = vmul.f32 %v996_v28, %v996_v28 }
 0x6ce   : > { %v5068_v34 = vadd.f32 %v5067_v31, %v3021_v27  ;;  %v997_v31 = vld [vmem:[%s6609_s19 + $0x1b08] sm:$0xff] }
 0x6cf   : > { %v3045_v35 = vmul.f32 %v997_v31, %v997_v31 }
 0x6d0   : > { %v5069_v37 = vadd.f32 %v5068_v34, %v3022_v30  ;;  %v998_v34 = vld [vmem:[%s6609_s19 + $0x1b10] sm:$0xff] }
 0x6d1   : > { %v3046_v38 = vmul.f32 %v998_v34, %v998_v34 }
 0x6d2   : > { %v5070_v40 = vadd.f32 %v5069_v37, %v3023_v33  ;;  %v999_v37 = vld [vmem:[%s6609_s19 + $0x1b18] sm:$0xff] }
 0x6d3   : > { %v3047_v41 = vmul.f32 %v999_v37, %v999_v37 }
 0x6d4   : > { %v5071_v43 = vadd.f32 %v5070_v40, %v3024_v36  ;;  %v1000_v40 = vld [vmem:[%s6609_s19 + $0x1b20] sm:$0xff] }
 0x6d5   : > { %v3048_v44 = vmul.f32 %v1000_v40, %v1000_v40 }
 0x6d6   : > { %v5072_v46 = vadd.f32 %v5071_v43, %v3025_v39  ;;  %v1001_v43 = vld [vmem:[%s6609_s19 + $0x1b28] sm:$0xff] }
 0x6d7   : > { %v3049_v47 = vmul.f32 %v1001_v43, %v1001_v43 }
 0x6d8   : > { %v5073_v49 = vadd.f32 %v5072_v46, %v3026_v42  ;;  %v1002_v46 = vld [vmem:[%s6609_s19 + $0x1b30] sm:$0xff] }
 0x6d9   : > { %v3050_v50 = vmul.f32 %v1002_v46, %v1002_v46 }
 0x6da   : > { %v5074_v52 = vadd.f32 %v5073_v49, %v3027_v45  ;;  %v1003_v49 = vld [vmem:[%s6609_s19 + $0x1b38] sm:$0xff] }
 0x6db   : > { %v3051_v53 = vmul.f32 %v1003_v49, %v1003_v49 }
 0x6dc   : > { %v5075_v55 = vadd.f32 %v5074_v52, %v3028_v48  ;;  %v1004_v52 = vld [vmem:[%s6609_s19 + $0x1b40] sm:$0xff] }
 0x6dd   : > { %v3052_v56 = vmul.f32 %v1004_v52, %v1004_v52 }
 0x6de   : > { %v5076_v58 = vadd.f32 %v5075_v55, %v3029_v51  ;;  %v1005_v55 = vld [vmem:[%s6609_s19 + $0x1b48] sm:$0xff] }
 0x6df   : > { %v3053_v59 = vmul.f32 %v1005_v55, %v1005_v55 }
 0x6e0   : > { %v5077_v61 = vadd.f32 %v5076_v58, %v3030_v54  ;;  %v1006_v58 = vld [vmem:[%s6609_s19 + $0x1b50] sm:$0xff] }
 0x6e1   : > { %v3054_v62 = vmul.f32 %v1006_v58, %v1006_v58 }
 0x6e2   : > { %v5078_v0 = vadd.f32 %v5077_v61, %v3031_v57  ;;  %v1007_v61 = vld [vmem:[%s6609_s19 + $0x1b58] sm:$0xff] }
 0x6e3   : > { %v3055_v1 = vmul.f32 %v1007_v61, %v1007_v61 }
 0x6e4   : > { %v5079_v3 = vadd.f32 %v5078_v0, %v3032_v60  ;;  %v1008_v0 = vld [vmem:[%s6609_s19 + $0x1b60] sm:$0xff] }
 0x6e5   : > { %v3056_v4 = vmul.f32 %v1008_v0, %v1008_v0 }
 0x6e6   : > { %v5080_v6 = vadd.f32 %v5079_v3, %v3033_v63  ;;  %v1009_v3 = vld [vmem:[%s6609_s19 + $0x1b68] sm:$0xff] }
 0x6e7   : > { %v3057_v7 = vmul.f32 %v1009_v3, %v1009_v3 }
 0x6e8   : > { %v5081_v9 = vadd.f32 %v5080_v6, %v3034_v2  ;;  %v1010_v6 = vld [vmem:[%s6609_s19 + $0x1b70] sm:$0xff] }
 0x6e9   : > { %v3058_v10 = vmul.f32 %v1010_v6, %v1010_v6 }
 0x6ea   : > { %v5082_v12 = vadd.f32 %v5081_v9, %v3035_v5  ;;  %v1011_v9 = vld [vmem:[%s6609_s19 + $0x1b78] sm:$0xff] }
 0x6eb   : > { %v3059_v13 = vmul.f32 %v1011_v9, %v1011_v9 }
 0x6ec   : > { %v5083_v15 = vadd.f32 %v5082_v12, %v3036_v8  ;;  %v1012_v12 = vld [vmem:[%s6609_s19 + $0x1b80] sm:$0xff] }
 0x6ed   : > { %v3060_v16 = vmul.f32 %v1012_v12, %v1012_v12 }
 0x6ee   : > { %v5084_v18 = vadd.f32 %v5083_v15, %v3037_v11  ;;  %v1013_v15 = vld [vmem:[%s6609_s19 + $0x1b88] sm:$0xff] }
 0x6ef   : > { %v3061_v19 = vmul.f32 %v1013_v15, %v1013_v15 }
 0x6f0   : > { %v5085_v21 = vadd.f32 %v5084_v18, %v3038_v14  ;;  %v1014_v18 = vld [vmem:[%s6609_s19 + $0x1b90] sm:$0xff] }
 0x6f1   : > { %v3062_v22 = vmul.f32 %v1014_v18, %v1014_v18 }
 0x6f2   : > { %v5086_v24 = vadd.f32 %v5085_v21, %v3039_v17  ;;  %v1015_v21 = vld [vmem:[%s6609_s19 + $0x1b98] sm:$0xff] }
 0x6f3   : > { %v3063_v25 = vmul.f32 %v1015_v21, %v1015_v21 }
 0x6f4   : > { %v5087_v27 = vadd.f32 %v5086_v24, %v3040_v20  ;;  %v1016_v24 = vld [vmem:[%s6609_s19 + $0x1ba0] sm:$0xff] }
 0x6f5   : > { %v3064_v28 = vmul.f32 %v1016_v24, %v1016_v24 }
 0x6f6   : > { %v5088_v30 = vadd.f32 %v5087_v27, %v3041_v23  ;;  %v1017_v27 = vld [vmem:[%s6609_s19 + $0x1ba8] sm:$0xff] }
 0x6f7   : > { %v3065_v31 = vmul.f32 %v1017_v27, %v1017_v27 }
 0x6f8   : > { %v5089_v33 = vadd.f32 %v5088_v30, %v3042_v26  ;;  %v1018_v30 = vld [vmem:[%s6609_s19 + $0x1bb0] sm:$0xff] }
 0x6f9   : > { %v3066_v34 = vmul.f32 %v1018_v30, %v1018_v30 }
 0x6fa   : > { %v5090_v36 = vadd.f32 %v5089_v33, %v3043_v29  ;;  %v1019_v33 = vld [vmem:[%s6609_s19 + $0x1bb8] sm:$0xff] }
 0x6fb   : > { %v3067_v37 = vmul.f32 %v1019_v33, %v1019_v33 }
 0x6fc   : > { %v5091_v39 = vadd.f32 %v5090_v36, %v3044_v32  ;;  %v1020_v36 = vld [vmem:[%s6609_s19 + $0x1bc0] sm:$0xff] }
 0x6fd   : > { %v3068_v40 = vmul.f32 %v1020_v36, %v1020_v36 }
 0x6fe   : > { %v5092_v42 = vadd.f32 %v5091_v39, %v3045_v35  ;;  %v1021_v39 = vld [vmem:[%s6609_s19 + $0x1bc8] sm:$0xff] }
 0x6ff   : > { %v3069_v43 = vmul.f32 %v1021_v39, %v1021_v39 }
 0x700   : > { %v5093_v45 = vadd.f32 %v5092_v42, %v3046_v38  ;;  %v1022_v42 = vld [vmem:[%s6609_s19 + $0x1bd0] sm:$0xff] }
 0x701   : > { %v3070_v46 = vmul.f32 %v1022_v42, %v1022_v42 }
 0x702   : > { %v5094_v48 = vadd.f32 %v5093_v45, %v3047_v41  ;;  %v1023_v45 = vld [vmem:[%s6609_s19 + $0x1bd8] sm:$0xff] }
 0x703   : > { %v3071_v49 = vmul.f32 %v1023_v45, %v1023_v45 }
 0x704   : > { %v5095_v51 = vadd.f32 %v5094_v48, %v3048_v44  ;;  %v1024_v48 = vld [vmem:[%s6609_s19 + $0x1be0] sm:$0xff] }
 0x705   : > { %v3072_v52 = vmul.f32 %v1024_v48, %v1024_v48 }
 0x706   : > { %v5096_v54 = vadd.f32 %v5095_v51, %v3049_v47  ;;  %v1025_v51 = vld [vmem:[%s6609_s19 + $0x1be8] sm:$0xff] }
 0x707   : > { %v3073_v55 = vmul.f32 %v1025_v51, %v1025_v51 }
 0x708   : > { %v5097_v57 = vadd.f32 %v5096_v54, %v3050_v50  ;;  %v1026_v54 = vld [vmem:[%s6609_s19 + $0x1bf0] sm:$0xff] }
 0x709   : > { %v3074_v58 = vmul.f32 %v1026_v54, %v1026_v54 }
 0x70a   : > { %v5098_v60 = vadd.f32 %v5097_v57, %v3051_v53  ;;  %v1027_v57 = vld [vmem:[%s6609_s19 + $0x1bf8] sm:$0xff] }
 0x70b   : > { %v3075_v61 = vmul.f32 %v1027_v57, %v1027_v57 }
 0x70c   : > { %v5099_v63 = vadd.f32 %v5098_v60, %v3052_v56  ;;  %v1028_v60 = vld [vmem:[%s6609_s19 + $0x1c00] sm:$0xff] }
 0x70d   : > { %v3076_v0 = vmul.f32 %v1028_v60, %v1028_v60 }
 0x70e   : > { %v5100_v2 = vadd.f32 %v5099_v63, %v3053_v59  ;;  %v1029_v63 = vld [vmem:[%s6609_s19 + $0x1c08] sm:$0xff] }
 0x70f   : > { %v3077_v3 = vmul.f32 %v1029_v63, %v1029_v63 }
 0x710   : > { %v5101_v5 = vadd.f32 %v5100_v2, %v3054_v62  ;;  %v1030_v2 = vld [vmem:[%s6609_s19 + $0x1c10] sm:$0xff] }
 0x711   : > { %v3078_v6 = vmul.f32 %v1030_v2, %v1030_v2 }
 0x712   : > { %v5102_v8 = vadd.f32 %v5101_v5, %v3055_v1  ;;  %v1031_v5 = vld [vmem:[%s6609_s19 + $0x1c18] sm:$0xff] }
 0x713   : > { %v3079_v9 = vmul.f32 %v1031_v5, %v1031_v5 }
 0x714   : > { %v5103_v11 = vadd.f32 %v5102_v8, %v3056_v4  ;;  %v1032_v8 = vld [vmem:[%s6609_s19 + $0x1c20] sm:$0xff] }
 0x715   : > { %v3080_v12 = vmul.f32 %v1032_v8, %v1032_v8 }
 0x716   : > { %v5104_v14 = vadd.f32 %v5103_v11, %v3057_v7  ;;  %v1033_v11 = vld [vmem:[%s6609_s19 + $0x1c28] sm:$0xff] }
 0x717   : > { %v3081_v15 = vmul.f32 %v1033_v11, %v1033_v11 }
 0x718   : > { %v5105_v17 = vadd.f32 %v5104_v14, %v3058_v10  ;;  %v1034_v14 = vld [vmem:[%s6609_s19 + $0x1c30] sm:$0xff] }
 0x719   : > { %v3082_v18 = vmul.f32 %v1034_v14, %v1034_v14 }
 0x71a   : > { %v5106_v20 = vadd.f32 %v5105_v17, %v3059_v13  ;;  %v1035_v17 = vld [vmem:[%s6609_s19 + $0x1c38] sm:$0xff] }
 0x71b   : > { %v3083_v21 = vmul.f32 %v1035_v17, %v1035_v17 }
 0x71c   : > { %v5107_v23 = vadd.f32 %v5106_v20, %v3060_v16  ;;  %v1036_v20 = vld [vmem:[%s6609_s19 + $0x1c40] sm:$0xff] }
 0x71d   : > { %v3084_v24 = vmul.f32 %v1036_v20, %v1036_v20 }
 0x71e   : > { %v5108_v26 = vadd.f32 %v5107_v23, %v3061_v19  ;;  %v1037_v23 = vld [vmem:[%s6609_s19 + $0x1c48] sm:$0xff] }
 0x71f   : > { %v3085_v27 = vmul.f32 %v1037_v23, %v1037_v23 }
 0x720   : > { %v5109_v29 = vadd.f32 %v5108_v26, %v3062_v22  ;;  %v1038_v26 = vld [vmem:[%s6609_s19 + $0x1c50] sm:$0xff] }
 0x721   : > { %v3086_v30 = vmul.f32 %v1038_v26, %v1038_v26 }
 0x722   : > { %v5110_v32 = vadd.f32 %v5109_v29, %v3063_v25  ;;  %v1039_v29 = vld [vmem:[%s6609_s19 + $0x1c58] sm:$0xff] }
 0x723   : > { %v3087_v33 = vmul.f32 %v1039_v29, %v1039_v29 }
 0x724   : > { %v5111_v35 = vadd.f32 %v5110_v32, %v3064_v28  ;;  %v1040_v32 = vld [vmem:[%s6609_s19 + $0x1c60] sm:$0xff] }
 0x725   : > { %v3088_v36 = vmul.f32 %v1040_v32, %v1040_v32 }
 0x726   : > { %v5112_v38 = vadd.f32 %v5111_v35, %v3065_v31  ;;  %v1041_v35 = vld [vmem:[%s6609_s19 + $0x1c68] sm:$0xff] }
 0x727   : > { %v3089_v39 = vmul.f32 %v1041_v35, %v1041_v35 }
 0x728   : > { %v5113_v41 = vadd.f32 %v5112_v38, %v3066_v34  ;;  %v1042_v38 = vld [vmem:[%s6609_s19 + $0x1c70] sm:$0xff] }
 0x729   : > { %v3090_v42 = vmul.f32 %v1042_v38, %v1042_v38 }
 0x72a   : > { %v5114_v44 = vadd.f32 %v5113_v41, %v3067_v37  ;;  %v1043_v41 = vld [vmem:[%s6609_s19 + $0x1c78] sm:$0xff] }
 0x72b   : > { %v3091_v45 = vmul.f32 %v1043_v41, %v1043_v41 }
 0x72c   : > { %v5115_v47 = vadd.f32 %v5114_v44, %v3068_v40  ;;  %v1044_v44 = vld [vmem:[%s6609_s19 + $0x1c80] sm:$0xff] }
 0x72d   : > { %v3092_v48 = vmul.f32 %v1044_v44, %v1044_v44 }
 0x72e   : > { %v5116_v50 = vadd.f32 %v5115_v47, %v3069_v43  ;;  %v1045_v47 = vld [vmem:[%s6609_s19 + $0x1c88] sm:$0xff] }
 0x72f   : > { %v3093_v51 = vmul.f32 %v1045_v47, %v1045_v47 }
 0x730   : > { %v5117_v53 = vadd.f32 %v5116_v50, %v3070_v46  ;;  %v1046_v50 = vld [vmem:[%s6609_s19 + $0x1c90] sm:$0xff] }
 0x731   : > { %v3094_v54 = vmul.f32 %v1046_v50, %v1046_v50 }
 0x732   : > { %v5118_v56 = vadd.f32 %v5117_v53, %v3071_v49  ;;  %v1047_v53 = vld [vmem:[%s6609_s19 + $0x1c98] sm:$0xff] }
 0x733   : > { %v3095_v57 = vmul.f32 %v1047_v53, %v1047_v53 }
 0x734   : > { %v5119_v59 = vadd.f32 %v5118_v56, %v3072_v52  ;;  %v1048_v56 = vld [vmem:[%s6609_s19 + $0x1ca0] sm:$0xff] }
 0x735   : > { %v3096_v60 = vmul.f32 %v1048_v56, %v1048_v56 }
 0x736   : > { %v5120_v62 = vadd.f32 %v5119_v59, %v3073_v55  ;;  %v1049_v59 = vld [vmem:[%s6609_s19 + $0x1ca8] sm:$0xff] }
 0x737   : > { %v3097_v63 = vmul.f32 %v1049_v59, %v1049_v59 }
 0x738   : > { %v5121_v1 = vadd.f32 %v5120_v62, %v3074_v58  ;;  %v1050_v62 = vld [vmem:[%s6609_s19 + $0x1cb0] sm:$0xff] }
 0x739   : > { %v3098_v2 = vmul.f32 %v1050_v62, %v1050_v62 }
 0x73a   : > { %v5122_v4 = vadd.f32 %v5121_v1, %v3075_v61  ;;  %v1051_v1 = vld [vmem:[%s6609_s19 + $0x1cb8] sm:$0xff] }
 0x73b   : > { %v3099_v5 = vmul.f32 %v1051_v1, %v1051_v1 }
 0x73c   : > { %v5123_v7 = vadd.f32 %v5122_v4, %v3076_v0  ;;  %v1052_v4 = vld [vmem:[%s6609_s19 + $0x1cc0] sm:$0xff] }
 0x73d   : > { %v3100_v8 = vmul.f32 %v1052_v4, %v1052_v4 }
 0x73e   : > { %v5124_v10 = vadd.f32 %v5123_v7, %v3077_v3  ;;  %v1053_v7 = vld [vmem:[%s6609_s19 + $0x1cc8] sm:$0xff] }
 0x73f   : > { %v3101_v11 = vmul.f32 %v1053_v7, %v1053_v7 }
 0x740   : > { %v5125_v13 = vadd.f32 %v5124_v10, %v3078_v6  ;;  %v1054_v10 = vld [vmem:[%s6609_s19 + $0x1cd0] sm:$0xff] }
 0x741   : > { %v3102_v14 = vmul.f32 %v1054_v10, %v1054_v10 }
 0x742   : > { %v5126_v16 = vadd.f32 %v5125_v13, %v3079_v9  ;;  %v1055_v13 = vld [vmem:[%s6609_s19 + $0x1cd8] sm:$0xff] }
 0x743   : > { %v3103_v17 = vmul.f32 %v1055_v13, %v1055_v13 }
 0x744   : > { %v5127_v19 = vadd.f32 %v5126_v16, %v3080_v12  ;;  %v1056_v16 = vld [vmem:[%s6609_s19 + $0x1ce0] sm:$0xff] }
 0x745   : > { %v3104_v20 = vmul.f32 %v1056_v16, %v1056_v16 }
 0x746   : > { %v5128_v22 = vadd.f32 %v5127_v19, %v3081_v15  ;;  %v1057_v19 = vld [vmem:[%s6609_s19 + $0x1ce8] sm:$0xff] }
 0x747   : > { %v3105_v23 = vmul.f32 %v1057_v19, %v1057_v19 }
 0x748   : > { %v5129_v25 = vadd.f32 %v5128_v22, %v3082_v18  ;;  %v1058_v22 = vld [vmem:[%s6609_s19 + $0x1cf0] sm:$0xff] }
 0x749   : > { %v3106_v26 = vmul.f32 %v1058_v22, %v1058_v22 }
 0x74a   : > { %v5130_v28 = vadd.f32 %v5129_v25, %v3083_v21  ;;  %v1059_v25 = vld [vmem:[%s6609_s19 + $0x1cf8] sm:$0xff] }
 0x74b   : > { %v3107_v29 = vmul.f32 %v1059_v25, %v1059_v25 }
 0x74c   : > { %v5131_v31 = vadd.f32 %v5130_v28, %v3084_v24  ;;  %v1060_v28 = vld [vmem:[%s6609_s19 + $0x1d00] sm:$0xff] }
 0x74d   : > { %v3108_v32 = vmul.f32 %v1060_v28, %v1060_v28 }
 0x74e   : > { %v5132_v34 = vadd.f32 %v5131_v31, %v3085_v27  ;;  %v1061_v31 = vld [vmem:[%s6609_s19 + $0x1d08] sm:$0xff] }
 0x74f   : > { %v3109_v35 = vmul.f32 %v1061_v31, %v1061_v31 }
 0x750   : > { %v5133_v37 = vadd.f32 %v5132_v34, %v3086_v30  ;;  %v1062_v34 = vld [vmem:[%s6609_s19 + $0x1d10] sm:$0xff] }
 0x751   : > { %v3110_v38 = vmul.f32 %v1062_v34, %v1062_v34 }
 0x752   : > { %v5134_v40 = vadd.f32 %v5133_v37, %v3087_v33  ;;  %v1063_v37 = vld [vmem:[%s6609_s19 + $0x1d18] sm:$0xff] }
 0x753   : > { %v3111_v41 = vmul.f32 %v1063_v37, %v1063_v37 }
 0x754   : > { %v5135_v43 = vadd.f32 %v5134_v40, %v3088_v36  ;;  %v1064_v40 = vld [vmem:[%s6609_s19 + $0x1d20] sm:$0xff] }
 0x755   : > { %v3112_v44 = vmul.f32 %v1064_v40, %v1064_v40 }
 0x756   : > { %v5136_v46 = vadd.f32 %v5135_v43, %v3089_v39  ;;  %v1065_v43 = vld [vmem:[%s6609_s19 + $0x1d28] sm:$0xff] }
 0x757   : > { %v3113_v47 = vmul.f32 %v1065_v43, %v1065_v43 }
 0x758   : > { %v5137_v49 = vadd.f32 %v5136_v46, %v3090_v42  ;;  %v1066_v46 = vld [vmem:[%s6609_s19 + $0x1d30] sm:$0xff] }
 0x759   : > { %v3114_v50 = vmul.f32 %v1066_v46, %v1066_v46 }
 0x75a   : > { %v5138_v52 = vadd.f32 %v5137_v49, %v3091_v45  ;;  %v1067_v49 = vld [vmem:[%s6609_s19 + $0x1d38] sm:$0xff] }
 0x75b   : > { %v3115_v53 = vmul.f32 %v1067_v49, %v1067_v49 }
 0x75c   : > { %v5139_v55 = vadd.f32 %v5138_v52, %v3092_v48  ;;  %v1068_v52 = vld [vmem:[%s6609_s19 + $0x1d40] sm:$0xff] }
 0x75d   : > { %v3116_v56 = vmul.f32 %v1068_v52, %v1068_v52 }
 0x75e   : > { %v5140_v58 = vadd.f32 %v5139_v55, %v3093_v51  ;;  %v1069_v55 = vld [vmem:[%s6609_s19 + $0x1d48] sm:$0xff] }
 0x75f   : > { %v3117_v59 = vmul.f32 %v1069_v55, %v1069_v55 }
 0x760   : > { %v5141_v61 = vadd.f32 %v5140_v58, %v3094_v54  ;;  %v1070_v58 = vld [vmem:[%s6609_s19 + $0x1d50] sm:$0xff] }
 0x761   : > { %v3118_v62 = vmul.f32 %v1070_v58, %v1070_v58 }
 0x762   : > { %v5142_v0 = vadd.f32 %v5141_v61, %v3095_v57  ;;  %v1071_v61 = vld [vmem:[%s6609_s19 + $0x1d58] sm:$0xff] }
 0x763   : > { %v3119_v1 = vmul.f32 %v1071_v61, %v1071_v61 }
 0x764   : > { %v5143_v3 = vadd.f32 %v5142_v0, %v3096_v60  ;;  %v1072_v0 = vld [vmem:[%s6609_s19 + $0x1d60] sm:$0xff] }
 0x765   : > { %v3120_v4 = vmul.f32 %v1072_v0, %v1072_v0 }
 0x766   : > { %v5144_v6 = vadd.f32 %v5143_v3, %v3097_v63  ;;  %v1073_v3 = vld [vmem:[%s6609_s19 + $0x1d68] sm:$0xff] }
 0x767   : > { %v3121_v7 = vmul.f32 %v1073_v3, %v1073_v3 }
 0x768   : > { %v5145_v9 = vadd.f32 %v5144_v6, %v3098_v2  ;;  %v1074_v6 = vld [vmem:[%s6609_s19 + $0x1d70] sm:$0xff] }
 0x769   : > { %v3122_v10 = vmul.f32 %v1074_v6, %v1074_v6 }
 0x76a   : > { %v5146_v12 = vadd.f32 %v5145_v9, %v3099_v5  ;;  %v1075_v9 = vld [vmem:[%s6609_s19 + $0x1d78] sm:$0xff] }
 0x76b   : > { %v3123_v13 = vmul.f32 %v1075_v9, %v1075_v9 }
 0x76c   : > { %v5147_v15 = vadd.f32 %v5146_v12, %v3100_v8  ;;  %v1076_v12 = vld [vmem:[%s6609_s19 + $0x1d80] sm:$0xff] }
 0x76d   : > { %v3124_v16 = vmul.f32 %v1076_v12, %v1076_v12 }
 0x76e   : > { %v5148_v18 = vadd.f32 %v5147_v15, %v3101_v11  ;;  %v1077_v15 = vld [vmem:[%s6609_s19 + $0x1d88] sm:$0xff] }
 0x76f   : > { %v3125_v19 = vmul.f32 %v1077_v15, %v1077_v15 }
 0x770   : > { %v5149_v21 = vadd.f32 %v5148_v18, %v3102_v14  ;;  %v1078_v18 = vld [vmem:[%s6609_s19 + $0x1d90] sm:$0xff] }
 0x771   : > { %v3126_v22 = vmul.f32 %v1078_v18, %v1078_v18 }
 0x772   : > { %v5150_v24 = vadd.f32 %v5149_v21, %v3103_v17  ;;  %v1079_v21 = vld [vmem:[%s6609_s19 + $0x1d98] sm:$0xff] }
 0x773   : > { %v3127_v25 = vmul.f32 %v1079_v21, %v1079_v21 }
 0x774   : > { %v5151_v27 = vadd.f32 %v5150_v24, %v3104_v20  ;;  %v1080_v24 = vld [vmem:[%s6609_s19 + $0x1da0] sm:$0xff] }
 0x775   : > { %v3128_v28 = vmul.f32 %v1080_v24, %v1080_v24 }
 0x776   : > { %v5152_v30 = vadd.f32 %v5151_v27, %v3105_v23  ;;  %v1081_v27 = vld [vmem:[%s6609_s19 + $0x1da8] sm:$0xff] }
 0x777   : > { %v3129_v31 = vmul.f32 %v1081_v27, %v1081_v27 }
 0x778   : > { %v5153_v33 = vadd.f32 %v5152_v30, %v3106_v26  ;;  %v1082_v30 = vld [vmem:[%s6609_s19 + $0x1db0] sm:$0xff] }
 0x779   : > { %v3130_v34 = vmul.f32 %v1082_v30, %v1082_v30 }
 0x77a   : > { %v5154_v36 = vadd.f32 %v5153_v33, %v3107_v29  ;;  %v1083_v33 = vld [vmem:[%s6609_s19 + $0x1db8] sm:$0xff] }
 0x77b   : > { %v3131_v37 = vmul.f32 %v1083_v33, %v1083_v33 }
 0x77c   : > { %v5155_v39 = vadd.f32 %v5154_v36, %v3108_v32  ;;  %v1084_v36 = vld [vmem:[%s6609_s19 + $0x1dc0] sm:$0xff] }
 0x77d   : > { %v3132_v40 = vmul.f32 %v1084_v36, %v1084_v36 }
 0x77e   : > { %v5156_v42 = vadd.f32 %v5155_v39, %v3109_v35  ;;  %v1085_v39 = vld [vmem:[%s6609_s19 + $0x1dc8] sm:$0xff] }
 0x77f   : > { %v3133_v43 = vmul.f32 %v1085_v39, %v1085_v39 }
 0x780   : > { %v5157_v45 = vadd.f32 %v5156_v42, %v3110_v38  ;;  %v1086_v42 = vld [vmem:[%s6609_s19 + $0x1dd0] sm:$0xff] }
 0x781   : > { %v3134_v46 = vmul.f32 %v1086_v42, %v1086_v42 }
 0x782   : > { %v5158_v48 = vadd.f32 %v5157_v45, %v3111_v41  ;;  %v1087_v45 = vld [vmem:[%s6609_s19 + $0x1dd8] sm:$0xff] }
 0x783   : > { %v3135_v49 = vmul.f32 %v1087_v45, %v1087_v45 }
 0x784   : > { %v5159_v51 = vadd.f32 %v5158_v48, %v3112_v44  ;;  %v1088_v48 = vld [vmem:[%s6609_s19 + $0x1de0] sm:$0xff] }
 0x785   : > { %v3136_v52 = vmul.f32 %v1088_v48, %v1088_v48 }
 0x786   : > { %v5160_v54 = vadd.f32 %v5159_v51, %v3113_v47  ;;  %v1089_v51 = vld [vmem:[%s6609_s19 + $0x1de8] sm:$0xff] }
 0x787   : > { %v3137_v55 = vmul.f32 %v1089_v51, %v1089_v51 }
 0x788   : > { %v5161_v57 = vadd.f32 %v5160_v54, %v3114_v50  ;;  %v1090_v54 = vld [vmem:[%s6609_s19 + $0x1df0] sm:$0xff] }
 0x789   : > { %v3138_v58 = vmul.f32 %v1090_v54, %v1090_v54 }
 0x78a   : > { %v5162_v60 = vadd.f32 %v5161_v57, %v3115_v53  ;;  %v1091_v57 = vld [vmem:[%s6609_s19 + $0x1df8] sm:$0xff] }
 0x78b   : > { %v3139_v61 = vmul.f32 %v1091_v57, %v1091_v57 }
 0x78c   : > { %v5163_v63 = vadd.f32 %v5162_v60, %v3116_v56  ;;  %v1092_v60 = vld [vmem:[%s6609_s19 + $0x1e00] sm:$0xff] }
 0x78d   : > { %v3140_v0 = vmul.f32 %v1092_v60, %v1092_v60 }
 0x78e   : > { %v5164_v2 = vadd.f32 %v5163_v63, %v3117_v59  ;;  %v1093_v63 = vld [vmem:[%s6609_s19 + $0x1e08] sm:$0xff] }
 0x78f   : > { %v3141_v3 = vmul.f32 %v1093_v63, %v1093_v63 }
 0x790   : > { %v5165_v5 = vadd.f32 %v5164_v2, %v3118_v62  ;;  %v1094_v2 = vld [vmem:[%s6609_s19 + $0x1e10] sm:$0xff] }
 0x791   : > { %v3142_v6 = vmul.f32 %v1094_v2, %v1094_v2 }
 0x792   : > { %v5166_v8 = vadd.f32 %v5165_v5, %v3119_v1  ;;  %v1095_v5 = vld [vmem:[%s6609_s19 + $0x1e18] sm:$0xff] }
 0x793   : > { %v3143_v9 = vmul.f32 %v1095_v5, %v1095_v5 }
 0x794   : > { %v5167_v11 = vadd.f32 %v5166_v8, %v3120_v4  ;;  %v1096_v8 = vld [vmem:[%s6609_s19 + $0x1e20] sm:$0xff] }
 0x795   : > { %v3144_v12 = vmul.f32 %v1096_v8, %v1096_v8 }
 0x796   : > { %v5168_v14 = vadd.f32 %v5167_v11, %v3121_v7  ;;  %v1097_v11 = vld [vmem:[%s6609_s19 + $0x1e28] sm:$0xff] }
 0x797   : > { %v3145_v15 = vmul.f32 %v1097_v11, %v1097_v11 }
 0x798   : > { %v5169_v17 = vadd.f32 %v5168_v14, %v3122_v10  ;;  %v1098_v14 = vld [vmem:[%s6609_s19 + $0x1e30] sm:$0xff] }
 0x799   : > { %v3146_v18 = vmul.f32 %v1098_v14, %v1098_v14 }
 0x79a   : > { %v5170_v20 = vadd.f32 %v5169_v17, %v3123_v13  ;;  %v1099_v17 = vld [vmem:[%s6609_s19 + $0x1e38] sm:$0xff] }
 0x79b   : > { %v3147_v21 = vmul.f32 %v1099_v17, %v1099_v17 }
 0x79c   : > { %v5171_v23 = vadd.f32 %v5170_v20, %v3124_v16  ;;  %v1100_v20 = vld [vmem:[%s6609_s19 + $0x1e40] sm:$0xff] }
 0x79d   : > { %v3148_v24 = vmul.f32 %v1100_v20, %v1100_v20 }
 0x79e   : > { %v5172_v26 = vadd.f32 %v5171_v23, %v3125_v19  ;;  %v1101_v23 = vld [vmem:[%s6609_s19 + $0x1e48] sm:$0xff] }
 0x79f   : > { %v3149_v27 = vmul.f32 %v1101_v23, %v1101_v23 }
 0x7a0   : > { %v5173_v29 = vadd.f32 %v5172_v26, %v3126_v22  ;;  %v1102_v26 = vld [vmem:[%s6609_s19 + $0x1e50] sm:$0xff] }
 0x7a1   : > { %v3150_v30 = vmul.f32 %v1102_v26, %v1102_v26 }
 0x7a2   : > { %v5174_v32 = vadd.f32 %v5173_v29, %v3127_v25  ;;  %v1103_v29 = vld [vmem:[%s6609_s19 + $0x1e58] sm:$0xff] }
 0x7a3   : > { %v3151_v33 = vmul.f32 %v1103_v29, %v1103_v29 }
 0x7a4   : > { %v5175_v35 = vadd.f32 %v5174_v32, %v3128_v28  ;;  %v1104_v32 = vld [vmem:[%s6609_s19 + $0x1e60] sm:$0xff] }
 0x7a5   : > { %v3152_v36 = vmul.f32 %v1104_v32, %v1104_v32 }
 0x7a6   : > { %v5176_v38 = vadd.f32 %v5175_v35, %v3129_v31  ;;  %v1105_v35 = vld [vmem:[%s6609_s19 + $0x1e68] sm:$0xff] }
 0x7a7   : > { %v3153_v39 = vmul.f32 %v1105_v35, %v1105_v35 }
 0x7a8   : > { %v5177_v41 = vadd.f32 %v5176_v38, %v3130_v34  ;;  %v1106_v38 = vld [vmem:[%s6609_s19 + $0x1e70] sm:$0xff] }
 0x7a9   : > { %v3154_v42 = vmul.f32 %v1106_v38, %v1106_v38 }
 0x7aa   : > { %v5178_v44 = vadd.f32 %v5177_v41, %v3131_v37  ;;  %v1107_v41 = vld [vmem:[%s6609_s19 + $0x1e78] sm:$0xff] }
 0x7ab   : > { %v3155_v45 = vmul.f32 %v1107_v41, %v1107_v41 }
 0x7ac   : > { %v5179_v47 = vadd.f32 %v5178_v44, %v3132_v40  ;;  %v1108_v44 = vld [vmem:[%s6609_s19 + $0x1e80] sm:$0xff] }
 0x7ad   : > { %v3156_v48 = vmul.f32 %v1108_v44, %v1108_v44 }
 0x7ae   : > { %v5180_v50 = vadd.f32 %v5179_v47, %v3133_v43  ;;  %v1109_v47 = vld [vmem:[%s6609_s19 + $0x1e88] sm:$0xff] }
 0x7af   : > { %v3157_v51 = vmul.f32 %v1109_v47, %v1109_v47 }
 0x7b0   : > { %v5181_v53 = vadd.f32 %v5180_v50, %v3134_v46  ;;  %v1110_v50 = vld [vmem:[%s6609_s19 + $0x1e90] sm:$0xff] }
 0x7b1   : > { %v3158_v54 = vmul.f32 %v1110_v50, %v1110_v50 }
 0x7b2   : > { %v5182_v56 = vadd.f32 %v5181_v53, %v3135_v49  ;;  %v1111_v53 = vld [vmem:[%s6609_s19 + $0x1e98] sm:$0xff] }
 0x7b3   : > { %v3159_v57 = vmul.f32 %v1111_v53, %v1111_v53 }
 0x7b4   : > { %v5183_v59 = vadd.f32 %v5182_v56, %v3136_v52  ;;  %v1112_v56 = vld [vmem:[%s6609_s19 + $0x1ea0] sm:$0xff] }
 0x7b5   : > { %v3160_v60 = vmul.f32 %v1112_v56, %v1112_v56 }
 0x7b6   : > { %v5184_v62 = vadd.f32 %v5183_v59, %v3137_v55  ;;  %v1113_v59 = vld [vmem:[%s6609_s19 + $0x1ea8] sm:$0xff] }
 0x7b7   : > { %v3161_v63 = vmul.f32 %v1113_v59, %v1113_v59 }
 0x7b8   : > { %v5185_v1 = vadd.f32 %v5184_v62, %v3138_v58  ;;  %v1114_v62 = vld [vmem:[%s6609_s19 + $0x1eb0] sm:$0xff] }
 0x7b9   : > { %v3162_v2 = vmul.f32 %v1114_v62, %v1114_v62 }
 0x7ba   : > { %v5186_v4 = vadd.f32 %v5185_v1, %v3139_v61  ;;  %v1115_v1 = vld [vmem:[%s6609_s19 + $0x1eb8] sm:$0xff] }
 0x7bb   : > { %v3163_v5 = vmul.f32 %v1115_v1, %v1115_v1 }
 0x7bc   : > { %v5187_v7 = vadd.f32 %v5186_v4, %v3140_v0  ;;  %v1116_v4 = vld [vmem:[%s6609_s19 + $0x1ec0] sm:$0xff] }
 0x7bd   : > { %v3164_v8 = vmul.f32 %v1116_v4, %v1116_v4 }
 0x7be   : > { %v5188_v10 = vadd.f32 %v5187_v7, %v3141_v3  ;;  %v1117_v7 = vld [vmem:[%s6609_s19 + $0x1ec8] sm:$0xff] }
 0x7bf   : > { %v3165_v11 = vmul.f32 %v1117_v7, %v1117_v7 }
 0x7c0   : > { %v5189_v13 = vadd.f32 %v5188_v10, %v3142_v6  ;;  %v1118_v10 = vld [vmem:[%s6609_s19 + $0x1ed0] sm:$0xff] }
 0x7c1   : > { %v3166_v14 = vmul.f32 %v1118_v10, %v1118_v10 }
 0x7c2   : > { %v5190_v16 = vadd.f32 %v5189_v13, %v3143_v9  ;;  %v1119_v13 = vld [vmem:[%s6609_s19 + $0x1ed8] sm:$0xff] }
 0x7c3   : > { %v3167_v17 = vmul.f32 %v1119_v13, %v1119_v13 }
 0x7c4   : > { %v5191_v19 = vadd.f32 %v5190_v16, %v3144_v12  ;;  %v1120_v16 = vld [vmem:[%s6609_s19 + $0x1ee0] sm:$0xff] }
 0x7c5   : > { %v3168_v20 = vmul.f32 %v1120_v16, %v1120_v16 }
 0x7c6   : > { %v5192_v22 = vadd.f32 %v5191_v19, %v3145_v15  ;;  %v1121_v19 = vld [vmem:[%s6609_s19 + $0x1ee8] sm:$0xff] }
 0x7c7   : > { %v3169_v23 = vmul.f32 %v1121_v19, %v1121_v19 }
 0x7c8   : > { %v5193_v25 = vadd.f32 %v5192_v22, %v3146_v18  ;;  %v1122_v22 = vld [vmem:[%s6609_s19 + $0x1ef0] sm:$0xff] }
 0x7c9   : > { %v3170_v26 = vmul.f32 %v1122_v22, %v1122_v22 }
 0x7ca   : > { %v5194_v28 = vadd.f32 %v5193_v25, %v3147_v21  ;;  %v1123_v25 = vld [vmem:[%s6609_s19 + $0x1ef8] sm:$0xff] }
 0x7cb   : > { %v3171_v29 = vmul.f32 %v1123_v25, %v1123_v25 }
 0x7cc   : > { %v5195_v31 = vadd.f32 %v5194_v28, %v3148_v24  ;;  %v1124_v28 = vld [vmem:[%s6609_s19 + $0x1f00] sm:$0xff] }
 0x7cd   : > { %v3172_v32 = vmul.f32 %v1124_v28, %v1124_v28 }
 0x7ce   : > { %v5196_v34 = vadd.f32 %v5195_v31, %v3149_v27  ;;  %v1125_v31 = vld [vmem:[%s6609_s19 + $0x1f08] sm:$0xff] }
 0x7cf   : > { %v3173_v35 = vmul.f32 %v1125_v31, %v1125_v31 }
 0x7d0   : > { %v5197_v37 = vadd.f32 %v5196_v34, %v3150_v30  ;;  %v1126_v34 = vld [vmem:[%s6609_s19 + $0x1f10] sm:$0xff] }
 0x7d1   : > { %v3174_v38 = vmul.f32 %v1126_v34, %v1126_v34 }
 0x7d2   : > { %v5198_v40 = vadd.f32 %v5197_v37, %v3151_v33  ;;  %v1127_v37 = vld [vmem:[%s6609_s19 + $0x1f18] sm:$0xff] }
 0x7d3   : > { %v3175_v41 = vmul.f32 %v1127_v37, %v1127_v37 }
 0x7d4   : > { %v5199_v43 = vadd.f32 %v5198_v40, %v3152_v36  ;;  %v1128_v40 = vld [vmem:[%s6609_s19 + $0x1f20] sm:$0xff] }
 0x7d5   : > { %v3176_v44 = vmul.f32 %v1128_v40, %v1128_v40 }
 0x7d6   : > { %v5200_v46 = vadd.f32 %v5199_v43, %v3153_v39  ;;  %v1129_v43 = vld [vmem:[%s6609_s19 + $0x1f28] sm:$0xff] }
 0x7d7   : > { %v3177_v47 = vmul.f32 %v1129_v43, %v1129_v43 }
 0x7d8   : > { %v5201_v49 = vadd.f32 %v5200_v46, %v3154_v42  ;;  %v1130_v46 = vld [vmem:[%s6609_s19 + $0x1f30] sm:$0xff] }
 0x7d9   : > { %v3178_v50 = vmul.f32 %v1130_v46, %v1130_v46 }
 0x7da   : > { %v5202_v52 = vadd.f32 %v5201_v49, %v3155_v45  ;;  %v1131_v49 = vld [vmem:[%s6609_s19 + $0x1f38] sm:$0xff] }
 0x7db   : > { %v3179_v53 = vmul.f32 %v1131_v49, %v1131_v49 }
 0x7dc   : > { %v5203_v55 = vadd.f32 %v5202_v52, %v3156_v48  ;;  %v1132_v52 = vld [vmem:[%s6609_s19 + $0x1f40] sm:$0xff] }
 0x7dd   : > { %v3180_v56 = vmul.f32 %v1132_v52, %v1132_v52 }
 0x7de   : > { %v5204_v58 = vadd.f32 %v5203_v55, %v3157_v51  ;;  %v1133_v55 = vld [vmem:[%s6609_s19 + $0x1f48] sm:$0xff] }
 0x7df   : > { %v3181_v59 = vmul.f32 %v1133_v55, %v1133_v55 }
 0x7e0   : > { %v5205_v61 = vadd.f32 %v5204_v58, %v3158_v54  ;;  %v1134_v58 = vld [vmem:[%s6609_s19 + $0x1f50] sm:$0xff] }
 0x7e1   : > { %v3182_v62 = vmul.f32 %v1134_v58, %v1134_v58 }
 0x7e2   : > { %v5206_v0 = vadd.f32 %v5205_v61, %v3159_v57  ;;  %v1135_v61 = vld [vmem:[%s6609_s19 + $0x1f58] sm:$0xff] }
 0x7e3   : > { %v3183_v1 = vmul.f32 %v1135_v61, %v1135_v61 }
 0x7e4   : > { %v5207_v3 = vadd.f32 %v5206_v0, %v3160_v60  ;;  %v1136_v0 = vld [vmem:[%s6609_s19 + $0x1f60] sm:$0xff] }
 0x7e5   : > { %v3184_v4 = vmul.f32 %v1136_v0, %v1136_v0 }
 0x7e6   : > { %v5208_v6 = vadd.f32 %v5207_v3, %v3161_v63  ;;  %v1137_v3 = vld [vmem:[%s6609_s19 + $0x1f68] sm:$0xff] }
 0x7e7   : > { %v3185_v7 = vmul.f32 %v1137_v3, %v1137_v3 }
 0x7e8   : > { %v5209_v9 = vadd.f32 %v5208_v6, %v3162_v2  ;;  %v1138_v6 = vld [vmem:[%s6609_s19 + $0x1f70] sm:$0xff] }
 0x7e9   : > { %v3186_v10 = vmul.f32 %v1138_v6, %v1138_v6 }
 0x7ea   : > { %v5210_v12 = vadd.f32 %v5209_v9, %v3163_v5  ;;  %v1139_v9 = vld [vmem:[%s6609_s19 + $0x1f78] sm:$0xff] }
 0x7eb   : > { %v3187_v13 = vmul.f32 %v1139_v9, %v1139_v9 }
 0x7ec   : > { %v5211_v15 = vadd.f32 %v5210_v12, %v3164_v8  ;;  %v1140_v12 = vld [vmem:[%s6609_s19 + $0x1f80] sm:$0xff] }
 0x7ed   : > { %v3188_v16 = vmul.f32 %v1140_v12, %v1140_v12 }
 0x7ee   : > { %v5212_v18 = vadd.f32 %v5211_v15, %v3165_v11  ;;  %v1141_v15 = vld [vmem:[%s6609_s19 + $0x1f88] sm:$0xff] }
 0x7ef   : > { %v3189_v19 = vmul.f32 %v1141_v15, %v1141_v15 }
 0x7f0   : > { %v5213_v21 = vadd.f32 %v5212_v18, %v3166_v14  ;;  %v1142_v18 = vld [vmem:[%s6609_s19 + $0x1f90] sm:$0xff] }
 0x7f1   : > { %v3190_v22 = vmul.f32 %v1142_v18, %v1142_v18 }
 0x7f2   : > { %v5214_v24 = vadd.f32 %v5213_v21, %v3167_v17  ;;  %v1143_v21 = vld [vmem:[%s6609_s19 + $0x1f98] sm:$0xff] }
 0x7f3   : > { %v3191_v25 = vmul.f32 %v1143_v21, %v1143_v21 }
 0x7f4   : > { %v5215_v27 = vadd.f32 %v5214_v24, %v3168_v20  ;;  %v1144_v24 = vld [vmem:[%s6609_s19 + $0x1fa0] sm:$0xff] }
 0x7f5   : > { %v3192_v28 = vmul.f32 %v1144_v24, %v1144_v24 }
 0x7f6   : > { %v5216_v30 = vadd.f32 %v5215_v27, %v3169_v23  ;;  %v1145_v27 = vld [vmem:[%s6609_s19 + $0x1fa8] sm:$0xff] }
 0x7f7   : > { %v3193_v31 = vmul.f32 %v1145_v27, %v1145_v27 }
 0x7f8   : > { %v5217_v33 = vadd.f32 %v5216_v30, %v3170_v26  ;;  %v1146_v30 = vld [vmem:[%s6609_s19 + $0x1fb0] sm:$0xff] }
 0x7f9   : > { %v3194_v34 = vmul.f32 %v1146_v30, %v1146_v30 }
 0x7fa   : > { %v5218_v36 = vadd.f32 %v5217_v33, %v3171_v29  ;;  %v1147_v33 = vld [vmem:[%s6609_s19 + $0x1fb8] sm:$0xff] }
 0x7fb   : > { %v3195_v37 = vmul.f32 %v1147_v33, %v1147_v33 }
 0x7fc   : > { %v5219_v39 = vadd.f32 %v5218_v36, %v3172_v32  ;;  %v1148_v36 = vld [vmem:[%s6609_s19 + $0x1fc0] sm:$0xff] }
 0x7fd   : > { %v3196_v40 = vmul.f32 %v1148_v36, %v1148_v36 }
 0x7fe   : > { %v5220_v42 = vadd.f32 %v5219_v39, %v3173_v35  ;;  %v1149_v39 = vld [vmem:[%s6609_s19 + $0x1fc8] sm:$0xff] }
 0x7ff   : > { %v3197_v43 = vmul.f32 %v1149_v39, %v1149_v39 }
 0x800   : > { %v5221_v45 = vadd.f32 %v5220_v42, %v3174_v38  ;;  %v1150_v42 = vld [vmem:[%s6609_s19 + $0x1fd0] sm:$0xff] }
 0x801   : > { %v3198_v46 = vmul.f32 %v1150_v42, %v1150_v42 }
 0x802   : > { %v5222_v48 = vadd.f32 %v5221_v45, %v3175_v41  ;;  %v1151_v45 = vld [vmem:[%s6609_s19 + $0x1fd8] sm:$0xff] }
 0x803   : > { %v3199_v49 = vmul.f32 %v1151_v45, %v1151_v45 }
 0x804   : > { %v5223_v51 = vadd.f32 %v5222_v48, %v3176_v44  ;;  %v1152_v48 = vld [vmem:[%s6609_s19 + $0x1fe0] sm:$0xff] }
 0x805   : > { %v3200_v52 = vmul.f32 %v1152_v48, %v1152_v48 }
 0x806   : > { %v5224_v54 = vadd.f32 %v5223_v51, %v3177_v47  ;;  %v1153_v51 = vld [vmem:[%s6609_s19 + $0x1fe8] sm:$0xff] }
 0x807   : > { %v3201_v55 = vmul.f32 %v1153_v51, %v1153_v51 }
 0x808   : > { %v5225_v57 = vadd.f32 %v5224_v54, %v3178_v50  ;;  %v1154_v54 = vld [vmem:[%s6609_s19 + $0x1ff0] sm:$0xff] }
 0x809   : > { %v3202_v58 = vmul.f32 %v1154_v54, %v1154_v54 }
 0x80a   : > { %v5226_v60 = vadd.f32 %v5225_v57, %v3179_v53  ;;  %v1155_v57 = vld [vmem:[%s6609_s19 + $0x1ff8] sm:$0xff] }
 0x80b   : > { %v3203_v61 = vmul.f32 %v1155_v57, %v1155_v57 }
 0x80c   : > { %v5227_v63 = vadd.f32 %v5226_v60, %v3180_v56  ;;  %v1156_v60 = vld [vmem:[%s6609_s19 + $0x2000] sm:$0xff] }
 0x80d   : > { %v3204_v0 = vmul.f32 %v1156_v60, %v1156_v60 }
 0x80e   : > { %v5228_v2 = vadd.f32 %v5227_v63, %v3181_v59  ;;  %v1157_v63 = vld [vmem:[%s6609_s19 + $0x2008] sm:$0xff] }
 0x80f   : > { %v3205_v3 = vmul.f32 %v1157_v63, %v1157_v63 }
 0x810   : > { %v5229_v5 = vadd.f32 %v5228_v2, %v3182_v62  ;;  %v1158_v2 = vld [vmem:[%s6609_s19 + $0x2010] sm:$0xff] }
 0x811   : > { %v3206_v6 = vmul.f32 %v1158_v2, %v1158_v2 }
 0x812   : > { %v5230_v8 = vadd.f32 %v5229_v5, %v3183_v1  ;;  %v1159_v5 = vld [vmem:[%s6609_s19 + $0x2018] sm:$0xff] }
 0x813   : > { %v3207_v9 = vmul.f32 %v1159_v5, %v1159_v5 }
 0x814   : > { %v5231_v11 = vadd.f32 %v5230_v8, %v3184_v4  ;;  %v1160_v8 = vld [vmem:[%s6609_s19 + $0x2020] sm:$0xff] }
 0x815   : > { %v3208_v12 = vmul.f32 %v1160_v8, %v1160_v8 }
 0x816   : > { %v5232_v14 = vadd.f32 %v5231_v11, %v3185_v7  ;;  %v1161_v11 = vld [vmem:[%s6609_s19 + $0x2028] sm:$0xff] }
 0x817   : > { %v3209_v15 = vmul.f32 %v1161_v11, %v1161_v11 }
 0x818   : > { %v5233_v17 = vadd.f32 %v5232_v14, %v3186_v10  ;;  %v1162_v14 = vld [vmem:[%s6609_s19 + $0x2030] sm:$0xff] }
 0x819   : > { %v3210_v18 = vmul.f32 %v1162_v14, %v1162_v14 }
 0x81a   : > { %v5234_v20 = vadd.f32 %v5233_v17, %v3187_v13  ;;  %v1163_v17 = vld [vmem:[%s6609_s19 + $0x2038] sm:$0xff] }
 0x81b   : > { %v3211_v21 = vmul.f32 %v1163_v17, %v1163_v17 }
 0x81c   : > { %v5235_v23 = vadd.f32 %v5234_v20, %v3188_v16  ;;  %v1164_v20 = vld [vmem:[%s6609_s19 + $0x2040] sm:$0xff] }
 0x81d   : > { %v3212_v24 = vmul.f32 %v1164_v20, %v1164_v20 }
 0x81e   : > { %v5236_v26 = vadd.f32 %v5235_v23, %v3189_v19  ;;  %v1165_v23 = vld [vmem:[%s6609_s19 + $0x2048] sm:$0xff] }
 0x81f   : > { %v3213_v27 = vmul.f32 %v1165_v23, %v1165_v23 }
 0x820   : > { %v5237_v29 = vadd.f32 %v5236_v26, %v3190_v22  ;;  %v1166_v26 = vld [vmem:[%s6609_s19 + $0x2050] sm:$0xff] }
 0x821   : > { %v3214_v30 = vmul.f32 %v1166_v26, %v1166_v26 }
 0x822   : > { %v5238_v32 = vadd.f32 %v5237_v29, %v3191_v25  ;;  %v1167_v29 = vld [vmem:[%s6609_s19 + $0x2058] sm:$0xff] }
 0x823   : > { %v3215_v33 = vmul.f32 %v1167_v29, %v1167_v29 }
 0x824   : > { %v5239_v35 = vadd.f32 %v5238_v32, %v3192_v28  ;;  %v1168_v32 = vld [vmem:[%s6609_s19 + $0x2060] sm:$0xff] }
 0x825   : > { %v3216_v36 = vmul.f32 %v1168_v32, %v1168_v32 }
 0x826   : > { %v5240_v38 = vadd.f32 %v5239_v35, %v3193_v31  ;;  %v1169_v35 = vld [vmem:[%s6609_s19 + $0x2068] sm:$0xff] }
 0x827   : > { %v3217_v39 = vmul.f32 %v1169_v35, %v1169_v35 }
 0x828   : > { %v5241_v41 = vadd.f32 %v5240_v38, %v3194_v34  ;;  %v1170_v38 = vld [vmem:[%s6609_s19 + $0x2070] sm:$0xff] }
 0x829   : > { %v3218_v42 = vmul.f32 %v1170_v38, %v1170_v38 }
 0x82a   : > { %v5242_v44 = vadd.f32 %v5241_v41, %v3195_v37  ;;  %v1171_v41 = vld [vmem:[%s6609_s19 + $0x2078] sm:$0xff] }
 0x82b   : > { %v3219_v45 = vmul.f32 %v1171_v41, %v1171_v41 }
 0x82c   : > { %v5243_v47 = vadd.f32 %v5242_v44, %v3196_v40  ;;  %v1172_v44 = vld [vmem:[%s6609_s19 + $0x2080] sm:$0xff] }
 0x82d   : > { %v3220_v48 = vmul.f32 %v1172_v44, %v1172_v44 }
 0x82e   : > { %v5244_v50 = vadd.f32 %v5243_v47, %v3197_v43  ;;  %v1173_v47 = vld [vmem:[%s6609_s19 + $0x2088] sm:$0xff] }
 0x82f   : > { %v3221_v51 = vmul.f32 %v1173_v47, %v1173_v47 }
 0x830   : > { %v5245_v53 = vadd.f32 %v5244_v50, %v3198_v46  ;;  %v1174_v50 = vld [vmem:[%s6609_s19 + $0x2090] sm:$0xff] }
 0x831   : > { %v3222_v54 = vmul.f32 %v1174_v50, %v1174_v50 }
 0x832   : > { %v5246_v56 = vadd.f32 %v5245_v53, %v3199_v49  ;;  %v1175_v53 = vld [vmem:[%s6609_s19 + $0x2098] sm:$0xff] }
 0x833   : > { %v3223_v57 = vmul.f32 %v1175_v53, %v1175_v53 }
 0x834   : > { %v5247_v59 = vadd.f32 %v5246_v56, %v3200_v52  ;;  %v1176_v56 = vld [vmem:[%s6609_s19 + $0x20a0] sm:$0xff] }
 0x835   : > { %v3224_v60 = vmul.f32 %v1176_v56, %v1176_v56 }
 0x836   : > { %v5248_v62 = vadd.f32 %v5247_v59, %v3201_v55  ;;  %v1177_v59 = vld [vmem:[%s6609_s19 + $0x20a8] sm:$0xff] }
 0x837   : > { %v3225_v63 = vmul.f32 %v1177_v59, %v1177_v59 }
 0x838   : > { %v5249_v1 = vadd.f32 %v5248_v62, %v3202_v58  ;;  %v1178_v62 = vld [vmem:[%s6609_s19 + $0x20b0] sm:$0xff] }
 0x839   : > { %v3226_v2 = vmul.f32 %v1178_v62, %v1178_v62 }
 0x83a   : > { %v5250_v4 = vadd.f32 %v5249_v1, %v3203_v61  ;;  %v1179_v1 = vld [vmem:[%s6609_s19 + $0x20b8] sm:$0xff] }
 0x83b   : > { %v3227_v5 = vmul.f32 %v1179_v1, %v1179_v1 }
 0x83c   : > { %v5251_v7 = vadd.f32 %v5250_v4, %v3204_v0  ;;  %v1180_v4 = vld [vmem:[%s6609_s19 + $0x20c0] sm:$0xff] }
 0x83d   : > { %v3228_v8 = vmul.f32 %v1180_v4, %v1180_v4 }
 0x83e   : > { %v5252_v10 = vadd.f32 %v5251_v7, %v3205_v3  ;;  %v1181_v7 = vld [vmem:[%s6609_s19 + $0x20c8] sm:$0xff] }
 0x83f   : > { %v3229_v11 = vmul.f32 %v1181_v7, %v1181_v7 }
 0x840   : > { %v5253_v13 = vadd.f32 %v5252_v10, %v3206_v6  ;;  %v1182_v10 = vld [vmem:[%s6609_s19 + $0x20d0] sm:$0xff] }
 0x841   : > { %v3230_v14 = vmul.f32 %v1182_v10, %v1182_v10 }
 0x842   : > { %v5254_v16 = vadd.f32 %v5253_v13, %v3207_v9  ;;  %v1183_v13 = vld [vmem:[%s6609_s19 + $0x20d8] sm:$0xff] }
 0x843   : > { %v3231_v17 = vmul.f32 %v1183_v13, %v1183_v13 }
 0x844   : > { %v5255_v19 = vadd.f32 %v5254_v16, %v3208_v12  ;;  %v1184_v16 = vld [vmem:[%s6609_s19 + $0x20e0] sm:$0xff] }
 0x845   : > { %v3232_v20 = vmul.f32 %v1184_v16, %v1184_v16 }
 0x846   : > { %v5256_v22 = vadd.f32 %v5255_v19, %v3209_v15  ;;  %v1185_v19 = vld [vmem:[%s6609_s19 + $0x20e8] sm:$0xff] }
 0x847   : > { %v3233_v23 = vmul.f32 %v1185_v19, %v1185_v19 }
 0x848   : > { %v5257_v25 = vadd.f32 %v5256_v22, %v3210_v18  ;;  %v1186_v22 = vld [vmem:[%s6609_s19 + $0x20f0] sm:$0xff] }
 0x849   : > { %v3234_v26 = vmul.f32 %v1186_v22, %v1186_v22 }
 0x84a   : > { %v5258_v28 = vadd.f32 %v5257_v25, %v3211_v21  ;;  %v1187_v25 = vld [vmem:[%s6609_s19 + $0x20f8] sm:$0xff] }
 0x84b   : > { %v3235_v29 = vmul.f32 %v1187_v25, %v1187_v25 }
 0x84c   : > { %v5259_v31 = vadd.f32 %v5258_v28, %v3212_v24  ;;  %v1188_v28 = vld [vmem:[%s6609_s19 + $0x2100] sm:$0xff] }
 0x84d   : > { %v3236_v32 = vmul.f32 %v1188_v28, %v1188_v28 }
 0x84e   : > { %v5260_v34 = vadd.f32 %v5259_v31, %v3213_v27  ;;  %v1189_v31 = vld [vmem:[%s6609_s19 + $0x2108] sm:$0xff] }
 0x84f   : > { %v3237_v35 = vmul.f32 %v1189_v31, %v1189_v31 }
 0x850   : > { %v5261_v37 = vadd.f32 %v5260_v34, %v3214_v30  ;;  %v1190_v34 = vld [vmem:[%s6609_s19 + $0x2110] sm:$0xff] }
 0x851   : > { %v3238_v38 = vmul.f32 %v1190_v34, %v1190_v34 }
 0x852   : > { %v5262_v40 = vadd.f32 %v5261_v37, %v3215_v33  ;;  %v1191_v37 = vld [vmem:[%s6609_s19 + $0x2118] sm:$0xff] }
 0x853   : > { %v3239_v41 = vmul.f32 %v1191_v37, %v1191_v37 }
 0x854   : > { %v5263_v43 = vadd.f32 %v5262_v40, %v3216_v36  ;;  %v1192_v40 = vld [vmem:[%s6609_s19 + $0x2120] sm:$0xff] }
 0x855   : > { %v3240_v44 = vmul.f32 %v1192_v40, %v1192_v40 }
 0x856   : > { %v5264_v46 = vadd.f32 %v5263_v43, %v3217_v39  ;;  %v1193_v43 = vld [vmem:[%s6609_s19 + $0x2128] sm:$0xff] }
 0x857   : > { %v3241_v47 = vmul.f32 %v1193_v43, %v1193_v43 }
 0x858   : > { %v5265_v49 = vadd.f32 %v5264_v46, %v3218_v42  ;;  %v1194_v46 = vld [vmem:[%s6609_s19 + $0x2130] sm:$0xff] }
 0x859   : > { %v3242_v50 = vmul.f32 %v1194_v46, %v1194_v46 }
 0x85a   : > { %v5266_v52 = vadd.f32 %v5265_v49, %v3219_v45  ;;  %v1195_v49 = vld [vmem:[%s6609_s19 + $0x2138] sm:$0xff] }
 0x85b   : > { %v3243_v53 = vmul.f32 %v1195_v49, %v1195_v49 }
 0x85c   : > { %v5267_v55 = vadd.f32 %v5266_v52, %v3220_v48  ;;  %v1196_v52 = vld [vmem:[%s6609_s19 + $0x2140] sm:$0xff] }
 0x85d   : > { %v3244_v56 = vmul.f32 %v1196_v52, %v1196_v52 }
 0x85e   : > { %v5268_v58 = vadd.f32 %v5267_v55, %v3221_v51  ;;  %v1197_v55 = vld [vmem:[%s6609_s19 + $0x2148] sm:$0xff] }
 0x85f   : > { %v3245_v59 = vmul.f32 %v1197_v55, %v1197_v55 }
 0x860   : > { %v5269_v61 = vadd.f32 %v5268_v58, %v3222_v54  ;;  %v1198_v58 = vld [vmem:[%s6609_s19 + $0x2150] sm:$0xff] }
 0x861   : > { %v3246_v62 = vmul.f32 %v1198_v58, %v1198_v58 }
 0x862   : > { %v5270_v0 = vadd.f32 %v5269_v61, %v3223_v57  ;;  %v1199_v61 = vld [vmem:[%s6609_s19 + $0x2158] sm:$0xff] }
 0x863   : > { %v3247_v1 = vmul.f32 %v1199_v61, %v1199_v61 }
 0x864   : > { %v5271_v3 = vadd.f32 %v5270_v0, %v3224_v60  ;;  %v1200_v0 = vld [vmem:[%s6609_s19 + $0x2160] sm:$0xff] }
 0x865   : > { %v3248_v4 = vmul.f32 %v1200_v0, %v1200_v0 }
 0x866   : > { %v5272_v6 = vadd.f32 %v5271_v3, %v3225_v63  ;;  %v1201_v3 = vld [vmem:[%s6609_s19 + $0x2168] sm:$0xff] }
 0x867   : > { %v3249_v7 = vmul.f32 %v1201_v3, %v1201_v3 }
 0x868   : > { %v5273_v9 = vadd.f32 %v5272_v6, %v3226_v2  ;;  %v1202_v6 = vld [vmem:[%s6609_s19 + $0x2170] sm:$0xff] }
 0x869   : > { %v3250_v10 = vmul.f32 %v1202_v6, %v1202_v6 }
 0x86a   : > { %v5274_v12 = vadd.f32 %v5273_v9, %v3227_v5  ;;  %v1203_v9 = vld [vmem:[%s6609_s19 + $0x2178] sm:$0xff] }
 0x86b   : > { %v3251_v13 = vmul.f32 %v1203_v9, %v1203_v9 }
 0x86c   : > { %v5275_v15 = vadd.f32 %v5274_v12, %v3228_v8  ;;  %v1204_v12 = vld [vmem:[%s6609_s19 + $0x2180] sm:$0xff] }
 0x86d   : > { %v3252_v16 = vmul.f32 %v1204_v12, %v1204_v12 }
 0x86e   : > { %v5276_v18 = vadd.f32 %v5275_v15, %v3229_v11  ;;  %v1205_v15 = vld [vmem:[%s6609_s19 + $0x2188] sm:$0xff] }
 0x86f   : > { %v3253_v19 = vmul.f32 %v1205_v15, %v1205_v15 }
 0x870   : > { %v5277_v21 = vadd.f32 %v5276_v18, %v3230_v14  ;;  %v1206_v18 = vld [vmem:[%s6609_s19 + $0x2190] sm:$0xff] }
 0x871   : > { %v3254_v22 = vmul.f32 %v1206_v18, %v1206_v18 }
 0x872   : > { %v5278_v24 = vadd.f32 %v5277_v21, %v3231_v17  ;;  %v1207_v21 = vld [vmem:[%s6609_s19 + $0x2198] sm:$0xff] }
 0x873   : > { %v3255_v25 = vmul.f32 %v1207_v21, %v1207_v21 }
 0x874   : > { %v5279_v27 = vadd.f32 %v5278_v24, %v3232_v20  ;;  %v1208_v24 = vld [vmem:[%s6609_s19 + $0x21a0] sm:$0xff] }
 0x875   : > { %v3256_v28 = vmul.f32 %v1208_v24, %v1208_v24 }
 0x876   : > { %v5280_v30 = vadd.f32 %v5279_v27, %v3233_v23  ;;  %v1209_v27 = vld [vmem:[%s6609_s19 + $0x21a8] sm:$0xff] }
 0x877   : > { %v3257_v31 = vmul.f32 %v1209_v27, %v1209_v27 }
 0x878   : > { %v5281_v33 = vadd.f32 %v5280_v30, %v3234_v26  ;;  %v1210_v30 = vld [vmem:[%s6609_s19 + $0x21b0] sm:$0xff] }
 0x879   : > { %v3258_v34 = vmul.f32 %v1210_v30, %v1210_v30 }
 0x87a   : > { %v5282_v36 = vadd.f32 %v5281_v33, %v3235_v29  ;;  %v1211_v33 = vld [vmem:[%s6609_s19 + $0x21b8] sm:$0xff] }
 0x87b   : > { %v3259_v37 = vmul.f32 %v1211_v33, %v1211_v33 }
 0x87c   : > { %v5283_v39 = vadd.f32 %v5282_v36, %v3236_v32  ;;  %v1212_v36 = vld [vmem:[%s6609_s19 + $0x21c0] sm:$0xff] }
 0x87d   : > { %v3260_v40 = vmul.f32 %v1212_v36, %v1212_v36 }
 0x87e   : > { %v5284_v42 = vadd.f32 %v5283_v39, %v3237_v35  ;;  %v1213_v39 = vld [vmem:[%s6609_s19 + $0x21c8] sm:$0xff] }
 0x87f   : > { %v3261_v43 = vmul.f32 %v1213_v39, %v1213_v39 }
 0x880   : > { %v5285_v45 = vadd.f32 %v5284_v42, %v3238_v38  ;;  %v1214_v42 = vld [vmem:[%s6609_s19 + $0x21d0] sm:$0xff] }
 0x881   : > { %v3262_v46 = vmul.f32 %v1214_v42, %v1214_v42 }
 0x882   : > { %v5286_v48 = vadd.f32 %v5285_v45, %v3239_v41  ;;  %v1215_v45 = vld [vmem:[%s6609_s19 + $0x21d8] sm:$0xff] }
 0x883   : > { %v3263_v49 = vmul.f32 %v1215_v45, %v1215_v45 }
 0x884   : > { %v5287_v51 = vadd.f32 %v5286_v48, %v3240_v44  ;;  %v1216_v48 = vld [vmem:[%s6609_s19 + $0x21e0] sm:$0xff] }
 0x885   : > { %v3264_v52 = vmul.f32 %v1216_v48, %v1216_v48 }
 0x886   : > { %v5288_v54 = vadd.f32 %v5287_v51, %v3241_v47  ;;  %v1217_v51 = vld [vmem:[%s6609_s19 + $0x21e8] sm:$0xff] }
 0x887   : > { %v3265_v55 = vmul.f32 %v1217_v51, %v1217_v51 }
 0x888   : > { %v5289_v57 = vadd.f32 %v5288_v54, %v3242_v50  ;;  %v1218_v54 = vld [vmem:[%s6609_s19 + $0x21f0] sm:$0xff] }
 0x889   : > { %v3266_v58 = vmul.f32 %v1218_v54, %v1218_v54 }
 0x88a   : > { %v5290_v60 = vadd.f32 %v5289_v57, %v3243_v53  ;;  %v1219_v57 = vld [vmem:[%s6609_s19 + $0x21f8] sm:$0xff] }
 0x88b   : > { %v3267_v61 = vmul.f32 %v1219_v57, %v1219_v57 }
 0x88c   : > { %v5291_v63 = vadd.f32 %v5290_v60, %v3244_v56  ;;  %v1220_v60 = vld [vmem:[%s6609_s19 + $0x2200] sm:$0xff] }
 0x88d   : > { %v3268_v0 = vmul.f32 %v1220_v60, %v1220_v60 }
 0x88e   : > { %v5292_v2 = vadd.f32 %v5291_v63, %v3245_v59  ;;  %v1221_v63 = vld [vmem:[%s6609_s19 + $0x2208] sm:$0xff] }
 0x88f   : > { %v3269_v3 = vmul.f32 %v1221_v63, %v1221_v63 }
 0x890   : > { %v5293_v5 = vadd.f32 %v5292_v2, %v3246_v62  ;;  %v1222_v2 = vld [vmem:[%s6609_s19 + $0x2210] sm:$0xff] }
 0x891   : > { %v3270_v6 = vmul.f32 %v1222_v2, %v1222_v2 }
 0x892   : > { %v5294_v8 = vadd.f32 %v5293_v5, %v3247_v1  ;;  %v1223_v5 = vld [vmem:[%s6609_s19 + $0x2218] sm:$0xff] }
 0x893   : > { %v3271_v9 = vmul.f32 %v1223_v5, %v1223_v5 }
 0x894   : > { %v5295_v11 = vadd.f32 %v5294_v8, %v3248_v4  ;;  %v1224_v8 = vld [vmem:[%s6609_s19 + $0x2220] sm:$0xff] }
 0x895   : > { %v3272_v12 = vmul.f32 %v1224_v8, %v1224_v8 }
 0x896   : > { %v5296_v14 = vadd.f32 %v5295_v11, %v3249_v7  ;;  %v1225_v11 = vld [vmem:[%s6609_s19 + $0x2228] sm:$0xff] }
 0x897   : > { %v3273_v15 = vmul.f32 %v1225_v11, %v1225_v11 }
 0x898   : > { %v5297_v17 = vadd.f32 %v5296_v14, %v3250_v10  ;;  %v1226_v14 = vld [vmem:[%s6609_s19 + $0x2230] sm:$0xff] }
 0x899   : > { %v3274_v18 = vmul.f32 %v1226_v14, %v1226_v14 }
 0x89a   : > { %v5298_v20 = vadd.f32 %v5297_v17, %v3251_v13  ;;  %v1227_v17 = vld [vmem:[%s6609_s19 + $0x2238] sm:$0xff] }
 0x89b   : > { %v3275_v21 = vmul.f32 %v1227_v17, %v1227_v17 }
 0x89c   : > { %v5299_v23 = vadd.f32 %v5298_v20, %v3252_v16  ;;  %v1228_v20 = vld [vmem:[%s6609_s19 + $0x2240] sm:$0xff] }
 0x89d   : > { %v3276_v24 = vmul.f32 %v1228_v20, %v1228_v20 }
 0x89e   : > { %v5300_v26 = vadd.f32 %v5299_v23, %v3253_v19  ;;  %v1229_v23 = vld [vmem:[%s6609_s19 + $0x2248] sm:$0xff] }
 0x89f   : > { %v3277_v27 = vmul.f32 %v1229_v23, %v1229_v23 }
 0x8a0   : > { %v5301_v29 = vadd.f32 %v5300_v26, %v3254_v22  ;;  %v1230_v26 = vld [vmem:[%s6609_s19 + $0x2250] sm:$0xff] }
 0x8a1   : > { %v3278_v30 = vmul.f32 %v1230_v26, %v1230_v26 }
 0x8a2   : > { %v5302_v32 = vadd.f32 %v5301_v29, %v3255_v25  ;;  %v1231_v29 = vld [vmem:[%s6609_s19 + $0x2258] sm:$0xff] }
 0x8a3   : > { %v3279_v33 = vmul.f32 %v1231_v29, %v1231_v29 }
 0x8a4   : > { %v5303_v35 = vadd.f32 %v5302_v32, %v3256_v28  ;;  %v1232_v32 = vld [vmem:[%s6609_s19 + $0x2260] sm:$0xff] }
 0x8a5   : > { %v3280_v36 = vmul.f32 %v1232_v32, %v1232_v32 }
 0x8a6   : > { %v5304_v38 = vadd.f32 %v5303_v35, %v3257_v31  ;;  %v1233_v35 = vld [vmem:[%s6609_s19 + $0x2268] sm:$0xff] }
 0x8a7   : > { %v3281_v39 = vmul.f32 %v1233_v35, %v1233_v35 }
 0x8a8   : > { %v5305_v41 = vadd.f32 %v5304_v38, %v3258_v34  ;;  %v1234_v38 = vld [vmem:[%s6609_s19 + $0x2270] sm:$0xff] }
 0x8a9   : > { %v3282_v42 = vmul.f32 %v1234_v38, %v1234_v38 }
 0x8aa   : > { %v5306_v44 = vadd.f32 %v5305_v41, %v3259_v37  ;;  %v1235_v41 = vld [vmem:[%s6609_s19 + $0x2278] sm:$0xff] }
 0x8ab   : > { %v3283_v45 = vmul.f32 %v1235_v41, %v1235_v41 }
 0x8ac   : > { %v5307_v47 = vadd.f32 %v5306_v44, %v3260_v40  ;;  %v1236_v44 = vld [vmem:[%s6609_s19 + $0x2280] sm:$0xff] }
 0x8ad   : > { %v3284_v48 = vmul.f32 %v1236_v44, %v1236_v44 }
 0x8ae   : > { %v5308_v50 = vadd.f32 %v5307_v47, %v3261_v43  ;;  %v1237_v47 = vld [vmem:[%s6609_s19 + $0x2288] sm:$0xff] }
 0x8af   : > { %v3285_v51 = vmul.f32 %v1237_v47, %v1237_v47 }
 0x8b0   : > { %v5309_v53 = vadd.f32 %v5308_v50, %v3262_v46  ;;  %v1238_v50 = vld [vmem:[%s6609_s19 + $0x2290] sm:$0xff] }
 0x8b1   : > { %v3286_v54 = vmul.f32 %v1238_v50, %v1238_v50 }
 0x8b2   : > { %v5310_v56 = vadd.f32 %v5309_v53, %v3263_v49  ;;  %v1239_v53 = vld [vmem:[%s6609_s19 + $0x2298] sm:$0xff] }
 0x8b3   : > { %v3287_v57 = vmul.f32 %v1239_v53, %v1239_v53 }
 0x8b4   : > { %v5311_v59 = vadd.f32 %v5310_v56, %v3264_v52  ;;  %v1240_v56 = vld [vmem:[%s6609_s19 + $0x22a0] sm:$0xff] }
 0x8b5   : > { %v3288_v60 = vmul.f32 %v1240_v56, %v1240_v56 }
 0x8b6   : > { %v5312_v62 = vadd.f32 %v5311_v59, %v3265_v55  ;;  %v1241_v59 = vld [vmem:[%s6609_s19 + $0x22a8] sm:$0xff] }
 0x8b7   : > { %v3289_v63 = vmul.f32 %v1241_v59, %v1241_v59 }
 0x8b8   : > { %v5313_v1 = vadd.f32 %v5312_v62, %v3266_v58  ;;  %v1242_v62 = vld [vmem:[%s6609_s19 + $0x22b0] sm:$0xff] }
 0x8b9   : > { %v3290_v2 = vmul.f32 %v1242_v62, %v1242_v62 }
 0x8ba   : > { %v5314_v4 = vadd.f32 %v5313_v1, %v3267_v61  ;;  %v1243_v1 = vld [vmem:[%s6609_s19 + $0x22b8] sm:$0xff] }
 0x8bb   : > { %v3291_v5 = vmul.f32 %v1243_v1, %v1243_v1 }
 0x8bc   : > { %v5315_v7 = vadd.f32 %v5314_v4, %v3268_v0  ;;  %v1244_v4 = vld [vmem:[%s6609_s19 + $0x22c0] sm:$0xff] }
 0x8bd   : > { %v3292_v8 = vmul.f32 %v1244_v4, %v1244_v4 }
 0x8be   : > { %v5316_v10 = vadd.f32 %v5315_v7, %v3269_v3  ;;  %v1245_v7 = vld [vmem:[%s6609_s19 + $0x22c8] sm:$0xff] }
 0x8bf   : > { %v3293_v11 = vmul.f32 %v1245_v7, %v1245_v7 }
 0x8c0   : > { %v5317_v13 = vadd.f32 %v5316_v10, %v3270_v6  ;;  %v1246_v10 = vld [vmem:[%s6609_s19 + $0x22d0] sm:$0xff] }
 0x8c1   : > { %v3294_v14 = vmul.f32 %v1246_v10, %v1246_v10 }
 0x8c2   : > { %v5318_v16 = vadd.f32 %v5317_v13, %v3271_v9  ;;  %v1247_v13 = vld [vmem:[%s6609_s19 + $0x22d8] sm:$0xff] }
 0x8c3   : > { %v3295_v17 = vmul.f32 %v1247_v13, %v1247_v13 }
 0x8c4   : > { %v5319_v19 = vadd.f32 %v5318_v16, %v3272_v12  ;;  %v1248_v16 = vld [vmem:[%s6609_s19 + $0x22e0] sm:$0xff] }
 0x8c5   : > { %v3296_v20 = vmul.f32 %v1248_v16, %v1248_v16 }
 0x8c6   : > { %v5320_v22 = vadd.f32 %v5319_v19, %v3273_v15  ;;  %v1249_v19 = vld [vmem:[%s6609_s19 + $0x22e8] sm:$0xff] }
 0x8c7   : > { %v3297_v23 = vmul.f32 %v1249_v19, %v1249_v19 }
 0x8c8   : > { %v5321_v25 = vadd.f32 %v5320_v22, %v3274_v18  ;;  %v1250_v22 = vld [vmem:[%s6609_s19 + $0x22f0] sm:$0xff] }
 0x8c9   : > { %v3298_v26 = vmul.f32 %v1250_v22, %v1250_v22 }
 0x8ca   : > { %v5322_v28 = vadd.f32 %v5321_v25, %v3275_v21  ;;  %v1251_v25 = vld [vmem:[%s6609_s19 + $0x22f8] sm:$0xff] }
 0x8cb   : > { %v3299_v29 = vmul.f32 %v1251_v25, %v1251_v25 }
 0x8cc   : > { %v5323_v31 = vadd.f32 %v5322_v28, %v3276_v24  ;;  %v1252_v28 = vld [vmem:[%s6609_s19 + $0x2300] sm:$0xff] }
 0x8cd   : > { %v3300_v32 = vmul.f32 %v1252_v28, %v1252_v28 }
 0x8ce   : > { %v5324_v34 = vadd.f32 %v5323_v31, %v3277_v27  ;;  %v1253_v31 = vld [vmem:[%s6609_s19 + $0x2308] sm:$0xff] }
 0x8cf   : > { %v3301_v35 = vmul.f32 %v1253_v31, %v1253_v31 }
 0x8d0   : > { %v5325_v37 = vadd.f32 %v5324_v34, %v3278_v30  ;;  %v1254_v34 = vld [vmem:[%s6609_s19 + $0x2310] sm:$0xff] }
 0x8d1   : > { %v3302_v38 = vmul.f32 %v1254_v34, %v1254_v34 }
 0x8d2   : > { %v5326_v40 = vadd.f32 %v5325_v37, %v3279_v33  ;;  %v1255_v37 = vld [vmem:[%s6609_s19 + $0x2318] sm:$0xff] }
 0x8d3   : > { %v3303_v41 = vmul.f32 %v1255_v37, %v1255_v37 }
 0x8d4   : > { %v5327_v43 = vadd.f32 %v5326_v40, %v3280_v36  ;;  %v1256_v40 = vld [vmem:[%s6609_s19 + $0x2320] sm:$0xff] }
 0x8d5   : > { %v3304_v44 = vmul.f32 %v1256_v40, %v1256_v40 }
 0x8d6   : > { %v5328_v46 = vadd.f32 %v5327_v43, %v3281_v39  ;;  %v1257_v43 = vld [vmem:[%s6609_s19 + $0x2328] sm:$0xff] }
 0x8d7   : > { %v3305_v47 = vmul.f32 %v1257_v43, %v1257_v43 }
 0x8d8   : > { %v5329_v49 = vadd.f32 %v5328_v46, %v3282_v42  ;;  %v1258_v46 = vld [vmem:[%s6609_s19 + $0x2330] sm:$0xff] }
 0x8d9   : > { %v3306_v50 = vmul.f32 %v1258_v46, %v1258_v46 }
 0x8da   : > { %v5330_v52 = vadd.f32 %v5329_v49, %v3283_v45  ;;  %v1259_v49 = vld [vmem:[%s6609_s19 + $0x2338] sm:$0xff] }
 0x8db   : > { %v3307_v53 = vmul.f32 %v1259_v49, %v1259_v49 }
 0x8dc   : > { %v5331_v55 = vadd.f32 %v5330_v52, %v3284_v48  ;;  %v1260_v52 = vld [vmem:[%s6609_s19 + $0x2340] sm:$0xff] }
 0x8dd   : > { %v3308_v56 = vmul.f32 %v1260_v52, %v1260_v52 }
 0x8de   : > { %v5332_v58 = vadd.f32 %v5331_v55, %v3285_v51  ;;  %v1261_v55 = vld [vmem:[%s6609_s19 + $0x2348] sm:$0xff] }
 0x8df   : > { %v3309_v59 = vmul.f32 %v1261_v55, %v1261_v55 }
 0x8e0   : > { %v5333_v61 = vadd.f32 %v5332_v58, %v3286_v54  ;;  %v1262_v58 = vld [vmem:[%s6609_s19 + $0x2350] sm:$0xff] }
 0x8e1   : > { %v3310_v62 = vmul.f32 %v1262_v58, %v1262_v58 }
 0x8e2   : > { %v5334_v0 = vadd.f32 %v5333_v61, %v3287_v57  ;;  %v1263_v61 = vld [vmem:[%s6609_s19 + $0x2358] sm:$0xff] }
 0x8e3   : > { %v3311_v1 = vmul.f32 %v1263_v61, %v1263_v61 }
 0x8e4   : > { %v5335_v3 = vadd.f32 %v5334_v0, %v3288_v60  ;;  %v1264_v0 = vld [vmem:[%s6609_s19 + $0x2360] sm:$0xff] }
 0x8e5   : > { %v3312_v4 = vmul.f32 %v1264_v0, %v1264_v0 }
 0x8e6   : > { %v5336_v6 = vadd.f32 %v5335_v3, %v3289_v63  ;;  %v1265_v3 = vld [vmem:[%s6609_s19 + $0x2368] sm:$0xff] }
 0x8e7   : > { %v3313_v7 = vmul.f32 %v1265_v3, %v1265_v3 }
 0x8e8   : > { %v5337_v9 = vadd.f32 %v5336_v6, %v3290_v2  ;;  %v1266_v6 = vld [vmem:[%s6609_s19 + $0x2370] sm:$0xff] }
 0x8e9   : > { %v3314_v10 = vmul.f32 %v1266_v6, %v1266_v6 }
 0x8ea   : > { %v5338_v12 = vadd.f32 %v5337_v9, %v3291_v5  ;;  %v1267_v9 = vld [vmem:[%s6609_s19 + $0x2378] sm:$0xff] }
 0x8eb   : > { %v3315_v13 = vmul.f32 %v1267_v9, %v1267_v9 }
 0x8ec   : > { %v5339_v15 = vadd.f32 %v5338_v12, %v3292_v8  ;;  %v1268_v12 = vld [vmem:[%s6609_s19 + $0x2380] sm:$0xff] }
 0x8ed   : > { %v3316_v16 = vmul.f32 %v1268_v12, %v1268_v12 }
 0x8ee   : > { %v5340_v18 = vadd.f32 %v5339_v15, %v3293_v11  ;;  %v1269_v15 = vld [vmem:[%s6609_s19 + $0x2388] sm:$0xff] }
 0x8ef   : > { %v3317_v19 = vmul.f32 %v1269_v15, %v1269_v15 }
 0x8f0   : > { %v5341_v21 = vadd.f32 %v5340_v18, %v3294_v14  ;;  %v1270_v18 = vld [vmem:[%s6609_s19 + $0x2390] sm:$0xff] }
 0x8f1   : > { %v3318_v22 = vmul.f32 %v1270_v18, %v1270_v18 }
 0x8f2   : > { %v5342_v24 = vadd.f32 %v5341_v21, %v3295_v17  ;;  %v1271_v21 = vld [vmem:[%s6609_s19 + $0x2398] sm:$0xff] }
 0x8f3   : > { %v3319_v25 = vmul.f32 %v1271_v21, %v1271_v21 }
 0x8f4   : > { %v5343_v27 = vadd.f32 %v5342_v24, %v3296_v20  ;;  %v1272_v24 = vld [vmem:[%s6609_s19 + $0x23a0] sm:$0xff] }
 0x8f5   : > { %v3320_v28 = vmul.f32 %v1272_v24, %v1272_v24 }
 0x8f6   : > { %v5344_v30 = vadd.f32 %v5343_v27, %v3297_v23  ;;  %v1273_v27 = vld [vmem:[%s6609_s19 + $0x23a8] sm:$0xff] }
 0x8f7   : > { %v3321_v31 = vmul.f32 %v1273_v27, %v1273_v27 }
 0x8f8   : > { %v5345_v33 = vadd.f32 %v5344_v30, %v3298_v26  ;;  %v1274_v30 = vld [vmem:[%s6609_s19 + $0x23b0] sm:$0xff] }
 0x8f9   : > { %v3322_v34 = vmul.f32 %v1274_v30, %v1274_v30 }
 0x8fa   : > { %v5346_v36 = vadd.f32 %v5345_v33, %v3299_v29  ;;  %v1275_v33 = vld [vmem:[%s6609_s19 + $0x23b8] sm:$0xff] }
 0x8fb   : > { %v3323_v37 = vmul.f32 %v1275_v33, %v1275_v33 }
 0x8fc   : > { %v5347_v39 = vadd.f32 %v5346_v36, %v3300_v32  ;;  %v1276_v36 = vld [vmem:[%s6609_s19 + $0x23c0] sm:$0xff] }
 0x8fd   : > { %v3324_v40 = vmul.f32 %v1276_v36, %v1276_v36 }
 0x8fe   : > { %v5348_v42 = vadd.f32 %v5347_v39, %v3301_v35  ;;  %v1277_v39 = vld [vmem:[%s6609_s19 + $0x23c8] sm:$0xff] }
 0x8ff   : > { %v3325_v43 = vmul.f32 %v1277_v39, %v1277_v39 }
 0x900   : > { %v5349_v45 = vadd.f32 %v5348_v42, %v3302_v38  ;;  %v1278_v42 = vld [vmem:[%s6609_s19 + $0x23d0] sm:$0xff] }
 0x901   : > { %v3326_v46 = vmul.f32 %v1278_v42, %v1278_v42 }
 0x902   : > { %v5350_v48 = vadd.f32 %v5349_v45, %v3303_v41  ;;  %v1279_v45 = vld [vmem:[%s6609_s19 + $0x23d8] sm:$0xff] }
 0x903   : > { %v3327_v49 = vmul.f32 %v1279_v45, %v1279_v45 }
 0x904   : > { %v5351_v51 = vadd.f32 %v5350_v48, %v3304_v44  ;;  %v1280_v48 = vld [vmem:[%s6609_s19 + $0x23e0] sm:$0xff] }
 0x905   : > { %v3328_v52 = vmul.f32 %v1280_v48, %v1280_v48 }
 0x906   : > { %v5352_v54 = vadd.f32 %v5351_v51, %v3305_v47  ;;  %v1281_v51 = vld [vmem:[%s6609_s19 + $0x23e8] sm:$0xff] }
 0x907   : > { %v3329_v55 = vmul.f32 %v1281_v51, %v1281_v51 }
 0x908   : > { %v5353_v57 = vadd.f32 %v5352_v54, %v3306_v50  ;;  %v1282_v54 = vld [vmem:[%s6609_s19 + $0x23f0] sm:$0xff] }
 0x909   : > { %v3330_v58 = vmul.f32 %v1282_v54, %v1282_v54 }
 0x90a   : > { %v5354_v60 = vadd.f32 %v5353_v57, %v3307_v53  ;;  %v1283_v57 = vld [vmem:[%s6609_s19 + $0x23f8] sm:$0xff] }
 0x90b   : > { %v3331_v61 = vmul.f32 %v1283_v57, %v1283_v57 }
 0x90c   : > { %v5355_v63 = vadd.f32 %v5354_v60, %v3308_v56  ;;  %v1284_v60 = vld [vmem:[%s6609_s19 + $0x2400] sm:$0xff] }
 0x90d   : > { %v3332_v0 = vmul.f32 %v1284_v60, %v1284_v60 }
 0x90e   : > { %v5356_v2 = vadd.f32 %v5355_v63, %v3309_v59  ;;  %v1285_v63 = vld [vmem:[%s6609_s19 + $0x2408] sm:$0xff] }
 0x90f   : > { %v3333_v3 = vmul.f32 %v1285_v63, %v1285_v63 }
 0x910   : > { %v5357_v5 = vadd.f32 %v5356_v2, %v3310_v62  ;;  %v1286_v2 = vld [vmem:[%s6609_s19 + $0x2410] sm:$0xff] }
 0x911   : > { %v3334_v6 = vmul.f32 %v1286_v2, %v1286_v2 }
 0x912   : > { %v5358_v8 = vadd.f32 %v5357_v5, %v3311_v1  ;;  %v1287_v5 = vld [vmem:[%s6609_s19 + $0x2418] sm:$0xff] }
 0x913   : > { %v3335_v9 = vmul.f32 %v1287_v5, %v1287_v5 }
 0x914   : > { %v5359_v11 = vadd.f32 %v5358_v8, %v3312_v4  ;;  %v1288_v8 = vld [vmem:[%s6609_s19 + $0x2420] sm:$0xff] }
 0x915   : > { %v3336_v12 = vmul.f32 %v1288_v8, %v1288_v8 }
 0x916   : > { %v5360_v14 = vadd.f32 %v5359_v11, %v3313_v7  ;;  %v1289_v11 = vld [vmem:[%s6609_s19 + $0x2428] sm:$0xff] }
 0x917   : > { %v3337_v15 = vmul.f32 %v1289_v11, %v1289_v11 }
 0x918   : > { %v5361_v17 = vadd.f32 %v5360_v14, %v3314_v10  ;;  %v1290_v14 = vld [vmem:[%s6609_s19 + $0x2430] sm:$0xff] }
 0x919   : > { %v3338_v18 = vmul.f32 %v1290_v14, %v1290_v14 }
 0x91a   : > { %v5362_v20 = vadd.f32 %v5361_v17, %v3315_v13  ;;  %v1291_v17 = vld [vmem:[%s6609_s19 + $0x2438] sm:$0xff] }
 0x91b   : > { %v3339_v21 = vmul.f32 %v1291_v17, %v1291_v17 }
 0x91c   : > { %v5363_v23 = vadd.f32 %v5362_v20, %v3316_v16  ;;  %v1292_v20 = vld [vmem:[%s6609_s19 + $0x2440] sm:$0xff] }
 0x91d   : > { %v3340_v24 = vmul.f32 %v1292_v20, %v1292_v20 }
 0x91e   : > { %v5364_v26 = vadd.f32 %v5363_v23, %v3317_v19  ;;  %v1293_v23 = vld [vmem:[%s6609_s19 + $0x2448] sm:$0xff] }
 0x91f   : > { %v3341_v27 = vmul.f32 %v1293_v23, %v1293_v23 }
 0x920   : > { %v5365_v29 = vadd.f32 %v5364_v26, %v3318_v22  ;;  %v1294_v26 = vld [vmem:[%s6609_s19 + $0x2450] sm:$0xff] }
 0x921   : > { %v3342_v30 = vmul.f32 %v1294_v26, %v1294_v26 }
 0x922   : > { %v5366_v32 = vadd.f32 %v5365_v29, %v3319_v25  ;;  %v1295_v29 = vld [vmem:[%s6609_s19 + $0x2458] sm:$0xff] }
 0x923   : > { %v3343_v33 = vmul.f32 %v1295_v29, %v1295_v29 }
 0x924   : > { %v5367_v35 = vadd.f32 %v5366_v32, %v3320_v28  ;;  %v1296_v32 = vld [vmem:[%s6609_s19 + $0x2460] sm:$0xff] }
 0x925   : > { %v3344_v36 = vmul.f32 %v1296_v32, %v1296_v32 }
 0x926   : > { %v5368_v38 = vadd.f32 %v5367_v35, %v3321_v31  ;;  %v1297_v35 = vld [vmem:[%s6609_s19 + $0x2468] sm:$0xff] }
 0x927   : > { %v3345_v39 = vmul.f32 %v1297_v35, %v1297_v35 }
 0x928   : > { %v5369_v41 = vadd.f32 %v5368_v38, %v3322_v34  ;;  %v1298_v38 = vld [vmem:[%s6609_s19 + $0x2470] sm:$0xff] }
 0x929   : > { %v3346_v42 = vmul.f32 %v1298_v38, %v1298_v38 }
 0x92a   : > { %v5370_v44 = vadd.f32 %v5369_v41, %v3323_v37  ;;  %v1299_v41 = vld [vmem:[%s6609_s19 + $0x2478] sm:$0xff] }
 0x92b   : > { %v3347_v45 = vmul.f32 %v1299_v41, %v1299_v41 }
 0x92c   : > { %v5371_v47 = vadd.f32 %v5370_v44, %v3324_v40  ;;  %v1300_v44 = vld [vmem:[%s6609_s19 + $0x2480] sm:$0xff] }
 0x92d   : > { %v3348_v48 = vmul.f32 %v1300_v44, %v1300_v44 }
 0x92e   : > { %v5372_v50 = vadd.f32 %v5371_v47, %v3325_v43  ;;  %v1301_v47 = vld [vmem:[%s6609_s19 + $0x2488] sm:$0xff] }
 0x92f   : > { %v3349_v51 = vmul.f32 %v1301_v47, %v1301_v47 }
 0x930   : > { %v5373_v53 = vadd.f32 %v5372_v50, %v3326_v46  ;;  %v1302_v50 = vld [vmem:[%s6609_s19 + $0x2490] sm:$0xff] }
 0x931   : > { %v3350_v54 = vmul.f32 %v1302_v50, %v1302_v50 }
 0x932   : > { %v5374_v56 = vadd.f32 %v5373_v53, %v3327_v49  ;;  %v1303_v53 = vld [vmem:[%s6609_s19 + $0x2498] sm:$0xff] }
 0x933   : > { %v3351_v57 = vmul.f32 %v1303_v53, %v1303_v53 }
 0x934   : > { %v5375_v59 = vadd.f32 %v5374_v56, %v3328_v52  ;;  %v1304_v56 = vld [vmem:[%s6609_s19 + $0x24a0] sm:$0xff] }
 0x935   : > { %v3352_v60 = vmul.f32 %v1304_v56, %v1304_v56 }
 0x936   : > { %v5376_v62 = vadd.f32 %v5375_v59, %v3329_v55  ;;  %v1305_v59 = vld [vmem:[%s6609_s19 + $0x24a8] sm:$0xff] }
 0x937   : > { %v3353_v63 = vmul.f32 %v1305_v59, %v1305_v59 }
 0x938   : > { %v5377_v1 = vadd.f32 %v5376_v62, %v3330_v58  ;;  %v1306_v62 = vld [vmem:[%s6609_s19 + $0x24b0] sm:$0xff] }
 0x939   : > { %v3354_v2 = vmul.f32 %v1306_v62, %v1306_v62 }
 0x93a   : > { %v5378_v4 = vadd.f32 %v5377_v1, %v3331_v61  ;;  %v1307_v1 = vld [vmem:[%s6609_s19 + $0x24b8] sm:$0xff] }
 0x93b   : > { %v3355_v5 = vmul.f32 %v1307_v1, %v1307_v1 }
 0x93c   : > { %v5379_v7 = vadd.f32 %v5378_v4, %v3332_v0  ;;  %v1308_v4 = vld [vmem:[%s6609_s19 + $0x24c0] sm:$0xff] }
 0x93d   : > { %v3356_v8 = vmul.f32 %v1308_v4, %v1308_v4 }
 0x93e   : > { %v5380_v10 = vadd.f32 %v5379_v7, %v3333_v3  ;;  %v1309_v7 = vld [vmem:[%s6609_s19 + $0x24c8] sm:$0xff] }
 0x93f   : > { %v3357_v11 = vmul.f32 %v1309_v7, %v1309_v7 }
 0x940   : > { %v5381_v13 = vadd.f32 %v5380_v10, %v3334_v6  ;;  %v1310_v10 = vld [vmem:[%s6609_s19 + $0x24d0] sm:$0xff] }
 0x941   : > { %v3358_v14 = vmul.f32 %v1310_v10, %v1310_v10 }
 0x942   : > { %v5382_v16 = vadd.f32 %v5381_v13, %v3335_v9  ;;  %v1311_v13 = vld [vmem:[%s6609_s19 + $0x24d8] sm:$0xff] }
 0x943   : > { %v3359_v17 = vmul.f32 %v1311_v13, %v1311_v13 }
 0x944   : > { %v5383_v19 = vadd.f32 %v5382_v16, %v3336_v12  ;;  %v1312_v16 = vld [vmem:[%s6609_s19 + $0x24e0] sm:$0xff] }
 0x945   : > { %v3360_v20 = vmul.f32 %v1312_v16, %v1312_v16 }
 0x946   : > { %v5384_v22 = vadd.f32 %v5383_v19, %v3337_v15  ;;  %v1313_v19 = vld [vmem:[%s6609_s19 + $0x24e8] sm:$0xff] }
 0x947   : > { %v3361_v23 = vmul.f32 %v1313_v19, %v1313_v19 }
 0x948   : > { %v5385_v25 = vadd.f32 %v5384_v22, %v3338_v18  ;;  %v1314_v22 = vld [vmem:[%s6609_s19 + $0x24f0] sm:$0xff] }
 0x949   : > { %v3362_v26 = vmul.f32 %v1314_v22, %v1314_v22 }
 0x94a   : > { %v5386_v28 = vadd.f32 %v5385_v25, %v3339_v21  ;;  %v1315_v25 = vld [vmem:[%s6609_s19 + $0x24f8] sm:$0xff] }
 0x94b   : > { %v3363_v29 = vmul.f32 %v1315_v25, %v1315_v25 }
 0x94c   : > { %v5387_v31 = vadd.f32 %v5386_v28, %v3340_v24  ;;  %v1316_v28 = vld [vmem:[%s6609_s19 + $0x2500] sm:$0xff] }
 0x94d   : > { %v3364_v32 = vmul.f32 %v1316_v28, %v1316_v28 }
 0x94e   : > { %v5388_v34 = vadd.f32 %v5387_v31, %v3341_v27  ;;  %v1317_v31 = vld [vmem:[%s6609_s19 + $0x2508] sm:$0xff] }
 0x94f   : > { %v3365_v35 = vmul.f32 %v1317_v31, %v1317_v31 }
 0x950   : > { %v5389_v37 = vadd.f32 %v5388_v34, %v3342_v30  ;;  %v1318_v34 = vld [vmem:[%s6609_s19 + $0x2510] sm:$0xff] }
 0x951   : > { %v3366_v38 = vmul.f32 %v1318_v34, %v1318_v34 }
 0x952   : > { %v5390_v40 = vadd.f32 %v5389_v37, %v3343_v33  ;;  %v1319_v37 = vld [vmem:[%s6609_s19 + $0x2518] sm:$0xff] }
 0x953   : > { %v3367_v41 = vmul.f32 %v1319_v37, %v1319_v37 }
 0x954   : > { %v5391_v43 = vadd.f32 %v5390_v40, %v3344_v36  ;;  %v1320_v40 = vld [vmem:[%s6609_s19 + $0x2520] sm:$0xff] }
 0x955   : > { %v3368_v44 = vmul.f32 %v1320_v40, %v1320_v40 }
 0x956   : > { %v5392_v46 = vadd.f32 %v5391_v43, %v3345_v39  ;;  %v1321_v43 = vld [vmem:[%s6609_s19 + $0x2528] sm:$0xff] }
 0x957   : > { %v3369_v47 = vmul.f32 %v1321_v43, %v1321_v43 }
 0x958   : > { %v5393_v49 = vadd.f32 %v5392_v46, %v3346_v42  ;;  %v1322_v46 = vld [vmem:[%s6609_s19 + $0x2530] sm:$0xff] }
 0x959   : > { %v3370_v50 = vmul.f32 %v1322_v46, %v1322_v46 }
 0x95a   : > { %v5394_v52 = vadd.f32 %v5393_v49, %v3347_v45  ;;  %v1323_v49 = vld [vmem:[%s6609_s19 + $0x2538] sm:$0xff] }
 0x95b   : > { %v3371_v53 = vmul.f32 %v1323_v49, %v1323_v49 }
 0x95c   : > { %v5395_v55 = vadd.f32 %v5394_v52, %v3348_v48  ;;  %v1324_v52 = vld [vmem:[%s6609_s19 + $0x2540] sm:$0xff] }
 0x95d   : > { %v3372_v56 = vmul.f32 %v1324_v52, %v1324_v52 }
 0x95e   : > { %v5396_v58 = vadd.f32 %v5395_v55, %v3349_v51  ;;  %v1325_v55 = vld [vmem:[%s6609_s19 + $0x2548] sm:$0xff] }
 0x95f   : > { %v3373_v59 = vmul.f32 %v1325_v55, %v1325_v55 }
 0x960   : > { %v5397_v61 = vadd.f32 %v5396_v58, %v3350_v54  ;;  %v1326_v58 = vld [vmem:[%s6609_s19 + $0x2550] sm:$0xff] }
 0x961   : > { %v3374_v62 = vmul.f32 %v1326_v58, %v1326_v58 }
 0x962   : > { %v5398_v0 = vadd.f32 %v5397_v61, %v3351_v57  ;;  %v1327_v61 = vld [vmem:[%s6609_s19 + $0x2558] sm:$0xff] }
 0x963   : > { %v3375_v1 = vmul.f32 %v1327_v61, %v1327_v61 }
 0x964   : > { %v5399_v3 = vadd.f32 %v5398_v0, %v3352_v60  ;;  %v1328_v0 = vld [vmem:[%s6609_s19 + $0x2560] sm:$0xff] }
 0x965   : > { %v3376_v4 = vmul.f32 %v1328_v0, %v1328_v0 }
 0x966   : > { %v5400_v6 = vadd.f32 %v5399_v3, %v3353_v63  ;;  %v1329_v3 = vld [vmem:[%s6609_s19 + $0x2568] sm:$0xff] }
 0x967   : > { %v3377_v7 = vmul.f32 %v1329_v3, %v1329_v3 }
 0x968   : > { %v5401_v9 = vadd.f32 %v5400_v6, %v3354_v2  ;;  %v1330_v6 = vld [vmem:[%s6609_s19 + $0x2570] sm:$0xff] }
 0x969   : > { %v3378_v10 = vmul.f32 %v1330_v6, %v1330_v6 }
 0x96a   : > { %v5402_v12 = vadd.f32 %v5401_v9, %v3355_v5  ;;  %v1331_v9 = vld [vmem:[%s6609_s19 + $0x2578] sm:$0xff] }
 0x96b   : > { %v3379_v13 = vmul.f32 %v1331_v9, %v1331_v9 }
 0x96c   : > { %v5403_v15 = vadd.f32 %v5402_v12, %v3356_v8  ;;  %v1332_v12 = vld [vmem:[%s6609_s19 + $0x2580] sm:$0xff] }
 0x96d   : > { %v3380_v16 = vmul.f32 %v1332_v12, %v1332_v12 }
 0x96e   : > { %v5404_v18 = vadd.f32 %v5403_v15, %v3357_v11  ;;  %v1333_v15 = vld [vmem:[%s6609_s19 + $0x2588] sm:$0xff] }
 0x96f   : > { %v3381_v19 = vmul.f32 %v1333_v15, %v1333_v15 }
 0x970   : > { %v5405_v21 = vadd.f32 %v5404_v18, %v3358_v14  ;;  %v1334_v18 = vld [vmem:[%s6609_s19 + $0x2590] sm:$0xff] }
 0x971   : > { %v3382_v22 = vmul.f32 %v1334_v18, %v1334_v18 }
 0x972   : > { %v5406_v24 = vadd.f32 %v5405_v21, %v3359_v17  ;;  %v1335_v21 = vld [vmem:[%s6609_s19 + $0x2598] sm:$0xff] }
 0x973   : > { %v3383_v25 = vmul.f32 %v1335_v21, %v1335_v21 }
 0x974   : > { %v5407_v27 = vadd.f32 %v5406_v24, %v3360_v20  ;;  %v1336_v24 = vld [vmem:[%s6609_s19 + $0x25a0] sm:$0xff] }
 0x975   : > { %v3384_v28 = vmul.f32 %v1336_v24, %v1336_v24 }
 0x976   : > { %v5408_v30 = vadd.f32 %v5407_v27, %v3361_v23  ;;  %v1337_v27 = vld [vmem:[%s6609_s19 + $0x25a8] sm:$0xff] }
 0x977   : > { %v3385_v31 = vmul.f32 %v1337_v27, %v1337_v27 }
 0x978   : > { %v5409_v33 = vadd.f32 %v5408_v30, %v3362_v26  ;;  %v1338_v30 = vld [vmem:[%s6609_s19 + $0x25b0] sm:$0xff] }
 0x979   : > { %v3386_v34 = vmul.f32 %v1338_v30, %v1338_v30 }
 0x97a   : > { %v5410_v36 = vadd.f32 %v5409_v33, %v3363_v29  ;;  %v1339_v33 = vld [vmem:[%s6609_s19 + $0x25b8] sm:$0xff] }
 0x97b   : > { %v3387_v37 = vmul.f32 %v1339_v33, %v1339_v33 }
 0x97c   : > { %v5411_v39 = vadd.f32 %v5410_v36, %v3364_v32  ;;  %v1340_v36 = vld [vmem:[%s6609_s19 + $0x25c0] sm:$0xff] }
 0x97d   : > { %v3388_v40 = vmul.f32 %v1340_v36, %v1340_v36 }
 0x97e   : > { %v5412_v42 = vadd.f32 %v5411_v39, %v3365_v35  ;;  %v1341_v39 = vld [vmem:[%s6609_s19 + $0x25c8] sm:$0xff] }
 0x97f   : > { %v3389_v43 = vmul.f32 %v1341_v39, %v1341_v39 }
 0x980   : > { %v5413_v45 = vadd.f32 %v5412_v42, %v3366_v38  ;;  %v1342_v42 = vld [vmem:[%s6609_s19 + $0x25d0] sm:$0xff] }
 0x981   : > { %v3390_v46 = vmul.f32 %v1342_v42, %v1342_v42 }
 0x982   : > { %v5414_v48 = vadd.f32 %v5413_v45, %v3367_v41  ;;  %v1343_v45 = vld [vmem:[%s6609_s19 + $0x25d8] sm:$0xff] }
 0x983   : > { %v3391_v49 = vmul.f32 %v1343_v45, %v1343_v45 }
 0x984   : > { %v5415_v51 = vadd.f32 %v5414_v48, %v3368_v44  ;;  %v1344_v48 = vld [vmem:[%s6609_s19 + $0x25e0] sm:$0xff] }
 0x985   : > { %v3392_v52 = vmul.f32 %v1344_v48, %v1344_v48 }
 0x986   : > { %v5416_v54 = vadd.f32 %v5415_v51, %v3369_v47  ;;  %v1345_v51 = vld [vmem:[%s6609_s19 + $0x25e8] sm:$0xff] }
 0x987   : > { %v3393_v55 = vmul.f32 %v1345_v51, %v1345_v51 }
 0x988   : > { %v5417_v57 = vadd.f32 %v5416_v54, %v3370_v50  ;;  %v1346_v54 = vld [vmem:[%s6609_s19 + $0x25f0] sm:$0xff] }
 0x989   : > { %v3394_v58 = vmul.f32 %v1346_v54, %v1346_v54 }
 0x98a   : > { %v5418_v60 = vadd.f32 %v5417_v57, %v3371_v53  ;;  %v1347_v57 = vld [vmem:[%s6609_s19 + $0x25f8] sm:$0xff] }
 0x98b   : > { %v3395_v61 = vmul.f32 %v1347_v57, %v1347_v57 }
 0x98c   : > { %v5419_v63 = vadd.f32 %v5418_v60, %v3372_v56  ;;  %v1348_v60 = vld [vmem:[%s6609_s19 + $0x2600] sm:$0xff] }
 0x98d   : > { %v3396_v0 = vmul.f32 %v1348_v60, %v1348_v60 }
 0x98e   : > { %v5420_v2 = vadd.f32 %v5419_v63, %v3373_v59  ;;  %v1349_v63 = vld [vmem:[%s6609_s19 + $0x2608] sm:$0xff] }
 0x98f   : > { %v3397_v3 = vmul.f32 %v1349_v63, %v1349_v63 }
 0x990   : > { %v5421_v5 = vadd.f32 %v5420_v2, %v3374_v62  ;;  %v1350_v2 = vld [vmem:[%s6609_s19 + $0x2610] sm:$0xff] }
 0x991   : > { %v3398_v6 = vmul.f32 %v1350_v2, %v1350_v2 }
 0x992   : > { %v5422_v8 = vadd.f32 %v5421_v5, %v3375_v1  ;;  %v1351_v5 = vld [vmem:[%s6609_s19 + $0x2618] sm:$0xff] }
 0x993   : > { %v3399_v9 = vmul.f32 %v1351_v5, %v1351_v5 }
 0x994   : > { %v5423_v11 = vadd.f32 %v5422_v8, %v3376_v4  ;;  %v1352_v8 = vld [vmem:[%s6609_s19 + $0x2620] sm:$0xff] }
 0x995   : > { %v3400_v12 = vmul.f32 %v1352_v8, %v1352_v8 }
 0x996   : > { %v5424_v14 = vadd.f32 %v5423_v11, %v3377_v7  ;;  %v1353_v11 = vld [vmem:[%s6609_s19 + $0x2628] sm:$0xff] }
 0x997   : > { %v3401_v15 = vmul.f32 %v1353_v11, %v1353_v11 }
 0x998   : > { %v5425_v17 = vadd.f32 %v5424_v14, %v3378_v10  ;;  %v1354_v14 = vld [vmem:[%s6609_s19 + $0x2630] sm:$0xff] }
 0x999   : > { %v3402_v18 = vmul.f32 %v1354_v14, %v1354_v14 }
 0x99a   : > { %v5426_v20 = vadd.f32 %v5425_v17, %v3379_v13  ;;  %v1355_v17 = vld [vmem:[%s6609_s19 + $0x2638] sm:$0xff] }
 0x99b   : > { %v3403_v21 = vmul.f32 %v1355_v17, %v1355_v17 }
 0x99c   : > { %v5427_v23 = vadd.f32 %v5426_v20, %v3380_v16  ;;  %v1356_v20 = vld [vmem:[%s6609_s19 + $0x2640] sm:$0xff] }
 0x99d   : > { %v3404_v24 = vmul.f32 %v1356_v20, %v1356_v20 }
 0x99e   : > { %v5428_v26 = vadd.f32 %v5427_v23, %v3381_v19  ;;  %v1357_v23 = vld [vmem:[%s6609_s19 + $0x2648] sm:$0xff] }
 0x99f   : > { %v3405_v27 = vmul.f32 %v1357_v23, %v1357_v23 }
 0x9a0   : > { %v5429_v29 = vadd.f32 %v5428_v26, %v3382_v22  ;;  %v1358_v26 = vld [vmem:[%s6609_s19 + $0x2650] sm:$0xff] }
 0x9a1   : > { %v3406_v30 = vmul.f32 %v1358_v26, %v1358_v26 }
 0x9a2   : > { %v5430_v32 = vadd.f32 %v5429_v29, %v3383_v25  ;;  %v1359_v29 = vld [vmem:[%s6609_s19 + $0x2658] sm:$0xff] }
 0x9a3   : > { %v3407_v33 = vmul.f32 %v1359_v29, %v1359_v29 }
 0x9a4   : > { %v5431_v35 = vadd.f32 %v5430_v32, %v3384_v28  ;;  %v1360_v32 = vld [vmem:[%s6609_s19 + $0x2660] sm:$0xff] }
 0x9a5   : > { %v3408_v36 = vmul.f32 %v1360_v32, %v1360_v32 }
 0x9a6   : > { %v5432_v38 = vadd.f32 %v5431_v35, %v3385_v31  ;;  %v1361_v35 = vld [vmem:[%s6609_s19 + $0x2668] sm:$0xff] }
 0x9a7   : > { %v3409_v39 = vmul.f32 %v1361_v35, %v1361_v35 }
 0x9a8   : > { %v5433_v41 = vadd.f32 %v5432_v38, %v3386_v34  ;;  %v1362_v38 = vld [vmem:[%s6609_s19 + $0x2670] sm:$0xff] }
 0x9a9   : > { %v3410_v42 = vmul.f32 %v1362_v38, %v1362_v38 }
 0x9aa   : > { %v5434_v44 = vadd.f32 %v5433_v41, %v3387_v37  ;;  %v1363_v41 = vld [vmem:[%s6609_s19 + $0x2678] sm:$0xff] }
 0x9ab   : > { %v3411_v45 = vmul.f32 %v1363_v41, %v1363_v41 }
 0x9ac   : > { %v5435_v47 = vadd.f32 %v5434_v44, %v3388_v40  ;;  %v1364_v44 = vld [vmem:[%s6609_s19 + $0x2680] sm:$0xff] }
 0x9ad   : > { %v3412_v48 = vmul.f32 %v1364_v44, %v1364_v44 }
 0x9ae   : > { %v5436_v50 = vadd.f32 %v5435_v47, %v3389_v43  ;;  %v1365_v47 = vld [vmem:[%s6609_s19 + $0x2688] sm:$0xff] }
 0x9af   : > { %v3413_v51 = vmul.f32 %v1365_v47, %v1365_v47 }
 0x9b0   : > { %v5437_v53 = vadd.f32 %v5436_v50, %v3390_v46  ;;  %v1366_v50 = vld [vmem:[%s6609_s19 + $0x2690] sm:$0xff] }
 0x9b1   : > { %v3414_v54 = vmul.f32 %v1366_v50, %v1366_v50 }
 0x9b2   : > { %v5438_v56 = vadd.f32 %v5437_v53, %v3391_v49  ;;  %v1367_v53 = vld [vmem:[%s6609_s19 + $0x2698] sm:$0xff] }
 0x9b3   : > { %v3415_v57 = vmul.f32 %v1367_v53, %v1367_v53 }
 0x9b4   : > { %v5439_v59 = vadd.f32 %v5438_v56, %v3392_v52  ;;  %v1368_v56 = vld [vmem:[%s6609_s19 + $0x26a0] sm:$0xff] }
 0x9b5   : > { %v3416_v60 = vmul.f32 %v1368_v56, %v1368_v56 }
 0x9b6   : > { %v5440_v62 = vadd.f32 %v5439_v59, %v3393_v55  ;;  %v1369_v59 = vld [vmem:[%s6609_s19 + $0x26a8] sm:$0xff] }
 0x9b7   : > { %v3417_v63 = vmul.f32 %v1369_v59, %v1369_v59 }
 0x9b8   : > { %v5441_v1 = vadd.f32 %v5440_v62, %v3394_v58  ;;  %v1370_v62 = vld [vmem:[%s6609_s19 + $0x26b0] sm:$0xff] }
 0x9b9   : > { %v3418_v2 = vmul.f32 %v1370_v62, %v1370_v62 }
 0x9ba   : > { %v5442_v4 = vadd.f32 %v5441_v1, %v3395_v61  ;;  %v1371_v1 = vld [vmem:[%s6609_s19 + $0x26b8] sm:$0xff] }
 0x9bb   : > { %v3419_v5 = vmul.f32 %v1371_v1, %v1371_v1 }
 0x9bc   : > { %v5443_v7 = vadd.f32 %v5442_v4, %v3396_v0  ;;  %v1372_v4 = vld [vmem:[%s6609_s19 + $0x26c0] sm:$0xff] }
 0x9bd   : > { %v3420_v8 = vmul.f32 %v1372_v4, %v1372_v4 }
 0x9be   : > { %v5444_v10 = vadd.f32 %v5443_v7, %v3397_v3  ;;  %v1373_v7 = vld [vmem:[%s6609_s19 + $0x26c8] sm:$0xff] }
 0x9bf   : > { %v3421_v11 = vmul.f32 %v1373_v7, %v1373_v7 }
 0x9c0   : > { %v5445_v13 = vadd.f32 %v5444_v10, %v3398_v6  ;;  %v1374_v10 = vld [vmem:[%s6609_s19 + $0x26d0] sm:$0xff] }
 0x9c1   : > { %v3422_v14 = vmul.f32 %v1374_v10, %v1374_v10 }
 0x9c2   : > { %v5446_v16 = vadd.f32 %v5445_v13, %v3399_v9  ;;  %v1375_v13 = vld [vmem:[%s6609_s19 + $0x26d8] sm:$0xff] }
 0x9c3   : > { %v3423_v17 = vmul.f32 %v1375_v13, %v1375_v13 }
 0x9c4   : > { %v5447_v19 = vadd.f32 %v5446_v16, %v3400_v12  ;;  %v1376_v16 = vld [vmem:[%s6609_s19 + $0x26e0] sm:$0xff] }
 0x9c5   : > { %v3424_v20 = vmul.f32 %v1376_v16, %v1376_v16 }
 0x9c6   : > { %v5448_v22 = vadd.f32 %v5447_v19, %v3401_v15  ;;  %v1377_v19 = vld [vmem:[%s6609_s19 + $0x26e8] sm:$0xff] }
 0x9c7   : > { %v3425_v23 = vmul.f32 %v1377_v19, %v1377_v19 }
 0x9c8   : > { %v5449_v25 = vadd.f32 %v5448_v22, %v3402_v18  ;;  %v1378_v22 = vld [vmem:[%s6609_s19 + $0x26f0] sm:$0xff] }
 0x9c9   : > { %v3426_v26 = vmul.f32 %v1378_v22, %v1378_v22 }
 0x9ca   : > { %v5450_v28 = vadd.f32 %v5449_v25, %v3403_v21  ;;  %v1379_v25 = vld [vmem:[%s6609_s19 + $0x26f8] sm:$0xff] }
 0x9cb   : > { %v3427_v29 = vmul.f32 %v1379_v25, %v1379_v25 }
 0x9cc   : > { %v5451_v31 = vadd.f32 %v5450_v28, %v3404_v24  ;;  %v1380_v28 = vld [vmem:[%s6609_s19 + $0x2700] sm:$0xff] }
 0x9cd   : > { %v3428_v32 = vmul.f32 %v1380_v28, %v1380_v28 }
 0x9ce   : > { %v5452_v34 = vadd.f32 %v5451_v31, %v3405_v27  ;;  %v1381_v31 = vld [vmem:[%s6609_s19 + $0x2708] sm:$0xff] }
 0x9cf   : > { %v3429_v35 = vmul.f32 %v1381_v31, %v1381_v31 }
 0x9d0   : > { %v5453_v37 = vadd.f32 %v5452_v34, %v3406_v30  ;;  %v1382_v34 = vld [vmem:[%s6609_s19 + $0x2710] sm:$0xff] }
 0x9d1   : > { %v3430_v38 = vmul.f32 %v1382_v34, %v1382_v34 }
 0x9d2   : > { %v5454_v40 = vadd.f32 %v5453_v37, %v3407_v33  ;;  %v1383_v37 = vld [vmem:[%s6609_s19 + $0x2718] sm:$0xff] }
 0x9d3   : > { %v3431_v41 = vmul.f32 %v1383_v37, %v1383_v37 }
 0x9d4   : > { %v5455_v43 = vadd.f32 %v5454_v40, %v3408_v36  ;;  %v1384_v40 = vld [vmem:[%s6609_s19 + $0x2720] sm:$0xff] }
 0x9d5   : > { %v3432_v44 = vmul.f32 %v1384_v40, %v1384_v40 }
 0x9d6   : > { %v5456_v46 = vadd.f32 %v5455_v43, %v3409_v39  ;;  %v1385_v43 = vld [vmem:[%s6609_s19 + $0x2728] sm:$0xff] }
 0x9d7   : > { %v3433_v47 = vmul.f32 %v1385_v43, %v1385_v43 }
 0x9d8   : > { %v5457_v49 = vadd.f32 %v5456_v46, %v3410_v42  ;;  %v1386_v46 = vld [vmem:[%s6609_s19 + $0x2730] sm:$0xff] }
 0x9d9   : > { %v3434_v50 = vmul.f32 %v1386_v46, %v1386_v46 }
 0x9da   : > { %v5458_v52 = vadd.f32 %v5457_v49, %v3411_v45  ;;  %v1387_v49 = vld [vmem:[%s6609_s19 + $0x2738] sm:$0xff] }
 0x9db   : > { %v3435_v53 = vmul.f32 %v1387_v49, %v1387_v49 }
 0x9dc   : > { %v5459_v55 = vadd.f32 %v5458_v52, %v3412_v48  ;;  %v1388_v52 = vld [vmem:[%s6609_s19 + $0x2740] sm:$0xff] }
 0x9dd   : > { %v3436_v56 = vmul.f32 %v1388_v52, %v1388_v52 }
 0x9de   : > { %v5460_v58 = vadd.f32 %v5459_v55, %v3413_v51  ;;  %v1389_v55 = vld [vmem:[%s6609_s19 + $0x2748] sm:$0xff] }
 0x9df   : > { %v3437_v59 = vmul.f32 %v1389_v55, %v1389_v55 }
 0x9e0   : > { %v5461_v61 = vadd.f32 %v5460_v58, %v3414_v54  ;;  %v1390_v58 = vld [vmem:[%s6609_s19 + $0x2750] sm:$0xff] }
 0x9e1   : > { %v3438_v62 = vmul.f32 %v1390_v58, %v1390_v58 }
 0x9e2   : > { %v5462_v0 = vadd.f32 %v5461_v61, %v3415_v57  ;;  %v1391_v61 = vld [vmem:[%s6609_s19 + $0x2758] sm:$0xff] }
 0x9e3   : > { %v3439_v1 = vmul.f32 %v1391_v61, %v1391_v61 }
 0x9e4   : > { %v5463_v3 = vadd.f32 %v5462_v0, %v3416_v60  ;;  %v1392_v0 = vld [vmem:[%s6609_s19 + $0x2760] sm:$0xff] }
 0x9e5   : > { %v3440_v4 = vmul.f32 %v1392_v0, %v1392_v0 }
 0x9e6   : > { %v5464_v6 = vadd.f32 %v5463_v3, %v3417_v63  ;;  %v1393_v3 = vld [vmem:[%s6609_s19 + $0x2768] sm:$0xff] }
 0x9e7   : > { %v3441_v7 = vmul.f32 %v1393_v3, %v1393_v3 }
 0x9e8   : > { %v5465_v9 = vadd.f32 %v5464_v6, %v3418_v2  ;;  %v1394_v6 = vld [vmem:[%s6609_s19 + $0x2770] sm:$0xff] }
 0x9e9   : > { %v3442_v10 = vmul.f32 %v1394_v6, %v1394_v6 }
 0x9ea   : > { %v5466_v12 = vadd.f32 %v5465_v9, %v3419_v5  ;;  %v1395_v9 = vld [vmem:[%s6609_s19 + $0x2778] sm:$0xff] }
 0x9eb   : > { %v3443_v13 = vmul.f32 %v1395_v9, %v1395_v9 }
 0x9ec   : > { %v5467_v15 = vadd.f32 %v5466_v12, %v3420_v8  ;;  %v1396_v12 = vld [vmem:[%s6609_s19 + $0x2780] sm:$0xff] }
 0x9ed   : > { %v3444_v16 = vmul.f32 %v1396_v12, %v1396_v12 }
 0x9ee   : > { %v5468_v18 = vadd.f32 %v5467_v15, %v3421_v11  ;;  %v1397_v15 = vld [vmem:[%s6609_s19 + $0x2788] sm:$0xff] }
 0x9ef   : > { %v3445_v19 = vmul.f32 %v1397_v15, %v1397_v15 }
 0x9f0   : > { %v5469_v21 = vadd.f32 %v5468_v18, %v3422_v14  ;;  %v1398_v18 = vld [vmem:[%s6609_s19 + $0x2790] sm:$0xff] }
 0x9f1   : > { %v3446_v22 = vmul.f32 %v1398_v18, %v1398_v18 }
 0x9f2   : > { %v5470_v24 = vadd.f32 %v5469_v21, %v3423_v17  ;;  %v1399_v21 = vld [vmem:[%s6609_s19 + $0x2798] sm:$0xff] }
 0x9f3   : > { %v3447_v25 = vmul.f32 %v1399_v21, %v1399_v21 }
 0x9f4   : > { %v5471_v27 = vadd.f32 %v5470_v24, %v3424_v20  ;;  %v1400_v24 = vld [vmem:[%s6609_s19 + $0x27a0] sm:$0xff] }
 0x9f5   : > { %v3448_v28 = vmul.f32 %v1400_v24, %v1400_v24 }
 0x9f6   : > { %v5472_v30 = vadd.f32 %v5471_v27, %v3425_v23  ;;  %v1401_v27 = vld [vmem:[%s6609_s19 + $0x27a8] sm:$0xff] }
 0x9f7   : > { %v3449_v31 = vmul.f32 %v1401_v27, %v1401_v27 }
 0x9f8   : > { %v5473_v33 = vadd.f32 %v5472_v30, %v3426_v26  ;;  %v1402_v30 = vld [vmem:[%s6609_s19 + $0x27b0] sm:$0xff] }
 0x9f9   : > { %v3450_v34 = vmul.f32 %v1402_v30, %v1402_v30 }
 0x9fa   : > { %v5474_v36 = vadd.f32 %v5473_v33, %v3427_v29  ;;  %v1403_v33 = vld [vmem:[%s6609_s19 + $0x27b8] sm:$0xff] }
 0x9fb   : > { %v3451_v37 = vmul.f32 %v1403_v33, %v1403_v33 }
 0x9fc   : > { %v5475_v39 = vadd.f32 %v5474_v36, %v3428_v32  ;;  %v1404_v36 = vld [vmem:[%s6609_s19 + $0x27c0] sm:$0xff] }
 0x9fd   : > { %v3452_v40 = vmul.f32 %v1404_v36, %v1404_v36 }
 0x9fe   : > { %v5476_v42 = vadd.f32 %v5475_v39, %v3429_v35  ;;  %v1405_v39 = vld [vmem:[%s6609_s19 + $0x27c8] sm:$0xff] }
 0x9ff   : > { %v3453_v43 = vmul.f32 %v1405_v39, %v1405_v39 }
 0xa00   : > { %v5477_v45 = vadd.f32 %v5476_v42, %v3430_v38  ;;  %v1406_v42 = vld [vmem:[%s6609_s19 + $0x27d0] sm:$0xff] }
 0xa01   : > { %v3454_v46 = vmul.f32 %v1406_v42, %v1406_v42 }
 0xa02   : > { %v5478_v48 = vadd.f32 %v5477_v45, %v3431_v41  ;;  %v1407_v45 = vld [vmem:[%s6609_s19 + $0x27d8] sm:$0xff] }
 0xa03   : > { %v3455_v49 = vmul.f32 %v1407_v45, %v1407_v45 }
 0xa04   : > { %v5479_v51 = vadd.f32 %v5478_v48, %v3432_v44  ;;  %v1408_v48 = vld [vmem:[%s6609_s19 + $0x27e0] sm:$0xff] }
 0xa05   : > { %v3456_v52 = vmul.f32 %v1408_v48, %v1408_v48 }
 0xa06   : > { %v5480_v54 = vadd.f32 %v5479_v51, %v3433_v47  ;;  %v1409_v51 = vld [vmem:[%s6609_s19 + $0x27e8] sm:$0xff] }
 0xa07   : > { %v3457_v55 = vmul.f32 %v1409_v51, %v1409_v51 }
 0xa08   : > { %v5481_v57 = vadd.f32 %v5480_v54, %v3434_v50  ;;  %v1410_v54 = vld [vmem:[%s6609_s19 + $0x27f0] sm:$0xff] }
 0xa09   : > { %v3458_v58 = vmul.f32 %v1410_v54, %v1410_v54 }
 0xa0a   : > { %v5482_v60 = vadd.f32 %v5481_v57, %v3435_v53  ;;  %v1411_v57 = vld [vmem:[%s6609_s19 + $0x27f8] sm:$0xff] }
 0xa0b   : > { %v3459_v61 = vmul.f32 %v1411_v57, %v1411_v57 }
 0xa0c   : > { %v5483_v63 = vadd.f32 %v5482_v60, %v3436_v56  ;;  %v1412_v60 = vld [vmem:[%s6609_s19 + $0x2800] sm:$0xff] }
 0xa0d   : > { %v3460_v0 = vmul.f32 %v1412_v60, %v1412_v60 }
 0xa0e   : > { %v5484_v2 = vadd.f32 %v5483_v63, %v3437_v59  ;;  %v1413_v63 = vld [vmem:[%s6609_s19 + $0x2808] sm:$0xff] }
 0xa0f   : > { %v3461_v3 = vmul.f32 %v1413_v63, %v1413_v63 }
 0xa10   : > { %v5485_v5 = vadd.f32 %v5484_v2, %v3438_v62  ;;  %v1414_v2 = vld [vmem:[%s6609_s19 + $0x2810] sm:$0xff] }
 0xa11   : > { %v3462_v6 = vmul.f32 %v1414_v2, %v1414_v2 }
 0xa12   : > { %v5486_v8 = vadd.f32 %v5485_v5, %v3439_v1  ;;  %v1415_v5 = vld [vmem:[%s6609_s19 + $0x2818] sm:$0xff] }
 0xa13   : > { %v3463_v9 = vmul.f32 %v1415_v5, %v1415_v5 }
 0xa14   : > { %v5487_v11 = vadd.f32 %v5486_v8, %v3440_v4  ;;  %v1416_v8 = vld [vmem:[%s6609_s19 + $0x2820] sm:$0xff] }
 0xa15   : > { %v3464_v12 = vmul.f32 %v1416_v8, %v1416_v8 }
 0xa16   : > { %v5488_v14 = vadd.f32 %v5487_v11, %v3441_v7  ;;  %v1417_v11 = vld [vmem:[%s6609_s19 + $0x2828] sm:$0xff] }
 0xa17   : > { %v3465_v15 = vmul.f32 %v1417_v11, %v1417_v11 }
 0xa18   : > { %v5489_v17 = vadd.f32 %v5488_v14, %v3442_v10  ;;  %v1418_v14 = vld [vmem:[%s6609_s19 + $0x2830] sm:$0xff] }
 0xa19   : > { %v3466_v18 = vmul.f32 %v1418_v14, %v1418_v14 }
 0xa1a   : > { %v5490_v20 = vadd.f32 %v5489_v17, %v3443_v13  ;;  %v1419_v17 = vld [vmem:[%s6609_s19 + $0x2838] sm:$0xff] }
 0xa1b   : > { %v3467_v21 = vmul.f32 %v1419_v17, %v1419_v17 }
 0xa1c   : > { %v5491_v23 = vadd.f32 %v5490_v20, %v3444_v16  ;;  %v1420_v20 = vld [vmem:[%s6609_s19 + $0x2840] sm:$0xff] }
 0xa1d   : > { %v3468_v24 = vmul.f32 %v1420_v20, %v1420_v20 }
 0xa1e   : > { %v5492_v26 = vadd.f32 %v5491_v23, %v3445_v19  ;;  %v1421_v23 = vld [vmem:[%s6609_s19 + $0x2848] sm:$0xff] }
 0xa1f   : > { %v3469_v27 = vmul.f32 %v1421_v23, %v1421_v23 }
 0xa20   : > { %v5493_v29 = vadd.f32 %v5492_v26, %v3446_v22  ;;  %v1422_v26 = vld [vmem:[%s6609_s19 + $0x2850] sm:$0xff] }
 0xa21   : > { %v3470_v30 = vmul.f32 %v1422_v26, %v1422_v26 }
 0xa22   : > { %v5494_v32 = vadd.f32 %v5493_v29, %v3447_v25  ;;  %v1423_v29 = vld [vmem:[%s6609_s19 + $0x2858] sm:$0xff] }
 0xa23   : > { %v3471_v33 = vmul.f32 %v1423_v29, %v1423_v29 }
 0xa24   : > { %v5495_v35 = vadd.f32 %v5494_v32, %v3448_v28  ;;  %v1424_v32 = vld [vmem:[%s6609_s19 + $0x2860] sm:$0xff] }
 0xa25   : > { %v3472_v36 = vmul.f32 %v1424_v32, %v1424_v32 }
 0xa26   : > { %v5496_v38 = vadd.f32 %v5495_v35, %v3449_v31  ;;  %v1425_v35 = vld [vmem:[%s6609_s19 + $0x2868] sm:$0xff] }
 0xa27   : > { %v3473_v39 = vmul.f32 %v1425_v35, %v1425_v35 }
 0xa28   : > { %v5497_v41 = vadd.f32 %v5496_v38, %v3450_v34  ;;  %v1426_v38 = vld [vmem:[%s6609_s19 + $0x2870] sm:$0xff] }
 0xa29   : > { %v3474_v42 = vmul.f32 %v1426_v38, %v1426_v38 }
 0xa2a   : > { %v5498_v44 = vadd.f32 %v5497_v41, %v3451_v37  ;;  %v1427_v41 = vld [vmem:[%s6609_s19 + $0x2878] sm:$0xff] }
 0xa2b   : > { %v3475_v45 = vmul.f32 %v1427_v41, %v1427_v41 }
 0xa2c   : > { %v5499_v47 = vadd.f32 %v5498_v44, %v3452_v40  ;;  %v1428_v44 = vld [vmem:[%s6609_s19 + $0x2880] sm:$0xff] }
 0xa2d   : > { %v3476_v48 = vmul.f32 %v1428_v44, %v1428_v44 }
 0xa2e   : > { %v5500_v50 = vadd.f32 %v5499_v47, %v3453_v43  ;;  %v1429_v47 = vld [vmem:[%s6609_s19 + $0x2888] sm:$0xff] }
 0xa2f   : > { %v3477_v51 = vmul.f32 %v1429_v47, %v1429_v47 }
 0xa30   : > { %v5501_v53 = vadd.f32 %v5500_v50, %v3454_v46  ;;  %v1430_v50 = vld [vmem:[%s6609_s19 + $0x2890] sm:$0xff] }
 0xa31   : > { %v3478_v54 = vmul.f32 %v1430_v50, %v1430_v50 }
 0xa32   : > { %v5502_v56 = vadd.f32 %v5501_v53, %v3455_v49  ;;  %v1431_v53 = vld [vmem:[%s6609_s19 + $0x2898] sm:$0xff] }
 0xa33   : > { %v3479_v57 = vmul.f32 %v1431_v53, %v1431_v53 }
 0xa34   : > { %v5503_v59 = vadd.f32 %v5502_v56, %v3456_v52  ;;  %v1432_v56 = vld [vmem:[%s6609_s19 + $0x28a0] sm:$0xff] }
 0xa35   : > { %v3480_v60 = vmul.f32 %v1432_v56, %v1432_v56 }
 0xa36   : > { %v5504_v62 = vadd.f32 %v5503_v59, %v3457_v55  ;;  %v1433_v59 = vld [vmem:[%s6609_s19 + $0x28a8] sm:$0xff] }
 0xa37   : > { %v3481_v63 = vmul.f32 %v1433_v59, %v1433_v59 }
 0xa38   : > { %v5505_v1 = vadd.f32 %v5504_v62, %v3458_v58  ;;  %v1434_v62 = vld [vmem:[%s6609_s19 + $0x28b0] sm:$0xff] }
 0xa39   : > { %v3482_v2 = vmul.f32 %v1434_v62, %v1434_v62 }
 0xa3a   : > { %v5506_v4 = vadd.f32 %v5505_v1, %v3459_v61  ;;  %v1435_v1 = vld [vmem:[%s6609_s19 + $0x28b8] sm:$0xff] }
 0xa3b   : > { %v3483_v5 = vmul.f32 %v1435_v1, %v1435_v1 }
 0xa3c   : > { %v5507_v7 = vadd.f32 %v5506_v4, %v3460_v0  ;;  %v1436_v4 = vld [vmem:[%s6609_s19 + $0x28c0] sm:$0xff] }
 0xa3d   : > { %v3484_v8 = vmul.f32 %v1436_v4, %v1436_v4 }
 0xa3e   : > { %v5508_v10 = vadd.f32 %v5507_v7, %v3461_v3  ;;  %v1437_v7 = vld [vmem:[%s6609_s19 + $0x28c8] sm:$0xff] }
 0xa3f   : > { %v3485_v11 = vmul.f32 %v1437_v7, %v1437_v7 }
 0xa40   : > { %v5509_v13 = vadd.f32 %v5508_v10, %v3462_v6  ;;  %v1438_v10 = vld [vmem:[%s6609_s19 + $0x28d0] sm:$0xff] }
 0xa41   : > { %v3486_v14 = vmul.f32 %v1438_v10, %v1438_v10 }
 0xa42   : > { %v5510_v16 = vadd.f32 %v5509_v13, %v3463_v9  ;;  %v1439_v13 = vld [vmem:[%s6609_s19 + $0x28d8] sm:$0xff] }
 0xa43   : > { %v3487_v17 = vmul.f32 %v1439_v13, %v1439_v13 }
 0xa44   : > { %v5511_v19 = vadd.f32 %v5510_v16, %v3464_v12  ;;  %v1440_v16 = vld [vmem:[%s6609_s19 + $0x28e0] sm:$0xff] }
 0xa45   : > { %v3488_v20 = vmul.f32 %v1440_v16, %v1440_v16 }
 0xa46   : > { %v5512_v22 = vadd.f32 %v5511_v19, %v3465_v15  ;;  %v1441_v19 = vld [vmem:[%s6609_s19 + $0x28e8] sm:$0xff] }
 0xa47   : > { %v3489_v23 = vmul.f32 %v1441_v19, %v1441_v19 }
 0xa48   : > { %v5513_v25 = vadd.f32 %v5512_v22, %v3466_v18  ;;  %v1442_v22 = vld [vmem:[%s6609_s19 + $0x28f0] sm:$0xff] }
 0xa49   : > { %v3490_v26 = vmul.f32 %v1442_v22, %v1442_v22 }
 0xa4a   : > { %v5514_v28 = vadd.f32 %v5513_v25, %v3467_v21  ;;  %v1443_v25 = vld [vmem:[%s6609_s19 + $0x28f8] sm:$0xff] }
 0xa4b   : > { %v3491_v29 = vmul.f32 %v1443_v25, %v1443_v25 }
 0xa4c   : > { %v5515_v31 = vadd.f32 %v5514_v28, %v3468_v24  ;;  %v1444_v28 = vld [vmem:[%s6609_s19 + $0x2900] sm:$0xff] }
 0xa4d   : > { %v3492_v32 = vmul.f32 %v1444_v28, %v1444_v28 }
 0xa4e   : > { %v5516_v34 = vadd.f32 %v5515_v31, %v3469_v27  ;;  %v1445_v31 = vld [vmem:[%s6609_s19 + $0x2908] sm:$0xff] }
 0xa4f   : > { %v3493_v35 = vmul.f32 %v1445_v31, %v1445_v31 }
 0xa50   : > { %v5517_v37 = vadd.f32 %v5516_v34, %v3470_v30  ;;  %v1446_v34 = vld [vmem:[%s6609_s19 + $0x2910] sm:$0xff] }
 0xa51   : > { %v3494_v38 = vmul.f32 %v1446_v34, %v1446_v34 }
 0xa52   : > { %v5518_v40 = vadd.f32 %v5517_v37, %v3471_v33  ;;  %v1447_v37 = vld [vmem:[%s6609_s19 + $0x2918] sm:$0xff] }
 0xa53   : > { %v3495_v41 = vmul.f32 %v1447_v37, %v1447_v37 }
 0xa54   : > { %v5519_v43 = vadd.f32 %v5518_v40, %v3472_v36  ;;  %v1448_v40 = vld [vmem:[%s6609_s19 + $0x2920] sm:$0xff] }
 0xa55   : > { %v3496_v44 = vmul.f32 %v1448_v40, %v1448_v40 }
 0xa56   : > { %v5520_v46 = vadd.f32 %v5519_v43, %v3473_v39  ;;  %v1449_v43 = vld [vmem:[%s6609_s19 + $0x2928] sm:$0xff] }
 0xa57   : > { %v3497_v47 = vmul.f32 %v1449_v43, %v1449_v43 }
 0xa58   : > { %v5521_v49 = vadd.f32 %v5520_v46, %v3474_v42  ;;  %v1450_v46 = vld [vmem:[%s6609_s19 + $0x2930] sm:$0xff] }
 0xa59   : > { %v3498_v50 = vmul.f32 %v1450_v46, %v1450_v46 }
 0xa5a   : > { %v5522_v52 = vadd.f32 %v5521_v49, %v3475_v45  ;;  %v1451_v49 = vld [vmem:[%s6609_s19 + $0x2938] sm:$0xff] }
 0xa5b   : > { %v3499_v53 = vmul.f32 %v1451_v49, %v1451_v49 }
 0xa5c   : > { %v5523_v55 = vadd.f32 %v5522_v52, %v3476_v48  ;;  %v1452_v52 = vld [vmem:[%s6609_s19 + $0x2940] sm:$0xff] }
 0xa5d   : > { %v3500_v56 = vmul.f32 %v1452_v52, %v1452_v52 }
 0xa5e   : > { %v5524_v58 = vadd.f32 %v5523_v55, %v3477_v51  ;;  %v1453_v55 = vld [vmem:[%s6609_s19 + $0x2948] sm:$0xff] }
 0xa5f   : > { %v3501_v59 = vmul.f32 %v1453_v55, %v1453_v55 }
 0xa60   : > { %v5525_v61 = vadd.f32 %v5524_v58, %v3478_v54  ;;  %v1454_v58 = vld [vmem:[%s6609_s19 + $0x2950] sm:$0xff] }
 0xa61   : > { %v3502_v62 = vmul.f32 %v1454_v58, %v1454_v58 }
 0xa62   : > { %v5526_v0 = vadd.f32 %v5525_v61, %v3479_v57  ;;  %v1455_v61 = vld [vmem:[%s6609_s19 + $0x2958] sm:$0xff] }
 0xa63   : > { %v3503_v1 = vmul.f32 %v1455_v61, %v1455_v61 }
 0xa64   : > { %v5527_v3 = vadd.f32 %v5526_v0, %v3480_v60  ;;  %v1456_v0 = vld [vmem:[%s6609_s19 + $0x2960] sm:$0xff] }
 0xa65   : > { %v3504_v4 = vmul.f32 %v1456_v0, %v1456_v0 }
 0xa66   : > { %v5528_v6 = vadd.f32 %v5527_v3, %v3481_v63  ;;  %v1457_v3 = vld [vmem:[%s6609_s19 + $0x2968] sm:$0xff] }
 0xa67   : > { %v3505_v7 = vmul.f32 %v1457_v3, %v1457_v3 }
 0xa68   : > { %v5529_v9 = vadd.f32 %v5528_v6, %v3482_v2  ;;  %v1458_v6 = vld [vmem:[%s6609_s19 + $0x2970] sm:$0xff] }
 0xa69   : > { %v3506_v10 = vmul.f32 %v1458_v6, %v1458_v6 }
 0xa6a   : > { %v5530_v12 = vadd.f32 %v5529_v9, %v3483_v5  ;;  %v1459_v9 = vld [vmem:[%s6609_s19 + $0x2978] sm:$0xff] }
 0xa6b   : > { %v3507_v13 = vmul.f32 %v1459_v9, %v1459_v9 }
 0xa6c   : > { %v5531_v15 = vadd.f32 %v5530_v12, %v3484_v8  ;;  %v1460_v12 = vld [vmem:[%s6609_s19 + $0x2980] sm:$0xff] }
 0xa6d   : > { %v3508_v16 = vmul.f32 %v1460_v12, %v1460_v12 }
 0xa6e   : > { %v5532_v18 = vadd.f32 %v5531_v15, %v3485_v11  ;;  %v1461_v15 = vld [vmem:[%s6609_s19 + $0x2988] sm:$0xff] }
 0xa6f   : > { %v3509_v19 = vmul.f32 %v1461_v15, %v1461_v15 }
 0xa70   : > { %v5533_v21 = vadd.f32 %v5532_v18, %v3486_v14  ;;  %v1462_v18 = vld [vmem:[%s6609_s19 + $0x2990] sm:$0xff] }
 0xa71   : > { %v3510_v22 = vmul.f32 %v1462_v18, %v1462_v18 }
 0xa72   : > { %v5534_v24 = vadd.f32 %v5533_v21, %v3487_v17  ;;  %v1463_v21 = vld [vmem:[%s6609_s19 + $0x2998] sm:$0xff] }
 0xa73   : > { %v3511_v25 = vmul.f32 %v1463_v21, %v1463_v21 }
 0xa74   : > { %v5535_v27 = vadd.f32 %v5534_v24, %v3488_v20  ;;  %v1464_v24 = vld [vmem:[%s6609_s19 + $0x29a0] sm:$0xff] }
 0xa75   : > { %v3512_v28 = vmul.f32 %v1464_v24, %v1464_v24 }
 0xa76   : > { %v5536_v30 = vadd.f32 %v5535_v27, %v3489_v23  ;;  %v1465_v27 = vld [vmem:[%s6609_s19 + $0x29a8] sm:$0xff] }
 0xa77   : > { %v3513_v31 = vmul.f32 %v1465_v27, %v1465_v27 }
 0xa78   : > { %v5537_v33 = vadd.f32 %v5536_v30, %v3490_v26  ;;  %v1466_v30 = vld [vmem:[%s6609_s19 + $0x29b0] sm:$0xff] }
 0xa79   : > { %v3514_v34 = vmul.f32 %v1466_v30, %v1466_v30 }
 0xa7a   : > { %v5538_v36 = vadd.f32 %v5537_v33, %v3491_v29  ;;  %v1467_v33 = vld [vmem:[%s6609_s19 + $0x29b8] sm:$0xff] }
 0xa7b   : > { %v3515_v37 = vmul.f32 %v1467_v33, %v1467_v33 }
 0xa7c   : > { %v5539_v39 = vadd.f32 %v5538_v36, %v3492_v32  ;;  %v1468_v36 = vld [vmem:[%s6609_s19 + $0x29c0] sm:$0xff] }
 0xa7d   : > { %v3516_v40 = vmul.f32 %v1468_v36, %v1468_v36 }
 0xa7e   : > { %v5540_v42 = vadd.f32 %v5539_v39, %v3493_v35  ;;  %v1469_v39 = vld [vmem:[%s6609_s19 + $0x29c8] sm:$0xff] }
 0xa7f   : > { %v3517_v43 = vmul.f32 %v1469_v39, %v1469_v39 }
 0xa80   : > { %v5541_v45 = vadd.f32 %v5540_v42, %v3494_v38  ;;  %v1470_v42 = vld [vmem:[%s6609_s19 + $0x29d0] sm:$0xff] }
 0xa81   : > { %v3518_v46 = vmul.f32 %v1470_v42, %v1470_v42 }
 0xa82   : > { %v5542_v48 = vadd.f32 %v5541_v45, %v3495_v41  ;;  %v1471_v45 = vld [vmem:[%s6609_s19 + $0x29d8] sm:$0xff] }
 0xa83   : > { %v3519_v49 = vmul.f32 %v1471_v45, %v1471_v45 }
 0xa84   : > { %v5543_v51 = vadd.f32 %v5542_v48, %v3496_v44  ;;  %v1472_v48 = vld [vmem:[%s6609_s19 + $0x29e0] sm:$0xff] }
 0xa85   : > { %v3520_v52 = vmul.f32 %v1472_v48, %v1472_v48 }
 0xa86   : > { %v5544_v54 = vadd.f32 %v5543_v51, %v3497_v47  ;;  %v1473_v51 = vld [vmem:[%s6609_s19 + $0x29e8] sm:$0xff] }
 0xa87   : > { %v3521_v55 = vmul.f32 %v1473_v51, %v1473_v51 }
 0xa88   : > { %v5545_v57 = vadd.f32 %v5544_v54, %v3498_v50  ;;  %v1474_v54 = vld [vmem:[%s6609_s19 + $0x29f0] sm:$0xff] }
 0xa89   : > { %v3522_v58 = vmul.f32 %v1474_v54, %v1474_v54 }
 0xa8a   : > { %v5546_v60 = vadd.f32 %v5545_v57, %v3499_v53  ;;  %v1475_v57 = vld [vmem:[%s6609_s19 + $0x29f8] sm:$0xff] }
 0xa8b   : > { %v3523_v61 = vmul.f32 %v1475_v57, %v1475_v57 }
 0xa8c   : > { %v5547_v63 = vadd.f32 %v5546_v60, %v3500_v56  ;;  %v1476_v60 = vld [vmem:[%s6609_s19 + $0x2a00] sm:$0xff] }
 0xa8d   : > { %v3524_v0 = vmul.f32 %v1476_v60, %v1476_v60 }
 0xa8e   : > { %v5548_v2 = vadd.f32 %v5547_v63, %v3501_v59  ;;  %v1477_v63 = vld [vmem:[%s6609_s19 + $0x2a08] sm:$0xff] }
 0xa8f   : > { %v3525_v3 = vmul.f32 %v1477_v63, %v1477_v63 }
 0xa90   : > { %v5549_v5 = vadd.f32 %v5548_v2, %v3502_v62  ;;  %v1478_v2 = vld [vmem:[%s6609_s19 + $0x2a10] sm:$0xff] }
 0xa91   : > { %v3526_v6 = vmul.f32 %v1478_v2, %v1478_v2 }
 0xa92   : > { %v5550_v8 = vadd.f32 %v5549_v5, %v3503_v1  ;;  %v1479_v5 = vld [vmem:[%s6609_s19 + $0x2a18] sm:$0xff] }
 0xa93   : > { %v3527_v9 = vmul.f32 %v1479_v5, %v1479_v5 }
 0xa94   : > { %v5551_v11 = vadd.f32 %v5550_v8, %v3504_v4  ;;  %v1480_v8 = vld [vmem:[%s6609_s19 + $0x2a20] sm:$0xff] }
 0xa95   : > { %v3528_v12 = vmul.f32 %v1480_v8, %v1480_v8 }
 0xa96   : > { %v5552_v14 = vadd.f32 %v5551_v11, %v3505_v7  ;;  %v1481_v11 = vld [vmem:[%s6609_s19 + $0x2a28] sm:$0xff] }
 0xa97   : > { %v3529_v15 = vmul.f32 %v1481_v11, %v1481_v11 }
 0xa98   : > { %v5553_v17 = vadd.f32 %v5552_v14, %v3506_v10  ;;  %v1482_v14 = vld [vmem:[%s6609_s19 + $0x2a30] sm:$0xff] }
 0xa99   : > { %v3530_v18 = vmul.f32 %v1482_v14, %v1482_v14 }
 0xa9a   : > { %v5554_v20 = vadd.f32 %v5553_v17, %v3507_v13  ;;  %v1483_v17 = vld [vmem:[%s6609_s19 + $0x2a38] sm:$0xff] }
 0xa9b   : > { %v3531_v21 = vmul.f32 %v1483_v17, %v1483_v17 }
 0xa9c   : > { %v5555_v23 = vadd.f32 %v5554_v20, %v3508_v16  ;;  %v1484_v20 = vld [vmem:[%s6609_s19 + $0x2a40] sm:$0xff] }
 0xa9d   : > { %v3532_v24 = vmul.f32 %v1484_v20, %v1484_v20 }
 0xa9e   : > { %v5556_v26 = vadd.f32 %v5555_v23, %v3509_v19  ;;  %v1485_v23 = vld [vmem:[%s6609_s19 + $0x2a48] sm:$0xff] }
 0xa9f   : > { %v3533_v27 = vmul.f32 %v1485_v23, %v1485_v23 }
 0xaa0   : > { %v5557_v29 = vadd.f32 %v5556_v26, %v3510_v22  ;;  %v1486_v26 = vld [vmem:[%s6609_s19 + $0x2a50] sm:$0xff] }
 0xaa1   : > { %v3534_v30 = vmul.f32 %v1486_v26, %v1486_v26 }
 0xaa2   : > { %v5558_v32 = vadd.f32 %v5557_v29, %v3511_v25  ;;  %v1487_v29 = vld [vmem:[%s6609_s19 + $0x2a58] sm:$0xff] }
 0xaa3   : > { %v3535_v33 = vmul.f32 %v1487_v29, %v1487_v29 }
 0xaa4   : > { %v5559_v35 = vadd.f32 %v5558_v32, %v3512_v28  ;;  %v1488_v32 = vld [vmem:[%s6609_s19 + $0x2a60] sm:$0xff] }
 0xaa5   : > { %v3536_v36 = vmul.f32 %v1488_v32, %v1488_v32 }
 0xaa6   : > { %v5560_v38 = vadd.f32 %v5559_v35, %v3513_v31  ;;  %v1489_v35 = vld [vmem:[%s6609_s19 + $0x2a68] sm:$0xff] }
 0xaa7   : > { %v3537_v39 = vmul.f32 %v1489_v35, %v1489_v35 }
 0xaa8   : > { %v5561_v41 = vadd.f32 %v5560_v38, %v3514_v34  ;;  %v1490_v38 = vld [vmem:[%s6609_s19 + $0x2a70] sm:$0xff] }
 0xaa9   : > { %v3538_v42 = vmul.f32 %v1490_v38, %v1490_v38 }
 0xaaa   : > { %v5562_v44 = vadd.f32 %v5561_v41, %v3515_v37  ;;  %v1491_v41 = vld [vmem:[%s6609_s19 + $0x2a78] sm:$0xff] }
 0xaab   : > { %v3539_v45 = vmul.f32 %v1491_v41, %v1491_v41 }
 0xaac   : > { %v5563_v47 = vadd.f32 %v5562_v44, %v3516_v40  ;;  %v1492_v44 = vld [vmem:[%s6609_s19 + $0x2a80] sm:$0xff] }
 0xaad   : > { %v3540_v48 = vmul.f32 %v1492_v44, %v1492_v44 }
 0xaae   : > { %v5564_v50 = vadd.f32 %v5563_v47, %v3517_v43  ;;  %v1493_v47 = vld [vmem:[%s6609_s19 + $0x2a88] sm:$0xff] }
 0xaaf   : > { %v3541_v51 = vmul.f32 %v1493_v47, %v1493_v47 }
 0xab0   : > { %v5565_v53 = vadd.f32 %v5564_v50, %v3518_v46  ;;  %v1494_v50 = vld [vmem:[%s6609_s19 + $0x2a90] sm:$0xff] }
 0xab1   : > { %v3542_v54 = vmul.f32 %v1494_v50, %v1494_v50 }
 0xab2   : > { %v5566_v56 = vadd.f32 %v5565_v53, %v3519_v49  ;;  %v1495_v53 = vld [vmem:[%s6609_s19 + $0x2a98] sm:$0xff] }
 0xab3   : > { %v3543_v57 = vmul.f32 %v1495_v53, %v1495_v53 }
 0xab4   : > { %v5567_v59 = vadd.f32 %v5566_v56, %v3520_v52  ;;  %v1496_v56 = vld [vmem:[%s6609_s19 + $0x2aa0] sm:$0xff] }
 0xab5   : > { %v3544_v60 = vmul.f32 %v1496_v56, %v1496_v56 }
 0xab6   : > { %v5568_v62 = vadd.f32 %v5567_v59, %v3521_v55  ;;  %v1497_v59 = vld [vmem:[%s6609_s19 + $0x2aa8] sm:$0xff] }
 0xab7   : > { %v3545_v63 = vmul.f32 %v1497_v59, %v1497_v59 }
 0xab8   : > { %v5569_v1 = vadd.f32 %v5568_v62, %v3522_v58  ;;  %v1498_v62 = vld [vmem:[%s6609_s19 + $0x2ab0] sm:$0xff] }
 0xab9   : > { %v3546_v2 = vmul.f32 %v1498_v62, %v1498_v62 }
 0xaba   : > { %v5570_v4 = vadd.f32 %v5569_v1, %v3523_v61  ;;  %v1499_v1 = vld [vmem:[%s6609_s19 + $0x2ab8] sm:$0xff] }
 0xabb   : > { %v3547_v5 = vmul.f32 %v1499_v1, %v1499_v1 }
 0xabc   : > { %v5571_v7 = vadd.f32 %v5570_v4, %v3524_v0  ;;  %v1500_v4 = vld [vmem:[%s6609_s19 + $0x2ac0] sm:$0xff] }
 0xabd   : > { %v3548_v8 = vmul.f32 %v1500_v4, %v1500_v4 }
 0xabe   : > { %v5572_v10 = vadd.f32 %v5571_v7, %v3525_v3  ;;  %v1501_v7 = vld [vmem:[%s6609_s19 + $0x2ac8] sm:$0xff] }
 0xabf   : > { %v3549_v11 = vmul.f32 %v1501_v7, %v1501_v7 }
 0xac0   : > { %v5573_v13 = vadd.f32 %v5572_v10, %v3526_v6  ;;  %v1502_v10 = vld [vmem:[%s6609_s19 + $0x2ad0] sm:$0xff] }
 0xac1   : > { %v3550_v14 = vmul.f32 %v1502_v10, %v1502_v10 }
 0xac2   : > { %v5574_v16 = vadd.f32 %v5573_v13, %v3527_v9  ;;  %v1503_v13 = vld [vmem:[%s6609_s19 + $0x2ad8] sm:$0xff] }
 0xac3   : > { %v3551_v17 = vmul.f32 %v1503_v13, %v1503_v13 }
 0xac4   : > { %v5575_v19 = vadd.f32 %v5574_v16, %v3528_v12  ;;  %v1504_v16 = vld [vmem:[%s6609_s19 + $0x2ae0] sm:$0xff] }
 0xac5   : > { %v3552_v20 = vmul.f32 %v1504_v16, %v1504_v16 }
 0xac6   : > { %v5576_v22 = vadd.f32 %v5575_v19, %v3529_v15  ;;  %v1505_v19 = vld [vmem:[%s6609_s19 + $0x2ae8] sm:$0xff] }
 0xac7   : > { %v3553_v23 = vmul.f32 %v1505_v19, %v1505_v19 }
 0xac8   : > { %v5577_v25 = vadd.f32 %v5576_v22, %v3530_v18  ;;  %v1506_v22 = vld [vmem:[%s6609_s19 + $0x2af0] sm:$0xff] }
 0xac9   : > { %v3554_v26 = vmul.f32 %v1506_v22, %v1506_v22 }
 0xaca   : > { %v5578_v28 = vadd.f32 %v5577_v25, %v3531_v21  ;;  %v1507_v25 = vld [vmem:[%s6609_s19 + $0x2af8] sm:$0xff] }
 0xacb   : > { %v3555_v29 = vmul.f32 %v1507_v25, %v1507_v25 }
 0xacc   : > { %v5579_v31 = vadd.f32 %v5578_v28, %v3532_v24  ;;  %v1508_v28 = vld [vmem:[%s6609_s19 + $0x2b00] sm:$0xff] }
 0xacd   : > { %v3556_v32 = vmul.f32 %v1508_v28, %v1508_v28 }
 0xace   : > { %v5580_v34 = vadd.f32 %v5579_v31, %v3533_v27  ;;  %v1509_v31 = vld [vmem:[%s6609_s19 + $0x2b08] sm:$0xff] }
 0xacf   : > { %v3557_v35 = vmul.f32 %v1509_v31, %v1509_v31 }
 0xad0   : > { %v5581_v37 = vadd.f32 %v5580_v34, %v3534_v30  ;;  %v1510_v34 = vld [vmem:[%s6609_s19 + $0x2b10] sm:$0xff] }
 0xad1   : > { %v3558_v38 = vmul.f32 %v1510_v34, %v1510_v34 }
 0xad2   : > { %v5582_v40 = vadd.f32 %v5581_v37, %v3535_v33  ;;  %v1511_v37 = vld [vmem:[%s6609_s19 + $0x2b18] sm:$0xff] }
 0xad3   : > { %v3559_v41 = vmul.f32 %v1511_v37, %v1511_v37 }
 0xad4   : > { %v5583_v43 = vadd.f32 %v5582_v40, %v3536_v36  ;;  %v1512_v40 = vld [vmem:[%s6609_s19 + $0x2b20] sm:$0xff] }
 0xad5   : > { %v3560_v44 = vmul.f32 %v1512_v40, %v1512_v40 }
 0xad6   : > { %v5584_v46 = vadd.f32 %v5583_v43, %v3537_v39  ;;  %v1513_v43 = vld [vmem:[%s6609_s19 + $0x2b28] sm:$0xff] }
 0xad7   : > { %v3561_v47 = vmul.f32 %v1513_v43, %v1513_v43 }
 0xad8   : > { %v5585_v49 = vadd.f32 %v5584_v46, %v3538_v42  ;;  %v1514_v46 = vld [vmem:[%s6609_s19 + $0x2b30] sm:$0xff] }
 0xad9   : > { %v3562_v50 = vmul.f32 %v1514_v46, %v1514_v46 }
 0xada   : > { %v5586_v52 = vadd.f32 %v5585_v49, %v3539_v45  ;;  %v1515_v49 = vld [vmem:[%s6609_s19 + $0x2b38] sm:$0xff] }
 0xadb   : > { %v3563_v53 = vmul.f32 %v1515_v49, %v1515_v49 }
 0xadc   : > { %v5587_v55 = vadd.f32 %v5586_v52, %v3540_v48  ;;  %v1516_v52 = vld [vmem:[%s6609_s19 + $0x2b40] sm:$0xff] }
 0xadd   : > { %v3564_v56 = vmul.f32 %v1516_v52, %v1516_v52 }
 0xade   : > { %v5588_v58 = vadd.f32 %v5587_v55, %v3541_v51  ;;  %v1517_v55 = vld [vmem:[%s6609_s19 + $0x2b48] sm:$0xff] }
 0xadf   : > { %v3565_v59 = vmul.f32 %v1517_v55, %v1517_v55 }
 0xae0   : > { %v5589_v61 = vadd.f32 %v5588_v58, %v3542_v54  ;;  %v1518_v58 = vld [vmem:[%s6609_s19 + $0x2b50] sm:$0xff] }
 0xae1   : > { %v3566_v62 = vmul.f32 %v1518_v58, %v1518_v58 }
 0xae2   : > { %v5590_v0 = vadd.f32 %v5589_v61, %v3543_v57  ;;  %v1519_v61 = vld [vmem:[%s6609_s19 + $0x2b58] sm:$0xff] }
 0xae3   : > { %v3567_v1 = vmul.f32 %v1519_v61, %v1519_v61 }
 0xae4   : > { %v5591_v3 = vadd.f32 %v5590_v0, %v3544_v60  ;;  %v1520_v0 = vld [vmem:[%s6609_s19 + $0x2b60] sm:$0xff] }
 0xae5   : > { %v3568_v4 = vmul.f32 %v1520_v0, %v1520_v0 }
 0xae6   : > { %v5592_v6 = vadd.f32 %v5591_v3, %v3545_v63  ;;  %v1521_v3 = vld [vmem:[%s6609_s19 + $0x2b68] sm:$0xff] }
 0xae7   : > { %v3569_v7 = vmul.f32 %v1521_v3, %v1521_v3 }
 0xae8   : > { %v5593_v9 = vadd.f32 %v5592_v6, %v3546_v2  ;;  %v1522_v6 = vld [vmem:[%s6609_s19 + $0x2b70] sm:$0xff] }
 0xae9   : > { %v3570_v10 = vmul.f32 %v1522_v6, %v1522_v6 }
 0xaea   : > { %v5594_v12 = vadd.f32 %v5593_v9, %v3547_v5  ;;  %v1523_v9 = vld [vmem:[%s6609_s19 + $0x2b78] sm:$0xff] }
 0xaeb   : > { %v3571_v13 = vmul.f32 %v1523_v9, %v1523_v9 }
 0xaec   : > { %v5595_v15 = vadd.f32 %v5594_v12, %v3548_v8  ;;  %v1524_v12 = vld [vmem:[%s6609_s19 + $0x2b80] sm:$0xff] }
 0xaed   : > { %v3572_v16 = vmul.f32 %v1524_v12, %v1524_v12 }
 0xaee   : > { %v5596_v18 = vadd.f32 %v5595_v15, %v3549_v11  ;;  %v1525_v15 = vld [vmem:[%s6609_s19 + $0x2b88] sm:$0xff] }
 0xaef   : > { %v3573_v19 = vmul.f32 %v1525_v15, %v1525_v15 }
 0xaf0   : > { %v5597_v21 = vadd.f32 %v5596_v18, %v3550_v14  ;;  %v1526_v18 = vld [vmem:[%s6609_s19 + $0x2b90] sm:$0xff] }
 0xaf1   : > { %v3574_v22 = vmul.f32 %v1526_v18, %v1526_v18 }
 0xaf2   : > { %v5598_v24 = vadd.f32 %v5597_v21, %v3551_v17  ;;  %v1527_v21 = vld [vmem:[%s6609_s19 + $0x2b98] sm:$0xff] }
 0xaf3   : > { %v3575_v25 = vmul.f32 %v1527_v21, %v1527_v21 }
 0xaf4   : > { %v5599_v27 = vadd.f32 %v5598_v24, %v3552_v20  ;;  %v1528_v24 = vld [vmem:[%s6609_s19 + $0x2ba0] sm:$0xff] }
 0xaf5   : > { %v3576_v28 = vmul.f32 %v1528_v24, %v1528_v24 }
 0xaf6   : > { %v5600_v30 = vadd.f32 %v5599_v27, %v3553_v23  ;;  %v1529_v27 = vld [vmem:[%s6609_s19 + $0x2ba8] sm:$0xff] }
 0xaf7   : > { %v3577_v31 = vmul.f32 %v1529_v27, %v1529_v27 }
 0xaf8   : > { %v5601_v33 = vadd.f32 %v5600_v30, %v3554_v26  ;;  %v1530_v30 = vld [vmem:[%s6609_s19 + $0x2bb0] sm:$0xff] }
 0xaf9   : > { %v3578_v34 = vmul.f32 %v1530_v30, %v1530_v30 }
 0xafa   : > { %v5602_v36 = vadd.f32 %v5601_v33, %v3555_v29  ;;  %v1531_v33 = vld [vmem:[%s6609_s19 + $0x2bb8] sm:$0xff] }
 0xafb   : > { %v3579_v37 = vmul.f32 %v1531_v33, %v1531_v33 }
 0xafc   : > { %v5603_v39 = vadd.f32 %v5602_v36, %v3556_v32  ;;  %v1532_v36 = vld [vmem:[%s6609_s19 + $0x2bc0] sm:$0xff] }
 0xafd   : > { %v3580_v40 = vmul.f32 %v1532_v36, %v1532_v36 }
 0xafe   : > { %v5604_v42 = vadd.f32 %v5603_v39, %v3557_v35  ;;  %v1533_v39 = vld [vmem:[%s6609_s19 + $0x2bc8] sm:$0xff] }
 0xaff   : > { %v3581_v43 = vmul.f32 %v1533_v39, %v1533_v39 }
 0xb00   : > { %v5605_v45 = vadd.f32 %v5604_v42, %v3558_v38  ;;  %v1534_v42 = vld [vmem:[%s6609_s19 + $0x2bd0] sm:$0xff] }
 0xb01   : > { %v3582_v46 = vmul.f32 %v1534_v42, %v1534_v42 }
 0xb02   : > { %v5606_v48 = vadd.f32 %v5605_v45, %v3559_v41  ;;  %v1535_v45 = vld [vmem:[%s6609_s19 + $0x2bd8] sm:$0xff] }
 0xb03   : > { %v3583_v49 = vmul.f32 %v1535_v45, %v1535_v45 }
 0xb04   : > { %v5607_v51 = vadd.f32 %v5606_v48, %v3560_v44  ;;  %v1536_v48 = vld [vmem:[%s6609_s19 + $0x2be0] sm:$0xff] }
 0xb05   : > { %v3584_v52 = vmul.f32 %v1536_v48, %v1536_v48 }
 0xb06   : > { %v5608_v54 = vadd.f32 %v5607_v51, %v3561_v47  ;;  %v1537_v51 = vld [vmem:[%s6609_s19 + $0x2be8] sm:$0xff] }
 0xb07   : > { %v3585_v55 = vmul.f32 %v1537_v51, %v1537_v51 }
 0xb08   : > { %v5609_v57 = vadd.f32 %v5608_v54, %v3562_v50  ;;  %v1538_v54 = vld [vmem:[%s6609_s19 + $0x2bf0] sm:$0xff] }
 0xb09   : > { %v3586_v58 = vmul.f32 %v1538_v54, %v1538_v54 }
 0xb0a   : > { %v5610_v60 = vadd.f32 %v5609_v57, %v3563_v53  ;;  %v1539_v57 = vld [vmem:[%s6609_s19 + $0x2bf8] sm:$0xff] }
 0xb0b   : > { %v3587_v61 = vmul.f32 %v1539_v57, %v1539_v57 }
 0xb0c   : > { %v5611_v63 = vadd.f32 %v5610_v60, %v3564_v56  ;;  %v1540_v60 = vld [vmem:[%s6609_s19 + $0x2c00] sm:$0xff] }
 0xb0d   : > { %v3588_v0 = vmul.f32 %v1540_v60, %v1540_v60 }
 0xb0e   : > { %v5612_v2 = vadd.f32 %v5611_v63, %v3565_v59  ;;  %v1541_v63 = vld [vmem:[%s6609_s19 + $0x2c08] sm:$0xff] }
 0xb0f   : > { %v3589_v3 = vmul.f32 %v1541_v63, %v1541_v63 }
 0xb10   : > { %v5613_v5 = vadd.f32 %v5612_v2, %v3566_v62  ;;  %v1542_v2 = vld [vmem:[%s6609_s19 + $0x2c10] sm:$0xff] }
 0xb11   : > { %v3590_v6 = vmul.f32 %v1542_v2, %v1542_v2 }
 0xb12   : > { %v5614_v8 = vadd.f32 %v5613_v5, %v3567_v1  ;;  %v1543_v5 = vld [vmem:[%s6609_s19 + $0x2c18] sm:$0xff] }
 0xb13   : > { %v3591_v9 = vmul.f32 %v1543_v5, %v1543_v5 }
 0xb14   : > { %v5615_v11 = vadd.f32 %v5614_v8, %v3568_v4  ;;  %v1544_v8 = vld [vmem:[%s6609_s19 + $0x2c20] sm:$0xff] }
 0xb15   : > { %v3592_v12 = vmul.f32 %v1544_v8, %v1544_v8 }
 0xb16   : > { %v5616_v14 = vadd.f32 %v5615_v11, %v3569_v7  ;;  %v1545_v11 = vld [vmem:[%s6609_s19 + $0x2c28] sm:$0xff] }
 0xb17   : > { %v3593_v15 = vmul.f32 %v1545_v11, %v1545_v11 }
 0xb18   : > { %v5617_v17 = vadd.f32 %v5616_v14, %v3570_v10  ;;  %v1546_v14 = vld [vmem:[%s6609_s19 + $0x2c30] sm:$0xff] }
 0xb19   : > { %v3594_v18 = vmul.f32 %v1546_v14, %v1546_v14 }
 0xb1a   : > { %v5618_v20 = vadd.f32 %v5617_v17, %v3571_v13  ;;  %v1547_v17 = vld [vmem:[%s6609_s19 + $0x2c38] sm:$0xff] }
 0xb1b   : > { %v3595_v21 = vmul.f32 %v1547_v17, %v1547_v17 }
 0xb1c   : > { %v5619_v23 = vadd.f32 %v5618_v20, %v3572_v16  ;;  %v1548_v20 = vld [vmem:[%s6609_s19 + $0x2c40] sm:$0xff] }
 0xb1d   : > { %v3596_v24 = vmul.f32 %v1548_v20, %v1548_v20 }
 0xb1e   : > { %v5620_v26 = vadd.f32 %v5619_v23, %v3573_v19  ;;  %v1549_v23 = vld [vmem:[%s6609_s19 + $0x2c48] sm:$0xff] }
 0xb1f   : > { %v3597_v27 = vmul.f32 %v1549_v23, %v1549_v23 }
 0xb20   : > { %v5621_v29 = vadd.f32 %v5620_v26, %v3574_v22  ;;  %v1550_v26 = vld [vmem:[%s6609_s19 + $0x2c50] sm:$0xff] }
 0xb21   : > { %v3598_v30 = vmul.f32 %v1550_v26, %v1550_v26 }
 0xb22   : > { %v5622_v32 = vadd.f32 %v5621_v29, %v3575_v25  ;;  %v1551_v29 = vld [vmem:[%s6609_s19 + $0x2c58] sm:$0xff] }
 0xb23   : > { %v3599_v33 = vmul.f32 %v1551_v29, %v1551_v29 }
 0xb24   : > { %v5623_v35 = vadd.f32 %v5622_v32, %v3576_v28  ;;  %v1552_v32 = vld [vmem:[%s6609_s19 + $0x2c60] sm:$0xff] }
 0xb25   : > { %v3600_v36 = vmul.f32 %v1552_v32, %v1552_v32 }
 0xb26   : > { %v5624_v38 = vadd.f32 %v5623_v35, %v3577_v31  ;;  %v1553_v35 = vld [vmem:[%s6609_s19 + $0x2c68] sm:$0xff] }
 0xb27   : > { %v3601_v39 = vmul.f32 %v1553_v35, %v1553_v35 }
 0xb28   : > { %v5625_v41 = vadd.f32 %v5624_v38, %v3578_v34  ;;  %v1554_v38 = vld [vmem:[%s6609_s19 + $0x2c70] sm:$0xff] }
 0xb29   : > { %v3602_v42 = vmul.f32 %v1554_v38, %v1554_v38 }
 0xb2a   : > { %v5626_v44 = vadd.f32 %v5625_v41, %v3579_v37  ;;  %v1555_v41 = vld [vmem:[%s6609_s19 + $0x2c78] sm:$0xff] }
 0xb2b   : > { %v3603_v45 = vmul.f32 %v1555_v41, %v1555_v41 }
 0xb2c   : > { %v5627_v47 = vadd.f32 %v5626_v44, %v3580_v40  ;;  %v1556_v44 = vld [vmem:[%s6609_s19 + $0x2c80] sm:$0xff] }
 0xb2d   : > { %v3604_v48 = vmul.f32 %v1556_v44, %v1556_v44 }
 0xb2e   : > { %v5628_v50 = vadd.f32 %v5627_v47, %v3581_v43  ;;  %v1557_v47 = vld [vmem:[%s6609_s19 + $0x2c88] sm:$0xff] }
 0xb2f   : > { %v3605_v51 = vmul.f32 %v1557_v47, %v1557_v47 }
 0xb30   : > { %v5629_v53 = vadd.f32 %v5628_v50, %v3582_v46  ;;  %v1558_v50 = vld [vmem:[%s6609_s19 + $0x2c90] sm:$0xff] }
 0xb31   : > { %v3606_v54 = vmul.f32 %v1558_v50, %v1558_v50 }
 0xb32   : > { %v5630_v56 = vadd.f32 %v5629_v53, %v3583_v49  ;;  %v1559_v53 = vld [vmem:[%s6609_s19 + $0x2c98] sm:$0xff] }
 0xb33   : > { %v3607_v57 = vmul.f32 %v1559_v53, %v1559_v53 }
 0xb34   : > { %v5631_v59 = vadd.f32 %v5630_v56, %v3584_v52  ;;  %v1560_v56 = vld [vmem:[%s6609_s19 + $0x2ca0] sm:$0xff] }
 0xb35   : > { %v3608_v60 = vmul.f32 %v1560_v56, %v1560_v56 }
 0xb36   : > { %v5632_v62 = vadd.f32 %v5631_v59, %v3585_v55  ;;  %v1561_v59 = vld [vmem:[%s6609_s19 + $0x2ca8] sm:$0xff] }
 0xb37   : > { %v3609_v63 = vmul.f32 %v1561_v59, %v1561_v59 }
 0xb38   : > { %v5633_v1 = vadd.f32 %v5632_v62, %v3586_v58  ;;  %v1562_v62 = vld [vmem:[%s6609_s19 + $0x2cb0] sm:$0xff] }
 0xb39   : > { %v3610_v2 = vmul.f32 %v1562_v62, %v1562_v62 }
 0xb3a   : > { %v5634_v4 = vadd.f32 %v5633_v1, %v3587_v61  ;;  %v1563_v1 = vld [vmem:[%s6609_s19 + $0x2cb8] sm:$0xff] }
 0xb3b   : > { %v3611_v5 = vmul.f32 %v1563_v1, %v1563_v1 }
 0xb3c   : > { %v5635_v7 = vadd.f32 %v5634_v4, %v3588_v0  ;;  %v1564_v4 = vld [vmem:[%s6609_s19 + $0x2cc0] sm:$0xff] }
 0xb3d   : > { %v3612_v8 = vmul.f32 %v1564_v4, %v1564_v4 }
 0xb3e   : > { %v5636_v10 = vadd.f32 %v5635_v7, %v3589_v3  ;;  %v1565_v7 = vld [vmem:[%s6609_s19 + $0x2cc8] sm:$0xff] }
 0xb3f   : > { %v3613_v11 = vmul.f32 %v1565_v7, %v1565_v7 }
 0xb40   : > { %v5637_v13 = vadd.f32 %v5636_v10, %v3590_v6  ;;  %v1566_v10 = vld [vmem:[%s6609_s19 + $0x2cd0] sm:$0xff] }
 0xb41   : > { %v3614_v14 = vmul.f32 %v1566_v10, %v1566_v10 }
 0xb42   : > { %v5638_v16 = vadd.f32 %v5637_v13, %v3591_v9  ;;  %v1567_v13 = vld [vmem:[%s6609_s19 + $0x2cd8] sm:$0xff] }
 0xb43   : > { %v3615_v17 = vmul.f32 %v1567_v13, %v1567_v13 }
 0xb44   : > { %v5639_v19 = vadd.f32 %v5638_v16, %v3592_v12  ;;  %v1568_v16 = vld [vmem:[%s6609_s19 + $0x2ce0] sm:$0xff] }
 0xb45   : > { %v3616_v20 = vmul.f32 %v1568_v16, %v1568_v16 }
 0xb46   : > { %v5640_v22 = vadd.f32 %v5639_v19, %v3593_v15  ;;  %v1569_v19 = vld [vmem:[%s6609_s19 + $0x2ce8] sm:$0xff] }
 0xb47   : > { %v3617_v23 = vmul.f32 %v1569_v19, %v1569_v19 }
 0xb48   : > { %v5641_v25 = vadd.f32 %v5640_v22, %v3594_v18  ;;  %v1570_v22 = vld [vmem:[%s6609_s19 + $0x2cf0] sm:$0xff] }
 0xb49   : > { %v3618_v26 = vmul.f32 %v1570_v22, %v1570_v22 }
 0xb4a   : > { %v5642_v28 = vadd.f32 %v5641_v25, %v3595_v21  ;;  %v1571_v25 = vld [vmem:[%s6609_s19 + $0x2cf8] sm:$0xff] }
 0xb4b   : > { %v3619_v29 = vmul.f32 %v1571_v25, %v1571_v25 }
 0xb4c   : > { %v5643_v31 = vadd.f32 %v5642_v28, %v3596_v24  ;;  %v1572_v28 = vld [vmem:[%s6609_s19 + $0x2d00] sm:$0xff] }
 0xb4d   : > { %v3620_v32 = vmul.f32 %v1572_v28, %v1572_v28 }
 0xb4e   : > { %v5644_v34 = vadd.f32 %v5643_v31, %v3597_v27  ;;  %v1573_v31 = vld [vmem:[%s6609_s19 + $0x2d08] sm:$0xff] }
 0xb4f   : > { %v3621_v35 = vmul.f32 %v1573_v31, %v1573_v31 }
 0xb50   : > { %v5645_v37 = vadd.f32 %v5644_v34, %v3598_v30  ;;  %v1574_v34 = vld [vmem:[%s6609_s19 + $0x2d10] sm:$0xff] }
 0xb51   : > { %v3622_v38 = vmul.f32 %v1574_v34, %v1574_v34 }
 0xb52   : > { %v5646_v40 = vadd.f32 %v5645_v37, %v3599_v33  ;;  %v1575_v37 = vld [vmem:[%s6609_s19 + $0x2d18] sm:$0xff] }
 0xb53   : > { %v3623_v41 = vmul.f32 %v1575_v37, %v1575_v37 }
 0xb54   : > { %v5647_v43 = vadd.f32 %v5646_v40, %v3600_v36  ;;  %v1576_v40 = vld [vmem:[%s6609_s19 + $0x2d20] sm:$0xff] }
 0xb55   : > { %v3624_v44 = vmul.f32 %v1576_v40, %v1576_v40 }
 0xb56   : > { %v5648_v46 = vadd.f32 %v5647_v43, %v3601_v39  ;;  %v1577_v43 = vld [vmem:[%s6609_s19 + $0x2d28] sm:$0xff] }
 0xb57   : > { %v3625_v47 = vmul.f32 %v1577_v43, %v1577_v43 }
 0xb58   : > { %v5649_v49 = vadd.f32 %v5648_v46, %v3602_v42  ;;  %v1578_v46 = vld [vmem:[%s6609_s19 + $0x2d30] sm:$0xff] }
 0xb59   : > { %v3626_v50 = vmul.f32 %v1578_v46, %v1578_v46 }
 0xb5a   : > { %v5650_v52 = vadd.f32 %v5649_v49, %v3603_v45  ;;  %v1579_v49 = vld [vmem:[%s6609_s19 + $0x2d38] sm:$0xff] }
 0xb5b   : > { %v3627_v53 = vmul.f32 %v1579_v49, %v1579_v49 }
 0xb5c   : > { %v5651_v55 = vadd.f32 %v5650_v52, %v3604_v48  ;;  %v1580_v52 = vld [vmem:[%s6609_s19 + $0x2d40] sm:$0xff] }
 0xb5d   : > { %v3628_v56 = vmul.f32 %v1580_v52, %v1580_v52 }
 0xb5e   : > { %v5652_v58 = vadd.f32 %v5651_v55, %v3605_v51  ;;  %v1581_v55 = vld [vmem:[%s6609_s19 + $0x2d48] sm:$0xff] }
 0xb5f   : > { %v3629_v59 = vmul.f32 %v1581_v55, %v1581_v55 }
 0xb60   : > { %v5653_v61 = vadd.f32 %v5652_v58, %v3606_v54  ;;  %v1582_v58 = vld [vmem:[%s6609_s19 + $0x2d50] sm:$0xff] }
 0xb61   : > { %v3630_v62 = vmul.f32 %v1582_v58, %v1582_v58 }
 0xb62   : > { %v5654_v0 = vadd.f32 %v5653_v61, %v3607_v57  ;;  %v1583_v61 = vld [vmem:[%s6609_s19 + $0x2d58] sm:$0xff] }
 0xb63   : > { %v3631_v1 = vmul.f32 %v1583_v61, %v1583_v61 }
 0xb64   : > { %v5655_v3 = vadd.f32 %v5654_v0, %v3608_v60  ;;  %v1584_v0 = vld [vmem:[%s6609_s19 + $0x2d60] sm:$0xff] }
 0xb65   : > { %v3632_v4 = vmul.f32 %v1584_v0, %v1584_v0 }
 0xb66   : > { %v5656_v6 = vadd.f32 %v5655_v3, %v3609_v63  ;;  %v1585_v3 = vld [vmem:[%s6609_s19 + $0x2d68] sm:$0xff] }
 0xb67   : > { %v3633_v7 = vmul.f32 %v1585_v3, %v1585_v3 }
 0xb68   : > { %v5657_v9 = vadd.f32 %v5656_v6, %v3610_v2  ;;  %v1586_v6 = vld [vmem:[%s6609_s19 + $0x2d70] sm:$0xff] }
 0xb69   : > { %v3634_v10 = vmul.f32 %v1586_v6, %v1586_v6 }
 0xb6a   : > { %v5658_v12 = vadd.f32 %v5657_v9, %v3611_v5  ;;  %v1587_v9 = vld [vmem:[%s6609_s19 + $0x2d78] sm:$0xff] }
 0xb6b   : > { %v3635_v13 = vmul.f32 %v1587_v9, %v1587_v9 }
 0xb6c   : > { %v5659_v15 = vadd.f32 %v5658_v12, %v3612_v8  ;;  %v1588_v12 = vld [vmem:[%s6609_s19 + $0x2d80] sm:$0xff] }
 0xb6d   : > { %v3636_v16 = vmul.f32 %v1588_v12, %v1588_v12 }
 0xb6e   : > { %v5660_v18 = vadd.f32 %v5659_v15, %v3613_v11  ;;  %v1589_v15 = vld [vmem:[%s6609_s19 + $0x2d88] sm:$0xff] }
 0xb6f   : > { %v3637_v19 = vmul.f32 %v1589_v15, %v1589_v15 }
 0xb70   : > { %v5661_v21 = vadd.f32 %v5660_v18, %v3614_v14  ;;  %v1590_v18 = vld [vmem:[%s6609_s19 + $0x2d90] sm:$0xff] }
 0xb71   : > { %v3638_v22 = vmul.f32 %v1590_v18, %v1590_v18 }
 0xb72   : > { %v5662_v24 = vadd.f32 %v5661_v21, %v3615_v17  ;;  %v1591_v21 = vld [vmem:[%s6609_s19 + $0x2d98] sm:$0xff] }
 0xb73   : > { %v3639_v25 = vmul.f32 %v1591_v21, %v1591_v21 }
 0xb74   : > { %v5663_v27 = vadd.f32 %v5662_v24, %v3616_v20  ;;  %v1592_v24 = vld [vmem:[%s6609_s19 + $0x2da0] sm:$0xff] }
 0xb75   : > { %v3640_v28 = vmul.f32 %v1592_v24, %v1592_v24 }
 0xb76   : > { %v5664_v30 = vadd.f32 %v5663_v27, %v3617_v23  ;;  %v1593_v27 = vld [vmem:[%s6609_s19 + $0x2da8] sm:$0xff] }
 0xb77   : > { %v3641_v31 = vmul.f32 %v1593_v27, %v1593_v27 }
 0xb78   : > { %v5665_v33 = vadd.f32 %v5664_v30, %v3618_v26  ;;  %v1594_v30 = vld [vmem:[%s6609_s19 + $0x2db0] sm:$0xff] }
 0xb79   : > { %v3642_v34 = vmul.f32 %v1594_v30, %v1594_v30 }
 0xb7a   : > { %v5666_v36 = vadd.f32 %v5665_v33, %v3619_v29  ;;  %v1595_v33 = vld [vmem:[%s6609_s19 + $0x2db8] sm:$0xff] }
 0xb7b   : > { %v3643_v37 = vmul.f32 %v1595_v33, %v1595_v33 }
 0xb7c   : > { %v5667_v39 = vadd.f32 %v5666_v36, %v3620_v32  ;;  %v1596_v36 = vld [vmem:[%s6609_s19 + $0x2dc0] sm:$0xff] }
 0xb7d   : > { %v3644_v40 = vmul.f32 %v1596_v36, %v1596_v36 }
 0xb7e   : > { %v5668_v42 = vadd.f32 %v5667_v39, %v3621_v35  ;;  %v1597_v39 = vld [vmem:[%s6609_s19 + $0x2dc8] sm:$0xff] }
 0xb7f   : > { %v3645_v43 = vmul.f32 %v1597_v39, %v1597_v39 }
 0xb80   : > { %v5669_v45 = vadd.f32 %v5668_v42, %v3622_v38  ;;  %v1598_v42 = vld [vmem:[%s6609_s19 + $0x2dd0] sm:$0xff] }
 0xb81   : > { %v3646_v46 = vmul.f32 %v1598_v42, %v1598_v42 }
 0xb82   : > { %v5670_v48 = vadd.f32 %v5669_v45, %v3623_v41  ;;  %v1599_v45 = vld [vmem:[%s6609_s19 + $0x2dd8] sm:$0xff] }
 0xb83   : > { %v3647_v49 = vmul.f32 %v1599_v45, %v1599_v45 }
 0xb84   : > { %v5671_v51 = vadd.f32 %v5670_v48, %v3624_v44  ;;  %v1600_v48 = vld [vmem:[%s6609_s19 + $0x2de0] sm:$0xff] }
 0xb85   : > { %v3648_v52 = vmul.f32 %v1600_v48, %v1600_v48 }
 0xb86   : > { %v5672_v54 = vadd.f32 %v5671_v51, %v3625_v47  ;;  %v1601_v51 = vld [vmem:[%s6609_s19 + $0x2de8] sm:$0xff] }
 0xb87   : > { %v3649_v55 = vmul.f32 %v1601_v51, %v1601_v51 }
 0xb88   : > { %v5673_v57 = vadd.f32 %v5672_v54, %v3626_v50  ;;  %v1602_v54 = vld [vmem:[%s6609_s19 + $0x2df0] sm:$0xff] }
 0xb89   : > { %v3650_v58 = vmul.f32 %v1602_v54, %v1602_v54 }
 0xb8a   : > { %v5674_v60 = vadd.f32 %v5673_v57, %v3627_v53  ;;  %v1603_v57 = vld [vmem:[%s6609_s19 + $0x2df8] sm:$0xff] }
 0xb8b   : > { %v3651_v61 = vmul.f32 %v1603_v57, %v1603_v57 }
 0xb8c   : > { %v5675_v63 = vadd.f32 %v5674_v60, %v3628_v56  ;;  %v1604_v60 = vld [vmem:[%s6609_s19 + $0x2e00] sm:$0xff] }
 0xb8d   : > { %v3652_v0 = vmul.f32 %v1604_v60, %v1604_v60 }
 0xb8e   : > { %v5676_v2 = vadd.f32 %v5675_v63, %v3629_v59  ;;  %v1605_v63 = vld [vmem:[%s6609_s19 + $0x2e08] sm:$0xff] }
 0xb8f   : > { %v3653_v3 = vmul.f32 %v1605_v63, %v1605_v63 }
 0xb90   : > { %v5677_v5 = vadd.f32 %v5676_v2, %v3630_v62  ;;  %v1606_v2 = vld [vmem:[%s6609_s19 + $0x2e10] sm:$0xff] }
 0xb91   : > { %v3654_v6 = vmul.f32 %v1606_v2, %v1606_v2 }
 0xb92   : > { %v5678_v8 = vadd.f32 %v5677_v5, %v3631_v1  ;;  %v1607_v5 = vld [vmem:[%s6609_s19 + $0x2e18] sm:$0xff] }
 0xb93   : > { %v3655_v9 = vmul.f32 %v1607_v5, %v1607_v5 }
 0xb94   : > { %v5679_v11 = vadd.f32 %v5678_v8, %v3632_v4  ;;  %v1608_v8 = vld [vmem:[%s6609_s19 + $0x2e20] sm:$0xff] }
 0xb95   : > { %v3656_v12 = vmul.f32 %v1608_v8, %v1608_v8 }
 0xb96   : > { %v5680_v14 = vadd.f32 %v5679_v11, %v3633_v7  ;;  %v1609_v11 = vld [vmem:[%s6609_s19 + $0x2e28] sm:$0xff] }
 0xb97   : > { %v3657_v15 = vmul.f32 %v1609_v11, %v1609_v11 }
 0xb98   : > { %v5681_v17 = vadd.f32 %v5680_v14, %v3634_v10  ;;  %v1610_v14 = vld [vmem:[%s6609_s19 + $0x2e30] sm:$0xff] }
 0xb99   : > { %v3658_v18 = vmul.f32 %v1610_v14, %v1610_v14 }
 0xb9a   : > { %v5682_v20 = vadd.f32 %v5681_v17, %v3635_v13  ;;  %v1611_v17 = vld [vmem:[%s6609_s19 + $0x2e38] sm:$0xff] }
 0xb9b   : > { %v3659_v21 = vmul.f32 %v1611_v17, %v1611_v17 }
 0xb9c   : > { %v5683_v23 = vadd.f32 %v5682_v20, %v3636_v16  ;;  %v1612_v20 = vld [vmem:[%s6609_s19 + $0x2e40] sm:$0xff] }
 0xb9d   : > { %v3660_v24 = vmul.f32 %v1612_v20, %v1612_v20 }
 0xb9e   : > { %v5684_v26 = vadd.f32 %v5683_v23, %v3637_v19  ;;  %v1613_v23 = vld [vmem:[%s6609_s19 + $0x2e48] sm:$0xff] }
 0xb9f   : > { %v3661_v27 = vmul.f32 %v1613_v23, %v1613_v23 }
 0xba0   : > { %v5685_v29 = vadd.f32 %v5684_v26, %v3638_v22  ;;  %v1614_v26 = vld [vmem:[%s6609_s19 + $0x2e50] sm:$0xff] }
 0xba1   : > { %v3662_v30 = vmul.f32 %v1614_v26, %v1614_v26 }
 0xba2   : > { %v5686_v32 = vadd.f32 %v5685_v29, %v3639_v25  ;;  %v1615_v29 = vld [vmem:[%s6609_s19 + $0x2e58] sm:$0xff] }
 0xba3   : > { %v3663_v33 = vmul.f32 %v1615_v29, %v1615_v29 }
 0xba4   : > { %v5687_v35 = vadd.f32 %v5686_v32, %v3640_v28  ;;  %v1616_v32 = vld [vmem:[%s6609_s19 + $0x2e60] sm:$0xff] }
 0xba5   : > { %v3664_v36 = vmul.f32 %v1616_v32, %v1616_v32 }
 0xba6   : > { %v5688_v38 = vadd.f32 %v5687_v35, %v3641_v31  ;;  %v1617_v35 = vld [vmem:[%s6609_s19 + $0x2e68] sm:$0xff] }
 0xba7   : > { %v3665_v39 = vmul.f32 %v1617_v35, %v1617_v35 }
 0xba8   : > { %v5689_v41 = vadd.f32 %v5688_v38, %v3642_v34  ;;  %v1618_v38 = vld [vmem:[%s6609_s19 + $0x2e70] sm:$0xff] }
 0xba9   : > { %v3666_v42 = vmul.f32 %v1618_v38, %v1618_v38 }
 0xbaa   : > { %v5690_v44 = vadd.f32 %v5689_v41, %v3643_v37  ;;  %v1619_v41 = vld [vmem:[%s6609_s19 + $0x2e78] sm:$0xff] }
 0xbab   : > { %v3667_v45 = vmul.f32 %v1619_v41, %v1619_v41 }
 0xbac   : > { %v5691_v47 = vadd.f32 %v5690_v44, %v3644_v40  ;;  %v1620_v44 = vld [vmem:[%s6609_s19 + $0x2e80] sm:$0xff] }
 0xbad   : > { %v3668_v48 = vmul.f32 %v1620_v44, %v1620_v44 }
 0xbae   : > { %v5692_v50 = vadd.f32 %v5691_v47, %v3645_v43  ;;  %v1621_v47 = vld [vmem:[%s6609_s19 + $0x2e88] sm:$0xff] }
 0xbaf   : > { %v3669_v51 = vmul.f32 %v1621_v47, %v1621_v47 }
 0xbb0   : > { %v5693_v53 = vadd.f32 %v5692_v50, %v3646_v46  ;;  %v1622_v50 = vld [vmem:[%s6609_s19 + $0x2e90] sm:$0xff] }
 0xbb1   : > { %v3670_v54 = vmul.f32 %v1622_v50, %v1622_v50 }
 0xbb2   : > { %v5694_v56 = vadd.f32 %v5693_v53, %v3647_v49  ;;  %v1623_v53 = vld [vmem:[%s6609_s19 + $0x2e98] sm:$0xff] }
 0xbb3   : > { %v3671_v57 = vmul.f32 %v1623_v53, %v1623_v53 }
 0xbb4   : > { %v5695_v59 = vadd.f32 %v5694_v56, %v3648_v52  ;;  %v1624_v56 = vld [vmem:[%s6609_s19 + $0x2ea0] sm:$0xff] }
 0xbb5   : > { %v3672_v60 = vmul.f32 %v1624_v56, %v1624_v56 }
 0xbb6   : > { %v5696_v62 = vadd.f32 %v5695_v59, %v3649_v55  ;;  %v1625_v59 = vld [vmem:[%s6609_s19 + $0x2ea8] sm:$0xff] }
 0xbb7   : > { %v3673_v63 = vmul.f32 %v1625_v59, %v1625_v59 }
 0xbb8   : > { %v5697_v1 = vadd.f32 %v5696_v62, %v3650_v58  ;;  %v1626_v62 = vld [vmem:[%s6609_s19 + $0x2eb0] sm:$0xff] }
 0xbb9   : > { %v3674_v2 = vmul.f32 %v1626_v62, %v1626_v62 }
 0xbba   : > { %v5698_v4 = vadd.f32 %v5697_v1, %v3651_v61  ;;  %v1627_v1 = vld [vmem:[%s6609_s19 + $0x2eb8] sm:$0xff] }
 0xbbb   : > { %v3675_v5 = vmul.f32 %v1627_v1, %v1627_v1 }
 0xbbc   : > { %v5699_v7 = vadd.f32 %v5698_v4, %v3652_v0  ;;  %v1628_v4 = vld [vmem:[%s6609_s19 + $0x2ec0] sm:$0xff] }
 0xbbd   : > { %v3676_v8 = vmul.f32 %v1628_v4, %v1628_v4 }
 0xbbe   : > { %v5700_v10 = vadd.f32 %v5699_v7, %v3653_v3  ;;  %v1629_v7 = vld [vmem:[%s6609_s19 + $0x2ec8] sm:$0xff] }
 0xbbf   : > { %v3677_v11 = vmul.f32 %v1629_v7, %v1629_v7 }
 0xbc0   : > { %v5701_v13 = vadd.f32 %v5700_v10, %v3654_v6  ;;  %v1630_v10 = vld [vmem:[%s6609_s19 + $0x2ed0] sm:$0xff] }
 0xbc1   : > { %v3678_v14 = vmul.f32 %v1630_v10, %v1630_v10 }
 0xbc2   : > { %v5702_v16 = vadd.f32 %v5701_v13, %v3655_v9  ;;  %v1631_v13 = vld [vmem:[%s6609_s19 + $0x2ed8] sm:$0xff] }
 0xbc3   : > { %v3679_v17 = vmul.f32 %v1631_v13, %v1631_v13 }
 0xbc4   : > { %v5703_v19 = vadd.f32 %v5702_v16, %v3656_v12  ;;  %v1632_v16 = vld [vmem:[%s6609_s19 + $0x2ee0] sm:$0xff] }
 0xbc5   : > { %v3680_v20 = vmul.f32 %v1632_v16, %v1632_v16 }
 0xbc6   : > { %v5704_v22 = vadd.f32 %v5703_v19, %v3657_v15  ;;  %v1633_v19 = vld [vmem:[%s6609_s19 + $0x2ee8] sm:$0xff] }
 0xbc7   : > { %v3681_v23 = vmul.f32 %v1633_v19, %v1633_v19 }
 0xbc8   : > { %v5705_v25 = vadd.f32 %v5704_v22, %v3658_v18  ;;  %v1634_v22 = vld [vmem:[%s6609_s19 + $0x2ef0] sm:$0xff] }
 0xbc9   : > { %v3682_v26 = vmul.f32 %v1634_v22, %v1634_v22 }
 0xbca   : > { %v5706_v28 = vadd.f32 %v5705_v25, %v3659_v21  ;;  %v1635_v25 = vld [vmem:[%s6609_s19 + $0x2ef8] sm:$0xff] }
 0xbcb   : > { %v3683_v29 = vmul.f32 %v1635_v25, %v1635_v25 }
 0xbcc   : > { %v5707_v31 = vadd.f32 %v5706_v28, %v3660_v24  ;;  %v1636_v28 = vld [vmem:[%s6609_s19 + $0x2f00] sm:$0xff] }
 0xbcd   : > { %v3684_v32 = vmul.f32 %v1636_v28, %v1636_v28 }
 0xbce   : > { %v5708_v34 = vadd.f32 %v5707_v31, %v3661_v27  ;;  %v1637_v31 = vld [vmem:[%s6609_s19 + $0x2f08] sm:$0xff] }
 0xbcf   : > { %v3685_v35 = vmul.f32 %v1637_v31, %v1637_v31 }
 0xbd0   : > { %v5709_v37 = vadd.f32 %v5708_v34, %v3662_v30  ;;  %v1638_v34 = vld [vmem:[%s6609_s19 + $0x2f10] sm:$0xff] }
 0xbd1   : > { %v3686_v38 = vmul.f32 %v1638_v34, %v1638_v34 }
 0xbd2   : > { %v5710_v40 = vadd.f32 %v5709_v37, %v3663_v33  ;;  %v1639_v37 = vld [vmem:[%s6609_s19 + $0x2f18] sm:$0xff] }
 0xbd3   : > { %v3687_v41 = vmul.f32 %v1639_v37, %v1639_v37 }
 0xbd4   : > { %v5711_v43 = vadd.f32 %v5710_v40, %v3664_v36  ;;  %v1640_v40 = vld [vmem:[%s6609_s19 + $0x2f20] sm:$0xff] }
 0xbd5   : > { %v3688_v44 = vmul.f32 %v1640_v40, %v1640_v40 }
 0xbd6   : > { %v5712_v46 = vadd.f32 %v5711_v43, %v3665_v39  ;;  %v1641_v43 = vld [vmem:[%s6609_s19 + $0x2f28] sm:$0xff] }
 0xbd7   : > { %v3689_v47 = vmul.f32 %v1641_v43, %v1641_v43 }
 0xbd8   : > { %v5713_v49 = vadd.f32 %v5712_v46, %v3666_v42  ;;  %v1642_v46 = vld [vmem:[%s6609_s19 + $0x2f30] sm:$0xff] }
 0xbd9   : > { %v3690_v50 = vmul.f32 %v1642_v46, %v1642_v46 }
 0xbda   : > { %v5714_v52 = vadd.f32 %v5713_v49, %v3667_v45  ;;  %v1643_v49 = vld [vmem:[%s6609_s19 + $0x2f38] sm:$0xff] }
 0xbdb   : > { %v3691_v53 = vmul.f32 %v1643_v49, %v1643_v49 }
 0xbdc   : > { %v5715_v55 = vadd.f32 %v5714_v52, %v3668_v48  ;;  %v1644_v52 = vld [vmem:[%s6609_s19 + $0x2f40] sm:$0xff] }
 0xbdd   : > { %v3692_v56 = vmul.f32 %v1644_v52, %v1644_v52 }
 0xbde   : > { %v5716_v58 = vadd.f32 %v5715_v55, %v3669_v51  ;;  %v1645_v55 = vld [vmem:[%s6609_s19 + $0x2f48] sm:$0xff] }
 0xbdf   : > { %v3693_v59 = vmul.f32 %v1645_v55, %v1645_v55 }
 0xbe0   : > { %v5717_v61 = vadd.f32 %v5716_v58, %v3670_v54  ;;  %v1646_v58 = vld [vmem:[%s6609_s19 + $0x2f50] sm:$0xff] }
 0xbe1   : > { %v3694_v62 = vmul.f32 %v1646_v58, %v1646_v58 }
 0xbe2   : > { %v5718_v0 = vadd.f32 %v5717_v61, %v3671_v57  ;;  %v1647_v61 = vld [vmem:[%s6609_s19 + $0x2f58] sm:$0xff] }
 0xbe3   : > { %v3695_v1 = vmul.f32 %v1647_v61, %v1647_v61 }
 0xbe4   : > { %v5719_v3 = vadd.f32 %v5718_v0, %v3672_v60  ;;  %v1648_v0 = vld [vmem:[%s6609_s19 + $0x2f60] sm:$0xff] }
 0xbe5   : > { %v3696_v4 = vmul.f32 %v1648_v0, %v1648_v0 }
 0xbe6   : > { %v5720_v6 = vadd.f32 %v5719_v3, %v3673_v63  ;;  %v1649_v3 = vld [vmem:[%s6609_s19 + $0x2f68] sm:$0xff] }
 0xbe7   : > { %v3697_v7 = vmul.f32 %v1649_v3, %v1649_v3 }
 0xbe8   : > { %v5721_v9 = vadd.f32 %v5720_v6, %v3674_v2  ;;  %v1650_v6 = vld [vmem:[%s6609_s19 + $0x2f70] sm:$0xff] }
 0xbe9   : > { %v3698_v10 = vmul.f32 %v1650_v6, %v1650_v6 }
 0xbea   : > { %v5722_v12 = vadd.f32 %v5721_v9, %v3675_v5  ;;  %v1651_v9 = vld [vmem:[%s6609_s19 + $0x2f78] sm:$0xff] }
 0xbeb   : > { %v3699_v13 = vmul.f32 %v1651_v9, %v1651_v9 }
 0xbec   : > { %v5723_v15 = vadd.f32 %v5722_v12, %v3676_v8  ;;  %v1652_v12 = vld [vmem:[%s6609_s19 + $0x2f80] sm:$0xff] }
 0xbed   : > { %v3700_v16 = vmul.f32 %v1652_v12, %v1652_v12 }
 0xbee   : > { %v5724_v18 = vadd.f32 %v5723_v15, %v3677_v11  ;;  %v1653_v15 = vld [vmem:[%s6609_s19 + $0x2f88] sm:$0xff] }
 0xbef   : > { %v3701_v19 = vmul.f32 %v1653_v15, %v1653_v15 }
 0xbf0   : > { %v5725_v21 = vadd.f32 %v5724_v18, %v3678_v14  ;;  %v1654_v18 = vld [vmem:[%s6609_s19 + $0x2f90] sm:$0xff] }
 0xbf1   : > { %v3702_v22 = vmul.f32 %v1654_v18, %v1654_v18 }
 0xbf2   : > { %v5726_v24 = vadd.f32 %v5725_v21, %v3679_v17  ;;  %v1655_v21 = vld [vmem:[%s6609_s19 + $0x2f98] sm:$0xff] }
 0xbf3   : > { %v3703_v25 = vmul.f32 %v1655_v21, %v1655_v21 }
 0xbf4   : > { %v5727_v27 = vadd.f32 %v5726_v24, %v3680_v20  ;;  %v1656_v24 = vld [vmem:[%s6609_s19 + $0x2fa0] sm:$0xff] }
 0xbf5   : > { %v3704_v28 = vmul.f32 %v1656_v24, %v1656_v24 }
 0xbf6   : > { %v5728_v30 = vadd.f32 %v5727_v27, %v3681_v23  ;;  %v1657_v27 = vld [vmem:[%s6609_s19 + $0x2fa8] sm:$0xff] }
 0xbf7   : > { %v3705_v31 = vmul.f32 %v1657_v27, %v1657_v27 }
 0xbf8   : > { %v5729_v33 = vadd.f32 %v5728_v30, %v3682_v26  ;;  %v1658_v30 = vld [vmem:[%s6609_s19 + $0x2fb0] sm:$0xff] }
 0xbf9   : > { %v3706_v34 = vmul.f32 %v1658_v30, %v1658_v30 }
 0xbfa   : > { %v5730_v36 = vadd.f32 %v5729_v33, %v3683_v29  ;;  %v1659_v33 = vld [vmem:[%s6609_s19 + $0x2fb8] sm:$0xff] }
 0xbfb   : > { %v3707_v37 = vmul.f32 %v1659_v33, %v1659_v33 }
 0xbfc   : > { %v5731_v39 = vadd.f32 %v5730_v36, %v3684_v32  ;;  %v1660_v36 = vld [vmem:[%s6609_s19 + $0x2fc0] sm:$0xff] }
 0xbfd   : > { %v3708_v40 = vmul.f32 %v1660_v36, %v1660_v36 }
 0xbfe   : > { %v5732_v42 = vadd.f32 %v5731_v39, %v3685_v35  ;;  %v1661_v39 = vld [vmem:[%s6609_s19 + $0x2fc8] sm:$0xff] }
 0xbff   : > { %v3709_v43 = vmul.f32 %v1661_v39, %v1661_v39 }
 0xc00   : > { %v5733_v45 = vadd.f32 %v5732_v42, %v3686_v38  ;;  %v1662_v42 = vld [vmem:[%s6609_s19 + $0x2fd0] sm:$0xff] }
 0xc01   : > { %v3710_v46 = vmul.f32 %v1662_v42, %v1662_v42 }
 0xc02   : > { %v5734_v48 = vadd.f32 %v5733_v45, %v3687_v41  ;;  %v1663_v45 = vld [vmem:[%s6609_s19 + $0x2fd8] sm:$0xff] }
 0xc03   : > { %v3711_v49 = vmul.f32 %v1663_v45, %v1663_v45 }
 0xc04   : > { %v5735_v51 = vadd.f32 %v5734_v48, %v3688_v44  ;;  %v1664_v48 = vld [vmem:[%s6609_s19 + $0x2fe0] sm:$0xff] }
 0xc05   : > { %v3712_v52 = vmul.f32 %v1664_v48, %v1664_v48 }
 0xc06   : > { %v5736_v54 = vadd.f32 %v5735_v51, %v3689_v47  ;;  %v1665_v51 = vld [vmem:[%s6609_s19 + $0x2fe8] sm:$0xff] }
 0xc07   : > { %v3713_v55 = vmul.f32 %v1665_v51, %v1665_v51 }
 0xc08   : > { %v5737_v57 = vadd.f32 %v5736_v54, %v3690_v50  ;;  %v1666_v54 = vld [vmem:[%s6609_s19 + $0x2ff0] sm:$0xff] }
 0xc09   : > { %v3714_v58 = vmul.f32 %v1666_v54, %v1666_v54 }
 0xc0a   : > { %v5738_v60 = vadd.f32 %v5737_v57, %v3691_v53  ;;  %v1667_v57 = vld [vmem:[%s6609_s19 + $0x2ff8] sm:$0xff] }
 0xc0b   : > { %v3715_v61 = vmul.f32 %v1667_v57, %v1667_v57 }
 0xc0c   : > { %v5739_v63 = vadd.f32 %v5738_v60, %v3692_v56  ;;  %v1668_v60 = vld [vmem:[%s6609_s19 + $0x3000] sm:$0xff] }
 0xc0d   : > { %v3716_v0 = vmul.f32 %v1668_v60, %v1668_v60 }
 0xc0e   : > { %v5740_v2 = vadd.f32 %v5739_v63, %v3693_v59  ;;  %v1669_v63 = vld [vmem:[%s6609_s19 + $0x3008] sm:$0xff] }
 0xc0f   : > { %v3717_v3 = vmul.f32 %v1669_v63, %v1669_v63 }
 0xc10   : > { %v5741_v5 = vadd.f32 %v5740_v2, %v3694_v62  ;;  %v1670_v2 = vld [vmem:[%s6609_s19 + $0x3010] sm:$0xff] }
 0xc11   : > { %v3718_v6 = vmul.f32 %v1670_v2, %v1670_v2 }
 0xc12   : > { %v5742_v8 = vadd.f32 %v5741_v5, %v3695_v1  ;;  %v1671_v5 = vld [vmem:[%s6609_s19 + $0x3018] sm:$0xff] }
 0xc13   : > { %v3719_v9 = vmul.f32 %v1671_v5, %v1671_v5 }
 0xc14   : > { %v5743_v11 = vadd.f32 %v5742_v8, %v3696_v4  ;;  %v1672_v8 = vld [vmem:[%s6609_s19 + $0x3020] sm:$0xff] }
 0xc15   : > { %v3720_v12 = vmul.f32 %v1672_v8, %v1672_v8 }
 0xc16   : > { %v5744_v14 = vadd.f32 %v5743_v11, %v3697_v7  ;;  %v1673_v11 = vld [vmem:[%s6609_s19 + $0x3028] sm:$0xff] }
 0xc17   : > { %v3721_v15 = vmul.f32 %v1673_v11, %v1673_v11 }
 0xc18   : > { %v5745_v17 = vadd.f32 %v5744_v14, %v3698_v10  ;;  %v1674_v14 = vld [vmem:[%s6609_s19 + $0x3030] sm:$0xff] }
 0xc19   : > { %v3722_v18 = vmul.f32 %v1674_v14, %v1674_v14 }
 0xc1a   : > { %v5746_v20 = vadd.f32 %v5745_v17, %v3699_v13  ;;  %v1675_v17 = vld [vmem:[%s6609_s19 + $0x3038] sm:$0xff] }
 0xc1b   : > { %v3723_v21 = vmul.f32 %v1675_v17, %v1675_v17 }
 0xc1c   : > { %v5747_v23 = vadd.f32 %v5746_v20, %v3700_v16  ;;  %v1676_v20 = vld [vmem:[%s6609_s19 + $0x3040] sm:$0xff] }
 0xc1d   : > { %v3724_v24 = vmul.f32 %v1676_v20, %v1676_v20 }
 0xc1e   : > { %v5748_v26 = vadd.f32 %v5747_v23, %v3701_v19  ;;  %v1677_v23 = vld [vmem:[%s6609_s19 + $0x3048] sm:$0xff] }
 0xc1f   : > { %v3725_v27 = vmul.f32 %v1677_v23, %v1677_v23 }
 0xc20   : > { %v5749_v29 = vadd.f32 %v5748_v26, %v3702_v22  ;;  %v1678_v26 = vld [vmem:[%s6609_s19 + $0x3050] sm:$0xff] }
 0xc21   : > { %v3726_v30 = vmul.f32 %v1678_v26, %v1678_v26 }
 0xc22   : > { %v5750_v32 = vadd.f32 %v5749_v29, %v3703_v25  ;;  %v1679_v29 = vld [vmem:[%s6609_s19 + $0x3058] sm:$0xff] }
 0xc23   : > { %v3727_v33 = vmul.f32 %v1679_v29, %v1679_v29 }
 0xc24   : > { %v5751_v35 = vadd.f32 %v5750_v32, %v3704_v28  ;;  %v1680_v32 = vld [vmem:[%s6609_s19 + $0x3060] sm:$0xff] }
 0xc25   : > { %v3728_v36 = vmul.f32 %v1680_v32, %v1680_v32 }
 0xc26   : > { %v5752_v38 = vadd.f32 %v5751_v35, %v3705_v31  ;;  %v1681_v35 = vld [vmem:[%s6609_s19 + $0x3068] sm:$0xff] }
 0xc27   : > { %v3729_v39 = vmul.f32 %v1681_v35, %v1681_v35 }
 0xc28   : > { %v5753_v41 = vadd.f32 %v5752_v38, %v3706_v34  ;;  %v1682_v38 = vld [vmem:[%s6609_s19 + $0x3070] sm:$0xff] }
 0xc29   : > { %v3730_v42 = vmul.f32 %v1682_v38, %v1682_v38 }
 0xc2a   : > { %v5754_v44 = vadd.f32 %v5753_v41, %v3707_v37  ;;  %v1683_v41 = vld [vmem:[%s6609_s19 + $0x3078] sm:$0xff] }
 0xc2b   : > { %v3731_v45 = vmul.f32 %v1683_v41, %v1683_v41 }
 0xc2c   : > { %v5755_v47 = vadd.f32 %v5754_v44, %v3708_v40  ;;  %v1684_v44 = vld [vmem:[%s6609_s19 + $0x3080] sm:$0xff] }
 0xc2d   : > { %v3732_v48 = vmul.f32 %v1684_v44, %v1684_v44 }
 0xc2e   : > { %v5756_v50 = vadd.f32 %v5755_v47, %v3709_v43  ;;  %v1685_v47 = vld [vmem:[%s6609_s19 + $0x3088] sm:$0xff] }
 0xc2f   : > { %v3733_v51 = vmul.f32 %v1685_v47, %v1685_v47 }
 0xc30   : > { %v5757_v53 = vadd.f32 %v5756_v50, %v3710_v46  ;;  %v1686_v50 = vld [vmem:[%s6609_s19 + $0x3090] sm:$0xff] }
 0xc31   : > { %v3734_v54 = vmul.f32 %v1686_v50, %v1686_v50 }
 0xc32   : > { %v5758_v56 = vadd.f32 %v5757_v53, %v3711_v49  ;;  %v1687_v53 = vld [vmem:[%s6609_s19 + $0x3098] sm:$0xff] }
 0xc33   : > { %v3735_v57 = vmul.f32 %v1687_v53, %v1687_v53 }
 0xc34   : > { %v5759_v59 = vadd.f32 %v5758_v56, %v3712_v52  ;;  %v1688_v56 = vld [vmem:[%s6609_s19 + $0x30a0] sm:$0xff] }
 0xc35   : > { %v3736_v60 = vmul.f32 %v1688_v56, %v1688_v56 }
 0xc36   : > { %v5760_v62 = vadd.f32 %v5759_v59, %v3713_v55  ;;  %v1689_v59 = vld [vmem:[%s6609_s19 + $0x30a8] sm:$0xff] }
 0xc37   : > { %v3737_v63 = vmul.f32 %v1689_v59, %v1689_v59 }
 0xc38   : > { %v5761_v1 = vadd.f32 %v5760_v62, %v3714_v58  ;;  %v1690_v62 = vld [vmem:[%s6609_s19 + $0x30b0] sm:$0xff] }
 0xc39   : > { %v3738_v2 = vmul.f32 %v1690_v62, %v1690_v62 }
 0xc3a   : > { %v5762_v4 = vadd.f32 %v5761_v1, %v3715_v61  ;;  %v1691_v1 = vld [vmem:[%s6609_s19 + $0x30b8] sm:$0xff] }
 0xc3b   : > { %v3739_v5 = vmul.f32 %v1691_v1, %v1691_v1 }
 0xc3c   : > { %v5763_v7 = vadd.f32 %v5762_v4, %v3716_v0  ;;  %v1692_v4 = vld [vmem:[%s6609_s19 + $0x30c0] sm:$0xff] }
 0xc3d   : > { %v3740_v8 = vmul.f32 %v1692_v4, %v1692_v4 }
 0xc3e   : > { %v5764_v10 = vadd.f32 %v5763_v7, %v3717_v3  ;;  %v1693_v7 = vld [vmem:[%s6609_s19 + $0x30c8] sm:$0xff] }
 0xc3f   : > { %v3741_v11 = vmul.f32 %v1693_v7, %v1693_v7 }
 0xc40   : > { %v5765_v13 = vadd.f32 %v5764_v10, %v3718_v6  ;;  %v1694_v10 = vld [vmem:[%s6609_s19 + $0x30d0] sm:$0xff] }
 0xc41   : > { %v3742_v14 = vmul.f32 %v1694_v10, %v1694_v10 }
 0xc42   : > { %v5766_v16 = vadd.f32 %v5765_v13, %v3719_v9  ;;  %v1695_v13 = vld [vmem:[%s6609_s19 + $0x30d8] sm:$0xff] }
 0xc43   : > { %v3743_v17 = vmul.f32 %v1695_v13, %v1695_v13 }
 0xc44   : > { %v5767_v19 = vadd.f32 %v5766_v16, %v3720_v12  ;;  %v1696_v16 = vld [vmem:[%s6609_s19 + $0x30e0] sm:$0xff] }
 0xc45   : > { %v3744_v20 = vmul.f32 %v1696_v16, %v1696_v16 }
 0xc46   : > { %v5768_v22 = vadd.f32 %v5767_v19, %v3721_v15  ;;  %v1697_v19 = vld [vmem:[%s6609_s19 + $0x30e8] sm:$0xff] }
 0xc47   : > { %v3745_v23 = vmul.f32 %v1697_v19, %v1697_v19 }
 0xc48   : > { %v5769_v25 = vadd.f32 %v5768_v22, %v3722_v18  ;;  %v1698_v22 = vld [vmem:[%s6609_s19 + $0x30f0] sm:$0xff] }
 0xc49   : > { %v3746_v26 = vmul.f32 %v1698_v22, %v1698_v22 }
 0xc4a   : > { %v5770_v28 = vadd.f32 %v5769_v25, %v3723_v21  ;;  %v1699_v25 = vld [vmem:[%s6609_s19 + $0x30f8] sm:$0xff] }
 0xc4b   : > { %v3747_v29 = vmul.f32 %v1699_v25, %v1699_v25 }
 0xc4c   : > { %v5771_v31 = vadd.f32 %v5770_v28, %v3724_v24  ;;  %v1700_v28 = vld [vmem:[%s6609_s19 + $0x3100] sm:$0xff] }
 0xc4d   : > { %v3748_v32 = vmul.f32 %v1700_v28, %v1700_v28 }
 0xc4e   : > { %v5772_v34 = vadd.f32 %v5771_v31, %v3725_v27  ;;  %v1701_v31 = vld [vmem:[%s6609_s19 + $0x3108] sm:$0xff] }
 0xc4f   : > { %v3749_v35 = vmul.f32 %v1701_v31, %v1701_v31 }
 0xc50   : > { %v5773_v37 = vadd.f32 %v5772_v34, %v3726_v30  ;;  %v1702_v34 = vld [vmem:[%s6609_s19 + $0x3110] sm:$0xff] }
 0xc51   : > { %v3750_v38 = vmul.f32 %v1702_v34, %v1702_v34 }
 0xc52   : > { %v5774_v40 = vadd.f32 %v5773_v37, %v3727_v33  ;;  %v1703_v37 = vld [vmem:[%s6609_s19 + $0x3118] sm:$0xff] }
 0xc53   : > { %v3751_v41 = vmul.f32 %v1703_v37, %v1703_v37 }
 0xc54   : > { %v5775_v43 = vadd.f32 %v5774_v40, %v3728_v36  ;;  %v1704_v40 = vld [vmem:[%s6609_s19 + $0x3120] sm:$0xff] }
 0xc55   : > { %v3752_v44 = vmul.f32 %v1704_v40, %v1704_v40 }
 0xc56   : > { %v5776_v46 = vadd.f32 %v5775_v43, %v3729_v39  ;;  %v1705_v43 = vld [vmem:[%s6609_s19 + $0x3128] sm:$0xff] }
 0xc57   : > { %v3753_v47 = vmul.f32 %v1705_v43, %v1705_v43 }
 0xc58   : > { %v5777_v49 = vadd.f32 %v5776_v46, %v3730_v42  ;;  %v1706_v46 = vld [vmem:[%s6609_s19 + $0x3130] sm:$0xff] }
 0xc59   : > { %v3754_v50 = vmul.f32 %v1706_v46, %v1706_v46 }
 0xc5a   : > { %v5778_v52 = vadd.f32 %v5777_v49, %v3731_v45  ;;  %v1707_v49 = vld [vmem:[%s6609_s19 + $0x3138] sm:$0xff] }
 0xc5b   : > { %v3755_v53 = vmul.f32 %v1707_v49, %v1707_v49 }
 0xc5c   : > { %v5779_v55 = vadd.f32 %v5778_v52, %v3732_v48  ;;  %v1708_v52 = vld [vmem:[%s6609_s19 + $0x3140] sm:$0xff] }
 0xc5d   : > { %v3756_v56 = vmul.f32 %v1708_v52, %v1708_v52 }
 0xc5e   : > { %v5780_v58 = vadd.f32 %v5779_v55, %v3733_v51  ;;  %v1709_v55 = vld [vmem:[%s6609_s19 + $0x3148] sm:$0xff] }
 0xc5f   : > { %v3757_v59 = vmul.f32 %v1709_v55, %v1709_v55 }
 0xc60   : > { %v5781_v61 = vadd.f32 %v5780_v58, %v3734_v54  ;;  %v1710_v58 = vld [vmem:[%s6609_s19 + $0x3150] sm:$0xff] }
 0xc61   : > { %v3758_v62 = vmul.f32 %v1710_v58, %v1710_v58 }
 0xc62   : > { %v5782_v0 = vadd.f32 %v5781_v61, %v3735_v57  ;;  %v1711_v61 = vld [vmem:[%s6609_s19 + $0x3158] sm:$0xff] }
 0xc63   : > { %v3759_v1 = vmul.f32 %v1711_v61, %v1711_v61 }
 0xc64   : > { %v5783_v3 = vadd.f32 %v5782_v0, %v3736_v60  ;;  %v1712_v0 = vld [vmem:[%s6609_s19 + $0x3160] sm:$0xff] }
 0xc65   : > { %v3760_v4 = vmul.f32 %v1712_v0, %v1712_v0 }
 0xc66   : > { %v5784_v6 = vadd.f32 %v5783_v3, %v3737_v63  ;;  %v1713_v3 = vld [vmem:[%s6609_s19 + $0x3168] sm:$0xff] }
 0xc67   : > { %v3761_v7 = vmul.f32 %v1713_v3, %v1713_v3 }
 0xc68   : > { %v5785_v9 = vadd.f32 %v5784_v6, %v3738_v2  ;;  %v1714_v6 = vld [vmem:[%s6609_s19 + $0x3170] sm:$0xff] }
 0xc69   : > { %v3762_v10 = vmul.f32 %v1714_v6, %v1714_v6 }
 0xc6a   : > { %v5786_v12 = vadd.f32 %v5785_v9, %v3739_v5  ;;  %v1715_v9 = vld [vmem:[%s6609_s19 + $0x3178] sm:$0xff] }
 0xc6b   : > { %v3763_v13 = vmul.f32 %v1715_v9, %v1715_v9 }
 0xc6c   : > { %v5787_v15 = vadd.f32 %v5786_v12, %v3740_v8  ;;  %v1716_v12 = vld [vmem:[%s6609_s19 + $0x3180] sm:$0xff] }
 0xc6d   : > { %v3764_v16 = vmul.f32 %v1716_v12, %v1716_v12 }
 0xc6e   : > { %v5788_v18 = vadd.f32 %v5787_v15, %v3741_v11  ;;  %v1717_v15 = vld [vmem:[%s6609_s19 + $0x3188] sm:$0xff] }
 0xc6f   : > { %v3765_v19 = vmul.f32 %v1717_v15, %v1717_v15 }
 0xc70   : > { %v5789_v21 = vadd.f32 %v5788_v18, %v3742_v14  ;;  %v1718_v18 = vld [vmem:[%s6609_s19 + $0x3190] sm:$0xff] }
 0xc71   : > { %v3766_v22 = vmul.f32 %v1718_v18, %v1718_v18 }
 0xc72   : > { %v5790_v24 = vadd.f32 %v5789_v21, %v3743_v17  ;;  %v1719_v21 = vld [vmem:[%s6609_s19 + $0x3198] sm:$0xff] }
 0xc73   : > { %v3767_v25 = vmul.f32 %v1719_v21, %v1719_v21 }
 0xc74   : > { %v5791_v27 = vadd.f32 %v5790_v24, %v3744_v20  ;;  %v1720_v24 = vld [vmem:[%s6609_s19 + $0x31a0] sm:$0xff] }
 0xc75   : > { %v3768_v28 = vmul.f32 %v1720_v24, %v1720_v24 }
 0xc76   : > { %v5792_v30 = vadd.f32 %v5791_v27, %v3745_v23  ;;  %v1721_v27 = vld [vmem:[%s6609_s19 + $0x31a8] sm:$0xff] }
 0xc77   : > { %v3769_v31 = vmul.f32 %v1721_v27, %v1721_v27 }
 0xc78   : > { %v5793_v33 = vadd.f32 %v5792_v30, %v3746_v26  ;;  %v1722_v30 = vld [vmem:[%s6609_s19 + $0x31b0] sm:$0xff] }
 0xc79   : > { %v3770_v34 = vmul.f32 %v1722_v30, %v1722_v30 }
 0xc7a   : > { %v5794_v36 = vadd.f32 %v5793_v33, %v3747_v29  ;;  %v1723_v33 = vld [vmem:[%s6609_s19 + $0x31b8] sm:$0xff] }
 0xc7b   : > { %v3771_v37 = vmul.f32 %v1723_v33, %v1723_v33 }
 0xc7c   : > { %v5795_v39 = vadd.f32 %v5794_v36, %v3748_v32  ;;  %v1724_v36 = vld [vmem:[%s6609_s19 + $0x31c0] sm:$0xff] }
 0xc7d   : > { %v3772_v40 = vmul.f32 %v1724_v36, %v1724_v36 }
 0xc7e   : > { %v5796_v42 = vadd.f32 %v5795_v39, %v3749_v35  ;;  %v1725_v39 = vld [vmem:[%s6609_s19 + $0x31c8] sm:$0xff] }
 0xc7f   : > { %v3773_v43 = vmul.f32 %v1725_v39, %v1725_v39 }
 0xc80   : > { %v5797_v45 = vadd.f32 %v5796_v42, %v3750_v38  ;;  %v1726_v42 = vld [vmem:[%s6609_s19 + $0x31d0] sm:$0xff] }
 0xc81   : > { %v3774_v46 = vmul.f32 %v1726_v42, %v1726_v42 }
 0xc82   : > { %v5798_v48 = vadd.f32 %v5797_v45, %v3751_v41  ;;  %v1727_v45 = vld [vmem:[%s6609_s19 + $0x31d8] sm:$0xff] }
 0xc83   : > { %v3775_v49 = vmul.f32 %v1727_v45, %v1727_v45 }
 0xc84   : > { %v5799_v51 = vadd.f32 %v5798_v48, %v3752_v44  ;;  %v1728_v48 = vld [vmem:[%s6609_s19 + $0x31e0] sm:$0xff] }
 0xc85   : > { %v3776_v52 = vmul.f32 %v1728_v48, %v1728_v48 }
 0xc86   : > { %v5800_v54 = vadd.f32 %v5799_v51, %v3753_v47  ;;  %v1729_v51 = vld [vmem:[%s6609_s19 + $0x31e8] sm:$0xff] }
 0xc87   : > { %v3777_v55 = vmul.f32 %v1729_v51, %v1729_v51 }
 0xc88   : > { %v5801_v57 = vadd.f32 %v5800_v54, %v3754_v50  ;;  %v1730_v54 = vld [vmem:[%s6609_s19 + $0x31f0] sm:$0xff] }
 0xc89   : > { %v3778_v58 = vmul.f32 %v1730_v54, %v1730_v54 }
 0xc8a   : > { %v5802_v60 = vadd.f32 %v5801_v57, %v3755_v53  ;;  %v1731_v57 = vld [vmem:[%s6609_s19 + $0x31f8] sm:$0xff] }
 0xc8b   : > { %v3779_v61 = vmul.f32 %v1731_v57, %v1731_v57 }
 0xc8c   : > { %v5803_v63 = vadd.f32 %v5802_v60, %v3756_v56  ;;  %v1732_v60 = vld [vmem:[%s6609_s19 + $0x3200] sm:$0xff] }
 0xc8d   : > { %v3780_v0 = vmul.f32 %v1732_v60, %v1732_v60 }
 0xc8e   : > { %v5804_v2 = vadd.f32 %v5803_v63, %v3757_v59  ;;  %v1733_v63 = vld [vmem:[%s6609_s19 + $0x3208] sm:$0xff] }
 0xc8f   : > { %v3781_v3 = vmul.f32 %v1733_v63, %v1733_v63 }
 0xc90   : > { %v5805_v5 = vadd.f32 %v5804_v2, %v3758_v62  ;;  %v1734_v2 = vld [vmem:[%s6609_s19 + $0x3210] sm:$0xff] }
 0xc91   : > { %v3782_v6 = vmul.f32 %v1734_v2, %v1734_v2 }
 0xc92   : > { %v5806_v8 = vadd.f32 %v5805_v5, %v3759_v1  ;;  %v1735_v5 = vld [vmem:[%s6609_s19 + $0x3218] sm:$0xff] }
 0xc93   : > { %v3783_v9 = vmul.f32 %v1735_v5, %v1735_v5 }
 0xc94   : > { %v5807_v11 = vadd.f32 %v5806_v8, %v3760_v4  ;;  %v1736_v8 = vld [vmem:[%s6609_s19 + $0x3220] sm:$0xff] }
 0xc95   : > { %v3784_v12 = vmul.f32 %v1736_v8, %v1736_v8 }
 0xc96   : > { %v5808_v14 = vadd.f32 %v5807_v11, %v3761_v7  ;;  %v1737_v11 = vld [vmem:[%s6609_s19 + $0x3228] sm:$0xff] }
 0xc97   : > { %v3785_v15 = vmul.f32 %v1737_v11, %v1737_v11 }
 0xc98   : > { %v5809_v17 = vadd.f32 %v5808_v14, %v3762_v10  ;;  %v1738_v14 = vld [vmem:[%s6609_s19 + $0x3230] sm:$0xff] }
 0xc99   : > { %v3786_v18 = vmul.f32 %v1738_v14, %v1738_v14 }
 0xc9a   : > { %v5810_v20 = vadd.f32 %v5809_v17, %v3763_v13  ;;  %v1739_v17 = vld [vmem:[%s6609_s19 + $0x3238] sm:$0xff] }
 0xc9b   : > { %v3787_v21 = vmul.f32 %v1739_v17, %v1739_v17 }
 0xc9c   : > { %v5811_v23 = vadd.f32 %v5810_v20, %v3764_v16  ;;  %v1740_v20 = vld [vmem:[%s6609_s19 + $0x3240] sm:$0xff] }
 0xc9d   : > { %v3788_v24 = vmul.f32 %v1740_v20, %v1740_v20 }
 0xc9e   : > { %v5812_v26 = vadd.f32 %v5811_v23, %v3765_v19  ;;  %v1741_v23 = vld [vmem:[%s6609_s19 + $0x3248] sm:$0xff] }
 0xc9f   : > { %v3789_v27 = vmul.f32 %v1741_v23, %v1741_v23 }
 0xca0   : > { %v5813_v29 = vadd.f32 %v5812_v26, %v3766_v22  ;;  %v1742_v26 = vld [vmem:[%s6609_s19 + $0x3250] sm:$0xff] }
 0xca1   : > { %v3790_v30 = vmul.f32 %v1742_v26, %v1742_v26 }
 0xca2   : > { %v5814_v32 = vadd.f32 %v5813_v29, %v3767_v25  ;;  %v1743_v29 = vld [vmem:[%s6609_s19 + $0x3258] sm:$0xff] }
 0xca3   : > { %v3791_v33 = vmul.f32 %v1743_v29, %v1743_v29 }
 0xca4   : > { %v5815_v35 = vadd.f32 %v5814_v32, %v3768_v28  ;;  %v1744_v32 = vld [vmem:[%s6609_s19 + $0x3260] sm:$0xff] }
 0xca5   : > { %v3792_v36 = vmul.f32 %v1744_v32, %v1744_v32 }
 0xca6   : > { %v5816_v38 = vadd.f32 %v5815_v35, %v3769_v31  ;;  %v1745_v35 = vld [vmem:[%s6609_s19 + $0x3268] sm:$0xff] }
 0xca7   : > { %v3793_v39 = vmul.f32 %v1745_v35, %v1745_v35 }
 0xca8   : > { %v5817_v41 = vadd.f32 %v5816_v38, %v3770_v34  ;;  %v1746_v38 = vld [vmem:[%s6609_s19 + $0x3270] sm:$0xff] }
 0xca9   : > { %v3794_v42 = vmul.f32 %v1746_v38, %v1746_v38 }
 0xcaa   : > { %v5818_v44 = vadd.f32 %v5817_v41, %v3771_v37  ;;  %v1747_v41 = vld [vmem:[%s6609_s19 + $0x3278] sm:$0xff] }
 0xcab   : > { %v3795_v45 = vmul.f32 %v1747_v41, %v1747_v41 }
 0xcac   : > { %v5819_v47 = vadd.f32 %v5818_v44, %v3772_v40  ;;  %v1748_v44 = vld [vmem:[%s6609_s19 + $0x3280] sm:$0xff] }
 0xcad   : > { %v3796_v48 = vmul.f32 %v1748_v44, %v1748_v44 }
 0xcae   : > { %v5820_v50 = vadd.f32 %v5819_v47, %v3773_v43  ;;  %v1749_v47 = vld [vmem:[%s6609_s19 + $0x3288] sm:$0xff] }
 0xcaf   : > { %v3797_v51 = vmul.f32 %v1749_v47, %v1749_v47 }
 0xcb0   : > { %v5821_v53 = vadd.f32 %v5820_v50, %v3774_v46  ;;  %v1750_v50 = vld [vmem:[%s6609_s19 + $0x3290] sm:$0xff] }
 0xcb1   : > { %v3798_v54 = vmul.f32 %v1750_v50, %v1750_v50 }
 0xcb2   : > { %v5822_v56 = vadd.f32 %v5821_v53, %v3775_v49  ;;  %v1751_v53 = vld [vmem:[%s6609_s19 + $0x3298] sm:$0xff] }
 0xcb3   : > { %v3799_v57 = vmul.f32 %v1751_v53, %v1751_v53 }
 0xcb4   : > { %v5823_v59 = vadd.f32 %v5822_v56, %v3776_v52  ;;  %v1752_v56 = vld [vmem:[%s6609_s19 + $0x32a0] sm:$0xff] }
 0xcb5   : > { %v3800_v60 = vmul.f32 %v1752_v56, %v1752_v56 }
 0xcb6   : > { %v5824_v62 = vadd.f32 %v5823_v59, %v3777_v55  ;;  %v1753_v59 = vld [vmem:[%s6609_s19 + $0x32a8] sm:$0xff] }
 0xcb7   : > { %v3801_v63 = vmul.f32 %v1753_v59, %v1753_v59 }
 0xcb8   : > { %v5825_v1 = vadd.f32 %v5824_v62, %v3778_v58  ;;  %v1754_v62 = vld [vmem:[%s6609_s19 + $0x32b0] sm:$0xff] }
 0xcb9   : > { %v3802_v2 = vmul.f32 %v1754_v62, %v1754_v62 }
 0xcba   : > { %v5826_v4 = vadd.f32 %v5825_v1, %v3779_v61  ;;  %v1755_v1 = vld [vmem:[%s6609_s19 + $0x32b8] sm:$0xff] }
 0xcbb   : > { %v3803_v5 = vmul.f32 %v1755_v1, %v1755_v1 }
 0xcbc   : > { %v5827_v7 = vadd.f32 %v5826_v4, %v3780_v0  ;;  %v1756_v4 = vld [vmem:[%s6609_s19 + $0x32c0] sm:$0xff] }
 0xcbd   : > { %v3804_v8 = vmul.f32 %v1756_v4, %v1756_v4 }
 0xcbe   : > { %v5828_v10 = vadd.f32 %v5827_v7, %v3781_v3  ;;  %v1757_v7 = vld [vmem:[%s6609_s19 + $0x32c8] sm:$0xff] }
 0xcbf   : > { %v3805_v11 = vmul.f32 %v1757_v7, %v1757_v7 }
 0xcc0   : > { %v5829_v13 = vadd.f32 %v5828_v10, %v3782_v6  ;;  %v1758_v10 = vld [vmem:[%s6609_s19 + $0x32d0] sm:$0xff] }
 0xcc1   : > { %v3806_v14 = vmul.f32 %v1758_v10, %v1758_v10 }
 0xcc2   : > { %v5830_v16 = vadd.f32 %v5829_v13, %v3783_v9  ;;  %v1759_v13 = vld [vmem:[%s6609_s19 + $0x32d8] sm:$0xff] }
 0xcc3   : > { %v3807_v17 = vmul.f32 %v1759_v13, %v1759_v13 }
 0xcc4   : > { %v5831_v19 = vadd.f32 %v5830_v16, %v3784_v12  ;;  %v1760_v16 = vld [vmem:[%s6609_s19 + $0x32e0] sm:$0xff] }
 0xcc5   : > { %v3808_v20 = vmul.f32 %v1760_v16, %v1760_v16 }
 0xcc6   : > { %v5832_v22 = vadd.f32 %v5831_v19, %v3785_v15  ;;  %v1761_v19 = vld [vmem:[%s6609_s19 + $0x32e8] sm:$0xff] }
 0xcc7   : > { %v3809_v23 = vmul.f32 %v1761_v19, %v1761_v19 }
 0xcc8   : > { %v5833_v25 = vadd.f32 %v5832_v22, %v3786_v18  ;;  %v1762_v22 = vld [vmem:[%s6609_s19 + $0x32f0] sm:$0xff] }
 0xcc9   : > { %v3810_v26 = vmul.f32 %v1762_v22, %v1762_v22 }
 0xcca   : > { %v5834_v28 = vadd.f32 %v5833_v25, %v3787_v21  ;;  %v1763_v25 = vld [vmem:[%s6609_s19 + $0x32f8] sm:$0xff] }
 0xccb   : > { %v3811_v29 = vmul.f32 %v1763_v25, %v1763_v25 }
 0xccc   : > { %v5835_v31 = vadd.f32 %v5834_v28, %v3788_v24  ;;  %v1764_v28 = vld [vmem:[%s6609_s19 + $0x3300] sm:$0xff] }
 0xccd   : > { %v3812_v32 = vmul.f32 %v1764_v28, %v1764_v28 }
 0xcce   : > { %v5836_v34 = vadd.f32 %v5835_v31, %v3789_v27  ;;  %v1765_v31 = vld [vmem:[%s6609_s19 + $0x3308] sm:$0xff] }
 0xccf   : > { %v3813_v35 = vmul.f32 %v1765_v31, %v1765_v31 }
 0xcd0   : > { %v5837_v37 = vadd.f32 %v5836_v34, %v3790_v30  ;;  %v1766_v34 = vld [vmem:[%s6609_s19 + $0x3310] sm:$0xff] }
 0xcd1   : > { %v3814_v38 = vmul.f32 %v1766_v34, %v1766_v34 }
 0xcd2   : > { %v5838_v40 = vadd.f32 %v5837_v37, %v3791_v33  ;;  %v1767_v37 = vld [vmem:[%s6609_s19 + $0x3318] sm:$0xff] }
 0xcd3   : > { %v3815_v41 = vmul.f32 %v1767_v37, %v1767_v37 }
 0xcd4   : > { %v5839_v43 = vadd.f32 %v5838_v40, %v3792_v36  ;;  %v1768_v40 = vld [vmem:[%s6609_s19 + $0x3320] sm:$0xff] }
 0xcd5   : > { %v3816_v44 = vmul.f32 %v1768_v40, %v1768_v40 }
 0xcd6   : > { %v5840_v46 = vadd.f32 %v5839_v43, %v3793_v39  ;;  %v1769_v43 = vld [vmem:[%s6609_s19 + $0x3328] sm:$0xff] }
 0xcd7   : > { %v3817_v47 = vmul.f32 %v1769_v43, %v1769_v43 }
 0xcd8   : > { %v5841_v49 = vadd.f32 %v5840_v46, %v3794_v42  ;;  %v1770_v46 = vld [vmem:[%s6609_s19 + $0x3330] sm:$0xff] }
 0xcd9   : > { %v3818_v50 = vmul.f32 %v1770_v46, %v1770_v46 }
 0xcda   : > { %v5842_v52 = vadd.f32 %v5841_v49, %v3795_v45  ;;  %v1771_v49 = vld [vmem:[%s6609_s19 + $0x3338] sm:$0xff] }
 0xcdb   : > { %v3819_v53 = vmul.f32 %v1771_v49, %v1771_v49 }
 0xcdc   : > { %v5843_v55 = vadd.f32 %v5842_v52, %v3796_v48  ;;  %v1772_v52 = vld [vmem:[%s6609_s19 + $0x3340] sm:$0xff] }
 0xcdd   : > { %v3820_v56 = vmul.f32 %v1772_v52, %v1772_v52 }
 0xcde   : > { %v5844_v58 = vadd.f32 %v5843_v55, %v3797_v51  ;;  %v1773_v55 = vld [vmem:[%s6609_s19 + $0x3348] sm:$0xff] }
 0xcdf   : > { %v3821_v59 = vmul.f32 %v1773_v55, %v1773_v55 }
 0xce0   : > { %v5845_v61 = vadd.f32 %v5844_v58, %v3798_v54  ;;  %v1774_v58 = vld [vmem:[%s6609_s19 + $0x3350] sm:$0xff] }
 0xce1   : > { %v3822_v62 = vmul.f32 %v1774_v58, %v1774_v58 }
 0xce2   : > { %v5846_v0 = vadd.f32 %v5845_v61, %v3799_v57  ;;  %v1775_v61 = vld [vmem:[%s6609_s19 + $0x3358] sm:$0xff] }
 0xce3   : > { %v3823_v1 = vmul.f32 %v1775_v61, %v1775_v61 }
 0xce4   : > { %v5847_v3 = vadd.f32 %v5846_v0, %v3800_v60  ;;  %v1776_v0 = vld [vmem:[%s6609_s19 + $0x3360] sm:$0xff] }
 0xce5   : > { %v3824_v4 = vmul.f32 %v1776_v0, %v1776_v0 }
 0xce6   : > { %v5848_v6 = vadd.f32 %v5847_v3, %v3801_v63  ;;  %v1777_v3 = vld [vmem:[%s6609_s19 + $0x3368] sm:$0xff] }
 0xce7   : > { %v3825_v7 = vmul.f32 %v1777_v3, %v1777_v3 }
 0xce8   : > { %v5849_v9 = vadd.f32 %v5848_v6, %v3802_v2  ;;  %v1778_v6 = vld [vmem:[%s6609_s19 + $0x3370] sm:$0xff] }
 0xce9   : > { %v3826_v10 = vmul.f32 %v1778_v6, %v1778_v6 }
 0xcea   : > { %v5850_v12 = vadd.f32 %v5849_v9, %v3803_v5  ;;  %v1779_v9 = vld [vmem:[%s6609_s19 + $0x3378] sm:$0xff] }
 0xceb   : > { %v3827_v13 = vmul.f32 %v1779_v9, %v1779_v9 }
 0xcec   : > { %v5851_v15 = vadd.f32 %v5850_v12, %v3804_v8  ;;  %v1780_v12 = vld [vmem:[%s6609_s19 + $0x3380] sm:$0xff] }
 0xced   : > { %v3828_v16 = vmul.f32 %v1780_v12, %v1780_v12 }
 0xcee   : > { %v5852_v18 = vadd.f32 %v5851_v15, %v3805_v11  ;;  %v1781_v15 = vld [vmem:[%s6609_s19 + $0x3388] sm:$0xff] }
 0xcef   : > { %v3829_v19 = vmul.f32 %v1781_v15, %v1781_v15 }
 0xcf0   : > { %v5853_v21 = vadd.f32 %v5852_v18, %v3806_v14  ;;  %v1782_v18 = vld [vmem:[%s6609_s19 + $0x3390] sm:$0xff] }
 0xcf1   : > { %v3830_v22 = vmul.f32 %v1782_v18, %v1782_v18 }
 0xcf2   : > { %v5854_v24 = vadd.f32 %v5853_v21, %v3807_v17  ;;  %v1783_v21 = vld [vmem:[%s6609_s19 + $0x3398] sm:$0xff] }
 0xcf3   : > { %v3831_v25 = vmul.f32 %v1783_v21, %v1783_v21 }
 0xcf4   : > { %v5855_v27 = vadd.f32 %v5854_v24, %v3808_v20  ;;  %v1784_v24 = vld [vmem:[%s6609_s19 + $0x33a0] sm:$0xff] }
 0xcf5   : > { %v3832_v28 = vmul.f32 %v1784_v24, %v1784_v24 }
 0xcf6   : > { %v5856_v30 = vadd.f32 %v5855_v27, %v3809_v23  ;;  %v1785_v27 = vld [vmem:[%s6609_s19 + $0x33a8] sm:$0xff] }
 0xcf7   : > { %v3833_v31 = vmul.f32 %v1785_v27, %v1785_v27 }
 0xcf8   : > { %v5857_v33 = vadd.f32 %v5856_v30, %v3810_v26  ;;  %v1786_v30 = vld [vmem:[%s6609_s19 + $0x33b0] sm:$0xff] }
 0xcf9   : > { %v3834_v34 = vmul.f32 %v1786_v30, %v1786_v30 }
 0xcfa   : > { %v5858_v36 = vadd.f32 %v5857_v33, %v3811_v29  ;;  %v1787_v33 = vld [vmem:[%s6609_s19 + $0x33b8] sm:$0xff] }
 0xcfb   : > { %v3835_v37 = vmul.f32 %v1787_v33, %v1787_v33 }
 0xcfc   : > { %v5859_v39 = vadd.f32 %v5858_v36, %v3812_v32  ;;  %v1788_v36 = vld [vmem:[%s6609_s19 + $0x33c0] sm:$0xff] }
 0xcfd   : > { %v3836_v40 = vmul.f32 %v1788_v36, %v1788_v36 }
 0xcfe   : > { %v5860_v42 = vadd.f32 %v5859_v39, %v3813_v35  ;;  %v1789_v39 = vld [vmem:[%s6609_s19 + $0x33c8] sm:$0xff] }
 0xcff   : > { %v3837_v43 = vmul.f32 %v1789_v39, %v1789_v39 }
 0xd00   : > { %v5861_v45 = vadd.f32 %v5860_v42, %v3814_v38  ;;  %v1790_v42 = vld [vmem:[%s6609_s19 + $0x33d0] sm:$0xff] }
 0xd01   : > { %v3838_v46 = vmul.f32 %v1790_v42, %v1790_v42 }
 0xd02   : > { %v5862_v48 = vadd.f32 %v5861_v45, %v3815_v41  ;;  %v1791_v45 = vld [vmem:[%s6609_s19 + $0x33d8] sm:$0xff] }
 0xd03   : > { %v3839_v49 = vmul.f32 %v1791_v45, %v1791_v45 }
 0xd04   : > { %v5863_v51 = vadd.f32 %v5862_v48, %v3816_v44  ;;  %v1792_v48 = vld [vmem:[%s6609_s19 + $0x33e0] sm:$0xff] }
 0xd05   : > { %v3840_v52 = vmul.f32 %v1792_v48, %v1792_v48 }
 0xd06   : > { %v5864_v54 = vadd.f32 %v5863_v51, %v3817_v47  ;;  %v1793_v51 = vld [vmem:[%s6609_s19 + $0x33e8] sm:$0xff] }
 0xd07   : > { %v3841_v55 = vmul.f32 %v1793_v51, %v1793_v51 }
 0xd08   : > { %v5865_v57 = vadd.f32 %v5864_v54, %v3818_v50  ;;  %v1794_v54 = vld [vmem:[%s6609_s19 + $0x33f0] sm:$0xff] }
 0xd09   : > { %v3842_v58 = vmul.f32 %v1794_v54, %v1794_v54 }
 0xd0a   : > { %v5866_v60 = vadd.f32 %v5865_v57, %v3819_v53  ;;  %v1795_v57 = vld [vmem:[%s6609_s19 + $0x33f8] sm:$0xff] }
 0xd0b   : > { %v3843_v61 = vmul.f32 %v1795_v57, %v1795_v57 }
 0xd0c   : > { %v5867_v63 = vadd.f32 %v5866_v60, %v3820_v56  ;;  %v1796_v60 = vld [vmem:[%s6609_s19 + $0x3400] sm:$0xff] }
 0xd0d   : > { %v3844_v0 = vmul.f32 %v1796_v60, %v1796_v60 }
 0xd0e   : > { %v5868_v2 = vadd.f32 %v5867_v63, %v3821_v59  ;;  %v1797_v63 = vld [vmem:[%s6609_s19 + $0x3408] sm:$0xff] }
 0xd0f   : > { %v3845_v3 = vmul.f32 %v1797_v63, %v1797_v63 }
 0xd10   : > { %v5869_v5 = vadd.f32 %v5868_v2, %v3822_v62  ;;  %v1798_v2 = vld [vmem:[%s6609_s19 + $0x3410] sm:$0xff] }
 0xd11   : > { %v3846_v6 = vmul.f32 %v1798_v2, %v1798_v2 }
 0xd12   : > { %v5870_v8 = vadd.f32 %v5869_v5, %v3823_v1  ;;  %v1799_v5 = vld [vmem:[%s6609_s19 + $0x3418] sm:$0xff] }
 0xd13   : > { %v3847_v9 = vmul.f32 %v1799_v5, %v1799_v5 }
 0xd14   : > { %v5871_v11 = vadd.f32 %v5870_v8, %v3824_v4  ;;  %v1800_v8 = vld [vmem:[%s6609_s19 + $0x3420] sm:$0xff] }
 0xd15   : > { %v3848_v12 = vmul.f32 %v1800_v8, %v1800_v8 }
 0xd16   : > { %v5872_v14 = vadd.f32 %v5871_v11, %v3825_v7  ;;  %v1801_v11 = vld [vmem:[%s6609_s19 + $0x3428] sm:$0xff] }
 0xd17   : > { %v3849_v15 = vmul.f32 %v1801_v11, %v1801_v11 }
 0xd18   : > { %v5873_v17 = vadd.f32 %v5872_v14, %v3826_v10  ;;  %v1802_v14 = vld [vmem:[%s6609_s19 + $0x3430] sm:$0xff] }
 0xd19   : > { %v3850_v18 = vmul.f32 %v1802_v14, %v1802_v14 }
 0xd1a   : > { %v5874_v20 = vadd.f32 %v5873_v17, %v3827_v13  ;;  %v1803_v17 = vld [vmem:[%s6609_s19 + $0x3438] sm:$0xff] }
 0xd1b   : > { %v3851_v21 = vmul.f32 %v1803_v17, %v1803_v17 }
 0xd1c   : > { %v5875_v23 = vadd.f32 %v5874_v20, %v3828_v16  ;;  %v1804_v20 = vld [vmem:[%s6609_s19 + $0x3440] sm:$0xff] }
 0xd1d   : > { %v3852_v24 = vmul.f32 %v1804_v20, %v1804_v20 }
 0xd1e   : > { %v5876_v26 = vadd.f32 %v5875_v23, %v3829_v19  ;;  %v1805_v23 = vld [vmem:[%s6609_s19 + $0x3448] sm:$0xff] }
 0xd1f   : > { %v3853_v27 = vmul.f32 %v1805_v23, %v1805_v23 }
 0xd20   : > { %v5877_v29 = vadd.f32 %v5876_v26, %v3830_v22  ;;  %v1806_v26 = vld [vmem:[%s6609_s19 + $0x3450] sm:$0xff] }
 0xd21   : > { %v3854_v30 = vmul.f32 %v1806_v26, %v1806_v26 }
 0xd22   : > { %v5878_v32 = vadd.f32 %v5877_v29, %v3831_v25  ;;  %v1807_v29 = vld [vmem:[%s6609_s19 + $0x3458] sm:$0xff] }
 0xd23   : > { %v3855_v33 = vmul.f32 %v1807_v29, %v1807_v29 }
 0xd24   : > { %v5879_v35 = vadd.f32 %v5878_v32, %v3832_v28  ;;  %v1808_v32 = vld [vmem:[%s6609_s19 + $0x3460] sm:$0xff] }
 0xd25   : > { %v3856_v36 = vmul.f32 %v1808_v32, %v1808_v32 }
 0xd26   : > { %v5880_v38 = vadd.f32 %v5879_v35, %v3833_v31  ;;  %v1809_v35 = vld [vmem:[%s6609_s19 + $0x3468] sm:$0xff] }
 0xd27   : > { %v3857_v39 = vmul.f32 %v1809_v35, %v1809_v35 }
 0xd28   : > { %v5881_v41 = vadd.f32 %v5880_v38, %v3834_v34  ;;  %v1810_v38 = vld [vmem:[%s6609_s19 + $0x3470] sm:$0xff] }
 0xd29   : > { %v3858_v42 = vmul.f32 %v1810_v38, %v1810_v38 }
 0xd2a   : > { %v5882_v44 = vadd.f32 %v5881_v41, %v3835_v37  ;;  %v1811_v41 = vld [vmem:[%s6609_s19 + $0x3478] sm:$0xff] }
 0xd2b   : > { %v3859_v45 = vmul.f32 %v1811_v41, %v1811_v41 }
 0xd2c   : > { %v5883_v47 = vadd.f32 %v5882_v44, %v3836_v40  ;;  %v1812_v44 = vld [vmem:[%s6609_s19 + $0x3480] sm:$0xff] }
 0xd2d   : > { %v3860_v48 = vmul.f32 %v1812_v44, %v1812_v44 }
 0xd2e   : > { %v5884_v50 = vadd.f32 %v5883_v47, %v3837_v43  ;;  %v1813_v47 = vld [vmem:[%s6609_s19 + $0x3488] sm:$0xff] }
 0xd2f   : > { %v3861_v51 = vmul.f32 %v1813_v47, %v1813_v47 }
 0xd30   : > { %v5885_v53 = vadd.f32 %v5884_v50, %v3838_v46  ;;  %v1814_v50 = vld [vmem:[%s6609_s19 + $0x3490] sm:$0xff] }
 0xd31   : > { %v3862_v54 = vmul.f32 %v1814_v50, %v1814_v50 }
 0xd32   : > { %v5886_v56 = vadd.f32 %v5885_v53, %v3839_v49  ;;  %v1815_v53 = vld [vmem:[%s6609_s19 + $0x3498] sm:$0xff] }
 0xd33   : > { %v3863_v57 = vmul.f32 %v1815_v53, %v1815_v53 }
 0xd34   : > { %v5887_v59 = vadd.f32 %v5886_v56, %v3840_v52  ;;  %v1816_v56 = vld [vmem:[%s6609_s19 + $0x34a0] sm:$0xff] }
 0xd35   : > { %v3864_v60 = vmul.f32 %v1816_v56, %v1816_v56 }
 0xd36   : > { %v5888_v62 = vadd.f32 %v5887_v59, %v3841_v55  ;;  %v1817_v59 = vld [vmem:[%s6609_s19 + $0x34a8] sm:$0xff] }
 0xd37   : > { %v3865_v63 = vmul.f32 %v1817_v59, %v1817_v59 }
 0xd38   : > { %v5889_v1 = vadd.f32 %v5888_v62, %v3842_v58  ;;  %v1818_v62 = vld [vmem:[%s6609_s19 + $0x34b0] sm:$0xff] }
 0xd39   : > { %v3866_v2 = vmul.f32 %v1818_v62, %v1818_v62 }
 0xd3a   : > { %v5890_v4 = vadd.f32 %v5889_v1, %v3843_v61  ;;  %v1819_v1 = vld [vmem:[%s6609_s19 + $0x34b8] sm:$0xff] }
 0xd3b   : > { %v3867_v5 = vmul.f32 %v1819_v1, %v1819_v1 }
 0xd3c   : > { %v5891_v7 = vadd.f32 %v5890_v4, %v3844_v0  ;;  %v1820_v4 = vld [vmem:[%s6609_s19 + $0x34c0] sm:$0xff] }
 0xd3d   : > { %v3868_v8 = vmul.f32 %v1820_v4, %v1820_v4 }
 0xd3e   : > { %v5892_v10 = vadd.f32 %v5891_v7, %v3845_v3  ;;  %v1821_v7 = vld [vmem:[%s6609_s19 + $0x34c8] sm:$0xff] }
 0xd3f   : > { %v3869_v11 = vmul.f32 %v1821_v7, %v1821_v7 }
 0xd40   : > { %v5893_v13 = vadd.f32 %v5892_v10, %v3846_v6  ;;  %v1822_v10 = vld [vmem:[%s6609_s19 + $0x34d0] sm:$0xff] }
 0xd41   : > { %v3870_v14 = vmul.f32 %v1822_v10, %v1822_v10 }
 0xd42   : > { %v5894_v16 = vadd.f32 %v5893_v13, %v3847_v9  ;;  %v1823_v13 = vld [vmem:[%s6609_s19 + $0x34d8] sm:$0xff] }
 0xd43   : > { %v3871_v17 = vmul.f32 %v1823_v13, %v1823_v13 }
 0xd44   : > { %v5895_v19 = vadd.f32 %v5894_v16, %v3848_v12  ;;  %v1824_v16 = vld [vmem:[%s6609_s19 + $0x34e0] sm:$0xff] }
 0xd45   : > { %v3872_v20 = vmul.f32 %v1824_v16, %v1824_v16 }
 0xd46   : > { %v5896_v22 = vadd.f32 %v5895_v19, %v3849_v15  ;;  %v1825_v19 = vld [vmem:[%s6609_s19 + $0x34e8] sm:$0xff] }
 0xd47   : > { %v3873_v23 = vmul.f32 %v1825_v19, %v1825_v19 }
 0xd48   : > { %v5897_v25 = vadd.f32 %v5896_v22, %v3850_v18  ;;  %v1826_v22 = vld [vmem:[%s6609_s19 + $0x34f0] sm:$0xff] }
 0xd49   : > { %v3874_v26 = vmul.f32 %v1826_v22, %v1826_v22 }
 0xd4a   : > { %v5898_v28 = vadd.f32 %v5897_v25, %v3851_v21  ;;  %v1827_v25 = vld [vmem:[%s6609_s19 + $0x34f8] sm:$0xff] }
 0xd4b   : > { %v3875_v29 = vmul.f32 %v1827_v25, %v1827_v25 }
 0xd4c   : > { %v5899_v31 = vadd.f32 %v5898_v28, %v3852_v24  ;;  %v1828_v28 = vld [vmem:[%s6609_s19 + $0x3500] sm:$0xff] }
 0xd4d   : > { %v3876_v32 = vmul.f32 %v1828_v28, %v1828_v28 }
 0xd4e   : > { %v5900_v34 = vadd.f32 %v5899_v31, %v3853_v27  ;;  %v1829_v31 = vld [vmem:[%s6609_s19 + $0x3508] sm:$0xff] }
 0xd4f   : > { %v3877_v35 = vmul.f32 %v1829_v31, %v1829_v31 }
 0xd50   : > { %v5901_v37 = vadd.f32 %v5900_v34, %v3854_v30  ;;  %v1830_v34 = vld [vmem:[%s6609_s19 + $0x3510] sm:$0xff] }
 0xd51   : > { %v3878_v38 = vmul.f32 %v1830_v34, %v1830_v34 }
 0xd52   : > { %v5902_v40 = vadd.f32 %v5901_v37, %v3855_v33  ;;  %v1831_v37 = vld [vmem:[%s6609_s19 + $0x3518] sm:$0xff] }
 0xd53   : > { %v3879_v41 = vmul.f32 %v1831_v37, %v1831_v37 }
 0xd54   : > { %v5903_v43 = vadd.f32 %v5902_v40, %v3856_v36  ;;  %v1832_v40 = vld [vmem:[%s6609_s19 + $0x3520] sm:$0xff] }
 0xd55   : > { %v3880_v44 = vmul.f32 %v1832_v40, %v1832_v40 }
 0xd56   : > { %v5904_v46 = vadd.f32 %v5903_v43, %v3857_v39  ;;  %v1833_v43 = vld [vmem:[%s6609_s19 + $0x3528] sm:$0xff] }
 0xd57   : > { %v3881_v47 = vmul.f32 %v1833_v43, %v1833_v43 }
 0xd58   : > { %v5905_v49 = vadd.f32 %v5904_v46, %v3858_v42  ;;  %v1834_v46 = vld [vmem:[%s6609_s19 + $0x3530] sm:$0xff] }
 0xd59   : > { %v3882_v50 = vmul.f32 %v1834_v46, %v1834_v46 }
 0xd5a   : > { %v5906_v52 = vadd.f32 %v5905_v49, %v3859_v45  ;;  %v1835_v49 = vld [vmem:[%s6609_s19 + $0x3538] sm:$0xff] }
 0xd5b   : > { %v3883_v53 = vmul.f32 %v1835_v49, %v1835_v49 }
 0xd5c   : > { %v5907_v55 = vadd.f32 %v5906_v52, %v3860_v48  ;;  %v1836_v52 = vld [vmem:[%s6609_s19 + $0x3540] sm:$0xff] }
 0xd5d   : > { %v3884_v56 = vmul.f32 %v1836_v52, %v1836_v52 }
 0xd5e   : > { %v5908_v58 = vadd.f32 %v5907_v55, %v3861_v51  ;;  %v1837_v55 = vld [vmem:[%s6609_s19 + $0x3548] sm:$0xff] }
 0xd5f   : > { %v3885_v59 = vmul.f32 %v1837_v55, %v1837_v55 }
 0xd60   : > { %v5909_v61 = vadd.f32 %v5908_v58, %v3862_v54  ;;  %v1838_v58 = vld [vmem:[%s6609_s19 + $0x3550] sm:$0xff] }
 0xd61   : > { %v3886_v62 = vmul.f32 %v1838_v58, %v1838_v58 }
 0xd62   : > { %v5910_v0 = vadd.f32 %v5909_v61, %v3863_v57  ;;  %v1839_v61 = vld [vmem:[%s6609_s19 + $0x3558] sm:$0xff] }
 0xd63   : > { %v3887_v1 = vmul.f32 %v1839_v61, %v1839_v61 }
 0xd64   : > { %v5911_v3 = vadd.f32 %v5910_v0, %v3864_v60  ;;  %v1840_v0 = vld [vmem:[%s6609_s19 + $0x3560] sm:$0xff] }
 0xd65   : > { %v3888_v4 = vmul.f32 %v1840_v0, %v1840_v0 }
 0xd66   : > { %v5912_v6 = vadd.f32 %v5911_v3, %v3865_v63  ;;  %v1841_v3 = vld [vmem:[%s6609_s19 + $0x3568] sm:$0xff] }
 0xd67   : > { %v3889_v7 = vmul.f32 %v1841_v3, %v1841_v3 }
 0xd68   : > { %v5913_v9 = vadd.f32 %v5912_v6, %v3866_v2  ;;  %v1842_v6 = vld [vmem:[%s6609_s19 + $0x3570] sm:$0xff] }
 0xd69   : > { %v3890_v10 = vmul.f32 %v1842_v6, %v1842_v6 }
 0xd6a   : > { %v5914_v12 = vadd.f32 %v5913_v9, %v3867_v5  ;;  %v1843_v9 = vld [vmem:[%s6609_s19 + $0x3578] sm:$0xff] }
 0xd6b   : > { %v3891_v13 = vmul.f32 %v1843_v9, %v1843_v9 }
 0xd6c   : > { %v5915_v15 = vadd.f32 %v5914_v12, %v3868_v8  ;;  %v1844_v12 = vld [vmem:[%s6609_s19 + $0x3580] sm:$0xff] }
 0xd6d   : > { %v3892_v16 = vmul.f32 %v1844_v12, %v1844_v12 }
 0xd6e   : > { %v5916_v18 = vadd.f32 %v5915_v15, %v3869_v11  ;;  %v1845_v15 = vld [vmem:[%s6609_s19 + $0x3588] sm:$0xff] }
 0xd6f   : > { %v3893_v19 = vmul.f32 %v1845_v15, %v1845_v15 }
 0xd70   : > { %v5917_v21 = vadd.f32 %v5916_v18, %v3870_v14  ;;  %v1846_v18 = vld [vmem:[%s6609_s19 + $0x3590] sm:$0xff] }
 0xd71   : > { %v3894_v22 = vmul.f32 %v1846_v18, %v1846_v18 }
 0xd72   : > { %v5918_v24 = vadd.f32 %v5917_v21, %v3871_v17  ;;  %v1847_v21 = vld [vmem:[%s6609_s19 + $0x3598] sm:$0xff] }
 0xd73   : > { %v3895_v25 = vmul.f32 %v1847_v21, %v1847_v21 }
 0xd74   : > { %v5919_v27 = vadd.f32 %v5918_v24, %v3872_v20  ;;  %v1848_v24 = vld [vmem:[%s6609_s19 + $0x35a0] sm:$0xff] }
 0xd75   : > { %v3896_v28 = vmul.f32 %v1848_v24, %v1848_v24 }
 0xd76   : > { %v5920_v30 = vadd.f32 %v5919_v27, %v3873_v23  ;;  %v1849_v27 = vld [vmem:[%s6609_s19 + $0x35a8] sm:$0xff] }
 0xd77   : > { %v3897_v31 = vmul.f32 %v1849_v27, %v1849_v27 }
 0xd78   : > { %v5921_v33 = vadd.f32 %v5920_v30, %v3874_v26  ;;  %v1850_v30 = vld [vmem:[%s6609_s19 + $0x35b0] sm:$0xff] }
 0xd79   : > { %v3898_v34 = vmul.f32 %v1850_v30, %v1850_v30 }
 0xd7a   : > { %v5922_v36 = vadd.f32 %v5921_v33, %v3875_v29  ;;  %v1851_v33 = vld [vmem:[%s6609_s19 + $0x35b8] sm:$0xff] }
 0xd7b   : > { %v3899_v37 = vmul.f32 %v1851_v33, %v1851_v33 }
 0xd7c   : > { %v5923_v39 = vadd.f32 %v5922_v36, %v3876_v32  ;;  %v1852_v36 = vld [vmem:[%s6609_s19 + $0x35c0] sm:$0xff] }
 0xd7d   : > { %v3900_v40 = vmul.f32 %v1852_v36, %v1852_v36 }
 0xd7e   : > { %v5924_v42 = vadd.f32 %v5923_v39, %v3877_v35  ;;  %v1853_v39 = vld [vmem:[%s6609_s19 + $0x35c8] sm:$0xff] }
 0xd7f   : > { %v3901_v43 = vmul.f32 %v1853_v39, %v1853_v39 }
 0xd80   : > { %v5925_v45 = vadd.f32 %v5924_v42, %v3878_v38  ;;  %v1854_v42 = vld [vmem:[%s6609_s19 + $0x35d0] sm:$0xff] }
 0xd81   : > { %v3902_v46 = vmul.f32 %v1854_v42, %v1854_v42 }
 0xd82   : > { %v5926_v48 = vadd.f32 %v5925_v45, %v3879_v41  ;;  %v1855_v45 = vld [vmem:[%s6609_s19 + $0x35d8] sm:$0xff] }
 0xd83   : > { %v3903_v49 = vmul.f32 %v1855_v45, %v1855_v45 }
 0xd84   : > { %v5927_v51 = vadd.f32 %v5926_v48, %v3880_v44  ;;  %v1856_v48 = vld [vmem:[%s6609_s19 + $0x35e0] sm:$0xff] }
 0xd85   : > { %v3904_v52 = vmul.f32 %v1856_v48, %v1856_v48 }
 0xd86   : > { %v5928_v54 = vadd.f32 %v5927_v51, %v3881_v47  ;;  %v1857_v51 = vld [vmem:[%s6609_s19 + $0x35e8] sm:$0xff] }
 0xd87   : > { %v3905_v55 = vmul.f32 %v1857_v51, %v1857_v51 }
 0xd88   : > { %v5929_v57 = vadd.f32 %v5928_v54, %v3882_v50  ;;  %v1858_v54 = vld [vmem:[%s6609_s19 + $0x35f0] sm:$0xff] }
 0xd89   : > { %v3906_v58 = vmul.f32 %v1858_v54, %v1858_v54 }
 0xd8a   : > { %v5930_v60 = vadd.f32 %v5929_v57, %v3883_v53  ;;  %v1859_v57 = vld [vmem:[%s6609_s19 + $0x35f8] sm:$0xff] }
 0xd8b   : > { %v3907_v61 = vmul.f32 %v1859_v57, %v1859_v57 }
 0xd8c   : > { %v5931_v63 = vadd.f32 %v5930_v60, %v3884_v56  ;;  %v1860_v60 = vld [vmem:[%s6609_s19 + $0x3600] sm:$0xff] }
 0xd8d   : > { %v3908_v0 = vmul.f32 %v1860_v60, %v1860_v60 }
 0xd8e   : > { %v5932_v2 = vadd.f32 %v5931_v63, %v3885_v59  ;;  %v1861_v63 = vld [vmem:[%s6609_s19 + $0x3608] sm:$0xff] }
 0xd8f   : > { %v3909_v3 = vmul.f32 %v1861_v63, %v1861_v63 }
 0xd90   : > { %v5933_v5 = vadd.f32 %v5932_v2, %v3886_v62  ;;  %v1862_v2 = vld [vmem:[%s6609_s19 + $0x3610] sm:$0xff] }
 0xd91   : > { %v3910_v6 = vmul.f32 %v1862_v2, %v1862_v2 }
 0xd92   : > { %v5934_v8 = vadd.f32 %v5933_v5, %v3887_v1  ;;  %v1863_v5 = vld [vmem:[%s6609_s19 + $0x3618] sm:$0xff] }
 0xd93   : > { %v3911_v9 = vmul.f32 %v1863_v5, %v1863_v5 }
 0xd94   : > { %v5935_v11 = vadd.f32 %v5934_v8, %v3888_v4  ;;  %v1864_v8 = vld [vmem:[%s6609_s19 + $0x3620] sm:$0xff] }
 0xd95   : > { %v3912_v12 = vmul.f32 %v1864_v8, %v1864_v8 }
 0xd96   : > { %v5936_v14 = vadd.f32 %v5935_v11, %v3889_v7  ;;  %v1865_v11 = vld [vmem:[%s6609_s19 + $0x3628] sm:$0xff] }
 0xd97   : > { %v3913_v15 = vmul.f32 %v1865_v11, %v1865_v11 }
 0xd98   : > { %v5937_v17 = vadd.f32 %v5936_v14, %v3890_v10  ;;  %v1866_v14 = vld [vmem:[%s6609_s19 + $0x3630] sm:$0xff] }
 0xd99   : > { %v3914_v18 = vmul.f32 %v1866_v14, %v1866_v14 }
 0xd9a   : > { %v5938_v20 = vadd.f32 %v5937_v17, %v3891_v13  ;;  %v1867_v17 = vld [vmem:[%s6609_s19 + $0x3638] sm:$0xff] }
 0xd9b   : > { %v3915_v21 = vmul.f32 %v1867_v17, %v1867_v17 }
 0xd9c   : > { %v5939_v23 = vadd.f32 %v5938_v20, %v3892_v16  ;;  %v1868_v20 = vld [vmem:[%s6609_s19 + $0x3640] sm:$0xff] }
 0xd9d   : > { %v3916_v24 = vmul.f32 %v1868_v20, %v1868_v20 }
 0xd9e   : > { %v5940_v26 = vadd.f32 %v5939_v23, %v3893_v19  ;;  %v1869_v23 = vld [vmem:[%s6609_s19 + $0x3648] sm:$0xff] }
 0xd9f   : > { %v3917_v27 = vmul.f32 %v1869_v23, %v1869_v23 }
 0xda0   : > { %v5941_v29 = vadd.f32 %v5940_v26, %v3894_v22  ;;  %v1870_v26 = vld [vmem:[%s6609_s19 + $0x3650] sm:$0xff] }
 0xda1   : > { %v3918_v30 = vmul.f32 %v1870_v26, %v1870_v26 }
 0xda2   : > { %v5942_v32 = vadd.f32 %v5941_v29, %v3895_v25  ;;  %v1871_v29 = vld [vmem:[%s6609_s19 + $0x3658] sm:$0xff] }
 0xda3   : > { %v3919_v33 = vmul.f32 %v1871_v29, %v1871_v29 }
 0xda4   : > { %v5943_v35 = vadd.f32 %v5942_v32, %v3896_v28  ;;  %v1872_v32 = vld [vmem:[%s6609_s19 + $0x3660] sm:$0xff] }
 0xda5   : > { %v3920_v36 = vmul.f32 %v1872_v32, %v1872_v32 }
 0xda6   : > { %v5944_v38 = vadd.f32 %v5943_v35, %v3897_v31  ;;  %v1873_v35 = vld [vmem:[%s6609_s19 + $0x3668] sm:$0xff] }
 0xda7   : > { %v3921_v39 = vmul.f32 %v1873_v35, %v1873_v35 }
 0xda8   : > { %v5945_v41 = vadd.f32 %v5944_v38, %v3898_v34  ;;  %v1874_v38 = vld [vmem:[%s6609_s19 + $0x3670] sm:$0xff] }
 0xda9   : > { %v3922_v42 = vmul.f32 %v1874_v38, %v1874_v38 }
 0xdaa   : > { %v5946_v44 = vadd.f32 %v5945_v41, %v3899_v37  ;;  %v1875_v41 = vld [vmem:[%s6609_s19 + $0x3678] sm:$0xff] }
 0xdab   : > { %v3923_v45 = vmul.f32 %v1875_v41, %v1875_v41 }
 0xdac   : > { %v5947_v47 = vadd.f32 %v5946_v44, %v3900_v40  ;;  %v1876_v44 = vld [vmem:[%s6609_s19 + $0x3680] sm:$0xff] }
 0xdad   : > { %v3924_v48 = vmul.f32 %v1876_v44, %v1876_v44 }
 0xdae   : > { %v5948_v50 = vadd.f32 %v5947_v47, %v3901_v43  ;;  %v1877_v47 = vld [vmem:[%s6609_s19 + $0x3688] sm:$0xff] }
 0xdaf   : > { %v3925_v51 = vmul.f32 %v1877_v47, %v1877_v47 }
 0xdb0   : > { %v5949_v53 = vadd.f32 %v5948_v50, %v3902_v46  ;;  %v1878_v50 = vld [vmem:[%s6609_s19 + $0x3690] sm:$0xff] }
 0xdb1   : > { %v3926_v54 = vmul.f32 %v1878_v50, %v1878_v50 }
 0xdb2   : > { %v5950_v56 = vadd.f32 %v5949_v53, %v3903_v49  ;;  %v1879_v53 = vld [vmem:[%s6609_s19 + $0x3698] sm:$0xff] }
 0xdb3   : > { %v3927_v57 = vmul.f32 %v1879_v53, %v1879_v53 }
 0xdb4   : > { %v5951_v59 = vadd.f32 %v5950_v56, %v3904_v52  ;;  %v1880_v56 = vld [vmem:[%s6609_s19 + $0x36a0] sm:$0xff] }
 0xdb5   : > { %v3928_v60 = vmul.f32 %v1880_v56, %v1880_v56 }
 0xdb6   : > { %v5952_v62 = vadd.f32 %v5951_v59, %v3905_v55  ;;  %v1881_v59 = vld [vmem:[%s6609_s19 + $0x36a8] sm:$0xff] }
 0xdb7   : > { %v3929_v63 = vmul.f32 %v1881_v59, %v1881_v59 }
 0xdb8   : > { %v5953_v1 = vadd.f32 %v5952_v62, %v3906_v58  ;;  %v1882_v62 = vld [vmem:[%s6609_s19 + $0x36b0] sm:$0xff] }
 0xdb9   : > { %v3930_v2 = vmul.f32 %v1882_v62, %v1882_v62 }
 0xdba   : > { %v5954_v4 = vadd.f32 %v5953_v1, %v3907_v61  ;;  %v1883_v1 = vld [vmem:[%s6609_s19 + $0x36b8] sm:$0xff] }
 0xdbb   : > { %v3931_v5 = vmul.f32 %v1883_v1, %v1883_v1 }
 0xdbc   : > { %v5955_v7 = vadd.f32 %v5954_v4, %v3908_v0  ;;  %v1884_v4 = vld [vmem:[%s6609_s19 + $0x36c0] sm:$0xff] }
 0xdbd   : > { %v3932_v8 = vmul.f32 %v1884_v4, %v1884_v4 }
 0xdbe   : > { %v5956_v10 = vadd.f32 %v5955_v7, %v3909_v3  ;;  %v1885_v7 = vld [vmem:[%s6609_s19 + $0x36c8] sm:$0xff] }
 0xdbf   : > { %v3933_v11 = vmul.f32 %v1885_v7, %v1885_v7 }
 0xdc0   : > { %v5957_v13 = vadd.f32 %v5956_v10, %v3910_v6  ;;  %v1886_v10 = vld [vmem:[%s6609_s19 + $0x36d0] sm:$0xff] }
 0xdc1   : > { %v3934_v14 = vmul.f32 %v1886_v10, %v1886_v10 }
 0xdc2   : > { %v5958_v16 = vadd.f32 %v5957_v13, %v3911_v9  ;;  %v1887_v13 = vld [vmem:[%s6609_s19 + $0x36d8] sm:$0xff] }
 0xdc3   : > { %v3935_v17 = vmul.f32 %v1887_v13, %v1887_v13 }
 0xdc4   : > { %v5959_v19 = vadd.f32 %v5958_v16, %v3912_v12  ;;  %v1888_v16 = vld [vmem:[%s6609_s19 + $0x36e0] sm:$0xff] }
 0xdc5   : > { %v3936_v20 = vmul.f32 %v1888_v16, %v1888_v16 }
 0xdc6   : > { %v5960_v22 = vadd.f32 %v5959_v19, %v3913_v15  ;;  %v1889_v19 = vld [vmem:[%s6609_s19 + $0x36e8] sm:$0xff] }
 0xdc7   : > { %v3937_v23 = vmul.f32 %v1889_v19, %v1889_v19 }
 0xdc8   : > { %v5961_v25 = vadd.f32 %v5960_v22, %v3914_v18  ;;  %v1890_v22 = vld [vmem:[%s6609_s19 + $0x36f0] sm:$0xff] }
 0xdc9   : > { %v3938_v26 = vmul.f32 %v1890_v22, %v1890_v22 }
 0xdca   : > { %v5962_v28 = vadd.f32 %v5961_v25, %v3915_v21  ;;  %v1891_v25 = vld [vmem:[%s6609_s19 + $0x36f8] sm:$0xff] }
 0xdcb   : > { %v3939_v29 = vmul.f32 %v1891_v25, %v1891_v25 }
 0xdcc   : > { %v5963_v31 = vadd.f32 %v5962_v28, %v3916_v24  ;;  %v1892_v28 = vld [vmem:[%s6609_s19 + $0x3700] sm:$0xff] }
 0xdcd   : > { %v3940_v32 = vmul.f32 %v1892_v28, %v1892_v28 }
 0xdce   : > { %v5964_v34 = vadd.f32 %v5963_v31, %v3917_v27  ;;  %v1893_v31 = vld [vmem:[%s6609_s19 + $0x3708] sm:$0xff] }
 0xdcf   : > { %v3941_v35 = vmul.f32 %v1893_v31, %v1893_v31 }
 0xdd0   : > { %v5965_v37 = vadd.f32 %v5964_v34, %v3918_v30  ;;  %v1894_v34 = vld [vmem:[%s6609_s19 + $0x3710] sm:$0xff] }
 0xdd1   : > { %v3942_v38 = vmul.f32 %v1894_v34, %v1894_v34 }
 0xdd2   : > { %v5966_v40 = vadd.f32 %v5965_v37, %v3919_v33  ;;  %v1895_v37 = vld [vmem:[%s6609_s19 + $0x3718] sm:$0xff] }
 0xdd3   : > { %v3943_v41 = vmul.f32 %v1895_v37, %v1895_v37 }
 0xdd4   : > { %v5967_v43 = vadd.f32 %v5966_v40, %v3920_v36  ;;  %v1896_v40 = vld [vmem:[%s6609_s19 + $0x3720] sm:$0xff] }
 0xdd5   : > { %v3944_v44 = vmul.f32 %v1896_v40, %v1896_v40 }
 0xdd6   : > { %v5968_v46 = vadd.f32 %v5967_v43, %v3921_v39  ;;  %v1897_v43 = vld [vmem:[%s6609_s19 + $0x3728] sm:$0xff] }
 0xdd7   : > { %v3945_v47 = vmul.f32 %v1897_v43, %v1897_v43 }
 0xdd8   : > { %v5969_v49 = vadd.f32 %v5968_v46, %v3922_v42  ;;  %v1898_v46 = vld [vmem:[%s6609_s19 + $0x3730] sm:$0xff] }
 0xdd9   : > { %v3946_v50 = vmul.f32 %v1898_v46, %v1898_v46 }
 0xdda   : > { %v5970_v52 = vadd.f32 %v5969_v49, %v3923_v45  ;;  %v1899_v49 = vld [vmem:[%s6609_s19 + $0x3738] sm:$0xff] }
 0xddb   : > { %v3947_v53 = vmul.f32 %v1899_v49, %v1899_v49 }
 0xddc   : > { %v5971_v55 = vadd.f32 %v5970_v52, %v3924_v48  ;;  %v1900_v52 = vld [vmem:[%s6609_s19 + $0x3740] sm:$0xff] }
 0xddd   : > { %v3948_v56 = vmul.f32 %v1900_v52, %v1900_v52 }
 0xdde   : > { %v5972_v58 = vadd.f32 %v5971_v55, %v3925_v51  ;;  %v1901_v55 = vld [vmem:[%s6609_s19 + $0x3748] sm:$0xff] }
 0xddf   : > { %v3949_v59 = vmul.f32 %v1901_v55, %v1901_v55 }
 0xde0   : > { %v5973_v61 = vadd.f32 %v5972_v58, %v3926_v54  ;;  %v1902_v58 = vld [vmem:[%s6609_s19 + $0x3750] sm:$0xff] }
 0xde1   : > { %v3950_v62 = vmul.f32 %v1902_v58, %v1902_v58 }
 0xde2   : > { %v5974_v0 = vadd.f32 %v5973_v61, %v3927_v57  ;;  %v1903_v61 = vld [vmem:[%s6609_s19 + $0x3758] sm:$0xff] }
 0xde3   : > { %v3951_v1 = vmul.f32 %v1903_v61, %v1903_v61 }
 0xde4   : > { %v5975_v3 = vadd.f32 %v5974_v0, %v3928_v60  ;;  %v1904_v0 = vld [vmem:[%s6609_s19 + $0x3760] sm:$0xff] }
 0xde5   : > { %v3952_v4 = vmul.f32 %v1904_v0, %v1904_v0 }
 0xde6   : > { %v5976_v6 = vadd.f32 %v5975_v3, %v3929_v63  ;;  %v1905_v3 = vld [vmem:[%s6609_s19 + $0x3768] sm:$0xff] }
 0xde7   : > { %v3953_v7 = vmul.f32 %v1905_v3, %v1905_v3 }
 0xde8   : > { %v5977_v9 = vadd.f32 %v5976_v6, %v3930_v2  ;;  %v1906_v6 = vld [vmem:[%s6609_s19 + $0x3770] sm:$0xff] }
 0xde9   : > { %v3954_v10 = vmul.f32 %v1906_v6, %v1906_v6 }
 0xdea   : > { %v5978_v12 = vadd.f32 %v5977_v9, %v3931_v5  ;;  %v1907_v9 = vld [vmem:[%s6609_s19 + $0x3778] sm:$0xff] }
 0xdeb   : > { %v3955_v13 = vmul.f32 %v1907_v9, %v1907_v9 }
 0xdec   : > { %v5979_v15 = vadd.f32 %v5978_v12, %v3932_v8  ;;  %v1908_v12 = vld [vmem:[%s6609_s19 + $0x3780] sm:$0xff] }
 0xded   : > { %v3956_v16 = vmul.f32 %v1908_v12, %v1908_v12 }
 0xdee   : > { %v5980_v18 = vadd.f32 %v5979_v15, %v3933_v11  ;;  %v1909_v15 = vld [vmem:[%s6609_s19 + $0x3788] sm:$0xff] }
 0xdef   : > { %v3957_v19 = vmul.f32 %v1909_v15, %v1909_v15 }
 0xdf0   : > { %v5981_v21 = vadd.f32 %v5980_v18, %v3934_v14  ;;  %v1910_v18 = vld [vmem:[%s6609_s19 + $0x3790] sm:$0xff] }
 0xdf1   : > { %v3958_v22 = vmul.f32 %v1910_v18, %v1910_v18 }
 0xdf2   : > { %v5982_v24 = vadd.f32 %v5981_v21, %v3935_v17  ;;  %v1911_v21 = vld [vmem:[%s6609_s19 + $0x3798] sm:$0xff] }
 0xdf3   : > { %v3959_v25 = vmul.f32 %v1911_v21, %v1911_v21 }
 0xdf4   : > { %v5983_v27 = vadd.f32 %v5982_v24, %v3936_v20  ;;  %v1912_v24 = vld [vmem:[%s6609_s19 + $0x37a0] sm:$0xff] }
 0xdf5   : > { %v3960_v28 = vmul.f32 %v1912_v24, %v1912_v24 }
 0xdf6   : > { %v5984_v30 = vadd.f32 %v5983_v27, %v3937_v23  ;;  %v1913_v27 = vld [vmem:[%s6609_s19 + $0x37a8] sm:$0xff] }
 0xdf7   : > { %v3961_v31 = vmul.f32 %v1913_v27, %v1913_v27 }
 0xdf8   : > { %v5985_v33 = vadd.f32 %v5984_v30, %v3938_v26  ;;  %v1914_v30 = vld [vmem:[%s6609_s19 + $0x37b0] sm:$0xff] }
 0xdf9   : > { %v3962_v34 = vmul.f32 %v1914_v30, %v1914_v30 }
 0xdfa   : > { %v5986_v36 = vadd.f32 %v5985_v33, %v3939_v29  ;;  %v1915_v33 = vld [vmem:[%s6609_s19 + $0x37b8] sm:$0xff] }
 0xdfb   : > { %v3963_v37 = vmul.f32 %v1915_v33, %v1915_v33 }
 0xdfc   : > { %v5987_v39 = vadd.f32 %v5986_v36, %v3940_v32  ;;  %v1916_v36 = vld [vmem:[%s6609_s19 + $0x37c0] sm:$0xff] }
 0xdfd   : > { %v3964_v40 = vmul.f32 %v1916_v36, %v1916_v36 }
 0xdfe   : > { %v5988_v42 = vadd.f32 %v5987_v39, %v3941_v35  ;;  %v1917_v39 = vld [vmem:[%s6609_s19 + $0x37c8] sm:$0xff] }
 0xdff   : > { %v3965_v43 = vmul.f32 %v1917_v39, %v1917_v39 }
 0xe00   : > { %v5989_v45 = vadd.f32 %v5988_v42, %v3942_v38  ;;  %v1918_v42 = vld [vmem:[%s6609_s19 + $0x37d0] sm:$0xff] }
 0xe01   : > { %v3966_v46 = vmul.f32 %v1918_v42, %v1918_v42 }
 0xe02   : > { %v5990_v48 = vadd.f32 %v5989_v45, %v3943_v41  ;;  %v1919_v45 = vld [vmem:[%s6609_s19 + $0x37d8] sm:$0xff] }
 0xe03   : > { %v3967_v49 = vmul.f32 %v1919_v45, %v1919_v45 }
 0xe04   : > { %v5991_v51 = vadd.f32 %v5990_v48, %v3944_v44  ;;  %v1920_v48 = vld [vmem:[%s6609_s19 + $0x37e0] sm:$0xff] }
 0xe05   : > { %v3968_v52 = vmul.f32 %v1920_v48, %v1920_v48 }
 0xe06   : > { %v5992_v54 = vadd.f32 %v5991_v51, %v3945_v47  ;;  %v1921_v51 = vld [vmem:[%s6609_s19 + $0x37e8] sm:$0xff] }
 0xe07   : > { %v3969_v55 = vmul.f32 %v1921_v51, %v1921_v51 }
 0xe08   : > { %v5993_v57 = vadd.f32 %v5992_v54, %v3946_v50  ;;  %v1922_v54 = vld [vmem:[%s6609_s19 + $0x37f0] sm:$0xff] }
 0xe09   : > { %v3970_v58 = vmul.f32 %v1922_v54, %v1922_v54 }
 0xe0a   : > { %v5994_v60 = vadd.f32 %v5993_v57, %v3947_v53  ;;  %v1923_v57 = vld [vmem:[%s6609_s19 + $0x37f8] sm:$0xff] }
 0xe0b   : > { %v3971_v61 = vmul.f32 %v1923_v57, %v1923_v57 }
 0xe0c   : > { %v5995_v63 = vadd.f32 %v5994_v60, %v3948_v56  ;;  %v1924_v60 = vld [vmem:[%s6609_s19 + $0x3800] sm:$0xff] }
 0xe0d   : > { %v3972_v0 = vmul.f32 %v1924_v60, %v1924_v60 }
 0xe0e   : > { %v5996_v2 = vadd.f32 %v5995_v63, %v3949_v59  ;;  %v1925_v63 = vld [vmem:[%s6609_s19 + $0x3808] sm:$0xff] }
 0xe0f   : > { %v3973_v3 = vmul.f32 %v1925_v63, %v1925_v63 }
 0xe10   : > { %v5997_v5 = vadd.f32 %v5996_v2, %v3950_v62  ;;  %v1926_v2 = vld [vmem:[%s6609_s19 + $0x3810] sm:$0xff] }
 0xe11   : > { %v3974_v6 = vmul.f32 %v1926_v2, %v1926_v2 }
 0xe12   : > { %v5998_v8 = vadd.f32 %v5997_v5, %v3951_v1  ;;  %v1927_v5 = vld [vmem:[%s6609_s19 + $0x3818] sm:$0xff] }
 0xe13   : > { %v3975_v9 = vmul.f32 %v1927_v5, %v1927_v5 }
 0xe14   : > { %v5999_v11 = vadd.f32 %v5998_v8, %v3952_v4  ;;  %v1928_v8 = vld [vmem:[%s6609_s19 + $0x3820] sm:$0xff] }
 0xe15   : > { %v3976_v12 = vmul.f32 %v1928_v8, %v1928_v8 }
 0xe16   : > { %v6000_v14 = vadd.f32 %v5999_v11, %v3953_v7  ;;  %v1929_v11 = vld [vmem:[%s6609_s19 + $0x3828] sm:$0xff] }
 0xe17   : > { %v3977_v15 = vmul.f32 %v1929_v11, %v1929_v11 }
 0xe18   : > { %v6001_v17 = vadd.f32 %v6000_v14, %v3954_v10  ;;  %v1930_v14 = vld [vmem:[%s6609_s19 + $0x3830] sm:$0xff] }
 0xe19   : > { %v3978_v18 = vmul.f32 %v1930_v14, %v1930_v14 }
 0xe1a   : > { %v6002_v20 = vadd.f32 %v6001_v17, %v3955_v13  ;;  %v1931_v17 = vld [vmem:[%s6609_s19 + $0x3838] sm:$0xff] }
 0xe1b   : > { %v3979_v21 = vmul.f32 %v1931_v17, %v1931_v17 }
 0xe1c   : > { %v6003_v23 = vadd.f32 %v6002_v20, %v3956_v16  ;;  %v1932_v20 = vld [vmem:[%s6609_s19 + $0x3840] sm:$0xff] }
 0xe1d   : > { %v3980_v24 = vmul.f32 %v1932_v20, %v1932_v20 }
 0xe1e   : > { %v6004_v26 = vadd.f32 %v6003_v23, %v3957_v19  ;;  %v1933_v23 = vld [vmem:[%s6609_s19 + $0x3848] sm:$0xff] }
 0xe1f   : > { %v3981_v27 = vmul.f32 %v1933_v23, %v1933_v23 }
 0xe20   : > { %v6005_v29 = vadd.f32 %v6004_v26, %v3958_v22  ;;  %v1934_v26 = vld [vmem:[%s6609_s19 + $0x3850] sm:$0xff] }
 0xe21   : > { %v3982_v30 = vmul.f32 %v1934_v26, %v1934_v26 }
 0xe22   : > { %v6006_v32 = vadd.f32 %v6005_v29, %v3959_v25  ;;  %v1935_v29 = vld [vmem:[%s6609_s19 + $0x3858] sm:$0xff] }
 0xe23   : > { %v3983_v33 = vmul.f32 %v1935_v29, %v1935_v29 }
 0xe24   : > { %v6007_v35 = vadd.f32 %v6006_v32, %v3960_v28  ;;  %v1936_v32 = vld [vmem:[%s6609_s19 + $0x3860] sm:$0xff] }
 0xe25   : > { %v3984_v36 = vmul.f32 %v1936_v32, %v1936_v32 }
 0xe26   : > { %v6008_v38 = vadd.f32 %v6007_v35, %v3961_v31  ;;  %v1937_v35 = vld [vmem:[%s6609_s19 + $0x3868] sm:$0xff] }
 0xe27   : > { %v3985_v39 = vmul.f32 %v1937_v35, %v1937_v35 }
 0xe28   : > { %v6009_v41 = vadd.f32 %v6008_v38, %v3962_v34  ;;  %v1938_v38 = vld [vmem:[%s6609_s19 + $0x3870] sm:$0xff] }
 0xe29   : > { %v3986_v42 = vmul.f32 %v1938_v38, %v1938_v38 }
 0xe2a   : > { %v6010_v44 = vadd.f32 %v6009_v41, %v3963_v37  ;;  %v1939_v41 = vld [vmem:[%s6609_s19 + $0x3878] sm:$0xff] }
 0xe2b   : > { %v3987_v45 = vmul.f32 %v1939_v41, %v1939_v41 }
 0xe2c   : > { %v6011_v47 = vadd.f32 %v6010_v44, %v3964_v40  ;;  %v1940_v44 = vld [vmem:[%s6609_s19 + $0x3880] sm:$0xff] }
 0xe2d   : > { %v3988_v48 = vmul.f32 %v1940_v44, %v1940_v44 }
 0xe2e   : > { %v6012_v50 = vadd.f32 %v6011_v47, %v3965_v43  ;;  %v1941_v47 = vld [vmem:[%s6609_s19 + $0x3888] sm:$0xff] }
 0xe2f   : > { %v3989_v51 = vmul.f32 %v1941_v47, %v1941_v47 }
 0xe30   : > { %v6013_v53 = vadd.f32 %v6012_v50, %v3966_v46  ;;  %v1942_v50 = vld [vmem:[%s6609_s19 + $0x3890] sm:$0xff] }
 0xe31   : > { %v3990_v54 = vmul.f32 %v1942_v50, %v1942_v50 }
 0xe32   : > { %v6014_v56 = vadd.f32 %v6013_v53, %v3967_v49  ;;  %v1943_v53 = vld [vmem:[%s6609_s19 + $0x3898] sm:$0xff] }
 0xe33   : > { %v3991_v57 = vmul.f32 %v1943_v53, %v1943_v53 }
 0xe34   : > { %v6015_v59 = vadd.f32 %v6014_v56, %v3968_v52  ;;  %v1944_v56 = vld [vmem:[%s6609_s19 + $0x38a0] sm:$0xff] }
 0xe35   : > { %v3992_v60 = vmul.f32 %v1944_v56, %v1944_v56 }
 0xe36   : > { %v6016_v62 = vadd.f32 %v6015_v59, %v3969_v55  ;;  %v1945_v59 = vld [vmem:[%s6609_s19 + $0x38a8] sm:$0xff] }
 0xe37   : > { %v3993_v63 = vmul.f32 %v1945_v59, %v1945_v59 }
 0xe38   : > { %v6017_v1 = vadd.f32 %v6016_v62, %v3970_v58  ;;  %v1946_v62 = vld [vmem:[%s6609_s19 + $0x38b0] sm:$0xff] }
 0xe39   : > { %v3994_v2 = vmul.f32 %v1946_v62, %v1946_v62 }
 0xe3a   : > { %v6018_v4 = vadd.f32 %v6017_v1, %v3971_v61  ;;  %v1947_v1 = vld [vmem:[%s6609_s19 + $0x38b8] sm:$0xff] }
 0xe3b   : > { %v3995_v5 = vmul.f32 %v1947_v1, %v1947_v1 }
 0xe3c   : > { %v6019_v7 = vadd.f32 %v6018_v4, %v3972_v0  ;;  %v1948_v4 = vld [vmem:[%s6609_s19 + $0x38c0] sm:$0xff] }
 0xe3d   : > { %v3996_v8 = vmul.f32 %v1948_v4, %v1948_v4 }
 0xe3e   : > { %v6020_v10 = vadd.f32 %v6019_v7, %v3973_v3  ;;  %v1949_v7 = vld [vmem:[%s6609_s19 + $0x38c8] sm:$0xff] }
 0xe3f   : > { %v3997_v11 = vmul.f32 %v1949_v7, %v1949_v7 }
 0xe40   : > { %v6021_v13 = vadd.f32 %v6020_v10, %v3974_v6  ;;  %v1950_v10 = vld [vmem:[%s6609_s19 + $0x38d0] sm:$0xff] }
 0xe41   : > { %v3998_v14 = vmul.f32 %v1950_v10, %v1950_v10 }
 0xe42   : > { %v6022_v16 = vadd.f32 %v6021_v13, %v3975_v9  ;;  %v1951_v13 = vld [vmem:[%s6609_s19 + $0x38d8] sm:$0xff] }
 0xe43   : > { %v3999_v17 = vmul.f32 %v1951_v13, %v1951_v13 }
 0xe44   : > { %v6023_v19 = vadd.f32 %v6022_v16, %v3976_v12  ;;  %v1952_v16 = vld [vmem:[%s6609_s19 + $0x38e0] sm:$0xff] }
 0xe45   : > { %v4000_v20 = vmul.f32 %v1952_v16, %v1952_v16 }
 0xe46   : > { %v6024_v22 = vadd.f32 %v6023_v19, %v3977_v15  ;;  %v1953_v19 = vld [vmem:[%s6609_s19 + $0x38e8] sm:$0xff] }
 0xe47   : > { %v4001_v23 = vmul.f32 %v1953_v19, %v1953_v19 }
 0xe48   : > { %v6025_v25 = vadd.f32 %v6024_v22, %v3978_v18  ;;  %v1954_v22 = vld [vmem:[%s6609_s19 + $0x38f0] sm:$0xff] }
 0xe49   : > { %v4002_v26 = vmul.f32 %v1954_v22, %v1954_v22 }
 0xe4a   : > { %v6026_v28 = vadd.f32 %v6025_v25, %v3979_v21  ;;  %v1955_v25 = vld [vmem:[%s6609_s19 + $0x38f8] sm:$0xff] }
 0xe4b   : > { %v4003_v29 = vmul.f32 %v1955_v25, %v1955_v25 }
 0xe4c   : > { %v6027_v31 = vadd.f32 %v6026_v28, %v3980_v24  ;;  %v1956_v28 = vld [vmem:[%s6609_s19 + $0x3900] sm:$0xff] }
 0xe4d   : > { %v4004_v32 = vmul.f32 %v1956_v28, %v1956_v28 }
 0xe4e   : > { %v6028_v34 = vadd.f32 %v6027_v31, %v3981_v27  ;;  %v1957_v31 = vld [vmem:[%s6609_s19 + $0x3908] sm:$0xff] }
 0xe4f   : > { %v4005_v35 = vmul.f32 %v1957_v31, %v1957_v31 }
 0xe50   : > { %v6029_v37 = vadd.f32 %v6028_v34, %v3982_v30  ;;  %v1958_v34 = vld [vmem:[%s6609_s19 + $0x3910] sm:$0xff] }
 0xe51   : > { %v4006_v38 = vmul.f32 %v1958_v34, %v1958_v34 }
 0xe52   : > { %v6030_v40 = vadd.f32 %v6029_v37, %v3983_v33  ;;  %v1959_v37 = vld [vmem:[%s6609_s19 + $0x3918] sm:$0xff] }
 0xe53   : > { %v4007_v41 = vmul.f32 %v1959_v37, %v1959_v37 }
 0xe54   : > { %v6031_v43 = vadd.f32 %v6030_v40, %v3984_v36  ;;  %v1960_v40 = vld [vmem:[%s6609_s19 + $0x3920] sm:$0xff] }
 0xe55   : > { %v4008_v44 = vmul.f32 %v1960_v40, %v1960_v40 }
 0xe56   : > { %v6032_v46 = vadd.f32 %v6031_v43, %v3985_v39  ;;  %v1961_v43 = vld [vmem:[%s6609_s19 + $0x3928] sm:$0xff] }
 0xe57   : > { %v4009_v47 = vmul.f32 %v1961_v43, %v1961_v43 }
 0xe58   : > { %v6033_v49 = vadd.f32 %v6032_v46, %v3986_v42  ;;  %v1962_v46 = vld [vmem:[%s6609_s19 + $0x3930] sm:$0xff] }
 0xe59   : > { %v4010_v50 = vmul.f32 %v1962_v46, %v1962_v46 }
 0xe5a   : > { %v6034_v52 = vadd.f32 %v6033_v49, %v3987_v45  ;;  %v1963_v49 = vld [vmem:[%s6609_s19 + $0x3938] sm:$0xff] }
 0xe5b   : > { %v4011_v53 = vmul.f32 %v1963_v49, %v1963_v49 }
 0xe5c   : > { %v6035_v55 = vadd.f32 %v6034_v52, %v3988_v48  ;;  %v1964_v52 = vld [vmem:[%s6609_s19 + $0x3940] sm:$0xff] }
 0xe5d   : > { %v4012_v56 = vmul.f32 %v1964_v52, %v1964_v52 }
 0xe5e   : > { %v6036_v58 = vadd.f32 %v6035_v55, %v3989_v51  ;;  %v1965_v55 = vld [vmem:[%s6609_s19 + $0x3948] sm:$0xff] }
 0xe5f   : > { %v4013_v59 = vmul.f32 %v1965_v55, %v1965_v55 }
 0xe60   : > { %v6037_v61 = vadd.f32 %v6036_v58, %v3990_v54  ;;  %v1966_v58 = vld [vmem:[%s6609_s19 + $0x3950] sm:$0xff] }
 0xe61   : > { %v4014_v62 = vmul.f32 %v1966_v58, %v1966_v58 }
 0xe62   : > { %v6038_v0 = vadd.f32 %v6037_v61, %v3991_v57  ;;  %v1967_v61 = vld [vmem:[%s6609_s19 + $0x3958] sm:$0xff] }
 0xe63   : > { %v4015_v1 = vmul.f32 %v1967_v61, %v1967_v61 }
 0xe64   : > { %v6039_v3 = vadd.f32 %v6038_v0, %v3992_v60  ;;  %v1968_v0 = vld [vmem:[%s6609_s19 + $0x3960] sm:$0xff] }
 0xe65   : > { %v4016_v4 = vmul.f32 %v1968_v0, %v1968_v0 }
 0xe66   : > { %v6040_v6 = vadd.f32 %v6039_v3, %v3993_v63  ;;  %v1969_v3 = vld [vmem:[%s6609_s19 + $0x3968] sm:$0xff] }
 0xe67   : > { %v4017_v7 = vmul.f32 %v1969_v3, %v1969_v3 }
 0xe68   : > { %v6041_v9 = vadd.f32 %v6040_v6, %v3994_v2  ;;  %v1970_v6 = vld [vmem:[%s6609_s19 + $0x3970] sm:$0xff] }
 0xe69   : > { %v4018_v10 = vmul.f32 %v1970_v6, %v1970_v6 }
 0xe6a   : > { %v6042_v12 = vadd.f32 %v6041_v9, %v3995_v5  ;;  %v1971_v9 = vld [vmem:[%s6609_s19 + $0x3978] sm:$0xff] }
 0xe6b   : > { %v4019_v13 = vmul.f32 %v1971_v9, %v1971_v9 }
 0xe6c   : > { %v6043_v15 = vadd.f32 %v6042_v12, %v3996_v8  ;;  %v1972_v12 = vld [vmem:[%s6609_s19 + $0x3980] sm:$0xff] }
 0xe6d   : > { %v4020_v16 = vmul.f32 %v1972_v12, %v1972_v12 }
 0xe6e   : > { %v6044_v18 = vadd.f32 %v6043_v15, %v3997_v11  ;;  %v1973_v15 = vld [vmem:[%s6609_s19 + $0x3988] sm:$0xff] }
 0xe6f   : > { %v4021_v19 = vmul.f32 %v1973_v15, %v1973_v15 }
 0xe70   : > { %v6045_v21 = vadd.f32 %v6044_v18, %v3998_v14  ;;  %v1974_v18 = vld [vmem:[%s6609_s19 + $0x3990] sm:$0xff] }
 0xe71   : > { %v4022_v22 = vmul.f32 %v1974_v18, %v1974_v18 }
 0xe72   : > { %v6046_v24 = vadd.f32 %v6045_v21, %v3999_v17  ;;  %v1975_v21 = vld [vmem:[%s6609_s19 + $0x3998] sm:$0xff] }
 0xe73   : > { %v4023_v25 = vmul.f32 %v1975_v21, %v1975_v21 }
 0xe74   : > { %v6047_v27 = vadd.f32 %v6046_v24, %v4000_v20  ;;  %v1976_v24 = vld [vmem:[%s6609_s19 + $0x39a0] sm:$0xff] }
 0xe75   : > { %v4024_v28 = vmul.f32 %v1976_v24, %v1976_v24 }
 0xe76   : > { %v6048_v30 = vadd.f32 %v6047_v27, %v4001_v23  ;;  %v1977_v27 = vld [vmem:[%s6609_s19 + $0x39a8] sm:$0xff] }
 0xe77   : > { %v4025_v31 = vmul.f32 %v1977_v27, %v1977_v27 }
 0xe78   : > { %v6049_v33 = vadd.f32 %v6048_v30, %v4002_v26  ;;  %v1978_v30 = vld [vmem:[%s6609_s19 + $0x39b0] sm:$0xff] }
 0xe79   : > { %v4026_v34 = vmul.f32 %v1978_v30, %v1978_v30 }
 0xe7a   : > { %v6050_v36 = vadd.f32 %v6049_v33, %v4003_v29  ;;  %v1979_v33 = vld [vmem:[%s6609_s19 + $0x39b8] sm:$0xff] }
 0xe7b   : > { %v4027_v37 = vmul.f32 %v1979_v33, %v1979_v33 }
 0xe7c   : > { %v6051_v39 = vadd.f32 %v6050_v36, %v4004_v32  ;;  %v1980_v36 = vld [vmem:[%s6609_s19 + $0x39c0] sm:$0xff] }
 0xe7d   : > { %v4028_v40 = vmul.f32 %v1980_v36, %v1980_v36 }
 0xe7e   : > { %v6052_v42 = vadd.f32 %v6051_v39, %v4005_v35  ;;  %v1981_v39 = vld [vmem:[%s6609_s19 + $0x39c8] sm:$0xff] }
 0xe7f   : > { %v4029_v43 = vmul.f32 %v1981_v39, %v1981_v39 }
 0xe80   : > { %v6053_v45 = vadd.f32 %v6052_v42, %v4006_v38  ;;  %v1982_v42 = vld [vmem:[%s6609_s19 + $0x39d0] sm:$0xff] }
 0xe81   : > { %v4030_v46 = vmul.f32 %v1982_v42, %v1982_v42 }
 0xe82   : > { %v6054_v48 = vadd.f32 %v6053_v45, %v4007_v41  ;;  %v1983_v45 = vld [vmem:[%s6609_s19 + $0x39d8] sm:$0xff] }
 0xe83   : > { %v4031_v49 = vmul.f32 %v1983_v45, %v1983_v45 }
 0xe84   : > { %v6055_v51 = vadd.f32 %v6054_v48, %v4008_v44  ;;  %v1984_v48 = vld [vmem:[%s6609_s19 + $0x39e0] sm:$0xff] }
 0xe85   : > { %v4032_v52 = vmul.f32 %v1984_v48, %v1984_v48 }
 0xe86   : > { %v6056_v54 = vadd.f32 %v6055_v51, %v4009_v47  ;;  %v1985_v51 = vld [vmem:[%s6609_s19 + $0x39e8] sm:$0xff] }
 0xe87   : > { %v4033_v55 = vmul.f32 %v1985_v51, %v1985_v51 }
 0xe88   : > { %v6057_v57 = vadd.f32 %v6056_v54, %v4010_v50  ;;  %v1986_v54 = vld [vmem:[%s6609_s19 + $0x39f0] sm:$0xff] }
 0xe89   : > { %v4034_v58 = vmul.f32 %v1986_v54, %v1986_v54 }
 0xe8a   : > { %v6058_v60 = vadd.f32 %v6057_v57, %v4011_v53  ;;  %v1987_v57 = vld [vmem:[%s6609_s19 + $0x39f8] sm:$0xff] }
 0xe8b   : > { %v4035_v61 = vmul.f32 %v1987_v57, %v1987_v57 }
 0xe8c   : > { %v6059_v63 = vadd.f32 %v6058_v60, %v4012_v56  ;;  %v1988_v60 = vld [vmem:[%s6609_s19 + $0x3a00] sm:$0xff] }
 0xe8d   : > { %v4036_v0 = vmul.f32 %v1988_v60, %v1988_v60 }
 0xe8e   : > { %v6060_v2 = vadd.f32 %v6059_v63, %v4013_v59  ;;  %v1989_v63 = vld [vmem:[%s6609_s19 + $0x3a08] sm:$0xff] }
 0xe8f   : > { %v4037_v3 = vmul.f32 %v1989_v63, %v1989_v63 }
 0xe90   : > { %v6061_v5 = vadd.f32 %v6060_v2, %v4014_v62  ;;  %v1990_v2 = vld [vmem:[%s6609_s19 + $0x3a10] sm:$0xff] }
 0xe91   : > { %v4038_v6 = vmul.f32 %v1990_v2, %v1990_v2 }
 0xe92   : > { %v6062_v8 = vadd.f32 %v6061_v5, %v4015_v1  ;;  %v1991_v5 = vld [vmem:[%s6609_s19 + $0x3a18] sm:$0xff] }
 0xe93   : > { %v4039_v9 = vmul.f32 %v1991_v5, %v1991_v5 }
 0xe94   : > { %v6063_v11 = vadd.f32 %v6062_v8, %v4016_v4  ;;  %v1992_v8 = vld [vmem:[%s6609_s19 + $0x3a20] sm:$0xff] }
 0xe95   : > { %v4040_v12 = vmul.f32 %v1992_v8, %v1992_v8 }
 0xe96   : > { %v6064_v14 = vadd.f32 %v6063_v11, %v4017_v7  ;;  %v1993_v11 = vld [vmem:[%s6609_s19 + $0x3a28] sm:$0xff] }
 0xe97   : > { %v4041_v15 = vmul.f32 %v1993_v11, %v1993_v11 }
 0xe98   : > { %v6065_v17 = vadd.f32 %v6064_v14, %v4018_v10  ;;  %v1994_v14 = vld [vmem:[%s6609_s19 + $0x3a30] sm:$0xff] }
 0xe99   : > { %v4042_v18 = vmul.f32 %v1994_v14, %v1994_v14 }
 0xe9a   : > { %v6066_v20 = vadd.f32 %v6065_v17, %v4019_v13  ;;  %v1995_v17 = vld [vmem:[%s6609_s19 + $0x3a38] sm:$0xff] }
 0xe9b   : > { %v4043_v21 = vmul.f32 %v1995_v17, %v1995_v17 }
 0xe9c   : > { %v6067_v23 = vadd.f32 %v6066_v20, %v4020_v16  ;;  %v1996_v20 = vld [vmem:[%s6609_s19 + $0x3a40] sm:$0xff] }
 0xe9d   : > { %v4044_v24 = vmul.f32 %v1996_v20, %v1996_v20 }
 0xe9e   : > { %v6068_v26 = vadd.f32 %v6067_v23, %v4021_v19  ;;  %v1997_v23 = vld [vmem:[%s6609_s19 + $0x3a48] sm:$0xff] }
 0xe9f   : > { %v4045_v27 = vmul.f32 %v1997_v23, %v1997_v23 }
 0xea0   : > { %v6069_v29 = vadd.f32 %v6068_v26, %v4022_v22  ;;  %v1998_v26 = vld [vmem:[%s6609_s19 + $0x3a50] sm:$0xff] }
 0xea1   : > { %v4046_v30 = vmul.f32 %v1998_v26, %v1998_v26 }
 0xea2   : > { %v6070_v32 = vadd.f32 %v6069_v29, %v4023_v25  ;;  %v1999_v29 = vld [vmem:[%s6609_s19 + $0x3a58] sm:$0xff] }
 0xea3   : > { %v4047_v33 = vmul.f32 %v1999_v29, %v1999_v29 }
 0xea4   : > { %v6071_v35 = vadd.f32 %v6070_v32, %v4024_v28  ;;  %v2000_v32 = vld [vmem:[%s6609_s19 + $0x3a60] sm:$0xff] }
 0xea5   : > { %v4048_v36 = vmul.f32 %v2000_v32, %v2000_v32 }
 0xea6   : > { %v6072_v38 = vadd.f32 %v6071_v35, %v4025_v31  ;;  %v2001_v35 = vld [vmem:[%s6609_s19 + $0x3a68] sm:$0xff] }
 0xea7   : > { %v4049_v39 = vmul.f32 %v2001_v35, %v2001_v35 }
 0xea8   : > { %v6073_v41 = vadd.f32 %v6072_v38, %v4026_v34  ;;  %v2002_v38 = vld [vmem:[%s6609_s19 + $0x3a70] sm:$0xff] }
 0xea9   : > { %v4050_v42 = vmul.f32 %v2002_v38, %v2002_v38 }
 0xeaa   : > { %v6074_v44 = vadd.f32 %v6073_v41, %v4027_v37  ;;  %v2003_v41 = vld [vmem:[%s6609_s19 + $0x3a78] sm:$0xff] }
 0xeab   : > { %v4051_v45 = vmul.f32 %v2003_v41, %v2003_v41 }
 0xeac   : > { %v6075_v47 = vadd.f32 %v6074_v44, %v4028_v40  ;;  %v2004_v44 = vld [vmem:[%s6609_s19 + $0x3a80] sm:$0xff] }
 0xead   : > { %v4052_v48 = vmul.f32 %v2004_v44, %v2004_v44 }
 0xeae   : > { %v6076_v50 = vadd.f32 %v6075_v47, %v4029_v43  ;;  %v2005_v47 = vld [vmem:[%s6609_s19 + $0x3a88] sm:$0xff] }
 0xeaf   : > { %v4053_v51 = vmul.f32 %v2005_v47, %v2005_v47 }
 0xeb0   : > { %v6077_v53 = vadd.f32 %v6076_v50, %v4030_v46  ;;  %v2006_v50 = vld [vmem:[%s6609_s19 + $0x3a90] sm:$0xff] }
 0xeb1   : > { %v4054_v54 = vmul.f32 %v2006_v50, %v2006_v50 }
 0xeb2   : > { %v6078_v56 = vadd.f32 %v6077_v53, %v4031_v49  ;;  %v2007_v53 = vld [vmem:[%s6609_s19 + $0x3a98] sm:$0xff] }
 0xeb3   : > { %v4055_v57 = vmul.f32 %v2007_v53, %v2007_v53 }
 0xeb4   : > { %v6079_v59 = vadd.f32 %v6078_v56, %v4032_v52  ;;  %v2008_v56 = vld [vmem:[%s6609_s19 + $0x3aa0] sm:$0xff] }
 0xeb5   : > { %v4056_v60 = vmul.f32 %v2008_v56, %v2008_v56 }
 0xeb6   : > { %v6080_v62 = vadd.f32 %v6079_v59, %v4033_v55  ;;  %v2009_v59 = vld [vmem:[%s6609_s19 + $0x3aa8] sm:$0xff] }
 0xeb7   : > { %v4057_v63 = vmul.f32 %v2009_v59, %v2009_v59 }
 0xeb8   : > { %v6081_v1 = vadd.f32 %v6080_v62, %v4034_v58  ;;  %v2010_v62 = vld [vmem:[%s6609_s19 + $0x3ab0] sm:$0xff] }
 0xeb9   : > { %v4058_v2 = vmul.f32 %v2010_v62, %v2010_v62 }
 0xeba   : > { %v6082_v4 = vadd.f32 %v6081_v1, %v4035_v61  ;;  %v2011_v1 = vld [vmem:[%s6609_s19 + $0x3ab8] sm:$0xff] }
 0xebb   : > { %v4059_v5 = vmul.f32 %v2011_v1, %v2011_v1 }
 0xebc   : > { %v6083_v7 = vadd.f32 %v6082_v4, %v4036_v0  ;;  %v2012_v4 = vld [vmem:[%s6609_s19 + $0x3ac0] sm:$0xff] }
 0xebd   : > { %v4060_v8 = vmul.f32 %v2012_v4, %v2012_v4 }
 0xebe   : > { %v6084_v10 = vadd.f32 %v6083_v7, %v4037_v3  ;;  %v2013_v7 = vld [vmem:[%s6609_s19 + $0x3ac8] sm:$0xff] }
 0xebf   : > { %v4061_v11 = vmul.f32 %v2013_v7, %v2013_v7 }
 0xec0   : > { %v6085_v13 = vadd.f32 %v6084_v10, %v4038_v6  ;;  %v2014_v10 = vld [vmem:[%s6609_s19 + $0x3ad0] sm:$0xff] }
 0xec1   : > { %v4062_v14 = vmul.f32 %v2014_v10, %v2014_v10 }
 0xec2   : > { %v6086_v16 = vadd.f32 %v6085_v13, %v4039_v9  ;;  %v2015_v13 = vld [vmem:[%s6609_s19 + $0x3ad8] sm:$0xff] }
 0xec3   : > { %v4063_v17 = vmul.f32 %v2015_v13, %v2015_v13 }
 0xec4   : > { %v6087_v19 = vadd.f32 %v6086_v16, %v4040_v12  ;;  %v2016_v16 = vld [vmem:[%s6609_s19 + $0x3ae0] sm:$0xff] }
 0xec5   : > { %v4064_v20 = vmul.f32 %v2016_v16, %v2016_v16 }
 0xec6   : > { %v6088_v22 = vadd.f32 %v6087_v19, %v4041_v15  ;;  %v2017_v19 = vld [vmem:[%s6609_s19 + $0x3ae8] sm:$0xff] }
 0xec7   : > { %v4065_v23 = vmul.f32 %v2017_v19, %v2017_v19 }
 0xec8   : > { %v6089_v25 = vadd.f32 %v6088_v22, %v4042_v18  ;;  %v2018_v22 = vld [vmem:[%s6609_s19 + $0x3af0] sm:$0xff] }
 0xec9   : > { %v4066_v26 = vmul.f32 %v2018_v22, %v2018_v22 }
 0xeca   : > { %v6090_v28 = vadd.f32 %v6089_v25, %v4043_v21  ;;  %v2019_v25 = vld [vmem:[%s6609_s19 + $0x3af8] sm:$0xff] }
 0xecb   : > { %v4067_v29 = vmul.f32 %v2019_v25, %v2019_v25 }
 0xecc   : > { %v6091_v31 = vadd.f32 %v6090_v28, %v4044_v24  ;;  %v2020_v28 = vld [vmem:[%s6609_s19 + $0x3b00] sm:$0xff] }
 0xecd   : > { %v4068_v32 = vmul.f32 %v2020_v28, %v2020_v28 }
 0xece   : > { %v6092_v34 = vadd.f32 %v6091_v31, %v4045_v27  ;;  %v2021_v31 = vld [vmem:[%s6609_s19 + $0x3b08] sm:$0xff] }
 0xecf   : > { %v4069_v35 = vmul.f32 %v2021_v31, %v2021_v31 }
 0xed0   : > { %v6093_v37 = vadd.f32 %v6092_v34, %v4046_v30  ;;  %v2022_v34 = vld [vmem:[%s6609_s19 + $0x3b10] sm:$0xff] }
 0xed1   : > { %v4070_v38 = vmul.f32 %v2022_v34, %v2022_v34 }
 0xed2   : > { %v6094_v40 = vadd.f32 %v6093_v37, %v4047_v33  ;;  %v2023_v37 = vld [vmem:[%s6609_s19 + $0x3b18] sm:$0xff] }
 0xed3   : > { %v4071_v41 = vmul.f32 %v2023_v37, %v2023_v37 }
 0xed4   : > { %v6095_v43 = vadd.f32 %v6094_v40, %v4048_v36  ;;  %v2024_v40 = vld [vmem:[%s6609_s19 + $0x3b20] sm:$0xff] }
 0xed5   : > { %v4072_v44 = vmul.f32 %v2024_v40, %v2024_v40 }
 0xed6   : > { %v6096_v46 = vadd.f32 %v6095_v43, %v4049_v39  ;;  %v2025_v43 = vld [vmem:[%s6609_s19 + $0x3b28] sm:$0xff] }
 0xed7   : > { %v4073_v47 = vmul.f32 %v2025_v43, %v2025_v43 }
 0xed8   : > { %v6097_v49 = vadd.f32 %v6096_v46, %v4050_v42  ;;  %v2026_v46 = vld [vmem:[%s6609_s19 + $0x3b30] sm:$0xff] }
 0xed9   : > { %v4074_v50 = vmul.f32 %v2026_v46, %v2026_v46 }
 0xeda   : > { %v6098_v52 = vadd.f32 %v6097_v49, %v4051_v45  ;;  %v2027_v49 = vld [vmem:[%s6609_s19 + $0x3b38] sm:$0xff] }
 0xedb   : > { %v4075_v53 = vmul.f32 %v2027_v49, %v2027_v49 }
 0xedc   : > { %v6099_v55 = vadd.f32 %v6098_v52, %v4052_v48  ;;  %v2028_v52 = vld [vmem:[%s6609_s19 + $0x3b40] sm:$0xff] }
 0xedd   : > { %v4076_v56 = vmul.f32 %v2028_v52, %v2028_v52 }
 0xede   : > { %v6100_v58 = vadd.f32 %v6099_v55, %v4053_v51  ;;  %v2029_v55 = vld [vmem:[%s6609_s19 + $0x3b48] sm:$0xff] }
 0xedf   : > { %v4077_v59 = vmul.f32 %v2029_v55, %v2029_v55 }
 0xee0   : > { %v6101_v61 = vadd.f32 %v6100_v58, %v4054_v54  ;;  %v2030_v58 = vld [vmem:[%s6609_s19 + $0x3b50] sm:$0xff] }
 0xee1   : > { %v4078_v62 = vmul.f32 %v2030_v58, %v2030_v58 }
 0xee2   : > { %v6102_v0 = vadd.f32 %v6101_v61, %v4055_v57  ;;  %v2031_v61 = vld [vmem:[%s6609_s19 + $0x3b58] sm:$0xff] }
 0xee3   : > { %v4079_v1 = vmul.f32 %v2031_v61, %v2031_v61 }
 0xee4   : > { %v6103_v3 = vadd.f32 %v6102_v0, %v4056_v60  ;;  %v2032_v0 = vld [vmem:[%s6609_s19 + $0x3b60] sm:$0xff] }
 0xee5   : > { %v4080_v4 = vmul.f32 %v2032_v0, %v2032_v0 }
 0xee6   : > { %v6104_v6 = vadd.f32 %v6103_v3, %v4057_v63  ;;  %v2033_v3 = vld [vmem:[%s6609_s19 + $0x3b68] sm:$0xff] }
 0xee7   : > { %v4081_v7 = vmul.f32 %v2033_v3, %v2033_v3 }
 0xee8   : > { %v6105_v9 = vadd.f32 %v6104_v6, %v4058_v2  ;;  %v2034_v6 = vld [vmem:[%s6609_s19 + $0x3b70] sm:$0xff] }
 0xee9   : > { %v4082_v10 = vmul.f32 %v2034_v6, %v2034_v6 }
 0xeea   : > { %v6106_v12 = vadd.f32 %v6105_v9, %v4059_v5  ;;  %v2035_v9 = vld [vmem:[%s6609_s19 + $0x3b78] sm:$0xff] }
 0xeeb   : > { %v4083_v13 = vmul.f32 %v2035_v9, %v2035_v9 }
 0xeec   : > { %v6107_v15 = vadd.f32 %v6106_v12, %v4060_v8  ;;  %v2036_v12 = vld [vmem:[%s6609_s19 + $0x3b80] sm:$0xff] }
 0xeed   : > { %v4084_v16 = vmul.f32 %v2036_v12, %v2036_v12 }
 0xeee   : > { %v6108_v18 = vadd.f32 %v6107_v15, %v4061_v11  ;;  %v2037_v15 = vld [vmem:[%s6609_s19 + $0x3b88] sm:$0xff] }
 0xeef   : > { %v4085_v19 = vmul.f32 %v2037_v15, %v2037_v15 }
 0xef0   : > { %v6109_v21 = vadd.f32 %v6108_v18, %v4062_v14  ;;  %v2038_v18 = vld [vmem:[%s6609_s19 + $0x3b90] sm:$0xff] }
 0xef1   : > { %v4086_v22 = vmul.f32 %v2038_v18, %v2038_v18 }
 0xef2   : > { %v6110_v24 = vadd.f32 %v6109_v21, %v4063_v17  ;;  %v2039_v21 = vld [vmem:[%s6609_s19 + $0x3b98] sm:$0xff] }
 0xef3   : > { %v4087_v25 = vmul.f32 %v2039_v21, %v2039_v21 }
 0xef4   : > { %v6111_v27 = vadd.f32 %v6110_v24, %v4064_v20  ;;  %v2040_v24 = vld [vmem:[%s6609_s19 + $0x3ba0] sm:$0xff] }
 0xef5   : > { %v4088_v28 = vmul.f32 %v2040_v24, %v2040_v24 }
 0xef6   : > { %v6112_v30 = vadd.f32 %v6111_v27, %v4065_v23  ;;  %v2041_v27 = vld [vmem:[%s6609_s19 + $0x3ba8] sm:$0xff] }
 0xef7   : > { %v4089_v31 = vmul.f32 %v2041_v27, %v2041_v27 }
 0xef8   : > { %v6113_v33 = vadd.f32 %v6112_v30, %v4066_v26  ;;  %v2042_v30 = vld [vmem:[%s6609_s19 + $0x3bb0] sm:$0xff] }
 0xef9   : > { %v4090_v34 = vmul.f32 %v2042_v30, %v2042_v30 }
 0xefa   : > { %v6114_v36 = vadd.f32 %v6113_v33, %v4067_v29  ;;  %v2043_v33 = vld [vmem:[%s6609_s19 + $0x3bb8] sm:$0xff] }
 0xefb   : > { %v4091_v37 = vmul.f32 %v2043_v33, %v2043_v33 }
 0xefc   : > { %v6115_v39 = vadd.f32 %v6114_v36, %v4068_v32  ;;  %v2044_v36 = vld [vmem:[%s6609_s19 + $0x3bc0] sm:$0xff] }
 0xefd   : > { %v4092_v40 = vmul.f32 %v2044_v36, %v2044_v36 }
 0xefe   : > { %v6116_v42 = vadd.f32 %v6115_v39, %v4069_v35  ;;  %v2045_v39 = vld [vmem:[%s6609_s19 + $0x3bc8] sm:$0xff] }
 0xeff   : > { %v4093_v43 = vmul.f32 %v2045_v39, %v2045_v39 }
 0xf00   : > { %v6117_v45 = vadd.f32 %v6116_v42, %v4070_v38  ;;  %v2046_v42 = vld [vmem:[%s6609_s19 + $0x3bd0] sm:$0xff] }
 0xf01   : > { %v4094_v46 = vmul.f32 %v2046_v42, %v2046_v42 }
 0xf02   : > { %v6118_v48 = vadd.f32 %v6117_v45, %v4071_v41  ;;  %v2047_v45 = vld [vmem:[%s6609_s19 + $0x3bd8] sm:$0xff] }
 0xf03   : > { %v4095_v49 = vmul.f32 %v2047_v45, %v2047_v45 }
 0xf04   : > { %v6119_v51 = vadd.f32 %v6118_v48, %v4072_v44  ;;  %v2048_v48 = vld [vmem:[%s6609_s19 + $0x3be0] sm:$0xff] }
 0xf05   : > { %v4096_v52 = vmul.f32 %v2048_v48, %v2048_v48 }
 0xf06   : > { %v6120_v54 = vadd.f32 %v6119_v51, %v4073_v47  ;;  %v2049_v51 = vld [vmem:[%s6609_s19 + $0x3be8] sm:$0xff] }
 0xf07   : > { %v4097_v55 = vmul.f32 %v2049_v51, %v2049_v51 }
 0xf08   : > { %v6121_v57 = vadd.f32 %v6120_v54, %v4074_v50  ;;  %v2050_v54 = vld [vmem:[%s6609_s19 + $0x3bf0] sm:$0xff] }
 0xf09   : > { %v4098_v58 = vmul.f32 %v2050_v54, %v2050_v54 }
 0xf0a   : > { %v6122_v60 = vadd.f32 %v6121_v57, %v4075_v53  ;;  %v2051_v57 = vld [vmem:[%s6609_s19 + $0x3bf8] sm:$0xff] }
 0xf0b   : > { %v4099_v61 = vmul.f32 %v2051_v57, %v2051_v57 }
 0xf0c   : > { %v6123_v63 = vadd.f32 %v6122_v60, %v4076_v56  ;;  %v2052_v60 = vld [vmem:[%s6609_s19 + $0x3c00] sm:$0xff] }
 0xf0d   : > { %v4100_v0 = vmul.f32 %v2052_v60, %v2052_v60 }
 0xf0e   : > { %v6124_v2 = vadd.f32 %v6123_v63, %v4077_v59  ;;  %v2053_v63 = vld [vmem:[%s6609_s19 + $0x3c08] sm:$0xff] }
 0xf0f   : > { %v4101_v3 = vmul.f32 %v2053_v63, %v2053_v63 }
 0xf10   : > { %v6125_v5 = vadd.f32 %v6124_v2, %v4078_v62  ;;  %v2054_v2 = vld [vmem:[%s6609_s19 + $0x3c10] sm:$0xff] }
 0xf11   : > { %v4102_v6 = vmul.f32 %v2054_v2, %v2054_v2 }
 0xf12   : > { %v6126_v8 = vadd.f32 %v6125_v5, %v4079_v1  ;;  %v2055_v5 = vld [vmem:[%s6609_s19 + $0x3c18] sm:$0xff] }
 0xf13   : > { %v4103_v9 = vmul.f32 %v2055_v5, %v2055_v5 }
 0xf14   : > { %v6127_v11 = vadd.f32 %v6126_v8, %v4080_v4  ;;  %v2056_v8 = vld [vmem:[%s6609_s19 + $0x3c20] sm:$0xff] }
 0xf15   : > { %v4104_v12 = vmul.f32 %v2056_v8, %v2056_v8 }
 0xf16   : > { %v6128_v14 = vadd.f32 %v6127_v11, %v4081_v7  ;;  %v2057_v11 = vld [vmem:[%s6609_s19 + $0x3c28] sm:$0xff] }
 0xf17   : > { %v4105_v15 = vmul.f32 %v2057_v11, %v2057_v11 }
 0xf18   : > { %v6129_v17 = vadd.f32 %v6128_v14, %v4082_v10  ;;  %v2058_v14 = vld [vmem:[%s6609_s19 + $0x3c30] sm:$0xff] }
 0xf19   : > { %v4106_v18 = vmul.f32 %v2058_v14, %v2058_v14 }
 0xf1a   : > { %v6130_v20 = vadd.f32 %v6129_v17, %v4083_v13  ;;  %v2059_v17 = vld [vmem:[%s6609_s19 + $0x3c38] sm:$0xff] }
 0xf1b   : > { %v4107_v21 = vmul.f32 %v2059_v17, %v2059_v17 }
 0xf1c   : > { %v6131_v23 = vadd.f32 %v6130_v20, %v4084_v16  ;;  %v2060_v20 = vld [vmem:[%s6609_s19 + $0x3c40] sm:$0xff] }
 0xf1d   : > { %v4108_v24 = vmul.f32 %v2060_v20, %v2060_v20 }
 0xf1e   : > { %v6132_v26 = vadd.f32 %v6131_v23, %v4085_v19  ;;  %v2061_v23 = vld [vmem:[%s6609_s19 + $0x3c48] sm:$0xff] }
 0xf1f   : > { %v4109_v27 = vmul.f32 %v2061_v23, %v2061_v23 }
 0xf20   : > { %v6133_v29 = vadd.f32 %v6132_v26, %v4086_v22  ;;  %v2062_v26 = vld [vmem:[%s6609_s19 + $0x3c50] sm:$0xff] }
 0xf21   : > { %v4110_v30 = vmul.f32 %v2062_v26, %v2062_v26 }
 0xf22   : > { %v6134_v32 = vadd.f32 %v6133_v29, %v4087_v25  ;;  %v2063_v29 = vld [vmem:[%s6609_s19 + $0x3c58] sm:$0xff] }
 0xf23   : > { %v4111_v33 = vmul.f32 %v2063_v29, %v2063_v29 }
 0xf24   : > { %v6135_v35 = vadd.f32 %v6134_v32, %v4088_v28  ;;  %v2064_v32 = vld [vmem:[%s6609_s19 + $0x3c60] sm:$0xff] }
 0xf25   : > { %v4112_v36 = vmul.f32 %v2064_v32, %v2064_v32 }
 0xf26   : > { %v6136_v38 = vadd.f32 %v6135_v35, %v4089_v31  ;;  %v2065_v35 = vld [vmem:[%s6609_s19 + $0x3c68] sm:$0xff] }
 0xf27   : > { %v4113_v39 = vmul.f32 %v2065_v35, %v2065_v35 }
 0xf28   : > { %v6137_v41 = vadd.f32 %v6136_v38, %v4090_v34  ;;  %v2066_v38 = vld [vmem:[%s6609_s19 + $0x3c70] sm:$0xff] }
 0xf29   : > { %v4114_v42 = vmul.f32 %v2066_v38, %v2066_v38 }
 0xf2a   : > { %v6138_v44 = vadd.f32 %v6137_v41, %v4091_v37  ;;  %v2067_v41 = vld [vmem:[%s6609_s19 + $0x3c78] sm:$0xff] }
 0xf2b   : > { %v4115_v45 = vmul.f32 %v2067_v41, %v2067_v41 }
 0xf2c   : > { %v6139_v47 = vadd.f32 %v6138_v44, %v4092_v40  ;;  %v2068_v44 = vld [vmem:[%s6609_s19 + $0x3c80] sm:$0xff] }
 0xf2d   : > { %v4116_v48 = vmul.f32 %v2068_v44, %v2068_v44 }
 0xf2e   : > { %v6140_v50 = vadd.f32 %v6139_v47, %v4093_v43  ;;  %v2069_v47 = vld [vmem:[%s6609_s19 + $0x3c88] sm:$0xff] }
 0xf2f   : > { %v4117_v51 = vmul.f32 %v2069_v47, %v2069_v47 }
 0xf30   : > { %v6141_v53 = vadd.f32 %v6140_v50, %v4094_v46  ;;  %v2070_v50 = vld [vmem:[%s6609_s19 + $0x3c90] sm:$0xff] }
 0xf31   : > { %v4118_v54 = vmul.f32 %v2070_v50, %v2070_v50 }
 0xf32   : > { %v6142_v56 = vadd.f32 %v6141_v53, %v4095_v49  ;;  %v2071_v53 = vld [vmem:[%s6609_s19 + $0x3c98] sm:$0xff] }
 0xf33   : > { %v4119_v57 = vmul.f32 %v2071_v53, %v2071_v53 }
 0xf34   : > { %v6143_v59 = vadd.f32 %v6142_v56, %v4096_v52  ;;  %v2072_v56 = vld [vmem:[%s6609_s19 + $0x3ca0] sm:$0xff] }
 0xf35   : > { %v4120_v60 = vmul.f32 %v2072_v56, %v2072_v56 }
 0xf36   : > { %v6144_v62 = vadd.f32 %v6143_v59, %v4097_v55  ;;  %v2073_v59 = vld [vmem:[%s6609_s19 + $0x3ca8] sm:$0xff] }
 0xf37   : > { %v4121_v63 = vmul.f32 %v2073_v59, %v2073_v59 }
 0xf38   : > { %v6145_v1 = vadd.f32 %v6144_v62, %v4098_v58  ;;  %v2074_v62 = vld [vmem:[%s6609_s19 + $0x3cb0] sm:$0xff] }
 0xf39   : > { %v4122_v2 = vmul.f32 %v2074_v62, %v2074_v62 }
 0xf3a   : > { %v6146_v4 = vadd.f32 %v6145_v1, %v4099_v61  ;;  %v2075_v1 = vld [vmem:[%s6609_s19 + $0x3cb8] sm:$0xff] }
 0xf3b   : > { %v4123_v5 = vmul.f32 %v2075_v1, %v2075_v1 }
 0xf3c   : > { %v6147_v7 = vadd.f32 %v6146_v4, %v4100_v0  ;;  %v2076_v4 = vld [vmem:[%s6609_s19 + $0x3cc0] sm:$0xff] }
 0xf3d   : > { %v4124_v8 = vmul.f32 %v2076_v4, %v2076_v4 }
 0xf3e   : > { %v6148_v10 = vadd.f32 %v6147_v7, %v4101_v3  ;;  %v2077_v7 = vld [vmem:[%s6609_s19 + $0x3cc8] sm:$0xff] }
 0xf3f   : > { %v4125_v11 = vmul.f32 %v2077_v7, %v2077_v7 }
 0xf40   : > { %v6149_v13 = vadd.f32 %v6148_v10, %v4102_v6  ;;  %v2078_v10 = vld [vmem:[%s6609_s19 + $0x3cd0] sm:$0xff] }
 0xf41   : > { %v4126_v14 = vmul.f32 %v2078_v10, %v2078_v10 }
 0xf42   : > { %v6150_v16 = vadd.f32 %v6149_v13, %v4103_v9  ;;  %v2079_v13 = vld [vmem:[%s6609_s19 + $0x3cd8] sm:$0xff] }
 0xf43   : > { %v4127_v17 = vmul.f32 %v2079_v13, %v2079_v13 }
 0xf44   : > { %v6151_v19 = vadd.f32 %v6150_v16, %v4104_v12  ;;  %v2080_v16 = vld [vmem:[%s6609_s19 + $0x3ce0] sm:$0xff] }
 0xf45   : > { %v4128_v20 = vmul.f32 %v2080_v16, %v2080_v16 }
 0xf46   : > { %v6152_v22 = vadd.f32 %v6151_v19, %v4105_v15  ;;  %v2081_v19 = vld [vmem:[%s6609_s19 + $0x3ce8] sm:$0xff] }
 0xf47   : > { %v4129_v23 = vmul.f32 %v2081_v19, %v2081_v19 }
 0xf48   : > { %v6153_v25 = vadd.f32 %v6152_v22, %v4106_v18  ;;  %v2082_v22 = vld [vmem:[%s6609_s19 + $0x3cf0] sm:$0xff] }
 0xf49   : > { %v4130_v26 = vmul.f32 %v2082_v22, %v2082_v22 }
 0xf4a   : > { %v6154_v28 = vadd.f32 %v6153_v25, %v4107_v21  ;;  %v2083_v25 = vld [vmem:[%s6609_s19 + $0x3cf8] sm:$0xff] }
 0xf4b   : > { %v4131_v29 = vmul.f32 %v2083_v25, %v2083_v25 }
 0xf4c   : > { %v6155_v31 = vadd.f32 %v6154_v28, %v4108_v24  ;;  %v2084_v28 = vld [vmem:[%s6609_s19 + $0x3d00] sm:$0xff] }
 0xf4d   : > { %v4132_v32 = vmul.f32 %v2084_v28, %v2084_v28 }
 0xf4e   : > { %v6156_v34 = vadd.f32 %v6155_v31, %v4109_v27  ;;  %v2085_v31 = vld [vmem:[%s6609_s19 + $0x3d08] sm:$0xff] }
 0xf4f   : > { %v4133_v35 = vmul.f32 %v2085_v31, %v2085_v31 }
 0xf50   : > { %v6157_v37 = vadd.f32 %v6156_v34, %v4110_v30  ;;  %v2086_v34 = vld [vmem:[%s6609_s19 + $0x3d10] sm:$0xff] }
 0xf51   : > { %v4134_v38 = vmul.f32 %v2086_v34, %v2086_v34 }
 0xf52   : > { %v6158_v40 = vadd.f32 %v6157_v37, %v4111_v33  ;;  %v2087_v37 = vld [vmem:[%s6609_s19 + $0x3d18] sm:$0xff] }
 0xf53   : > { %v4135_v41 = vmul.f32 %v2087_v37, %v2087_v37 }
 0xf54   : > { %v6159_v43 = vadd.f32 %v6158_v40, %v4112_v36  ;;  %v2088_v40 = vld [vmem:[%s6609_s19 + $0x3d20] sm:$0xff] }
 0xf55   : > { %v4136_v44 = vmul.f32 %v2088_v40, %v2088_v40 }
 0xf56   : > { %v6160_v46 = vadd.f32 %v6159_v43, %v4113_v39  ;;  %v2089_v43 = vld [vmem:[%s6609_s19 + $0x3d28] sm:$0xff] }
 0xf57   : > { %v4137_v47 = vmul.f32 %v2089_v43, %v2089_v43 }
 0xf58   : > { %v6161_v49 = vadd.f32 %v6160_v46, %v4114_v42  ;;  %v2090_v46 = vld [vmem:[%s6609_s19 + $0x3d30] sm:$0xff] }
 0xf59   : > { %v4138_v50 = vmul.f32 %v2090_v46, %v2090_v46 }
 0xf5a   : > { %v6162_v52 = vadd.f32 %v6161_v49, %v4115_v45  ;;  %v2091_v49 = vld [vmem:[%s6609_s19 + $0x3d38] sm:$0xff] }
 0xf5b   : > { %v4139_v53 = vmul.f32 %v2091_v49, %v2091_v49 }
 0xf5c   : > { %v6163_v55 = vadd.f32 %v6162_v52, %v4116_v48  ;;  %v2092_v52 = vld [vmem:[%s6609_s19 + $0x3d40] sm:$0xff] }
 0xf5d   : > { %v4140_v56 = vmul.f32 %v2092_v52, %v2092_v52 }
 0xf5e   : > { %v6164_v58 = vadd.f32 %v6163_v55, %v4117_v51  ;;  %v2093_v55 = vld [vmem:[%s6609_s19 + $0x3d48] sm:$0xff] }
 0xf5f   : > { %v4141_v59 = vmul.f32 %v2093_v55, %v2093_v55 }
 0xf60   : > { %v6165_v61 = vadd.f32 %v6164_v58, %v4118_v54  ;;  %v2094_v58 = vld [vmem:[%s6609_s19 + $0x3d50] sm:$0xff] }
 0xf61   : > { %v4142_v62 = vmul.f32 %v2094_v58, %v2094_v58 }
 0xf62   : > { %v6166_v0 = vadd.f32 %v6165_v61, %v4119_v57  ;;  %v2095_v61 = vld [vmem:[%s6609_s19 + $0x3d58] sm:$0xff] }
 0xf63   : > { %v4143_v1 = vmul.f32 %v2095_v61, %v2095_v61 }
 0xf64   : > { %v6167_v3 = vadd.f32 %v6166_v0, %v4120_v60  ;;  %v2096_v0 = vld [vmem:[%s6609_s19 + $0x3d60] sm:$0xff] }
 0xf65   : > { %v4144_v4 = vmul.f32 %v2096_v0, %v2096_v0 }
 0xf66   : > { %v6168_v6 = vadd.f32 %v6167_v3, %v4121_v63  ;;  %v2097_v3 = vld [vmem:[%s6609_s19 + $0x3d68] sm:$0xff] }
 0xf67   : > { %v4145_v7 = vmul.f32 %v2097_v3, %v2097_v3 }
 0xf68   : > { %v6169_v9 = vadd.f32 %v6168_v6, %v4122_v2  ;;  %v2098_v6 = vld [vmem:[%s6609_s19 + $0x3d70] sm:$0xff] }
 0xf69   : > { %v4146_v10 = vmul.f32 %v2098_v6, %v2098_v6 }
 0xf6a   : > { %v6170_v12 = vadd.f32 %v6169_v9, %v4123_v5  ;;  %v2099_v9 = vld [vmem:[%s6609_s19 + $0x3d78] sm:$0xff] }
 0xf6b   : > { %v4147_v13 = vmul.f32 %v2099_v9, %v2099_v9 }
 0xf6c   : > { %v6171_v15 = vadd.f32 %v6170_v12, %v4124_v8  ;;  %v2100_v12 = vld [vmem:[%s6609_s19 + $0x3d80] sm:$0xff] }
 0xf6d   : > { %v4148_v16 = vmul.f32 %v2100_v12, %v2100_v12 }
 0xf6e   : > { %v6172_v18 = vadd.f32 %v6171_v15, %v4125_v11  ;;  %v2101_v15 = vld [vmem:[%s6609_s19 + $0x3d88] sm:$0xff] }
 0xf6f   : > { %v4149_v19 = vmul.f32 %v2101_v15, %v2101_v15 }
 0xf70   : > { %v6173_v21 = vadd.f32 %v6172_v18, %v4126_v14  ;;  %v2102_v18 = vld [vmem:[%s6609_s19 + $0x3d90] sm:$0xff] }
 0xf71   : > { %v4150_v22 = vmul.f32 %v2102_v18, %v2102_v18 }
 0xf72   : > { %v6174_v24 = vadd.f32 %v6173_v21, %v4127_v17  ;;  %v2103_v21 = vld [vmem:[%s6609_s19 + $0x3d98] sm:$0xff] }
 0xf73   : > { %v4151_v25 = vmul.f32 %v2103_v21, %v2103_v21 }
 0xf74   : > { %v6175_v27 = vadd.f32 %v6174_v24, %v4128_v20  ;;  %v2104_v24 = vld [vmem:[%s6609_s19 + $0x3da0] sm:$0xff] }
 0xf75   : > { %v4152_v28 = vmul.f32 %v2104_v24, %v2104_v24 }
 0xf76   : > { %v6176_v30 = vadd.f32 %v6175_v27, %v4129_v23  ;;  %v2105_v27 = vld [vmem:[%s6609_s19 + $0x3da8] sm:$0xff] }
 0xf77   : > { %v4153_v31 = vmul.f32 %v2105_v27, %v2105_v27 }
 0xf78   : > { %v6177_v33 = vadd.f32 %v6176_v30, %v4130_v26  ;;  %v2106_v30 = vld [vmem:[%s6609_s19 + $0x3db0] sm:$0xff] }
 0xf79   : > { %v4154_v34 = vmul.f32 %v2106_v30, %v2106_v30 }
 0xf7a   : > { %v6178_v36 = vadd.f32 %v6177_v33, %v4131_v29  ;;  %v2107_v33 = vld [vmem:[%s6609_s19 + $0x3db8] sm:$0xff] }
 0xf7b   : > { %v4155_v37 = vmul.f32 %v2107_v33, %v2107_v33 }
 0xf7c   : > { %v6179_v39 = vadd.f32 %v6178_v36, %v4132_v32  ;;  %v2108_v36 = vld [vmem:[%s6609_s19 + $0x3dc0] sm:$0xff] }
 0xf7d   : > { %v4156_v40 = vmul.f32 %v2108_v36, %v2108_v36 }
 0xf7e   : > { %v6180_v42 = vadd.f32 %v6179_v39, %v4133_v35  ;;  %v2109_v39 = vld [vmem:[%s6609_s19 + $0x3dc8] sm:$0xff] }
 0xf7f   : > { %v4157_v43 = vmul.f32 %v2109_v39, %v2109_v39 }
 0xf80   : > { %v6181_v45 = vadd.f32 %v6180_v42, %v4134_v38  ;;  %v2110_v42 = vld [vmem:[%s6609_s19 + $0x3dd0] sm:$0xff] }
 0xf81   : > { %v4158_v46 = vmul.f32 %v2110_v42, %v2110_v42 }
 0xf82   : > { %v6182_v48 = vadd.f32 %v6181_v45, %v4135_v41  ;;  %v2111_v45 = vld [vmem:[%s6609_s19 + $0x3dd8] sm:$0xff] }
 0xf83   : > { %v4159_v49 = vmul.f32 %v2111_v45, %v2111_v45 }
 0xf84   : > { %v6183_v51 = vadd.f32 %v6182_v48, %v4136_v44  ;;  %v2112_v48 = vld [vmem:[%s6609_s19 + $0x3de0] sm:$0xff] }
 0xf85   : > { %v4160_v52 = vmul.f32 %v2112_v48, %v2112_v48 }
 0xf86   : > { %v6184_v54 = vadd.f32 %v6183_v51, %v4137_v47  ;;  %v2113_v51 = vld [vmem:[%s6609_s19 + $0x3de8] sm:$0xff] }
 0xf87   : > { %v4161_v55 = vmul.f32 %v2113_v51, %v2113_v51 }
 0xf88   : > { %v6185_v57 = vadd.f32 %v6184_v54, %v4138_v50  ;;  %v2114_v54 = vld [vmem:[%s6609_s19 + $0x3df0] sm:$0xff] }
 0xf89   : > { %v4162_v58 = vmul.f32 %v2114_v54, %v2114_v54 }
 0xf8a   : > { %v6186_v60 = vadd.f32 %v6185_v57, %v4139_v53  ;;  %v2115_v57 = vld [vmem:[%s6609_s19 + $0x3df8] sm:$0xff] }
 0xf8b   : > { %v4163_v61 = vmul.f32 %v2115_v57, %v2115_v57 }
 0xf8c   : > { %v6187_v63 = vadd.f32 %v6186_v60, %v4140_v56  ;;  %v2116_v60 = vld [vmem:[%s6609_s19 + $0x3e00] sm:$0xff] }
 0xf8d   : > { %v4164_v0 = vmul.f32 %v2116_v60, %v2116_v60 }
 0xf8e   : > { %v6188_v2 = vadd.f32 %v6187_v63, %v4141_v59  ;;  %v2117_v63 = vld [vmem:[%s6609_s19 + $0x3e08] sm:$0xff] }
 0xf8f   : > { %v4165_v3 = vmul.f32 %v2117_v63, %v2117_v63 }
 0xf90   : > { %v6189_v5 = vadd.f32 %v6188_v2, %v4142_v62  ;;  %v2118_v2 = vld [vmem:[%s6609_s19 + $0x3e10] sm:$0xff] }
 0xf91   : > { %v4166_v6 = vmul.f32 %v2118_v2, %v2118_v2 }
 0xf92   : > { %v6190_v8 = vadd.f32 %v6189_v5, %v4143_v1  ;;  %v2119_v5 = vld [vmem:[%s6609_s19 + $0x3e18] sm:$0xff] }
 0xf93   : > { %v4167_v9 = vmul.f32 %v2119_v5, %v2119_v5 }
 0xf94   : > { %v6191_v11 = vadd.f32 %v6190_v8, %v4144_v4  ;;  %v2120_v8 = vld [vmem:[%s6609_s19 + $0x3e20] sm:$0xff] }
 0xf95   : > { %v4168_v12 = vmul.f32 %v2120_v8, %v2120_v8 }
 0xf96   : > { %v6192_v14 = vadd.f32 %v6191_v11, %v4145_v7  ;;  %v2121_v11 = vld [vmem:[%s6609_s19 + $0x3e28] sm:$0xff] }
 0xf97   : > { %v4169_v15 = vmul.f32 %v2121_v11, %v2121_v11 }
 0xf98   : > { %v6193_v17 = vadd.f32 %v6192_v14, %v4146_v10  ;;  %v2122_v14 = vld [vmem:[%s6609_s19 + $0x3e30] sm:$0xff] }
 0xf99   : > { %v4170_v18 = vmul.f32 %v2122_v14, %v2122_v14 }
 0xf9a   : > { %v6194_v20 = vadd.f32 %v6193_v17, %v4147_v13  ;;  %v2123_v17 = vld [vmem:[%s6609_s19 + $0x3e38] sm:$0xff] }
 0xf9b   : > { %v4171_v21 = vmul.f32 %v2123_v17, %v2123_v17 }
 0xf9c   : > { %v6195_v23 = vadd.f32 %v6194_v20, %v4148_v16  ;;  %v2124_v20 = vld [vmem:[%s6609_s19 + $0x3e40] sm:$0xff] }
 0xf9d   : > { %v4172_v24 = vmul.f32 %v2124_v20, %v2124_v20 }
 0xf9e   : > { %v6196_v26 = vadd.f32 %v6195_v23, %v4149_v19  ;;  %v2125_v23 = vld [vmem:[%s6609_s19 + $0x3e48] sm:$0xff] }
 0xf9f   : > { %v4173_v27 = vmul.f32 %v2125_v23, %v2125_v23 }
 0xfa0   : > { %v6197_v29 = vadd.f32 %v6196_v26, %v4150_v22  ;;  %v2126_v26 = vld [vmem:[%s6609_s19 + $0x3e50] sm:$0xff] }
 0xfa1   : > { %v4174_v30 = vmul.f32 %v2126_v26, %v2126_v26 }
 0xfa2   : > { %v6198_v32 = vadd.f32 %v6197_v29, %v4151_v25  ;;  %v2127_v29 = vld [vmem:[%s6609_s19 + $0x3e58] sm:$0xff] }
 0xfa3   : > { %v4175_v33 = vmul.f32 %v2127_v29, %v2127_v29 }
 0xfa4   : > { %v6199_v35 = vadd.f32 %v6198_v32, %v4152_v28  ;;  %v2128_v32 = vld [vmem:[%s6609_s19 + $0x3e60] sm:$0xff] }
 0xfa5   : > { %v4176_v36 = vmul.f32 %v2128_v32, %v2128_v32 }
 0xfa6   : > { %v6200_v38 = vadd.f32 %v6199_v35, %v4153_v31  ;;  %v2129_v35 = vld [vmem:[%s6609_s19 + $0x3e68] sm:$0xff] }
 0xfa7   : > { %v4177_v39 = vmul.f32 %v2129_v35, %v2129_v35 }
 0xfa8   : > { %v6201_v41 = vadd.f32 %v6200_v38, %v4154_v34  ;;  %v2130_v38 = vld [vmem:[%s6609_s19 + $0x3e70] sm:$0xff] }
 0xfa9   : > { %v4178_v42 = vmul.f32 %v2130_v38, %v2130_v38 }
 0xfaa   : > { %v6202_v44 = vadd.f32 %v6201_v41, %v4155_v37  ;;  %v2131_v41 = vld [vmem:[%s6609_s19 + $0x3e78] sm:$0xff] }
 0xfab   : > { %v4179_v45 = vmul.f32 %v2131_v41, %v2131_v41 }
 0xfac   : > { %v6203_v47 = vadd.f32 %v6202_v44, %v4156_v40  ;;  %v2132_v44 = vld [vmem:[%s6609_s19 + $0x3e80] sm:$0xff] }
 0xfad   : > { %v4180_v48 = vmul.f32 %v2132_v44, %v2132_v44 }
 0xfae   : > { %v6204_v50 = vadd.f32 %v6203_v47, %v4157_v43  ;;  %v2133_v47 = vld [vmem:[%s6609_s19 + $0x3e88] sm:$0xff] }
 0xfaf   : > { %v4181_v51 = vmul.f32 %v2133_v47, %v2133_v47 }
 0xfb0   : > { %v6205_v53 = vadd.f32 %v6204_v50, %v4158_v46  ;;  %v2134_v50 = vld [vmem:[%s6609_s19 + $0x3e90] sm:$0xff] }
 0xfb1   : > { %v4182_v54 = vmul.f32 %v2134_v50, %v2134_v50 }
 0xfb2   : > { %v6206_v56 = vadd.f32 %v6205_v53, %v4159_v49  ;;  %v2135_v53 = vld [vmem:[%s6609_s19 + $0x3e98] sm:$0xff] }
 0xfb3   : > { %v4183_v57 = vmul.f32 %v2135_v53, %v2135_v53 }
 0xfb4   : > { %v6207_v59 = vadd.f32 %v6206_v56, %v4160_v52  ;;  %v2136_v56 = vld [vmem:[%s6609_s19 + $0x3ea0] sm:$0xff] }
 0xfb5   : > { %v4184_v60 = vmul.f32 %v2136_v56, %v2136_v56 }
 0xfb6   : > { %v6208_v62 = vadd.f32 %v6207_v59, %v4161_v55  ;;  %v2137_v59 = vld [vmem:[%s6609_s19 + $0x3ea8] sm:$0xff] }
 0xfb7   : > { %v4185_v63 = vmul.f32 %v2137_v59, %v2137_v59 }
 0xfb8   : > { %v6209_v1 = vadd.f32 %v6208_v62, %v4162_v58  ;;  %v2138_v62 = vld [vmem:[%s6609_s19 + $0x3eb0] sm:$0xff] }
 0xfb9   : > { %v4186_v2 = vmul.f32 %v2138_v62, %v2138_v62 }
 0xfba   : > { %v6210_v4 = vadd.f32 %v6209_v1, %v4163_v61  ;;  %v2139_v1 = vld [vmem:[%s6609_s19 + $0x3eb8] sm:$0xff] }
 0xfbb   : > { %v4187_v5 = vmul.f32 %v2139_v1, %v2139_v1 }
 0xfbc   : > { %v6211_v7 = vadd.f32 %v6210_v4, %v4164_v0  ;;  %v2140_v4 = vld [vmem:[%s6609_s19 + $0x3ec0] sm:$0xff] }
 0xfbd   : > { %v4188_v8 = vmul.f32 %v2140_v4, %v2140_v4 }
 0xfbe   : > { %v6212_v10 = vadd.f32 %v6211_v7, %v4165_v3  ;;  %v2141_v7 = vld [vmem:[%s6609_s19 + $0x3ec8] sm:$0xff] }
 0xfbf   : > { %v4189_v11 = vmul.f32 %v2141_v7, %v2141_v7 }
 0xfc0   : > { %v6213_v13 = vadd.f32 %v6212_v10, %v4166_v6  ;;  %v2142_v10 = vld [vmem:[%s6609_s19 + $0x3ed0] sm:$0xff] }
 0xfc1   : > { %v4190_v14 = vmul.f32 %v2142_v10, %v2142_v10 }
 0xfc2   : > { %v6214_v16 = vadd.f32 %v6213_v13, %v4167_v9  ;;  %v2143_v13 = vld [vmem:[%s6609_s19 + $0x3ed8] sm:$0xff] }
 0xfc3   : > { %v4191_v17 = vmul.f32 %v2143_v13, %v2143_v13 }
 0xfc4   : > { %v6215_v19 = vadd.f32 %v6214_v16, %v4168_v12  ;;  %v2144_v16 = vld [vmem:[%s6609_s19 + $0x3ee0] sm:$0xff] }
 0xfc5   : > { %v4192_v20 = vmul.f32 %v2144_v16, %v2144_v16 }
 0xfc6   : > { %v6216_v22 = vadd.f32 %v6215_v19, %v4169_v15  ;;  %v2145_v19 = vld [vmem:[%s6609_s19 + $0x3ee8] sm:$0xff] }
 0xfc7   : > { %v4193_v23 = vmul.f32 %v2145_v19, %v2145_v19 }
 0xfc8   : > { %v6217_v25 = vadd.f32 %v6216_v22, %v4170_v18  ;;  %v2146_v22 = vld [vmem:[%s6609_s19 + $0x3ef0] sm:$0xff] }
 0xfc9   : > { %v4194_v26 = vmul.f32 %v2146_v22, %v2146_v22 }
 0xfca   : > { %v6218_v28 = vadd.f32 %v6217_v25, %v4171_v21  ;;  %v2147_v25 = vld [vmem:[%s6609_s19 + $0x3ef8] sm:$0xff] }
 0xfcb   : > { %v4195_v29 = vmul.f32 %v2147_v25, %v2147_v25 }
 0xfcc   : > { %v6219_v31 = vadd.f32 %v6218_v28, %v4172_v24  ;;  %v2148_v28 = vld [vmem:[%s6609_s19 + $0x3f00] sm:$0xff] }
 0xfcd   : > { %v4196_v32 = vmul.f32 %v2148_v28, %v2148_v28 }
 0xfce   : > { %v6220_v34 = vadd.f32 %v6219_v31, %v4173_v27  ;;  %v2149_v31 = vld [vmem:[%s6609_s19 + $0x3f08] sm:$0xff] }
 0xfcf   : > { %v4197_v35 = vmul.f32 %v2149_v31, %v2149_v31 }
 0xfd0   : > { %v6221_v37 = vadd.f32 %v6220_v34, %v4174_v30  ;;  %v2150_v34 = vld [vmem:[%s6609_s19 + $0x3f10] sm:$0xff] }
 0xfd1   : > { %v4198_v38 = vmul.f32 %v2150_v34, %v2150_v34 }
 0xfd2   : > { %v6222_v40 = vadd.f32 %v6221_v37, %v4175_v33  ;;  %v2151_v37 = vld [vmem:[%s6609_s19 + $0x3f18] sm:$0xff] }
 0xfd3   : > { %v4199_v41 = vmul.f32 %v2151_v37, %v2151_v37 }
 0xfd4   : > { %v6223_v43 = vadd.f32 %v6222_v40, %v4176_v36  ;;  %v2152_v40 = vld [vmem:[%s6609_s19 + $0x3f20] sm:$0xff] }
 0xfd5   : > { %v4200_v44 = vmul.f32 %v2152_v40, %v2152_v40 }
 0xfd6   : > { %v6224_v46 = vadd.f32 %v6223_v43, %v4177_v39  ;;  %v2153_v43 = vld [vmem:[%s6609_s19 + $0x3f28] sm:$0xff] }
 0xfd7   : > { %v4201_v47 = vmul.f32 %v2153_v43, %v2153_v43 }
 0xfd8   : > { %v6225_v49 = vadd.f32 %v6224_v46, %v4178_v42  ;;  %v2154_v46 = vld [vmem:[%s6609_s19 + $0x3f30] sm:$0xff] }
 0xfd9   : > { %v4202_v50 = vmul.f32 %v2154_v46, %v2154_v46 }
 0xfda   : > { %v6226_v52 = vadd.f32 %v6225_v49, %v4179_v45  ;;  %v2155_v49 = vld [vmem:[%s6609_s19 + $0x3f38] sm:$0xff] }
 0xfdb   : > { %v4203_v53 = vmul.f32 %v2155_v49, %v2155_v49 }
 0xfdc   : > { %v6227_v55 = vadd.f32 %v6226_v52, %v4180_v48  ;;  %v2156_v52 = vld [vmem:[%s6609_s19 + $0x3f40] sm:$0xff] }
 0xfdd   : > { %v4204_v56 = vmul.f32 %v2156_v52, %v2156_v52 }
 0xfde   : > { %v6228_v58 = vadd.f32 %v6227_v55, %v4181_v51  ;;  %v2157_v55 = vld [vmem:[%s6609_s19 + $0x3f48] sm:$0xff] }
 0xfdf   : > { %v4205_v59 = vmul.f32 %v2157_v55, %v2157_v55 }
 0xfe0   : > { %v6229_v61 = vadd.f32 %v6228_v58, %v4182_v54  ;;  %v2158_v58 = vld [vmem:[%s6609_s19 + $0x3f50] sm:$0xff] }
 0xfe1   : > { %v4206_v62 = vmul.f32 %v2158_v58, %v2158_v58 }
 0xfe2   : > { %v6230_v0 = vadd.f32 %v6229_v61, %v4183_v57  ;;  %v2159_v61 = vld [vmem:[%s6609_s19 + $0x3f58] sm:$0xff] }
 0xfe3   : > { %v4207_v1 = vmul.f32 %v2159_v61, %v2159_v61 }
 0xfe4   : > { %v6231_v3 = vadd.f32 %v6230_v0, %v4184_v60  ;;  %v2160_v0 = vld [vmem:[%s6609_s19 + $0x3f60] sm:$0xff] }
 0xfe5   : > { %v4208_v4 = vmul.f32 %v2160_v0, %v2160_v0 }
 0xfe6   : > { %v6232_v6 = vadd.f32 %v6231_v3, %v4185_v63  ;;  %v2161_v3 = vld [vmem:[%s6609_s19 + $0x3f68] sm:$0xff] }
 0xfe7   : > { %v4209_v7 = vmul.f32 %v2161_v3, %v2161_v3 }
 0xfe8   : > { %v6233_v9 = vadd.f32 %v6232_v6, %v4186_v2  ;;  %v2162_v6 = vld [vmem:[%s6609_s19 + $0x3f70] sm:$0xff] }
 0xfe9   : > { %v4210_v10 = vmul.f32 %v2162_v6, %v2162_v6 }
 0xfea   : > { %v6234_v12 = vadd.f32 %v6233_v9, %v4187_v5  ;;  %v2163_v9 = vld [vmem:[%s6609_s19 + $0x3f78] sm:$0xff] }
 0xfeb   : > { %v4211_v13 = vmul.f32 %v2163_v9, %v2163_v9 }
 0xfec   : > { %v6235_v15 = vadd.f32 %v6234_v12, %v4188_v8  ;;  %v2164_v12 = vld [vmem:[%s6609_s19 + $0x3f80] sm:$0xff] }
 0xfed   : > { %v4212_v16 = vmul.f32 %v2164_v12, %v2164_v12 }
 0xfee   : > { %v6236_v18 = vadd.f32 %v6235_v15, %v4189_v11  ;;  %v2165_v15 = vld [vmem:[%s6609_s19 + $0x3f88] sm:$0xff] }
 0xfef   : > { %v4213_v19 = vmul.f32 %v2165_v15, %v2165_v15 }
 0xff0   : > { %v6237_v21 = vadd.f32 %v6236_v18, %v4190_v14  ;;  %v2166_v18 = vld [vmem:[%s6609_s19 + $0x3f90] sm:$0xff] }
 0xff1   : > { %v4214_v22 = vmul.f32 %v2166_v18, %v2166_v18 }
 0xff2   : > { %v6238_v24 = vadd.f32 %v6237_v21, %v4191_v17  ;;  %v2167_v21 = vld [vmem:[%s6609_s19 + $0x3f98] sm:$0xff] }
 0xff3   : > { %v4215_v25 = vmul.f32 %v2167_v21, %v2167_v21 }
 0xff4   : > { %v6239_v27 = vadd.f32 %v6238_v24, %v4192_v20  ;;  %v2168_v24 = vld [vmem:[%s6609_s19 + $0x3fa0] sm:$0xff] }
 0xff5   : > { %v4216_v28 = vmul.f32 %v2168_v24, %v2168_v24 }
 0xff6   : > { %v6240_v30 = vadd.f32 %v6239_v27, %v4193_v23  ;;  %v2169_v27 = vld [vmem:[%s6609_s19 + $0x3fa8] sm:$0xff] }
 0xff7   : > { %v4217_v31 = vmul.f32 %v2169_v27, %v2169_v27 }
 0xff8   : > { %v6241_v33 = vadd.f32 %v6240_v30, %v4194_v26  ;;  %v2170_v30 = vld [vmem:[%s6609_s19 + $0x3fb0] sm:$0xff] }
 0xff9   : > { %v4218_v34 = vmul.f32 %v2170_v30, %v2170_v30 }
 0xffa   : > { %v6242_v36 = vadd.f32 %v6241_v33, %v4195_v29  ;;  %v2171_v33 = vld [vmem:[%s6609_s19 + $0x3fb8] sm:$0xff] }
 0xffb   : > { %v4219_v37 = vmul.f32 %v2171_v33, %v2171_v33 }
 0xffc   : > { %v6243_v39 = vadd.f32 %v6242_v36, %v4196_v32  ;;  %v2172_v36 = vld [vmem:[%s6609_s19 + $0x3fc0] sm:$0xff] }
 0xffd   : > { %v4220_v40 = vmul.f32 %v2172_v36, %v2172_v36 }
 0xffe   : > { %v6244_v42 = vadd.f32 %v6243_v39, %v4197_v35  ;;  %v2173_v39 = vld [vmem:[%s6609_s19 + $0x3fc8] sm:$0xff] }
 0xfff   : > { %v4221_v43 = vmul.f32 %v2173_v39, %v2173_v39 }
0x1000   : > { %v6245_v45 = vadd.f32 %v6244_v42, %v4198_v38  ;;  %v2174_v42 = vld [vmem:[%s6609_s19 + $0x3fd0] sm:$0xff] }
0x1001   : > { %v4222_v46 = vmul.f32 %v2174_v42, %v2174_v42 }
0x1002   : > { %v6246_v48 = vadd.f32 %v6245_v45, %v4199_v41  ;;  %v2175_v45 = vld [vmem:[%s6609_s19 + $0x3fd8] sm:$0xff] }
0x1003   : > { %v4223_v49 = vmul.f32 %v2175_v45, %v2175_v45 }
0x1004   : > { %v6247_v51 = vadd.f32 %v6246_v48, %v4200_v44  ;;  %v2176_v48 = vld [vmem:[%s6609_s19 + $0x3fe0] sm:$0xff] }
0x1005   : > { %v4224_v52 = vmul.f32 %v2176_v48, %v2176_v48 }
0x1006   : > { %v6248_v54 = vadd.f32 %v6247_v51, %v4201_v47  ;;  %v2177_v51 = vld [vmem:[%s6609_s19 + $0x3fe8] sm:$0xff] }
0x1007   : > { %v4225_v55 = vmul.f32 %v2177_v51, %v2177_v51 }
0x1008   : > { %v6249_v57 = vadd.f32 %v6248_v54, %v4202_v50  ;;  %v2178_v54 = vld [vmem:[%s6609_s19 + $0x3ff0] sm:$0xff] }
0x1009   : > { %v4226_v58 = vmul.f32 %v2178_v54, %v2178_v54 }
0x100a   : > { %v6250_v60 = vadd.f32 %v6249_v57, %v4203_v53  ;;  %v2179_v57 = vld [vmem:[%s6609_s19 + $0x3ff8] sm:$0xff] }
0x100c   : > { %v6251_v63 = vadd.f32 %v6250_v60, %v4204_v56  ;;  %v4227_v60 = vmul.f32 %v2179_v57, %v2179_v57 }
0x100e   : > { %v6252_v2 = vadd.f32 %v6251_v63, %v4205_v59 }
0x1010   : > { %v6253_v5 = vadd.f32 %v6252_v2, %v4206_v62 }
0x1012   : > { %v6254_v8 = vadd.f32 %v6253_v5, %v4207_v1 }
0x1014   : > { %v6255_v11 = vadd.f32 %v6254_v8, %v4208_v4 }
0x1016   : > { %v6256_v14 = vadd.f32 %v6255_v11, %v4209_v7  ;;  %v131_v7 = vld [vmem:[#allocation5] sm:$0x1] }
0x1018   : > { %v6257_v17 = vadd.f32 %v6256_v14, %v4210_v10 }
0x101a   : > { %v6258_v20 = vadd.f32 %v6257_v17, %v4211_v13 }
0x101c   : > { %v6259_v23 = vadd.f32 %v6258_v20, %v4212_v16 }
0x101e   : > { %v6260_v26 = vadd.f32 %v6259_v23, %v4213_v19 }
0x1020   : > { %v6261_v29 = vadd.f32 %v6260_v26, %v4214_v22 }
0x1022   : > { %v6262_v32 = vadd.f32 %v6261_v29, %v4215_v25 }
0x1024   : > { %v6263_v35 = vadd.f32 %v6262_v32, %v4216_v28 }
0x1026   : > { %v6264_v38 = vadd.f32 %v6263_v35, %v4217_v31 }
0x1028   : > { %v6265_v41 = vadd.f32 %v6264_v38, %v4218_v34 }
0x102a   : > { %v6266_v44 = vadd.f32 %v6265_v41, %v4219_v37 }
0x102c   : > { %v6267_v47 = vadd.f32 %v6266_v44, %v4220_v40 }
0x102e   : > { %v6268_v50 = vadd.f32 %v6267_v47, %v4221_v43 }
0x1030   : > { %v6269_v53 = vadd.f32 %v6268_v50, %v4222_v46 }
0x1032   : > { %v6270_v56 = vadd.f32 %v6269_v53, %v4223_v49 }
0x1034   : > { %v6271_v59 = vadd.f32 %v6270_v56, %v4224_v52 }
0x1036   : > { %v6272_v61 = vadd.f32 %v6271_v59, %v4225_v55 }
0x1038   : > { %v6273_v62 = vadd.f32 %v6272_v61, %v4226_v58 }
0x103a   : > { %v6274_v63 = vadd.f32 %v6273_v62, %v4227_v60 }
0x103c   : > { %6275 = vadd.xlane.f32.xlu0 %v6274_v63 }
0x10c9   : > { %v6276_v0 = vpop.xlane.xlu0 %6275 }
0x10ca   : > { %v6277_v1 = vrot.slane %v6276_v0, 4 }
0x10cc   : > { %v6278_v2 = vadd.f32 %v6277_v1, %v6276_v0 }
0x10ce   : > { %v6279_v3 = vrot.slane %v6278_v2, 2 }
0x10d0   : > { %v6280_v4 = vadd.f32 %v6279_v3, %v6278_v2 }
0x10d2   : > { %v6281_v5 = vrot.slane %v6280_v4, 1 }
0x10d4   : > { %v6282_v6 = vadd.f32 %v6281_v5, %v6280_v4 }
0x10d6   : > { %6361 = vpush %v6282_v6 }
0x1107   : > { %s6362_s20 = spop %6361 }
0x1108   : > { %v6284_v8 = vstv %s6362_s20 }
0x1109   : > { %v6285_v9 = vadd.f32 %v6284_v8, %v131_v7 }
0x110b   : > { %6287 = vst.msk [vmem:[#allocation5] sm:$0x1] %vm6286_vm1, %v6285_v9 }
0x110c   : > { %6455 = shalt.err (!%p6452_p0)
}
0x110d   : > { %s6456_s25 = scalar_lea.hbm %s8701_s1, 16 }
0x110e   : > { %p6457_p1 = scmp.ne.s32.totalorder %s8701_s1, %s6456_s25  ;;  %p6462_p13 = scmp.lt.u32.totalorder %s6456_s25, %s8701_s1 }
0x1110   : > { %p6458_p2 = pnand %p6457_p1, %p6374_p7 }
0x1112   : > { %p6459_p11 = pneg %p6458_p2 }
0x1114   : > { %p6464_p3 = pnand %p6462_p13, %p6459_p11 }
0x1116   : > { %6467 = shalt.err (!%p6464_p3)
}
0x1117   : > { %6366 = dma.vmem_to_hbm [thread:$0]  (%p6374_p7), %s6296_s15, 16, %s8701_s1, [#allocation4]  }
0x1118   : > { %6489 = dma.done.wait (%p6374_p7), [#allocation4], 16  }
0x1119   : > { %6491 = vsyncadd (%p6374_p7), [#allocation4], 4294967280 }
0x111a PF: > { %p12_p9 = scmp.ge.s32.totalorder %s6545_s11, 10   ;;  %s8705_s6 = smov %s6498_s7 }
0x111b   : > { %s8706_s7 = smov %s6502_s8  ;;  %s8707_s8 = smov %s6555_s14 }
0x111c   : > { %s8708_s9 = smov %s6545_s11  ;;  %14 = sbr.rel (!%p12_p9) target bundleno = 4 (0x4), region = 65 }
0x1123   :  { %6308 = vsyncpa [#allocation3], 1 }
0x1124   :  { %6310 = vsyncpa [#allocation3 + $0x1], 1 }
0x1125   :  { %6311 = vsyncpa [#allocation4], 1 }
0x1126   :  { %6313 = vsyncpa [#allocation4 + $0x1], 1 }

</bundles_post_ra>
